<compile_context>
chip_gen: v6e
topology: v6e:2x2x1
jax: 0.10.0
libtpu: 0.0.40
codegen_flags: <defaults>
</compile_context>

<pallas_src>
import numpy as np
import jax
import jax.numpy as jnp
from jax import lax
from jax.experimental import pallas as pl
from jax.experimental.pallas import tpu as pltpu


# ----------------------------- Pallas kernel --------------------------------

def _make_conv_bn_relu_kernel(b_tile, kh, kw, dilation, hout, wout, cin, cout):
    """Fused conv(no bias) + folded-BN + ReLU for a batch tile of NHWC images."""
    hw = hout * wout

    def kernel(xp_ref, w_ref, s_ref, t_ref, o_ref, slab_ref):
        # xp_ref  : (b_tile, Hp, Wp, Cin)       bf16 padded input images
        # w_ref   : (kh*kw*Cin, Cout)           bf16 im2col weights (resident)
        # s_ref   : (Cout, 1)                   f32 folded BN scale
        # t_ref   : (Cout, 1)                   f32 folded BN shift
        # o_ref   : (b_tile, Cout, Hout*Wout)   f32 lane-dense output
        # slab_ref: (b_tile*hw, kh*kw*Cin)      bf16 im2col scratch (VMEM)

        # ---- in-kernel im2col: build the slab once (one pass of copies) ----
        for b in range(b_tile):
            for dy in range(kh):
                for dx in range(kw):
                    t = dy * kw + dx
                    patch = xp_ref[b,
                                   dy * dilation: dy * dilation + hout,
                                   dx * dilation: dx * dilation + wout, :]
                    slab_ref[b * hw:(b + 1) * hw,
                             t * cin:(t + 1) * cin] = patch.reshape(hw, cin)

        # ---- one big MXU matmul: (M, K) @ (K, Cout), f32 accumulation ------
        acc = jnp.dot(slab_ref[...], w_ref[...],
                      preferred_element_type=jnp.float32)   # (b_tile*hw, Cout)

        # ---- lane-dense epilogue: XLU transpose + folded BN + ReLU ---------
        s = s_ref[...]    # (Cout, 1)
        t0 = t_ref[...]   # (Cout, 1)
        for b in range(b_tile):
            yb = jnp.transpose(acc[b * hw:(b + 1) * hw, :])  # (Cout, hw)
            o_ref[b] = jnp.maximum(yb * s + t0, 0.0)

    return kernel


# ------------------------------- wrapper -------------------------------------

def basic_conv2d_forward(params, x, *, stride=1, padding=1, dilation=1,
                         vmem_budget_bytes=8 << 20):
    """BasicConv2d forward.  x: [B, Cin, H, W] (NCHW), returns NCHW."""
    if stride != 1:
        raise NotImplementedError("stride != 1 not supported by this kernel")

    w = params['w']                          # (Cout, Cin, kh, kw), PyTorch OIHW
    cout, cin, kh, kw = w.shape
    B, Cin, H, W = x.shape
    assert Cin == cin
    hout = H + 2 * padding - dilation * (kh - 1)
    wout = W + 2 * padding - dilation * (kw - 1)
    assert hout > 0 and wout > 0
    Hp, Wp = H + 2 * padding, W + 2 * padding
    hw = hout * wout
    K = kh * kw * cin

    # Fold BN (inference / running stats) into per-channel scale + shift,
    # laid out (Cout, 1) so it broadcasts over the lane-dense (Cout, hw) tile.
    eps = 1e-5
    inv_std = 1.0 / jnp.sqrt(params['var'] + eps)
    scale = (params['gamma'] * inv_std).reshape(cout, 1).astype(jnp.float32)
    shift = (params['beta'] - params['mean'] * params['gamma'] * inv_std
             ).reshape(cout, 1).astype(jnp.float32)

    # OIHW -> HWIO -> (kh*kw*Cin, Cout), bf16 for the MXU.
    w2 = jnp.transpose(w, (2, 3, 1, 0)).reshape(K, cout).astype(jnp.bfloat16)

    # NCHW -> padded NHWC, bf16 (the only XLA-side layout glue; output needs
    # no transpose at all since the kernel writes (Cout, H*W) per image).
    xp = jnp.transpose(x, (0, 2, 3, 1)).astype(jnp.bfloat16)
    xp = jnp.pad(xp, ((0, 0), (padding, padding), (padding, padding), (0, 0)))

    # Largest batch tile that divides B and fits the per-step VMEM budget.
    per_img = Hp * Wp * cin * 2 + hw * K * 2 + hw * cout * 4
    b_tile = B
    while b_tile > 1 and (B % b_tile != 0 or b_tile * per_img > vmem_budget_bytes):
        b_tile -= 1
    nb = B // b_tile

    kernel = _make_conv_bn_relu_kernel(b_tile, kh, kw, dilation,
                                       hout, wout, cin, cout)

    flops = 2 * B * hw * K * cout
    bytes_accessed = (xp.size * 2 + w2.size * 2 + B * cout * hw * 4
                      + 2 * cout * 4)

    out = pl.pallas_call(
        kernel,
        out_shape=jax.ShapeDtypeStruct((B, cout, hw), jnp.float32),
        grid_spec=pltpu.PrefetchScalarGridSpec(
            num_scalar_prefetch=0,
            grid=(nb,),                                  # whole batch tile / step
            in_specs=[
                pl.BlockSpec((b_tile, Hp, Wp, cin), lambda b: (b, 0, 0, 0)),
                pl.BlockSpec((K, cout), lambda b: (0, 0)),      # resident weights
                pl.BlockSpec((cout, 1), lambda b: (0, 0)),      # resident scale
                pl.BlockSpec((cout, 1), lambda b: (0, 0)),      # resident shift
            ],
            out_specs=pl.BlockSpec((b_tile, cout, hw), lambda b: (b, 0, 0)),
            scratch_shapes=[pltpu.VMEM((b_tile * hw, K), jnp.bfloat16)],
        ),
        # Note: on v7x, splitting across the 2 TensorCores needs CORE_PARALLEL
        # (or pl.core_map) with >=2 batch tiles; at this size one big step wins.
        compiler_params=pltpu.CompilerParams(
            dimension_semantics=("parallel",)),
        cost_estimate=pl.CostEstimate(
            flops=flops, transcendentals=0, bytes_accessed=bytes_accessed),
    )(xp, w2, scale, shift)

    # (B, Cout, Hout*Wout) -> NCHW is a free reshape (no transpose).
    return out.reshape(B, cout, hout, wout)


# --------------------------- pure-JAX reference -------------------------------

def basic_conv2d_reference(params, x, *, stride=1, padding=1, dilation=1):
    w = params['w'].astype(jnp.float32)
    y = lax.conv_general_dilated(
        x.astype(jnp.float32), w,
        window_strides=(stride, stride),
        padding=((padding, padding), (padding, padding)),
        rhs_dilation=(dilation, dilation),
        dimension_numbers=('NCHW', 'OIHW', 'NCHW'),
        precision=lax.Precision.HIGHEST)
    eps = 1e-5
    s = (params['gamma'] / jnp.sqrt(params['var'] + eps)).reshape(1, -1, 1, 1)
    y = (y - params['mean'].reshape(1, -1, 1, 1)) * s + params['beta'].reshape(1, -1, 1, 1)
    return jnp.maximum(y, 0.0)


# ------------------------------- params ---------------------------------------

def init_params(key, in_planes, out_planes, kernel_size):
    k1, k2, k3, k4, k5 = jax.random.split(key, 5)
    fan_in = in_planes * kernel_size * kernel_size
    return dict(
        w=jax.random.normal(
            k1, (out_planes, in_planes, kernel_size, kernel_size),
            jnp.float32) / np.sqrt(fan_in),
        gamma=1.0 + 0.1 * jax.random.normal(k2, (out_planes,), jnp.float32),
        beta=0.05 * jax.random.normal(k3, (out_planes,), jnp.float32),
        mean=0.02 * jax.random.normal(k4, (out_planes,), jnp.float32),
        var=1.0 + 0.1 * jax.random.uniform(k5, (out_planes,), jnp.float32),
    )


# --------------------------------- main ---------------------------------------

if __name__ == "__main__":
    key = jax.random.PRNGKey(0)
    kp, kx = jax.random.split(key)

    # BasicConv2d(64 -> 32, kernel_size=3, padding=1), as used inside MDNet.
    B, Cin, Cout, H, W, K = 2, 64, 32, 16, 16, 3

    params = init_params(kp, Cin, Cout, K)
    x = jax.random.normal(kx, (B, Cin, H, W), jnp.float32)

    out = jax.block_until_ready(basic_conv2d_forward(params, x, padding=1))
    assert out.shape == (B, Cout, H, W), out.shape

    ref = jax.block_until_ready(basic_conv2d_reference(params, x, padding=1))
    max_err = float(jnp.max(jnp.abs(out - ref)))
    if not np.allclose(np.asarray(out), np.asarray(ref), atol=2e-2, rtol=2e-2):
        raise AssertionError(f"Pallas vs reference mismatch, max abs err = {max_err}")

    print("KERNEL_OK")
</pallas_src>

<mosaic_0001>
module attributes {stable_mosaic.version = 11 : i64} {
  func.func @kernel(%arg0: i32, %arg1: memref<2x18x18x64xbf16, #tpu.memory_space<vmem>>, %arg2: memref<576x32xbf16, #tpu.memory_space<vmem>>, %arg3: memref<32x1xf32, #tpu.memory_space<vmem>>, %arg4: memref<32x1xf32, #tpu.memory_space<vmem>>, %arg5: memref<2x32x256xf32, #tpu.memory_space<vmem>>, %arg6: memref<512x576xbf16, #tpu.memory_space<vmem>>) attributes {dimension_semantics = [#tpu.dimension_semantics<parallel>], iteration_bounds = array<i64: 1>, scalar_prefetch = 0 : i64, scratch_operands = 1 : i64, tpu.core_type = #tpu.core_type<tc>, window_params = [{transform_indices = @transform_0, window_bounds = array<i64: 2, 18, 18, 64>}, {pipeline_mode = #tpu.pipeline_mode<synchronous>, transform_indices = @transform_1, window_bounds = array<i64: 576, 32>}, {pipeline_mode = #tpu.pipeline_mode<synchronous>, transform_indices = @transform_2, window_bounds = array<i64: 32, 1>}, {pipeline_mode = #tpu.pipeline_mode<synchronous>, transform_indices = @transform_3, window_bounds = array<i64: 32, 1>}, {transform_indices = @transform_4, window_bounds = array<i64: 2, 32, 256>}]} {
    %c0 = arith.constant 0 : index
    %c0_0 = arith.constant 0 : index
    %c0_1 = arith.constant 0 : index
    %c0_2 = arith.constant 0 : index
    %0 = vector.load %arg1[%c0, %c0_0, %c0_1, %c0_2] : memref<2x18x18x64xbf16, #tpu.memory_space<vmem>>, vector<1x16x16x64xbf16>
    %1 = vector.shape_cast %0 : vector<1x16x16x64xbf16> to vector<16x16x64xbf16>
    %2 = vector.shape_cast %1 : vector<16x16x64xbf16> to vector<256x64xbf16>
    %c0_3 = arith.constant 0 : index
    %c0_4 = arith.constant 0 : index
    %3 = vector.load %arg6[%c0_3, %c0_4] : memref<512x576xbf16, #tpu.memory_space<vmem>>, vector<256x64xbf16>
    tpu.vector_store %arg6[%c0_3, %c0_4], %2 {strides = array<i32>} : memref<512x576xbf16, #tpu.memory_space<vmem>>, vector<256x64xbf16>,
    %c0_5 = arith.constant 0 : index
    %c0_6 = arith.constant 0 : index
    %c1 = arith.constant 1 : index
    %c0_7 = arith.constant 0 : index
    %4 = vector.load %arg1[%c0_5, %c0_6, %c1, %c0_7] : memref<2x18x18x64xbf16, #tpu.memory_space<vmem>>, vector<1x16x16x64xbf16>
    %5 = vector.shape_cast %4 : vector<1x16x16x64xbf16> to vector<16x16x64xbf16>
    %6 = vector.shape_cast %5 : vector<16x16x64xbf16> to vector<256x64xbf16>
    %c0_8 = arith.constant 0 : index
    %c64 = arith.constant 64 : index
    %7 = vector.load %arg6[%c0_8, %c64] : memref<512x576xbf16, #tpu.memory_space<vmem>>, vector<256x64xbf16>
    tpu.vector_store %arg6[%c0_8, %c64], %6 {strides = array<i32>} : memref<512x576xbf16, #tpu.memory_space<vmem>>, vector<256x64xbf16>,
    %c0_9 = arith.constant 0 : index
    %c0_10 = arith.constant 0 : index
    %c2 = arith.constant 2 : index
    %c0_11 = arith.constant 0 : index
    %8 = vector.load %arg1[%c0_9, %c0_10, %c2, %c0_11] : memref<2x18x18x64xbf16, #tpu.memory_space<vmem>>, vector<1x16x16x64xbf16>
    %9 = vector.shape_cast %8 : vector<1x16x16x64xbf16> to vector<16x16x64xbf16>
    %10 = vector.shape_cast %9 : vector<16x16x64xbf16> to vector<256x64xbf16>
    %c0_12 = arith.constant 0 : index
    %c128 = arith.constant 128 : index
    %11 = vector.load %arg6[%c0_12, %c128] : memref<512x576xbf16, #tpu.memory_space<vmem>>, vector<256x64xbf16>
    tpu.vector_store %arg6[%c0_12, %c128], %10 {strides = array<i32>} : memref<512x576xbf16, #tpu.memory_space<vmem>>, vector<256x64xbf16>,
    %c0_13 = arith.constant 0 : index
    %c1_14 = arith.constant 1 : index
    %c0_15 = arith.constant 0 : index
    %c0_16 = arith.constant 0 : index
    %12 = vector.load %arg1[%c0_13, %c1_14, %c0_15, %c0_16] : memref<2x18x18x64xbf16, #tpu.memory_space<vmem>>, vector<1x16x16x64xbf16>
    %13 = vector.shape_cast %12 : vector<1x16x16x64xbf16> to vector<16x16x64xbf16>
    %14 = vector.shape_cast %13 : vector<16x16x64xbf16> to vector<256x64xbf16>
    %c0_17 = arith.constant 0 : index
    %c192 = arith.constant 192 : index
    %15 = vector.load %arg6[%c0_17, %c192] : memref<512x576xbf16, #tpu.memory_space<vmem>>, vector<256x64xbf16>
    tpu.vector_store %arg6[%c0_17, %c192], %14 {strides = array<i32>} : memref<512x576xbf16, #tpu.memory_space<vmem>>, vector<256x64xbf16>,
    %c0_18 = arith.constant 0 : index
    %c1_19 = arith.constant 1 : index
    %c1_20 = arith.constant 1 : index
    %c0_21 = arith.constant 0 : index
    %16 = vector.load %arg1[%c0_18, %c1_19, %c1_20, %c0_21] : memref<2x18x18x64xbf16, #tpu.memory_space<vmem>>, vector<1x16x16x64xbf16>
    %17 = vector.shape_cast %16 : vector<1x16x16x64xbf16> to vector<16x16x64xbf16>
    %18 = vector.shape_cast %17 : vector<16x16x64xbf16> to vector<256x64xbf16>
    %c0_22 = arith.constant 0 : index
    %c256 = arith.constant 256 : index
    %19 = vector.load %arg6[%c0_22, %c256] : memref<512x576xbf16, #tpu.memory_space<vmem>>, vector<256x64xbf16>
    tpu.vector_store %arg6[%c0_22, %c256], %18 {strides = array<i32>} : memref<512x576xbf16, #tpu.memory_space<vmem>>, vector<256x64xbf16>,
    %c0_23 = arith.constant 0 : index
    %c1_24 = arith.constant 1 : index
    %c2_25 = arith.constant 2 : index
    %c0_26 = arith.constant 0 : index
    %20 = vector.load %arg1[%c0_23, %c1_24, %c2_25, %c0_26] : memref<2x18x18x64xbf16, #tpu.memory_space<vmem>>, vector<1x16x16x64xbf16>
    %21 = vector.shape_cast %20 : vector<1x16x16x64xbf16> to vector<16x16x64xbf16>
    %22 = vector.shape_cast %21 : vector<16x16x64xbf16> to vector<256x64xbf16>
    %c0_27 = arith.constant 0 : index
    %c320 = arith.constant 320 : index
    %23 = vector.load %arg6[%c0_27, %c320] : memref<512x576xbf16, #tpu.memory_space<vmem>>, vector<256x64xbf16>
    tpu.vector_store %arg6[%c0_27, %c320], %22 {strides = array<i32>} : memref<512x576xbf16, #tpu.memory_space<vmem>>, vector<256x64xbf16>,
    %c0_28 = arith.constant 0 : index
    %c2_29 = arith.constant 2 : index
    %c0_30 = arith.constant 0 : index
    %c0_31 = arith.constant 0 : index
    %24 = vector.load %arg1[%c0_28, %c2_29, %c0_30, %c0_31] : memref<2x18x18x64xbf16, #tpu.memory_space<vmem>>, vector<1x16x16x64xbf16>
    %25 = vector.shape_cast %24 : vector<1x16x16x64xbf16> to vector<16x16x64xbf16>
    %26 = vector.shape_cast %25 : vector<16x16x64xbf16> to vector<256x64xbf16>
    %c0_32 = arith.constant 0 : index
    %c384 = arith.constant 384 : index
    %27 = vector.load %arg6[%c0_32, %c384] : memref<512x576xbf16, #tpu.memory_space<vmem>>, vector<256x64xbf16>
    tpu.vector_store %arg6[%c0_32, %c384], %26 {strides = array<i32>} : memref<512x576xbf16, #tpu.memory_space<vmem>>, vector<256x64xbf16>,
    %c0_33 = arith.constant 0 : index
    %c2_34 = arith.constant 2 : index
    %c1_35 = arith.constant 1 : index
    %c0_36 = arith.constant 0 : index
    %28 = vector.load %arg1[%c0_33, %c2_34, %c1_35, %c0_36] : memref<2x18x18x64xbf16, #tpu.memory_space<vmem>>, vector<1x16x16x64xbf16>
    %29 = vector.shape_cast %28 : vector<1x16x16x64xbf16> to vector<16x16x64xbf16>
    %30 = vector.shape_cast %29 : vector<16x16x64xbf16> to vector<256x64xbf16>
    %c0_37 = arith.constant 0 : index
    %c448 = arith.constant 448 : index
    %31 = vector.load %arg6[%c0_37, %c448] : memref<512x576xbf16, #tpu.memory_space<vmem>>, vector<256x64xbf16>
    tpu.vector_store %arg6[%c0_37, %c448], %30 {strides = array<i32>} : memref<512x576xbf16, #tpu.memory_space<vmem>>, vector<256x64xbf16>,
    %c0_38 = arith.constant 0 : index
    %c2_39 = arith.constant 2 : index
    %c2_40 = arith.constant 2 : index
    %c0_41 = arith.constant 0 : index
    %32 = vector.load %arg1[%c0_38, %c2_39, %c2_40, %c0_41] : memref<2x18x18x64xbf16, #tpu.memory_space<vmem>>, vector<1x16x16x64xbf16>
    %33 = vector.shape_cast %32 : vector<1x16x16x64xbf16> to vector<16x16x64xbf16>
    %34 = vector.shape_cast %33 : vector<16x16x64xbf16> to vector<256x64xbf16>
    %c0_42 = arith.constant 0 : index
    %c512 = arith.constant 512 : index
    %35 = vector.load %arg6[%c0_42, %c512] : memref<512x576xbf16, #tpu.memory_space<vmem>>, vector<256x64xbf16>
    tpu.vector_store %arg6[%c0_42, %c512], %34 {strides = array<i32>} : memref<512x576xbf16, #tpu.memory_space<vmem>>, vector<256x64xbf16>,
    %c1_43 = arith.constant 1 : index
    %c0_44 = arith.constant 0 : index
    %c0_45 = arith.constant 0 : index
    %c0_46 = arith.constant 0 : index
    %36 = vector.load %arg1[%c1_43, %c0_44, %c0_45, %c0_46] : memref<2x18x18x64xbf16, #tpu.memory_space<vmem>>, vector<1x16x16x64xbf16>
    %37 = vector.shape_cast %36 : vector<1x16x16x64xbf16> to vector<16x16x64xbf16>
    %38 = vector.shape_cast %37 : vector<16x16x64xbf16> to vector<256x64xbf16>
    %c256_47 = arith.constant 256 : index
    %c0_48 = arith.constant 0 : index
    %39 = vector.load %arg6[%c256_47, %c0_48] : memref<512x576xbf16, #tpu.memory_space<vmem>>, vector<256x64xbf16>
    tpu.vector_store %arg6[%c256_47, %c0_48], %38 {strides = array<i32>} : memref<512x576xbf16, #tpu.memory_space<vmem>>, vector<256x64xbf16>,
    %c1_49 = arith.constant 1 : index
    %c0_50 = arith.constant 0 : index
    %c1_51 = arith.constant 1 : index
    %c0_52 = arith.constant 0 : index
    %40 = vector.load %arg1[%c1_49, %c0_50, %c1_51, %c0_52] : memref<2x18x18x64xbf16, #tpu.memory_space<vmem>>, vector<1x16x16x64xbf16>
    %41 = vector.shape_cast %40 : vector<1x16x16x64xbf16> to vector<16x16x64xbf16>
    %42 = vector.shape_cast %41 : vector<16x16x64xbf16> to vector<256x64xbf16>
    %c256_53 = arith.constant 256 : index
    %c64_54 = arith.constant 64 : index
    %43 = vector.load %arg6[%c256_53, %c64_54] : memref<512x576xbf16, #tpu.memory_space<vmem>>, vector<256x64xbf16>
    tpu.vector_store %arg6[%c256_53, %c64_54], %42 {strides = array<i32>} : memref<512x576xbf16, #tpu.memory_space<vmem>>, vector<256x64xbf16>,
    %c1_55 = arith.constant 1 : index
    %c0_56 = arith.constant 0 : index
    %c2_57 = arith.constant 2 : index
    %c0_58 = arith.constant 0 : index
    %44 = vector.load %arg1[%c1_55, %c0_56, %c2_57, %c0_58] : memref<2x18x18x64xbf16, #tpu.memory_space<vmem>>, vector<1x16x16x64xbf16>
    %45 = vector.shape_cast %44 : vector<1x16x16x64xbf16> to vector<16x16x64xbf16>
    %46 = vector.shape_cast %45 : vector<16x16x64xbf16> to vector<256x64xbf16>
    %c256_59 = arith.constant 256 : index
    %c128_60 = arith.constant 128 : index
    %47 = vector.load %arg6[%c256_59, %c128_60] : memref<512x576xbf16, #tpu.memory_space<vmem>>, vector<256x64xbf16>
    tpu.vector_store %arg6[%c256_59, %c128_60], %46 {strides = array<i32>} : memref<512x576xbf16, #tpu.memory_space<vmem>>, vector<256x64xbf16>,
    %c1_61 = arith.constant 1 : index
    %c1_62 = arith.constant 1 : index
    %c0_63 = arith.constant 0 : index
    %c0_64 = arith.constant 0 : index
    %48 = vector.load %arg1[%c1_61, %c1_62, %c0_63, %c0_64] : memref<2x18x18x64xbf16, #tpu.memory_space<vmem>>, vector<1x16x16x64xbf16>
    %49 = vector.shape_cast %48 : vector<1x16x16x64xbf16> to vector<16x16x64xbf16>
    %50 = vector.shape_cast %49 : vector<16x16x64xbf16> to vector<256x64xbf16>
    %c256_65 = arith.constant 256 : index
    %c192_66 = arith.constant 192 : index
    %51 = vector.load %arg6[%c256_65, %c192_66] : memref<512x576xbf16, #tpu.memory_space<vmem>>, vector<256x64xbf16>
    tpu.vector_store %arg6[%c256_65, %c192_66], %50 {strides = array<i32>} : memref<512x576xbf16, #tpu.memory_space<vmem>>, vector<256x64xbf16>,
    %c1_67 = arith.constant 1 : index
    %c1_68 = arith.constant 1 : index
    %c1_69 = arith.constant 1 : index
    %c0_70 = arith.constant 0 : index
    %52 = vector.load %arg1[%c1_67, %c1_68, %c1_69, %c0_70] : memref<2x18x18x64xbf16, #tpu.memory_space<vmem>>, vector<1x16x16x64xbf16>
    %53 = vector.shape_cast %52 : vector<1x16x16x64xbf16> to vector<16x16x64xbf16>
    %54 = vector.shape_cast %53 : vector<16x16x64xbf16> to vector<256x64xbf16>
    %c256_71 = arith.constant 256 : index
    %c256_72 = arith.constant 256 : index
    %55 = vector.load %arg6[%c256_71, %c256_72] : memref<512x576xbf16, #tpu.memory_space<vmem>>, vector<256x64xbf16>
    tpu.vector_store %arg6[%c256_71, %c256_72], %54 {strides = array<i32>} : memref<512x576xbf16, #tpu.memory_space<vmem>>, vector<256x64xbf16>,
    %c1_73 = arith.constant 1 : index
    %c1_74 = arith.constant 1 : index
    %c2_75 = arith.constant 2 : index
    %c0_76 = arith.constant 0 : index
    %56 = vector.load %arg1[%c1_73, %c1_74, %c2_75, %c0_76] : memref<2x18x18x64xbf16, #tpu.memory_space<vmem>>, vector<1x16x16x64xbf16>
    %57 = vector.shape_cast %56 : vector<1x16x16x64xbf16> to vector<16x16x64xbf16>
    %58 = vector.shape_cast %57 : vector<16x16x64xbf16> to vector<256x64xbf16>
    %c256_77 = arith.constant 256 : index
    %c320_78 = arith.constant 320 : index
    %59 = vector.load %arg6[%c256_77, %c320_78] : memref<512x576xbf16, #tpu.memory_space<vmem>>, vector<256x64xbf16>
    tpu.vector_store %arg6[%c256_77, %c320_78], %58 {strides = array<i32>} : memref<512x576xbf16, #tpu.memory_space<vmem>>, vector<256x64xbf16>,
    %c1_79 = arith.constant 1 : index
    %c2_80 = arith.constant 2 : index
    %c0_81 = arith.constant 0 : index
    %c0_82 = arith.constant 0 : index
    %60 = vector.load %arg1[%c1_79, %c2_80, %c0_81, %c0_82] : memref<2x18x18x64xbf16, #tpu.memory_space<vmem>>, vector<1x16x16x64xbf16>
    %61 = vector.shape_cast %60 : vector<1x16x16x64xbf16> to vector<16x16x64xbf16>
    %62 = vector.shape_cast %61 : vector<16x16x64xbf16> to vector<256x64xbf16>
    %c256_83 = arith.constant 256 : index
    %c384_84 = arith.constant 384 : index
    %63 = vector.load %arg6[%c256_83, %c384_84] : memref<512x576xbf16, #tpu.memory_space<vmem>>, vector<256x64xbf16>
    tpu.vector_store %arg6[%c256_83, %c384_84], %62 {strides = array<i32>} : memref<512x576xbf16, #tpu.memory_space<vmem>>, vector<256x64xbf16>,
    %c1_85 = arith.constant 1 : index
    %c2_86 = arith.constant 2 : index
    %c1_87 = arith.constant 1 : index
    %c0_88 = arith.constant 0 : index
    %64 = vector.load %arg1[%c1_85, %c2_86, %c1_87, %c0_88] : memref<2x18x18x64xbf16, #tpu.memory_space<vmem>>, vector<1x16x16x64xbf16>
    %65 = vector.shape_cast %64 : vector<1x16x16x64xbf16> to vector<16x16x64xbf16>
    %66 = vector.shape_cast %65 : vector<16x16x64xbf16> to vector<256x64xbf16>
    %c256_89 = arith.constant 256 : index
    %c448_90 = arith.constant 448 : index
    %67 = vector.load %arg6[%c256_89, %c448_90] : memref<512x576xbf16, #tpu.memory_space<vmem>>, vector<256x64xbf16>
    tpu.vector_store %arg6[%c256_89, %c448_90], %66 {strides = array<i32>} : memref<512x576xbf16, #tpu.memory_space<vmem>>, vector<256x64xbf16>,
    %c1_91 = arith.constant 1 : index
    %c2_92 = arith.constant 2 : index
    %c2_93 = arith.constant 2 : index
    %c0_94 = arith.constant 0 : index
    %68 = vector.load %arg1[%c1_91, %c2_92, %c2_93, %c0_94] : memref<2x18x18x64xbf16, #tpu.memory_space<vmem>>, vector<1x16x16x64xbf16>
    %69 = vector.shape_cast %68 : vector<1x16x16x64xbf16> to vector<16x16x64xbf16>
    %70 = vector.shape_cast %69 : vector<16x16x64xbf16> to vector<256x64xbf16>
    %c256_95 = arith.constant 256 : index
    %c512_96 = arith.constant 512 : index
    %71 = vector.load %arg6[%c256_95, %c512_96] : memref<512x576xbf16, #tpu.memory_space<vmem>>, vector<256x64xbf16>
    tpu.vector_store %arg6[%c256_95, %c512_96], %70 {strides = array<i32>} : memref<512x576xbf16, #tpu.memory_space<vmem>>, vector<256x64xbf16>,
    %c0_97 = arith.constant 0 : index
    %c0_98 = arith.constant 0 : index
    %72 = vector.load %arg6[%c0_97, %c0_98] : memref<512x576xbf16, #tpu.memory_space<vmem>>, vector<512x576xbf16>
    %c0_99 = arith.constant 0 : index
    %c0_100 = arith.constant 0 : index
    %73 = vector.load %arg2[%c0_99, %c0_100] : memref<576x32xbf16, #tpu.memory_space<vmem>>, vector<576x32xbf16>
    %cst = arith.constant dense<0.000000e+00> : vector<512x32xf32>
    %74 = tpu.matmul %72, %73, %cst {dimension_numbers = #tpu.dot_dimension_numbers<[1], [0], [0], [1], [0, 0, 1, 1], [], []>} : vector<512x576xbf16>, vector<576x32xbf16>, vector<512x32xf32> -> vector<512x32xf32>
    %c0_101 = arith.constant 0 : index
    %c0_102 = arith.constant 0 : index
    %75 = vector.load %arg3[%c0_101, %c0_102] : memref<32x1xf32, #tpu.memory_space<vmem>>, vector<32x1xf32>
    %c0_103 = arith.constant 0 : index
    %c0_104 = arith.constant 0 : index
    %76 = vector.load %arg4[%c0_103, %c0_104] : memref<32x1xf32, #tpu.memory_space<vmem>>, vector<32x1xf32>
    %77 = vector.extract_strided_slice %74 {offsets = [0, 0], sizes = [256, 32], strides = [1, 1]} : vector<512x32xf32> to vector<256x32xf32>
    %78 = tpu.transpose %77, [1, 0] : vector<256x32xf32> -> vector<32x256xf32>
    %79 = vector.broadcast %75 : vector<32x1xf32> to vector<32x256xf32>
    %80 = arith.mulf %78, %79 : vector<32x256xf32>
    %81 = vector.broadcast %76 : vector<32x1xf32> to vector<32x256xf32>
    %82 = arith.addf %80, %81 : vector<32x256xf32>
    %cst_105 = arith.constant 0.000000e+00 : f32
    %83 = vector.broadcast %cst_105 : f32 to vector<32x256xf32>
    %84 = arith.maximumf %82, %83 : vector<32x256xf32>
    %c0_106 = arith.constant 0 : index
    %c0_107 = arith.constant 0 : index
    %c0_108 = arith.constant 0 : index
    %85 = vector.load %arg5[%c0_106, %c0_107, %c0_108] : memref<2x32x256xf32, #tpu.memory_space<vmem>>, vector<1x32x256xf32>
    %86 = vector.shape_cast %85 : vector<1x32x256xf32> to vector<32x256xf32>
    %87 = vector.shape_cast %84 : vector<32x256xf32> to vector<1x32x256xf32>
    tpu.vector_store %arg5[%c0_106, %c0_107, %c0_108], %87 {strides = array<i32>} : memref<2x32x256xf32, #tpu.memory_space<vmem>>, vector<1x32x256xf32>,
    %88 = vector.extract_strided_slice %74 {offsets = [256, 0], sizes = [256, 32], strides = [1, 1]} : vector<512x32xf32> to vector<256x32xf32>
    %89 = tpu.transpose %88, [1, 0] : vector<256x32xf32> -> vector<32x256xf32>
    %90 = vector.broadcast %75 : vector<32x1xf32> to vector<32x256xf32>
    %91 = arith.mulf %89, %90 : vector<32x256xf32>
    %92 = vector.broadcast %76 : vector<32x1xf32> to vector<32x256xf32>
    %93 = arith.addf %91, %92 : vector<32x256xf32>
    %cst_109 = arith.constant 0.000000e+00 : f32
    %94 = vector.broadcast %cst_109 : f32 to vector<32x256xf32>
    %95 = arith.maximumf %93, %94 : vector<32x256xf32>
    %c1_110 = arith.constant 1 : index
    %c0_111 = arith.constant 0 : index
    %c0_112 = arith.constant 0 : index
    %96 = vector.load %arg5[%c1_110, %c0_111, %c0_112] : memref<2x32x256xf32, #tpu.memory_space<vmem>>, vector<1x32x256xf32>
    %97 = vector.shape_cast %96 : vector<1x32x256xf32> to vector<32x256xf32>
    %98 = vector.shape_cast %95 : vector<32x256xf32> to vector<1x32x256xf32>
    tpu.vector_store %arg5[%c1_110, %c0_111, %c0_112], %98 {strides = array<i32>} : memref<2x32x256xf32, #tpu.memory_space<vmem>>, vector<1x32x256xf32>,
    return
  }
  func.func @transform_0(%arg0: i32) -> (i32, i32, i32, i32) {
    %c0_i32 = arith.constant 0 : i32
    %c0_i32_0 = arith.constant 0 : i32
    %c0_i32_1 = arith.constant 0 : i32
    %c0_i32_2 = arith.constant 0 : i32
    return %arg0, %c0_i32, %c0_i32_0, %c0_i32_1 : i32, i32, i32, i32
  }
  func.func @transform_1(%arg0: i32) -> (i32, i32) {
    %c0_i32 = arith.constant 0 : i32
    %c0_i32_0 = arith.constant 0 : i32
    %c0_i32_1 = arith.constant 0 : i32
    return %c0_i32, %c0_i32_0 : i32, i32
  }
  func.func @transform_2(%arg0: i32) -> (i32, i32) {
    %c0_i32 = arith.constant 0 : i32
    %c0_i32_0 = arith.constant 0 : i32
    %c0_i32_1 = arith.constant 0 : i32
    return %c0_i32, %c0_i32_0 : i32, i32
  }
  func.func @transform_3(%arg0: i32) -> (i32, i32) {
    %c0_i32 = arith.constant 0 : i32
    %c0_i32_0 = arith.constant 0 : i32
    %c0_i32_1 = arith.constant 0 : i32
    return %c0_i32, %c0_i32_0 : i32, i32
  }
  func.func @transform_4(%arg0: i32) -> (i32, i32, i32) {
    %c0_i32 = arith.constant 0 : i32
    %c0_i32_0 = arith.constant 0 : i32
    %c0_i32_1 = arith.constant 0 : i32
    return %arg0, %c0_i32, %c0_i32_0 : i32, i32, i32
  }
}

</mosaic_0001>

<bundles_post_ra>
// kernel: tpu_custom_call.1
= control target key start
LH: loop header
LB: loop body
LE: loop exit
PB: predicated region body
PF: predicated region fallthrough
CT: control target
= control target key end

     0   :  { %vm132_vm0 = vsmask.f32 3328  ;;  %vm133_vm1 = vsmask.f32 7440  ;;  %s9509_s11 = smov 64   ;;  %vm51_vm3 = vcmask 519168   ;;  %s16074_s0 = inlined_call_operand.vmem [shape: bf16[2,18,18,64], index: 0, kind: input, shape index: {}]   ;;  %s16075_s1 = inlined_call_operand.vmem [shape: bf16[576,32], index: 1, kind: input, shape index: {}]   ;;  %s16076_s2 = inlined_call_operand.vmem [shape: f32[32,1], index: 2, kind: input, shape index: {}]   ;;  %s16077_s3 = inlined_call_operand.vmem [shape: f32[32,1], index: 3, kind: input, shape index: {}]   ;;  %s16078_s4 = inlined_call_operand.hbm [shape: f32[2,32,256], index: 4, kind: output, shape index: {}]  }
   0x1   :  { %v87_v0 = vld [vmem:[%s16074_s0 + $0xc] sm:$0xf]  ;;  %v88_v1 = vld [vmem:[%s16074_s0 + $0x10] sm:$0xf]  ;;  %v84_v6 = vld [vmem:[%s16074_s0] sm:$0xf] }
   0x2   :  { %v160_v2 = vshrl.u32 %v87_v0, 16  ;;  %v163_v3 = vshll.u32 %v87_v0, 16  ;;  %v169_v4 = vshll.u32 %v88_v1, 16  ;;  %v173_v5 = vshrl.u32 %v88_v1, 16  ;;  %v85_v7 = vld [vmem:[%s16074_s0 + $0x4] sm:$0xf]  ;;  %vm9562_vm2 = vmor %vm132_vm0, %vm133_vm1 }
   0x3   :  { %v136_v11 = vshrl.u32 %v84_v6, 16  ;;  %v89_v12 = vld [vmem:[%s16074_s0 + $0x14] sm:$0x1]  ;;  %v139_v14 = vshll.u32 %v84_v6, 16  ;;  %v145_v15 = vshll.u32 %v85_v7, 16  ;;  %v149_v16 = vshrl.u32 %v85_v7, 16 }
   0x4   :  { %v162_v8 = vrot.slane %v160_v2, 4  ;;  %v165_v9 = vrot.slane %v163_v3, 5  ;;  %v171_v10 = vrot.slane %v169_v4, 5  ;;  %v175_v13 = vrot.slane %v173_v5, 4  ;;  %v86_v17 = vld [vmem:[%s16074_s0 + $0x8] sm:$0x1] }
   0x5   :  { %v138_v19 = vrot.slane %v136_v11, 4  ;;  %v179_v20 = vshll.u32 %v89_v12, 16  ;;  %v155_v21 = vshll.u32 %v86_v17, 16  ;;  %v91_v22 = vld [vmem:[%s16074_s0 + $0x1c] sm:$0xf]  ;;  %v141_v24 = vrot.slane %v139_v14, 5 }
   0x6   :  { %v166_v18 = vor.u32 %v165_v9, %v162_v8  ;;  %v147_v25 = vrot.slane %v145_v15, 5  ;;  %v151_v26 = vrot.slane %v149_v16, 4  ;;  %v176_v27 = vor.u32 %v175_v13, %v171_v10  ;;  %v92_v28 = vld [vmem:[%s16074_s0 + $0x20] sm:$0x1]  ;;  %v90_v33 = vld [vmem:[%s16074_s0 + $0x18] sm:$0xf] }
   0x7   :  { %v181_v30 = vrot.slane %v179_v20, 5  ;;  %v157_v31 = vrot.slane %v155_v21, 5  ;;  %v193_v32 = vshll.u32 %v91_v22, 16  ;;  %v142_v34 = vor.u32 %v141_v24, %v138_v19  ;;  %v94_v38 = vld [vmem:[%s16074_s0 + $0x28] sm:$0xf] }
   0x8   :  { %v167_v29 = vrot.slane %v166_v18, 4  ;;  %v177_v35 = vrot.slane %v176_v27, 4  ;;  %v152_v36 = vor.u32 %v151_v26, %v147_v25  ;;  %v197_v37 = vshrl.u32 %v91_v22, 16  ;;  %v95_v43 = vld [vmem:[%s16074_s0 + $0x2c] sm:$0x1] }
   0x9   :  { %v195_v40 = vrot.slane %v193_v32, 5  ;;  %v203_v41 = vshll.u32 %v92_v28, 16  ;;  %v184_v42 = vshrl.u32 %v90_v33, 16  ;;  %v143_v44 = vrot.slane %v142_v34, 4  ;;  %v93_v48 = vld [vmem:[%s16074_s0 + $0x24] sm:$0xf] }
   0xa   :  { %v172_v39 = vsel %vm9562_vm2, %v167_v29, %v171_v10  ;;  %v182_v45 = vsel %vm9562_vm2, %v177_v35, %v181_v30  ;;  %v153_v46 = vrot.slane %v152_v36, 4  ;;  %v199_v47 = vrot.slane %v197_v37, 4  ;;  %v97_v53 = vld [vmem:[%s16074_s0 + $0x34] sm:$0xf]  ;;  %v98_v62 = vld [vmem:[%s16074_s0 + $0x38] sm:$0x1] }
   0xb   :  { %523 = vrot.lane.b32.xlu1 %v172_v39, %s9509_s11  ;;  %v205_v49 = vrot.slane %v203_v41, 5  ;;  %v186_v50 = vrot.slane %v184_v42, 4  ;;  %v187_v51 = vshll.u32 %v90_v33, 16  ;;  %v217_v52 = vshll.u32 %v94_v38, 16  ;;  %v96_v3 = vld [vmem:[%s16074_s0 + $0x30] sm:$0xf] }
   0xc   :  { %v148_v54 = vsel %vm9562_vm2, %v143_v44, %v147_v25  ;;  %v158_v55 = vsel %vm9562_vm2, %v153_v46, %v157_v31  ;;  %v200_v56 = vor.u32 %v199_v47, %v195_v40  ;;  %v221_v57 = vshrl.u32 %v94_v38, 16  ;;  %v100_v8 = vld [vmem:[%s16074_s0 + $0x40] sm:$0xf]  ;;  %v101_v17 = vld [vmem:[%s16074_s0 + $0x44] sm:$0x1] }
   0xd   :  { %519 = vrot.lane.b32.xlu0 %v148_v54, %s9509_s11  ;;  %v189_v58 = vrot.slane %v187_v51, 5  ;;  %v219_v59 = vrot.slane %v217_v52, 5  ;;  %v227_v60 = vshll.u32 %v95_v43, 16  ;;  %v208_v61 = vshrl.u32 %v93_v48, 16  ;;  %v99_v22 = vld [vmem:[%s16074_s0 + $0x3c] sm:$0xf] }
   0xe   :  { %v201_v63 = vrot.slane %v200_v56, 4  ;;  %v223_v0 = vrot.slane %v221_v57, 4  ;;  %v211_v1 = vshll.u32 %v93_v48, 16  ;;  %v241_v2 = vshll.u32 %v97_v53, 16  ;;  %v103_v28 = vld [vmem:[%s16074_s0 + $0x4c] sm:$0xf] }
   0xf   :  { %525 = vrot.lane.b32.xlu1 %v182_v45, %s9509_s11  ;;  %v190_v4 = vor.u32 %v189_v58, %v186_v50  ;;  %v229_v5 = vrot.slane %v227_v60, 5  ;;  %v210_v6 = vrot.slane %v208_v61, 4  ;;  %v245_v7 = vshrl.u32 %v97_v53, 16  ;;  %v102_v42 = vld [vmem:[%s16074_s0 + $0x48] sm:$0xf] }
  0x10   :  { %v206_v9 = vsel %vm9562_vm2, %v201_v63, %v205_v49  ;;  %v224_v10 = vor.u32 %v223_v0, %v219_v59  ;;  %v213_v11 = vrot.slane %v211_v1, 5  ;;  %v9606_v12 = vrot.slane %v241_v2, 5  ;;  %v106_v47 = vld [vmem:[%s16074_s0 + $0x58] sm:$0xf]  ;;  %v105_v61 = vld [vmem:[%s16074_s0 + $0x54] sm:$0xf] }
  0x11   :  { %521 = vrot.lane.b32.xlu0 %v158_v55, %s9509_s11  ;;  %v191_v13 = vrot.slane %v190_v4, 4  ;;  %v247_v14 = vrot.slane %v245_v7, 4  ;;  %v251_v15 = vshll.u32 %v98_v62, 16  ;;  %v232_v16 = vshrl.u32 %v96_v3, 16 }
  0x12   :  { %v225_v18 = vrot.slane %v224_v10, 4  ;;  %v214_v19 = vor.u32 %v213_v11, %v210_v6  ;;  %v235_v20 = vshll.u32 %v96_v3, 16  ;;  %v265_v21 = vshll.u32 %v100_v8, 16  ;;  %v109_v6 = vld [vmem:[%s16074_s0 + $0x64] sm:$0xf] }
  0x13   :  { %529 = vrot.lane.b32.xlu1 %v206_v9, %s9509_s11  ;;  %v196_v24 = vsel %vm9562_vm2, %v191_v13, %v195_v40  ;;  %v248_v25 = vor.u32 %v247_v14, %v9606_v12  ;;  %v253_v26 = vrot.slane %v251_v15, 5  ;;  %v234_v27 = vrot.slane %v232_v16, 4  ;;  %v104_v40 = vld [vmem:[%s16074_s0 + $0x50] sm:$0x1]  ;;  %v110_v11 = vld [vmem:[%s16074_s0 + $0x68] sm:$0x1] }
  0x14   :  { %v230_v29 = vsel %vm9562_vm2, %v225_v18, %v229_v5  ;;  %v215_v30 = vrot.slane %v214_v19, 4  ;;  %v237_v31 = vrot.slane %v235_v20, 5  ;;  %v9624_v32 = vrot.slane %v265_v21, 5  ;;  %v108_v16 = vld [vmem:[%s16074_s0 + $0x60] sm:$0xf] }
  0x15   :  { %527 = vrot.lane.b32.xlu0 %v196_v24, %s9509_s11  ;;  %v249_v33 = vrot.slane %v248_v25, 4  ;;  %v269_v34 = vshrl.u32 %v100_v8, 16  ;;  %v275_v35 = vshll.u32 %v101_v17, 16  ;;  %v256_v36 = vshrl.u32 %v99_v22, 16 }
  0x16   :  { %v220_v37 = vsel %vm9562_vm2, %v215_v30, %v219_v59  ;;  %v238_v38 = vor.u32 %v237_v31, %v234_v27  ;;  %v259_v39 = vshll.u32 %v99_v22, 16  ;;  %v289_v41 = vshll.u32 %v103_v28, 16  ;;  %v107_v59 = vld [vmem:[%s16074_s0 + $0x5c] sm:$0x1]  ;;  %v113_v31 = vld [vmem:[%s16074_s0 + $0x74] sm:$0x1] }
  0x17   :  { %533 = vrot.lane.b32.xlu1 %v230_v29, %s9509_s11  ;;  %v254_v43 = vsel %vm9562_vm2, %v249_v33, %v253_v26  ;;  %v271_v44 = vrot.slane %v269_v34, 4  ;;  %v277_v45 = vrot.slane %v275_v35, 5  ;;  %v258_v46 = vrot.slane %v256_v36, 4  ;;  %v112_v26 = vld [vmem:[%s16074_s0 + $0x70] sm:$0xf] }
  0x18   :  { %v239_v48 = vrot.slane %v238_v38, 4  ;;  %v261_v49 = vrot.slane %v259_v39, 5  ;;  %v9641_v50 = vrot.slane %v289_v41, 5  ;;  %v293_v51 = vshrl.u32 %v103_v28, 16  ;;  %v111_v36 = vld [vmem:[%s16074_s0 + $0x6c] sm:$0xf] }
  0x19   :  { %531 = vrot.lane.b32.xlu0 %v220_v37, %s9509_s11  ;;  %v272_v52 = vor.u32 %v271_v44, %v9624_v32  ;;  %v299_v53 = vshll.u32 %v104_v40, 16  ;;  %v280_v54 = vshrl.u32 %v102_v42, 16  ;;  %v283_v55 = vshll.u32 %v102_v42, 16 }
  0x1a   :  { %v244_v56 = vsel %vm9562_vm2, %v239_v48, %v9606_v12  ;;  %v262_v57 = vor.u32 %v261_v49, %v258_v46  ;;  %v295_v58 = vrot.slane %v293_v51, 4  ;;  %v313_v60 = vshll.u32 %v106_v47, 16 }
  0x1b   :  { %537 = vrot.lane.b32.xlu1 %v254_v43, %s9509_s11  ;;  %v273_v62 = vrot.slane %v272_v52, 4  ;;  %v301_v63 = vrot.slane %v299_v53, 5  ;;  %v282_v0 = vrot.slane %v280_v54, 4  ;;  %v285_v1 = vrot.slane %v283_v55, 5  ;;  %v116_v54 = vld [vmem:[%s16074_s0 + $0x80] sm:$0x1] }
  0x1c   :  { %v263_v2 = vrot.slane %v262_v57, 4  ;;  %v296_v3 = vor.u32 %v295_v58, %v9641_v50  ;;  %v9656_v4 = vrot.slane %v313_v60, 5  ;;  %v317_v5 = vshrl.u32 %v106_v47, 16  ;;  %v114_v55 = vld [vmem:[%s16074_s0 + $0x78] sm:$0xf] }
  0x1d   :  { %535 = vrot.lane.b32.xlu0 %v244_v56, %s9509_s11  ;;  %v278_v7 = vsel %vm9562_vm2, %v273_v62, %v277_v45  ;;  %v286_v8 = vor.u32 %v285_v1, %v282_v0  ;;  %v323_v9 = vshll.u32 %v107_v59, 16  ;;  %v304_v10 = vshrl.u32 %v105_v61, 16  ;;  %v115_v45 = vld [vmem:[%s16074_s0 + $0x7c] sm:$0xf]  ;;  %v118_v0 = vld [vmem:[%s16074_s0 + $0x88] sm:$0xf] }
  0x1e   :  { %v268_v12 = vsel %vm9562_vm2, %v263_v2, %v9624_v32  ;;  %v297_v13 = vrot.slane %v296_v3, 4  ;;  %v319_v14 = vrot.slane %v317_v5, 4  ;;  %v307_v15 = vshll.u32 %v105_v61, 16 }
  0x1f   :  { %541 = vrot.lane.b32.xlu1 %v278_v7, %s9509_s11  ;;  %v287_v17 = vrot.slane %v286_v8, 4  ;;  %v325_v18 = vrot.slane %v323_v9, 5  ;;  %v306_v19 = vrot.slane %v304_v10, 4  ;;  %v337_v20 = vshll.u32 %v109_v6, 16  ;;  %v119_v9 = vld [vmem:[%s16074_s0 + $0x8c] sm:$0x1] }
  0x20   :  { %v302_v21 = vsel %vm9562_vm2, %v297_v13, %v301_v63  ;;  %v320_v22 = vor.u32 %v319_v14, %v9656_v4  ;;  %v309_v24 = vrot.slane %v307_v15, 5  ;;  %v341_v25 = vshrl.u32 %v109_v6, 16  ;;  %v117_v10 = vld [vmem:[%s16074_s0 + $0x84] sm:$0xf] }
  0x21   :  { %539 = vrot.lane.b32.xlu0 %v268_v12, %s9509_s11  ;;  %v292_v27 = vsel %vm9562_vm2, %v287_v17, %v9641_v50  ;;  %v339_v28 = vrot.slane %v337_v20, 5  ;;  %v347_v29 = vshll.u32 %v110_v11, 16  ;;  %v328_v30 = vshrl.u32 %v108_v16, 16 }
  0x22   :  { %v321_v32 = vrot.slane %v320_v22, 4  ;;  %v310_v33 = vor.u32 %v309_v24, %v306_v19  ;;  %v343_v34 = vrot.slane %v341_v25, 4  ;;  %v331_v35 = vshll.u32 %v108_v16, 16  ;;  %v121_v19 = vld [vmem:[%s16074_s0 + $0x94] sm:$0xf] }
  0x23   :  { %545 = vrot.lane.b32.xlu1 %v302_v21, %s9509_s11  ;;  %v349_v37 = vrot.slane %v347_v29, 5  ;;  %v330_v38 = vrot.slane %v328_v30, 4  ;;  %v361_v39 = vshll.u32 %v112_v26, 16  ;;  %v365_v40 = vshrl.u32 %v112_v26, 16  ;;  %v122_v29 = vld [vmem:[%s16074_s0 + $0x98] sm:$0x1] }
  0x24   :  { %v326_v41 = vsel %vm9562_vm2, %v321_v32, %v325_v18  ;;  %v311_v42 = vrot.slane %v310_v33, 4  ;;  %v344_v43 = vor.u32 %v343_v34, %v339_v28  ;;  %v333_v44 = vrot.slane %v331_v35, 5  ;;  %v120_v30 = vld [vmem:[%s16074_s0 + $0x90] sm:$0xf] }
  0x25   :  { %543 = vrot.lane.b32.xlu0 %v292_v27, %s9509_s11  ;;  %v363_v46 = vrot.slane %v361_v39, 5  ;;  %v367_v47 = vrot.slane %v365_v40, 4  ;;  %v371_v48 = vshll.u32 %v113_v31, 16  ;;  %v352_v49 = vshrl.u32 %v111_v36, 16  ;;  %v124_v39 = vld [vmem:[%s16074_s0 + $0xa0] sm:$0xf] }
  0x26   :  { %v316_v50 = vsel %vm9562_vm2, %v311_v42, %v9656_v4  ;;  %v345_v51 = vrot.slane %v344_v43, 4  ;;  %v334_v52 = vor.u32 %v333_v44, %v330_v38  ;;  %v355_v53 = vshll.u32 %v111_v36, 16  ;;  %v125_v44 = vld [vmem:[%s16074_s0 + $0xa4] sm:$0x1] }
  0x27   :  { %549 = vrot.lane.b32.xlu1 %v326_v41, %s9509_s11  ;;  %v368_v56 = vor.u32 %v367_v47, %v363_v46  ;;  %v373_v57 = vrot.slane %v371_v48, 5  ;;  %v354_v58 = vrot.slane %v352_v49, 4  ;;  %v385_v59 = vshll.u32 %v115_v45, 16  ;;  %v123_v49 = vld [vmem:[%s16074_s0 + $0x9c] sm:$0xf] }
  0x28   :  { %v350_v60 = vsel %vm9562_vm2, %v345_v51, %v349_v37  ;;  %v335_v61 = vrot.slane %v334_v52, 4  ;;  %v357_v62 = vrot.slane %v355_v53, 5  ;;  %v389_v63 = vshrl.u32 %v115_v45, 16 }
  0x29   :  { %547 = vrot.lane.b32.xlu0 %v316_v50, %s9509_s11  ;;  %v369_v1 = vrot.slane %v368_v56, 4  ;;  %v387_v2 = vrot.slane %v385_v59, 5  ;;  %v395_v3 = vshll.u32 %v116_v54, 16  ;;  %v376_v4 = vshrl.u32 %v114_v55, 16 }
  0x2a   :  { %v340_v5 = vsel %vm9562_vm2, %v335_v61, %v339_v28  ;;  %v358_v6 = vor.u32 %v357_v62, %v354_v58  ;;  %v391_v7 = vrot.slane %v389_v63, 4  ;;  %v379_v8 = vshll.u32 %v114_v55, 16  ;;  %v127_v58 = vld [vmem:[%s16074_s0 + $0xac] sm:$0xf]  ;;  %v128_v63 = vld [vmem:[%s16074_s0 + $0xb0] sm:$0x1] }
  0x2b   :  { %553 = vrot.lane.b32.xlu1 %v350_v60, %s9509_s11  ;;  %v374_v11 = vsel %vm9562_vm2, %v369_v1, %v373_v57  ;;  %v397_v12 = vrot.slane %v395_v3, 5  ;;  %v378_v13 = vrot.slane %v376_v4, 4  ;;  %v409_v14 = vshll.u32 %v118_v0, 16  ;;  %v126_v4 = vld [vmem:[%s16074_s0 + $0xa8] sm:$0xf] }
  0x2c   :  { %v359_v15 = vrot.slane %v358_v6, 4  ;;  %v392_v16 = vor.u32 %v391_v7, %v387_v2  ;;  %v381_v17 = vrot.slane %v379_v8, 5  ;;  %v413_v18 = vshrl.u32 %v118_v0, 16 }
  0x2d   :  { %551 = vrot.lane.b32.xlu0 %v340_v5, %s9509_s11  ;;  %v411_v20 = vrot.slane %v409_v14, 5  ;;  %v419_v21 = vshll.u32 %v119_v9, 16  ;;  %v400_v22 = vshrl.u32 %v117_v10, 16  ;;  %v403_v24 = vshll.u32 %v117_v10, 16 }
  0x2e   :  { %v364_v25 = vsel %vm9562_vm2, %v359_v15, %v363_v46  ;;  %v393_v26 = vrot.slane %v392_v16, 4  ;;  %v382_v27 = vor.u32 %v381_v17, %v378_v13  ;;  %v415_v28 = vrot.slane %v413_v18, 4  ;;  %v130_v13 = vld [vmem:[%s16074_s0 + $0xb8] sm:$0xf] }
  0x2f   :  { %557 = vrot.lane.b32.xlu1 %v374_v11, %s9509_s11  ;;  %v421_v31 = vrot.slane %v419_v21, 5  ;;  %v402_v32 = vrot.slane %v400_v22, 4  ;;  %v405_v33 = vrot.slane %v403_v24, 5  ;;  %v433_v34 = vshll.u32 %v121_v19, 16  ;;  %v131_v22 = vld [vmem:[%s16074_s0 + $0xbc] sm:$0x1] }
  0x30   :  { %v398_v35 = vsel %vm9562_vm2, %v393_v26, %v397_v12  ;;  %v383_v36 = vrot.slane %v382_v27, 4  ;;  %v416_v37 = vor.u32 %v415_v28, %v411_v20  ;;  %v437_v38 = vshrl.u32 %v121_v19, 16  ;;  %v129_v24 = vld [vmem:[%s16074_s0 + $0xb4] sm:$0xf] }
  0x31   :  { %555 = vrot.lane.b32.xlu0 %v364_v25, %s9509_s11  ;;  %v406_v40 = vor.u32 %v405_v33, %v402_v32  ;;  %v435_v41 = vrot.slane %v433_v34, 5  ;;  %v443_v42 = vshll.u32 %v122_v29, 16  ;;  %v424_v43 = vshrl.u32 %v120_v30, 16 }
  0x32   :  { %v388_v45 = vsel %vm9562_vm2, %v383_v36, %v387_v2  ;;  %v417_v46 = vrot.slane %v416_v37, 4  ;;  %v439_v47 = vrot.slane %v437_v38, 4  ;;  %v427_v48 = vshll.u32 %v120_v30, 16 }
  0x33   :  { %561 = vrot.lane.b32.xlu1 %v398_v35, %s9509_s11  ;;  %v407_v50 = vrot.slane %v406_v40, 4  ;;  %v445_v51 = vrot.slane %v443_v42, 5  ;;  %v426_v52 = vrot.slane %v424_v43, 4  ;;  %v457_v53 = vshll.u32 %v124_v39, 16 }
  0x34   :  { %v422_v54 = vsel %vm9562_vm2, %v417_v46, %v421_v31  ;;  %v440_v55 = vor.u32 %v439_v47, %v435_v41  ;;  %v429_v56 = vrot.slane %v427_v48, 5  ;;  %v461_v57 = vshrl.u32 %v124_v39, 16 }
  0x35   :  { %559 = vrot.lane.b32.xlu0 %v388_v45, %s9509_s11  ;;  %v412_v59 = vsel %vm9562_vm2, %v407_v50, %v411_v20  ;;  %v459_v60 = vrot.slane %v457_v53, 5  ;;  %v467_v61 = vshll.u32 %v125_v44, 16  ;;  %v448_v62 = vshrl.u32 %v123_v49, 16  ;;  %v8182_v53 = vld [vmem:[%s16074_s0 + $0x10] sm:$0xf] }
  0x36   :  { %v441_v0 = vrot.slane %v440_v55, 4  ;;  %v430_v1 = vor.u32 %v429_v56, %v426_v52  ;;  %v463_v2 = vrot.slane %v461_v57, 4  ;;  %v451_v3 = vshll.u32 %v123_v49, 16  ;;  %v8184_v55 = vld [vmem:[%s16074_s0 + $0x1c] sm:$0xf] }
  0x37   :  { %565 = vrot.lane.b32.xlu1 %v422_v54, %s9509_s11  ;;  %v469_v5 = vrot.slane %v467_v61, 5  ;;  %v450_v6 = vrot.slane %v448_v62, 4  ;;  %v481_v7 = vshll.u32 %v127_v58, 16  ;;  %v485_v8 = vshrl.u32 %v127_v58, 16  ;;  %v8181_v54 = vld [vmem:[%s16074_s0 + $0xc] sm:$0xf] }
  0x38   :  { %v446_v9 = vsel %vm9562_vm2, %v441_v0, %v445_v51  ;;  %v431_v10 = vrot.slane %v430_v1, 4  ;;  %v464_v11 = vor.u32 %v463_v2, %v459_v60  ;;  %v453_v12 = vrot.slane %v451_v3, 5  ;;  %v8526_v56 = vld [vmem:[%s16074_s0 + $0x13c] sm:$0xf]  ;;  %v21_v57 = vld [vmem:[%s16074_s0 + $0xc] sm:$0xf] }
  0x39   :  { %563 = vrot.lane.b32.xlu0 %v412_v59, %s9509_s11  ;;  %v483_v14 = vrot.slane %v481_v7, 5  ;;  %v487_v15 = vrot.slane %v485_v8, 4  ;;  %v491_v16 = vshll.u32 %v128_v63, 16  ;;  %v472_v17 = vshrl.u32 %v126_v4, 16  ;;  %v19_v58 = vld [vmem:[%s16074_s0] sm:$0xf] }
  0x3a   :  { %v436_v18 = vsel %vm9562_vm2, %v431_v10, %v435_v41  ;;  %v465_v19 = vrot.slane %v464_v11, 4  ;;  %v454_v20 = vor.u32 %v453_v12, %v450_v6  ;;  %v475_v21 = vshll.u32 %v126_v4, 16  ;;  %v22_v59 = vld [vmem:[%s16074_s0 + $0x10] sm:$0xf]  ;;  %v8183_v61 = vld [vmem:[%s16074_s0 + $0x18] sm:$0xf] }
  0x3b   :  { %569 = vrot.lane.b32.xlu1 %v446_v9, %s9509_s11  ;;  %v488_v25 = vor.u32 %v487_v15, %v483_v14  ;;  %v493_v26 = vrot.slane %v491_v16, 5  ;;  %v474_v27 = vrot.slane %v472_v17, 4  ;;  %v505_v28 = vshll.u32 %v130_v13, 16  ;;  %v24_v62 = vld [vmem:[%s16074_s0 + $0x1c] sm:$0xf] }
  0x3c   :  { %v470_v29 = vsel %vm9562_vm2, %v465_v19, %v469_v5  ;;  %v455_v30 = vrot.slane %v454_v20, 4  ;;  %v477_v31 = vrot.slane %v475_v21, 5  ;;  %v509_v32 = vshrl.u32 %v130_v13, 16  ;;  %v23_v63 = vld [vmem:[%s16074_s0 + $0x18] sm:$0xf]  ;;  %v9277_v19 = vld [vmem:[%s16075_s1 + $0x30] sm:$0xff]  }
  0x3d   :  { %567 = vrot.lane.b32.xlu0 %v436_v18, %s9509_s11  ;;  %v489_v33 = vrot.slane %v488_v25, 4  ;;  %v507_v34 = vrot.slane %v505_v28, 5  ;;  %v515_v35 = vshll.u32 %v131_v22, 16  ;;  %v496_v36 = vshrl.u32 %v129_v24, 16  ;;  %v26_v0 = vld [vmem:[%s16074_s0 + $0x28] sm:$0xf] }
  0x3e   :  { %v460_v37 = vsel %vm9562_vm2, %v455_v30, %v459_v60  ;;  %v478_v38 = vor.u32 %v477_v31, %v474_v27  ;;  %v511_v39 = vrot.slane %v509_v32, 4  ;;  %v499_v40 = vshll.u32 %v129_v24, 16  ;;  %v20_v60 = vld [vmem:[%s16074_s0 + $0x4] sm:$0xf]  ;;  %v28_v2 = vld [vmem:[%s16074_s0 + $0x34] sm:$0xf] }
  0x3f   :  { %573 = vrot.lane.b32.xlu1 %v470_v29, %s9509_s11  ;;  %v494_v41 = vsel %vm9562_vm2, %v489_v33, %v493_v26  ;;  %v498_v42 = vrot.slane %v496_v36, 4  ;;  %v517_v45 = vrot.slane %v515_v35, 5  ;;  %v25_v1 = vld [vmem:[%s16074_s0 + $0x24] sm:$0xf]  ;;  %v27_v3 = vld [vmem:[%s16074_s0 + $0x30] sm:$0xf] }
  0x40   :  { %v479_v43 = vrot.slane %v478_v38, 4  ;;  %v512_v44 = vor.u32 %v511_v39, %v507_v34  ;;  %v501_v46 = vrot.slane %v499_v40, 5  ;;  %v8525_v4 = vld [vmem:[%s16074_s0 + $0x138] sm:$0xf]  ;;  %v8186_v5 = vld [vmem:[%s16074_s0 + $0x28] sm:$0xf] }
  0x41   :  { %571 = vrot.lane.b32.xlu0 %v460_v37, %s9509_s11  ;;  %v3160_v6 = vshll.u32 %v8526_v56, 16  ;;  %v3164_v7 = vshrl.u32 %v8526_v56, 16  ;;  %54 = vst.msk [vmem:[#allocation2 + $0x28] sm:$0xf] %vm51_vm3, %v21_v57  ;;  %52 = vst.msk [vmem:[#allocation2] sm:$0xf] %vm51_vm3, %v19_v58 }
  0x42   :  { %v484_v47 = vsel %vm9562_vm2, %v479_v43, %v483_v14  ;;  %v513_v48 = vrot.slane %v512_v44, 4  ;;  %v502_v49 = vor.u32 %v501_v46, %v498_v42  ;;  %55 = vst.msk [vmem:[#allocation2 + $0x3c] sm:$0xf] %vm51_vm3, %v22_v59  ;;  %53 = vst.msk [vmem:[#allocation2 + $0x14] sm:$0xf] %vm51_vm3, %v20_v60  ;;  %v3151_v8 = vshrl.u32 %v8525_v4, 16 }
  0x43   :  { %577 = vrot.lane.b32.xlu1 %v494_v41, %s9509_s11  ;;  %57 = vst.msk [vmem:[#allocation2 + $0x64] sm:$0xf] %vm51_vm3, %v24_v62  ;;  %56 = vst.msk [vmem:[#allocation2 + $0x50] sm:$0xf] %vm51_vm3, %v23_v63  ;;  %v3154_v9 = vshll.u32 %v8525_v4, 16  ;;  %v9276_v10 = vld [vmem:[%s16075_s1 + $0x38] sm:$0xff]  }
  0x44   :  { %v518_v50 = vsel %vm9562_vm2, %v513_v48, %v517_v45  ;;  %v503_v51 = vrot.slane %v502_v49, 4  ;;  %59 = vst.msk [vmem:[#allocation2 + $0x8c] sm:$0xf] %vm51_vm3, %v26_v0  ;;  %58 = vst.msk [vmem:[#allocation2 + $0x78] sm:$0xf] %vm51_vm3, %v25_v1  ;;  %v9883_v15 = vrot.slane %v3160_v6, 5 }
  0x45   :  { %575 = vrot.lane.b32.xlu0 %v484_v47, %s9509_s11  ;;  %61 = vst.msk [vmem:[#allocation2 + $0xb4] sm:$0xf] %vm51_vm3, %v28_v2  ;;  %60 = vst.msk [vmem:[#allocation2 + $0xa0] sm:$0xf] %vm51_vm3, %v27_v3  ;;  %v30_v11 = vld [vmem:[%s16074_s0 + $0x40] sm:$0xf] }
  0x46   :  { %v508_v52 = vsel %vm9562_vm2, %v503_v51, %v507_v34  ;;  %v8185_v12 = vld [vmem:[%s16074_s0 + $0x24] sm:$0xf]  ;;  %63 = vst.msk [vmem:[#allocation2 + $0xdc] sm:$0xf] %vm51_vm3, %v30_v11  ;;  %v29_v13 = vld [vmem:[%s16074_s0 + $0x3c] sm:$0xf] }
  0x47   :  { %581 = vrot.lane.b32.xlu1 %v518_v50, %s9509_s11  ;;  %v8188_v14 = vld [vmem:[%s16074_s0 + $0x34] sm:$0xf]  ;;  %v3166_v16 = vrot.slane %v3164_v7, 4  ;;  %62 = vst.msk [vmem:[#allocation2 + $0xc8] sm:$0xf] %vm51_vm3, %v29_v13  ;;  %v3153_v22 = vrot.slane %v3151_v8, 4 }
  0x48   :  { %v8527_v17 = vld [vmem:[%s16074_s0 + $0x140] sm:$0x1]  ;;  %v8529_v18 = vld [vmem:[%s16074_s0 + $0x148] sm:$0xf]  ;;  %v8187_v20 = vld [vmem:[%s16074_s0 + $0x30] sm:$0xf] }
  0x49   :  { %579 = vrot.lane.b32.xlu0 %v508_v52, %s9509_s11  ;;  %v8190_v21 = vld [vmem:[%s16074_s0 + $0x40] sm:$0xf]  ;;  %v3156_v24 = vrot.slane %v3154_v9, 5  ;;  %v9510_v25 = vmov 0   ;;  %v8528_v26 = vld [vmem:[%s16074_s0 + $0x144] sm:$0xf]  ;;  %v3167_v29 = vor.u32 %v3166_v16, %v9883_v15 }
  0x4a   :  { %7041 = vmatprep.subr.bf16.mxu0 %v9510_v25  ;;  %v32_v27 = vld [vmem:[%s16074_s0 + $0x4c] sm:$0xf]  ;;  %v31_v28 = vld [vmem:[%s16074_s0 + $0x48] sm:$0xf]  ;;  %v3170_v30 = vshll.u32 %v8527_v17, 16  ;;  %v3184_v31 = vshll.u32 %v8529_v18, 16  ;;  %9237 = vmatprep.subr.bf16.mxu1 %v9510_v25 }
  0x4b   :  { %990 = vrot.lane.b32.xlu1 %v8182_v53, %s9509_s11  ;;  %7042 = vmatpush1.bf16.msra.mxu0 %v9276_v10  ;;  %v3188_v32 = vshrl.u32 %v8529_v18, 16  ;;  %65 = vst.msk [vmem:[#allocation2 + $0x104] sm:$0xf] %vm51_vm3, %v32_v27  ;;  %64 = vst.msk [vmem:[#allocation2 + $0xf0] sm:$0xf] %vm51_vm3, %v31_v28  ;;  %v9278_v33 = vld [vmem:[%s16075_s1 + $0x28] sm:$0xff]   ;;  %v3157_v36 = vor.u32 %v3156_v24, %v3153_v22 }
  0x4c   :  { %7043 = vmatprep.subr.bf16.mxu0 %v9510_v25  ;;  %9253 = vmatpush1.bf16.msra.mxu1 %v9276_v10  ;;  %v8189_v34 = vld [vmem:[%s16074_s0 + $0x3c] sm:$0xf]  ;;  %v8192_v35 = vld [vmem:[%s16074_s0 + $0x4c] sm:$0xf]  ;;  %v3175_v37 = vshrl.u32 %v8528_v26, 16  ;;  %v3178_v38 = vshll.u32 %v8528_v26, 16 }
  0x4d   :  { %988 = vrot.lane.b32.xlu0 %v8181_v54, %s9509_s11  ;;  %9238 = vmatprep.subr.bf16.mxu1 %v9510_v25  ;;  %v8530_v39 = vld [vmem:[%s16074_s0 + $0x14c] sm:$0x1]  ;;  %v34_v40 = vld [vmem:[%s16074_s0 + $0x58] sm:$0xf]  ;;  %v33_v41 = vld [vmem:[%s16074_s0 + $0x54] sm:$0xf] }
  0x4e   :  { %9274 = vset.pattern.permute.xlu0 %v9510_v25  ;;  %v3168_v42 = vrot.slane %v3167_v29, 4  ;;  %v3172_v43 = vrot.slane %v3170_v30, 5  ;;  %v9940_v44 = vrot.slane %v3184_v31, 5  ;;  %v3190_v45 = vrot.slane %v3188_v32, 4  ;;  %67 = vst.msk [vmem:[#allocation2 + $0x12c] sm:$0xf] %vm51_vm3, %v34_v40  ;;  %9275 = vset.pattern.permute.xlu1 %v9510_v25 }
  0x4f   :  { %994 = vrot.lane.b32.xlu1 %v8184_v55, %s9509_s11  ;;  %7044 = vmatpush1.bf16.msra.mxu0 %v9277_v19  ;;  %66 = vst.msk [vmem:[#allocation2 + $0x118] sm:$0xf] %vm51_vm3, %v33_v41  ;;  %v8191_v46 = vld [vmem:[%s16074_s0 + $0x48] sm:$0xf]  ;;  %v8532_v47 = vld [vmem:[%s16074_s0 + $0x154] sm:$0xf] }
  0x50   :  { %7045 = vmatprep.subr.bf16.mxu0 %v9510_v25  ;;  %v9279_v48 = vld [vmem:[%s16075_s1 + $0x20] sm:$0xff]   ;;  %9254 = vmatpush1.bf16.msra.mxu1 %v9277_v19  ;;  %v3158_v49 = vrot.slane %v3157_v36, 4  ;;  %v3194_v50 = vshll.u32 %v8530_v39, 16  ;;  %v3177_v51 = vrot.slane %v3175_v37, 4  ;;  %v3180_v52 = vrot.slane %v3178_v38, 5  ;;  %v9281_v11 = vld [vmem:[%s16075_s1 + $0x10] sm:$0xff]  }
  0x51   :  { %992 = vrot.lane.b32.xlu0 %v8183_v61, %s9509_s11  ;;  %v8531_v53 = vld [vmem:[%s16074_s0 + $0x150] sm:$0xf]  ;;  %9239 = vmatprep.subr.bf16.mxu1 %v9510_v25  ;;  %v36_v54 = vld [vmem:[%s16074_s0 + $0x64] sm:$0xf]  ;;  %v35_v55 = vld [vmem:[%s16074_s0 + $0x60] sm:$0xf]  ;;  %v3173_v56 = vsel %vm9562_vm2, %v3168_v42, %v3172_v43  ;;  %v3191_v57 = vor.u32 %v3190_v45, %v9940_v44 }
  0x52   :  { %v3208_v58 = vshll.u32 %v8532_v47, 16  ;;  %v3212_v59 = vshrl.u32 %v8532_v47, 16  ;;  %69 = vst.msk [vmem:[#allocation2 + $0x154] sm:$0xf] %vm51_vm3, %v36_v54  ;;  %68 = vst.msk [vmem:[#allocation2 + $0x140] sm:$0xf] %vm51_vm3, %v35_v55  ;;  %v3163_v0 = vsel %vm9562_vm2, %v3158_v49, %v9883_v15  ;;  %v3181_v1 = vor.u32 %v3180_v52, %v3177_v51 }
  0x53   :  { %998 = vrot.lane.b32.xlu1 %v8186_v5, %s9509_s11  ;;  %7046 = vmatpush1.bf16.msra.mxu0 %v9278_v33  ;;  %v38_v60 = vld [vmem:[%s16074_s0 + $0x70] sm:$0xf]  ;;  %v37_v61 = vld [vmem:[%s16074_s0 + $0x6c] sm:$0xf]  ;;  %v8630_v62 = vld [vmem:[%s16074_s0 + $0x148] sm:$0xf] }
  0x54   :  { %7047 = vmatprep.subr.bf16.mxu0 %v9510_v25  ;;  %9255 = vmatpush1.bf16.msra.mxu1 %v9278_v33  ;;  %v3199_v63 = vshrl.u32 %v8531_v53, 16  ;;  %71 = vst.msk [vmem:[#allocation2 + $0x17c] sm:$0xf] %vm51_vm3, %v38_v60  ;;  %70 = vst.msk [vmem:[#allocation2 + $0x168] sm:$0xf] %vm51_vm3, %v37_v61  ;;  %v3202_v3 = vshll.u32 %v8531_v53, 16 }
  0x55   :  { %996 = vrot.lane.b32.xlu0 %v8185_v12, %s9509_s11  ;;  %9240 = vmatprep.subr.bf16.mxu1 %v9510_v25  ;;  %v8533_v2 = vld [vmem:[%s16074_s0 + $0x158] sm:$0x1]  ;;  %v8535_v4 = vld [vmem:[%s16074_s0 + $0x160] sm:$0xf]  ;;  %v3192_v6 = vrot.slane %v3191_v57, 4  ;;  %v3196_v7 = vrot.slane %v3194_v50, 5 }
  0x56   :  { %v9280_v5 = vld [vmem:[%s16075_s1 + $0x18] sm:$0xff]   ;;  %v9999_v8 = vrot.slane %v3208_v58, 5  ;;  %v3214_v9 = vrot.slane %v3212_v59, 4  ;;  %v3218_v13 = vshll.u32 %v8533_v2, 16  ;;  %v8629_v16 = vld [vmem:[%s16074_s0 + $0x144] sm:$0xf] }
  0x57   :  { %1002 = vrot.lane.b32.xlu1 %v8188_v14, %s9509_s11  ;;  %7048 = vmatpush1.bf16.msra.mxu0 %v9279_v48  ;;  %v40_v10 = vld [vmem:[%s16074_s0 + $0x7c] sm:$0xf]  ;;  %v39_v12 = vld [vmem:[%s16074_s0 + $0x78] sm:$0xf]  ;;  %v3201_v14 = vrot.slane %v3199_v63, 4  ;;  %v3182_v17 = vrot.slane %v3181_v1, 4 }
  0x58   :  { %7049 = vmatprep.subr.bf16.mxu0 %v9510_v25  ;;  %73 = vst.msk [vmem:[#allocation2 + $0x1a4] sm:$0xf] %vm51_vm3, %v40_v10  ;;  %9256 = vmatpush1.bf16.msra.mxu1 %v9279_v48  ;;  %v8534_v15 = vld [vmem:[%s16074_s0 + $0x15c] sm:$0xf]  ;;  %72 = vst.msk [vmem:[#allocation2 + $0x190] sm:$0xf] %vm51_vm3, %v39_v12  ;;  %v3215_v22 = vor.u32 %v3214_v9, %v9999_v8 }
  0x59   :  { %1000 = vrot.lane.b32.xlu0 %v8187_v20, %s9509_s11  ;;  %9241 = vmatprep.subr.bf16.mxu1 %v9510_v25  ;;  %v3204_v18 = vrot.slane %v3202_v3, 5  ;;  %v3232_v19 = vshll.u32 %v8535_v4, 16  ;;  %v3236_v20 = vshrl.u32 %v8535_v4, 16  ;;  %v42_v24 = vld [vmem:[%s16074_s0 + $0x88] sm:$0xf]  ;;  %v3223_v27 = vshrl.u32 %v8534_v15, 16 }
  0x5a   :  { %v41_v26 = vld [vmem:[%s16074_s0 + $0x84] sm:$0xf]  ;;  %v3226_v28 = vshll.u32 %v8534_v15, 16  ;;  %75 = vst.msk [vmem:[#allocation2 + $0x1cc] sm:$0xf] %vm51_vm3, %v42_v24  ;;  %v9282_v29 = vld [vmem:[%s16075_s1 + $0x8] sm:$0xff]   ;;  %v3187_v32 = vsel %vm9562_vm2, %v3182_v17, %v9940_v44 }
  0x5b   :  { %1006 = vrot.lane.b32.xlu1 %v8190_v21, %s9509_s11  ;;  %7050 = vmatpush1.bf16.msra.mxu0 %v9280_v5  ;;  %v3197_v21 = vsel %vm9562_vm2, %v3192_v6, %v3196_v7  ;;  %74 = vst.msk [vmem:[#allocation2 + $0x1b8] sm:$0xf] %vm51_vm3, %v41_v26  ;;  %v44_v30 = vld [vmem:[%s16074_s0 + $0x94] sm:$0xf]  ;;  %v43_v31 = vld [vmem:[%s16074_s0 + $0x90] sm:$0xf]  ;;  %v3205_v33 = vor.u32 %v3204_v18, %v3201_v14 }
  0x5c   :  { %7051 = vmatprep.subr.bf16.mxu0 %v9510_v25  ;;  %9257 = vmatpush1.bf16.msra.mxu1 %v9280_v5  ;;  %77 = vst.msk [vmem:[#allocation2 + $0x1f4] sm:$0xf] %vm51_vm3, %v44_v30  ;;  %76 = vst.msk [vmem:[#allocation2 + $0x1e0] sm:$0xf] %vm51_vm3, %v43_v31  ;;  %v8632_v36 = vld [vmem:[%s16074_s0 + $0x154] sm:$0xf] }
  0x5d   :  { %1004 = vrot.lane.b32.xlu0 %v8189_v34, %s9509_s11  ;;  %9242 = vmatprep.subr.bf16.mxu1 %v9510_v25  ;;  %v10049_v34 = vrot.slane %v3232_v19, 5  ;;  %v3216_v37 = vrot.slane %v3215_v22, 4  ;;  %v3220_v38 = vrot.slane %v3218_v13, 5  ;;  %v8536_v39 = vld [vmem:[%s16074_s0 + $0x164] sm:$0x1]  ;;  %v3225_v40 = vrot.slane %v3223_v27, 4 }
  0x5e   :  { %v3228_v41 = vrot.slane %v3226_v28, 5  ;;  %v8538_v42 = vld [vmem:[%s16074_s0 + $0x16c] sm:$0xf]  ;;  %v9283_v43 = vld [vmem:[%s16075_s1] sm:$0xff]   ;;  %v45_v45 = vld [vmem:[%s16074_s0 + $0x9c] sm:$0xf] }
  0x5f   :  { %1010 = vrot.lane.b32.xlu1 %v8192_v35, %s9509_s11  ;;  %v3238_v35 = vrot.slane %v3236_v20, 4  ;;  %7052 = vmatpush1.bf16.msra.mxu0 %v9281_v11  ;;  %v46_v44 = vld [vmem:[%s16074_s0 + $0xa0] sm:$0xf]  ;;  %v3206_v47 = vrot.slane %v3205_v33, 4  ;;  %v3242_v49 = vshll.u32 %v8536_v39, 16  ;;  %v3221_v51 = vsel %vm9562_vm2, %v3216_v37, %v3220_v38  ;;  %v9284_v1 = vld [vmem:[%s16075_s1 + $0x78] sm:$0xff]  }
  0x60   :  { %7053 = vmatprep.subr.bf16.mxu0 %v9510_v25  ;;  %9258 = vmatpush1.bf16.msra.mxu1 %v9281_v11  ;;  %79 = vst.msk [vmem:[#allocation2 + $0x21c] sm:$0xf] %vm51_vm3, %v46_v44  ;;  %v8537_v50 = vld [vmem:[%s16074_s0 + $0x168] sm:$0xf]  ;;  %78 = vst.msk [vmem:[#allocation2 + $0x208] sm:$0xf] %vm51_vm3, %v45_v45  ;;  %v3229_v58 = vor.u32 %v3228_v41, %v3225_v40 }
  0x61   :  { %1008 = vrot.lane.b32.xlu0 %v8191_v46, %s9509_s11  ;;  %9243 = vmatprep.subr.bf16.mxu1 %v9510_v25  ;;  %v8631_v46 = vld [vmem:[%s16074_s0 + $0x150] sm:$0xf]  ;;  %v3239_v48 = vor.u32 %v3238_v35, %v10049_v34  ;;  %v3256_v52 = vshll.u32 %v8538_v42, 16  ;;  %v3260_v53 = vshrl.u32 %v8538_v42, 16  ;;  %v48_v55 = vld [vmem:[%s16074_s0 + $0xac] sm:$0xf]  ;;  %v3211_v61 = vsel %vm9562_vm2, %v3206_v47, %v9999_v8 }
  0x62   :  { %v8539_v54 = vld [vmem:[%s16074_s0 + $0x170] sm:$0x1]  ;;  %v8634_v57 = vld [vmem:[%s16074_s0 + $0x160] sm:$0xf]  ;;  %v3247_v59 = vshrl.u32 %v8537_v50, 16  ;;  %v3244_v63 = vrot.slane %v3242_v49, 5 }
  0x63   :  { %3376 = vrot.lane.b32.xlu1 %v3173_v56, %s9509_s11  ;;  %7054 = vmatpush1.bf16.msra.mxu0 %v9282_v29  ;;  %v47_v56 = vld [vmem:[%s16074_s0 + $0xa8] sm:$0xf]  ;;  %v8541_v60 = vld [vmem:[%s16074_s0 + $0x178] sm:$0xf]  ;;  %81 = vst.msk [vmem:[#allocation2 + $0x244] sm:$0xf] %vm51_vm3, %v48_v55 }
  0x64   :  { %7055 = vmatprep.subr.bf16.mxu0 %v9510_v25  ;;  %9259 = vmatpush1.bf16.msra.mxu1 %v9282_v29  ;;  %80 = vst.msk [vmem:[#allocation2 + $0x230] sm:$0xf] %vm51_vm3, %v47_v56  ;;  %vm615_vm4 = vcmask 1043968   ;;  %v10113_v2 = vrot.slane %v3256_v52, 5  ;;  %v3262_v3 = vrot.slane %v3260_v53, 4  ;;  %v3230_v7 = vrot.slane %v3229_v58, 4 }
  0x65   :  { %3374 = vrot.lane.b32.xlu0 %v3163_v0, %s9509_s11  ;;  %9244 = vmatprep.subr.bf16.mxu1 %v9510_v25  ;;  %v3250_v0 = vshll.u32 %v8537_v50, 16  ;;  %v50_v4 = vld [vmem:[%s16074_s0 + $0xb8] sm:$0xf]  ;;  %v49_v5 = vld [vmem:[%s16074_s0 + $0xb4] sm:$0xf]  ;;  %v3266_v8 = vshll.u32 %v8539_v54, 16 }
  0x66   :  { %v8633_v6 = vld [vmem:[%s16074_s0 + $0x15c] sm:$0xf]  ;;  %83 = vst.msk [vmem:[#allocation2 + $0x26c] sm:$0xf] %vm51_vm3, %v50_v4  ;;  %82 = vst.msk [vmem:[#allocation2 + $0x258] sm:$0xf] %vm51_vm3, %v49_v5  ;;  %v3235_v24 = vsel %vm9562_vm2, %v3230_v7, %v10049_v34 }
  0x67   :  { %3841 = vrot.lane.b32.xlu1 %v8630_v62, %s9509_s11  ;;  %v3240_v62 = vrot.slane %v3239_v48, 4  ;;  %7056 = vmatpush1.bf16.msra.mxu0 %v9283_v43  ;;  %v3249_v9 = vrot.slane %v3247_v59, 4  ;;  %v8540_v10 = vld [vmem:[%s16074_s0 + $0x174] sm:$0xf]  ;;  %v3252_v12 = vrot.slane %v3250_v0, 5  ;;  %v3280_v13 = vshll.u32 %v8541_v60, 16 }
  0x68   :  { %7057 = vmatprep.subr.bf16.mxu0 %v9510_v25  ;;  %9260 = vmatpush1.bf16.msra.mxu1 %v9283_v43  ;;  %v9285_v11 = vld [vmem:[%s16075_s1 + $0x70] sm:$0xff]   ;;  %vm744_vm5 = vcmask 1042432   ;;  %vm745_vm6 = vcmask 1046532   ;;  %v649_v14 = vld [vmem:[%s16074_s0 + $0x4] sm:$0xf]  ;;  %v3284_v17 = vshrl.u32 %v8541_v60, 16 }
  0x69   :  { %3839 = vrot.lane.b32.xlu0 %v8629_v16, %s9509_s11  ;;  %9245 = vmatprep.subr.bf16.mxu1 %v9510_v25  ;;  %v3245_v15 = vsel %vm9562_vm2, %v3240_v62, %v3244_v63  ;;  %v3263_v16 = vor.u32 %v3262_v3, %v10113_v2  ;;  %v650_v18 = vld [vmem:[%s16074_s0 + $0x8] sm:$0x1]  ;;  %v749_v19 = vrot.slane %v649_v14, 5  ;;  %v648_v20 = vld [vmem:[%s16074_s0] sm:$0xe]  ;;  %v10153_v26 = vrot.slane %v3266_v8, 5  ;;  %vm10157_vm7 = vmor %vm744_vm5, %vm745_vm6 }
  0x6a   :  { %v8165_v22 = vrot.slane %v648_v20, 9  ;;  %v3271_v27 = vshrl.u32 %v8540_v10, 16  ;;  %v9286_v29 = vld [vmem:[%s16075_s1 + $0x68] sm:$0xff]   ;;  %v8542_v33 = vld [vmem:[%s16074_s0 + $0x17c] sm:$0x1]  ;;  %v10172_v34 = vrot.slane %v3280_v13, 5 }
  0x6b   :  { %3380 = vrot.lane.b32.xlu1 %v3197_v21, %s9509_s11  ;;  %7058 = vmatpush2.bf16.msra.mxu0 %v9284_v1  ;;  %v752_v21 = vrot.slane %v650_v18, 5  ;;  %v751_v30 = vrot.slane %v749_v19, 4  ;;  %v8636_v31 = vld [vmem:[%s16074_s0 + $0x16c] sm:$0xf]  ;;  %v3274_v35 = vshll.u32 %v8540_v10, 16  ;;  %v3264_v37 = vrot.slane %v3263_v16, 4 }
  0x6c   :  { %7059 = vmatprep.subr.bf16.mxu0 %v9510_v25  ;;  %9261 = vmatpush2.bf16.msra.mxu1 %v9284_v1  ;;  %v3286_v38 = vrot.slane %v3284_v17, 4  ;;  %v652_v40 = vld [vmem:[%s16074_s0 + $0x10] sm:$0xf]  ;;  %v653_v41 = vld [vmem:[%s16074_s0 + $0x14] sm:$0x1]  ;;  %v9287_v47 = vld [vmem:[%s16075_s1 + $0x60] sm:$0xff]  }
  0x6d   :  { %3378 = vrot.lane.b32.xlu0 %v3187_v32, %s9509_s11  ;;  %9246 = vmatprep.subr.bf16.mxu1 %v9510_v25  ;;  %v3253_v32 = vor.u32 %v3252_v12, %v3249_v9  ;;  %v753_v39 = vsel %vm10157_vm7, %v751_v30, %v752_v21  ;;  %v8635_v43 = vld [vmem:[%s16074_s0 + $0x168] sm:$0xf]  ;;  %v756_v44 = vrot.slane %v652_v40, 5  ;;  %v651_v45 = vld [vmem:[%s16074_s0 + $0xc] sm:$0xe]  ;;  %v759_v48 = vrot.slane %v653_v41, 5 }
  0x6e   :  { %892 = vst.msk [vmem:[#allocation2 + $0x18] sm:$0xf] %vm51_vm3, %v753_v39  ;;  %v8166_v49 = vrot.slane %v651_v45, 9  ;;  %v3276_v52 = vrot.slane %v3274_v35, 5  ;;  %v3269_v55 = vsel %vm9562_vm2, %v3264_v37, %v10153_v26  ;;  %v3287_v56 = vor.u32 %v3286_v38, %v10172_v34  ;;  %v655_v59 = vld [vmem:[%s16074_s0 + $0x1c] sm:$0xf] }
  0x6f   :  { %3845 = vrot.lane.b32.xlu1 %v8632_v36, %s9509_s11  ;;  %7060 = vmatpush2.bf16.msra.mxu0 %v9285_v11  ;;  %v750_v36 = vsel %vm10157_vm7, %v8165_v22, %v749_v19  ;;  %v3254_v50 = vrot.slane %v3253_v32, 4  ;;  %v758_v53 = vrot.slane %v756_v44, 4  ;;  %v656_v60 = vld [vmem:[%s16074_s0 + $0x20] sm:$0x1]  ;;  %v10222_v62 = vld [vmem:[%s16075_s1 + $0x58] sm:$0xff]   ;;  %v763_v0 = vrot.slane %v655_v59, 5 }
  0x70   :  { %7061 = vmatprep.subr.bf16.mxu0 %v9510_v25  ;;  %891 = vst.msk [vmem:[#allocation2 + $0x4] sm:$0xf] %vm51_vm3, %v750_v36  ;;  %9262 = vmatpush2.bf16.msra.mxu1 %v9285_v11  ;;  %v757_v58 = vsel %vm10157_vm7, %v8166_v49, %v756_v44  ;;  %v766_v1 = vrot.slane %v656_v60, 5  ;;  %v654_v3 = vld [vmem:[%s16074_s0 + $0x18] sm:$0xe]  ;;  %v3288_v13 = vrot.slane %v3287_v56, 4 }
  0x71   :  { %3843 = vrot.lane.b32.xlu0 %v8631_v46, %s9509_s11  ;;  %v3290_v46 = vshll.u32 %v8542_v33, 16  ;;  %9247 = vmatprep.subr.bf16.mxu1 %v9510_v25  ;;  %v760_v63 = vsel %vm10157_vm7, %v758_v53, %v759_v48  ;;  %893 = vst.msk [vmem:[#allocation2 + $0x2c] sm:$0xf] %vm51_vm3, %v757_v58  ;;  %v8167_v5 = vrot.slane %v654_v3, 9  ;;  %v8638_v7 = vld [vmem:[%s16074_s0 + $0x178] sm:$0xf] }
  0x72   :  { %894 = vst.msk [vmem:[#allocation2 + $0x40] sm:$0xf] %vm51_vm3, %v760_v63  ;;  %v10247_v10 = vld [vmem:[%s16074_s0 + $0x180] sm:$0xf]  ;;  %v765_v11 = vrot.slane %v763_v0, 4  ;;  %vm6944_vm8 = vcmask 523264  }
  0x73   :  { %3384 = vrot.lane.b32.xlu1 %v3221_v51, %s9509_s11  ;;  %v3273_v51 = vrot.slane %v3271_v27, 4  ;;  %7062 = vmatpush2.bf16.msra.mxu0 %v9286_v29  ;;  %v10232_v4 = vrot.slane %v3290_v46, 5  ;;  %v658_v16 = vld [vmem:[%s16074_s0 + $0x28] sm:$0xf]  ;;  %v8637_v18 = vld [vmem:[%s16074_s0 + $0x174] sm:$0xf] }
  0x74   :  { %7063 = vmatprep.subr.bf16.mxu0 %v9510_v25  ;;  %9263 = vmatpush2.bf16.msra.mxu1 %v9286_v29  ;;  %v767_v19 = vsel %vm10157_vm7, %v765_v11, %v766_v1  ;;  %v659_v20 = vld [vmem:[%s16074_s0 + $0x2c] sm:$0x1]  ;;  %v770_v21 = vrot.slane %v658_v16, 5  ;;  %v657_v22 = vld [vmem:[%s16074_s0 + $0x24] sm:$0xe]  ;;  %v3295_v26 = vshrl.u32 %v10247_v10, 16 }
  0x75   :  { %3382 = vrot.lane.b32.xlu0 %v3211_v61, %s9509_s11  ;;  %9248 = vmatprep.subr.bf16.mxu1 %v9510_v25  ;;  %v3277_v8 = vor.u32 %v3276_v52, %v3273_v51  ;;  %v9289_v27 = vld [vmem:[%s16075_s1 + $0x50] sm:$0xff]   ;;  %896 = vst.msk [vmem:[#allocation2 + $0x68] sm:$0xf] %vm51_vm3, %v767_v19  ;;  %v773_v29 = vrot.slane %v659_v20, 5  ;;  %v8168_v30 = vrot.slane %v657_v22, 9  ;;  %v3298_v33 = vshll.u32 %v10247_v10, 16 }
  0x76   :  { %v8546_v35 = vld [vmem:[%s16074_s0 + $0x18c] sm:$0xf]  ;;  %v772_v36 = vrot.slane %v770_v21, 4  ;;  %v3293_v38 = vsel %vm9562_vm2, %v3288_v13, %v10232_v4  ;;  %v660_v52 = vld [vmem:[%s16074_s0 + $0x30] sm:$0xe] }
  0x77   :  { %3849 = vrot.lane.b32.xlu1 %v8634_v57, %s9509_s11  ;;  %v10207_v57 = vld [vmem:[%s16074_s0 + $0x184] sm:$0xf]  ;;  %7064 = vmatpush2.bf16.msra.mxu0 %v9287_v47  ;;  %v771_v41 = vsel %vm10157_vm7, %v8168_v30, %v770_v21  ;;  %v3319_v48 = vshrl.u32 %v8546_v35, 16  ;;  %v3322_v49 = vshll.u32 %v8546_v35, 16  ;;  %v3300_v56 = vrot.slane %v3298_v33, 5 }
  0x78   :  { %v3304_v9 = vshll.u32 %v10207_v57, 16  ;;  %v3308_v14 = vshrl.u32 %v10207_v57, 16  ;;  %7065 = vmatprep.subr.bf16.mxu0 %v9510_v25  ;;  %9264 = vmatpush2.bf16.msra.mxu1 %v9287_v47  ;;  %v774_v46 = vsel %vm10157_vm7, %v772_v36, %v773_v29  ;;  %897 = vst.msk [vmem:[#allocation2 + $0x7c] sm:$0xf] %vm51_vm3, %v771_v41  ;;  %v662_v47 = vld [vmem:[%s16074_s0 + $0x38] sm:$0x1] }
  0x79   :  { %3847 = vrot.lane.b32.xlu0 %v8633_v6, %s9509_s11  ;;  %v3259_v6 = vsel %vm9562_vm2, %v3254_v50, %v10113_v2  ;;  %v10253_v2 = vld [vmem:[%s16074_s0 + $0x190] sm:$0xf]  ;;  %9249 = vmatprep.subr.bf16.mxu1 %v9510_v25  ;;  %898 = vst.msk [vmem:[#allocation2 + $0x90] sm:$0xf] %vm51_vm3, %v774_v46  ;;  %v780_v51 = vrot.slane %v662_v47, 5  ;;  %v9290_v57 = vld [vmem:[%s16075_s1 + $0x48] sm:$0xff]  }
  0x7a   :  { %v10288_v32 = vrot.slane %v3304_v9, 5  ;;  %v10298_v39 = vrot.slane %v3308_v14, 4  ;;  %v3328_v40 = vshll.u32 %v10253_v2, 16  ;;  %v3332_v45 = vshrl.u32 %v10253_v2, 16  ;;  %v665_v63 = vld [vmem:[%s16074_s0 + $0x44] sm:$0x1] }
  0x7b   :  { %3388 = vrot.lane.b32.xlu1 %v3245_v15, %s9509_s11  ;;  %v764_v15 = vsel %vm10157_vm7, %v8167_v5, %v763_v0  ;;  %7066 = vmatpush2.bf16.msra.mxu0 %v10222_v62  ;;  %v8169_v58 = vrot.slane %v660_v52, 9  ;;  %v787_v5 = vrot.slane %v665_v63, 5  ;;  %v3324_v9 = vrot.slane %v3322_v49, 5  ;;  %v8548_v14 = vld [vmem:[%s16074_s0 + $0x194] sm:$0x1]  ;;  %v9291_v2 = vld [vmem:[%s16075_s1 + $0x40] sm:$0xff]  }
  0x7c   :  { %895 = vst.msk [vmem:[#allocation2 + $0x54] sm:$0xf] %vm51_vm3, %v764_v15  ;;  %7067 = vmatprep.subr.bf16.mxu0 %v9510_v25  ;;  %9265 = vmatpush2.bf16.msra.mxu1 %v10222_v62  ;;  %v3311_v60 = vor.u32 %v10298_v39, %v10288_v32  ;;  %v664_v62 = vld [vmem:[%s16074_s0 + $0x40] sm:$0xf]  ;;  %v10346_v1 = vrot.slane %v3332_v45, 4 }
  0x7d   :  { %v524_v42 = vpop.permute.xlu1 %523  ;;  %3386 = vrot.lane.b32.xlu0 %v3235_v24, %s9509_s11  ;;  %v10279_v24 = vld [vmem:[%s16074_s0 + $0x188] sm:$0x1]  ;;  %9250 = vmatprep.subr.bf16.mxu1 %v9510_v25  ;;  %v784_v4 = vrot.slane %v664_v62, 5  ;;  %v8486_v20 = vld [vmem:[%s16074_s0 + $0x13c] sm:$0xf] }
  0x7e   :  { %618 = vst.msk [vmem:[#allocation2 + $0x28] sm:$0xf] %vm615_vm4, %v524_v42  ;;  %v661_v42 = vld [vmem:[%s16074_s0 + $0x34] sm:$0xf]  ;;  %v3314_v44 = vshll.u32 %v10279_v24, 16 }
  0x7f   :  { %3853 = vrot.lane.b32.xlu1 %v8636_v31, %s9509_s11  ;;  %v520_v54 = vpop.permute.xlu0 %519  ;;  %v3278_v31 = vrot.slane %v3277_v8, 4  ;;  %v777_v50 = vrot.slane %v661_v42, 5  ;;  %7068 = vmatpush2.bf16.msra.mxu0 %v9289_v27  ;;  %v3321_v8 = vrot.slane %v3319_v48, 4  ;;  %v786_v15 = vrot.slane %v784_v4, 4  ;;  %v8485_v21 = vld [vmem:[%s16074_s0 + $0x138] sm:$0xf] }
  0x80   :  { %616 = vst.msk [vmem:[#allocation2] sm:$0xf] %vm615_vm4, %v520_v54  ;;  %v8640_v54 = vld [vmem:[%s16074_s0 + $0x184] sm:$0xf]  ;;  %7069 = vmatprep.subr.bf16.mxu0 %v9510_v25  ;;  %9266 = vmatpush2.bf16.msra.mxu1 %v9289_v27  ;;  %v3338_v27 = vshll.u32 %v8548_v14, 16 }
  0x81   :  { %v526_v61 = vpop.permute.xlu1 %525  ;;  %3851 = vrot.lane.b32.xlu0 %v8635_v43, %s9509_s11  ;;  %v3283_v53 = vsel %vm9562_vm2, %v3278_v31, %v10172_v34  ;;  %v779_v34 = vrot.slane %v777_v50, 4  ;;  %v778_v3 = vsel %vm10157_vm7, %v8169_v58, %v777_v50  ;;  %9251 = vmatprep.subr.bf16.mxu1 %v9510_v25  ;;  %v788_v24 = vsel %vm10157_vm7, %v786_v15, %v787_v5  ;;  %v8574_v30 = vld [vmem:[%s16074_s0 + $0x13c] sm:$0xf]  ;;  %v8193_v31 = vld [vmem:[%s16074_s0 + $0x54] sm:$0xf] }
  0x82   :  { %619 = vst.msk [vmem:[#allocation2 + $0x3c] sm:$0xf] %vm615_vm4, %v526_v61  ;;  %v10336_v61 = vrot.slane %v3328_v40, 5  ;;  %v3325_v29 = vor.u32 %v3324_v9, %v3321_v8  ;;  %v8575_v35 = vld [vmem:[%s16074_s0 + $0x140] sm:$0x1]  ;;  %v3624_v39 = vrot.slane %v8574_v30, 5 }
  0x83   :  { %3392 = vrot.lane.b32.xlu1 %v3269_v55, %s9509_s11  ;;  %v522_v12 = vpop.permute.xlu0 %521  ;;  %v3297_v55 = vrot.slane %v3295_v26, 4  ;;  %v781_v10 = vsel %vm10157_vm7, %v779_v34, %v780_v51  ;;  %899 = vst.msk [vmem:[#allocation2 + $0xa4] sm:$0xf] %vm51_vm3, %v778_v3  ;;  %7070 = vmatpush2.bf16.msra.mxu0 %v9290_v57  ;;  %2895 = vst.msk [vmem:[#allocation2 + $0x3d4] sm:$0xf] %vm51_vm3, %v8486_v20  ;;  %v3627_v40 = vrot.slane %v8575_v35, 5 }
  0x84   :  { %617 = vst.msk [vmem:[#allocation2 + $0x14] sm:$0xf] %vm615_vm4, %v522_v12  ;;  %v8194_v12 = vld [vmem:[%s16074_s0 + $0x58] sm:$0xf]  ;;  %7071 = vmatprep.subr.bf16.mxu0 %v9510_v25  ;;  %9267 = vmatpush2.bf16.msra.mxu1 %v9290_v57  ;;  %v3335_v26 = vor.u32 %v10346_v1, %v10336_v61  ;;  %v8642_v45 = vld [vmem:[%s16074_s0 + $0x190] sm:$0xf] }
  0x85   :  { %v530_v17 = vpop.permute.xlu1 %529  ;;  %3390 = vrot.lane.b32.xlu0 %v3259_v6, %s9509_s11  ;;  %v663_v6 = vld [vmem:[%s16074_s0 + $0x3c] sm:$0xe]  ;;  %v3301_v13 = vor.u32 %v3300_v56, %v3297_v55  ;;  %900 = vst.msk [vmem:[#allocation2 + $0xb8] sm:$0xf] %vm51_vm3, %v781_v10  ;;  %2894 = vst.msk [vmem:[#allocation2 + $0x3c0] sm:$0xf] %vm51_vm3, %v8485_v21  ;;  %9252 = vmatprep.subr.bf16.mxu1 %v9510_v25 }
  0x86   :  { %621 = vst.msk [vmem:[#allocation2 + $0x64] sm:$0xf] %vm615_vm4, %v530_v17  ;;  %v8170_v11 = vrot.slane %v663_v6, 9  ;;  %v3312_v17 = vrot.slane %v3311_v60, 4  ;;  %v8573_v41 = vld [vmem:[%s16074_s0 + $0x138] sm:$0xe] }
  0x87   :  { %3857 = vrot.lane.b32.xlu1 %v8638_v7, %s9509_s11  ;;  %v528_v37 = vpop.permute.xlu0 %527  ;;  %v8639_v7 = vld [vmem:[%s16074_s0 + $0x180] sm:$0xf]  ;;  %902 = vst.msk [vmem:[#allocation2 + $0xe0] sm:$0xf] %vm51_vm3, %v788_v24  ;;  %v3302_v33 = vrot.slane %v3301_v13, 4  ;;  %7072 = vmatpush2.bf16.msra.mxu0 %v9291_v2  ;;  %v10421_v46 = vrot.slane %v3335_v26, 4 }
  0x88   :  { %620 = vst.msk [vmem:[#allocation2 + $0x50] sm:$0xf] %vm615_vm4, %v528_v37  ;;  %v785_v19 = vsel %vm10157_vm7, %v8170_v11, %v784_v4  ;;  %9268 = vmatpush2.bf16.msra.mxu1 %v9291_v2  ;;  %v10423_v47 = vrot.slane %v3338_v27, 5  ;;  %v10425_v48 = vrot.slane %v3325_v29, 4  ;;  %v3626_v49 = vrot.slane %v3624_v39, 4 }
  0x89   :  { %v534_v43 = vpop.permute.xlu1 %533  ;;  %3855 = vrot.lane.b32.xlu0 %v8637_v18, %s9509_s11  ;;  %v3316_v18 = vrot.slane %v3314_v44, 5  ;;  %901 = vst.msk [vmem:[#allocation2 + $0xcc] sm:$0xf] %vm51_vm3, %v785_v19  ;;  %v8605_v44 = vrot.slane %v8573_v41, 9  ;;  %v8488_v50 = vld [vmem:[%s16074_s0 + $0x148] sm:$0xf]  ;;  %7330 = vmatprep.subr.bf16.mxu1 %v9510_v25  ;;  %v3307_v51 = vsel %vm9562_vm2, %v3302_v33, %v10288_v32 }
  0x8a   :  { %623 = vst.msk [vmem:[#allocation2 + $0x8c] sm:$0xf] %vm615_vm4, %v534_v43  ;;  %v8357_v43 = vld [vmem:[%s16074_s0 + $0x18] sm:$0xf]  ;;  %v10438_v52 = vld [vmem:[%s16074_s0 + $0x10] sm:$0xf]  ;;  %v3628_v34 = vsel %vm10157_vm7, %v3626_v49, %v3627_v40 }
  0x8b   :  { %3396 = vrot.lane.b32.xlu1 %v3293_v38, %s9509_s11  ;;  %v532_v59 = vpop.permute.xlu0 %531  ;;  %v3317_v37 = vsel %vm9562_vm2, %v3312_v17, %v3316_v18  ;;  %v8358_v38 = vld [vmem:[%s16074_s0 + $0x1c] sm:$0xf]  ;;  %v3625_v55 = vsel %vm10157_vm7, %v8605_v44, %v3624_v39  ;;  %2897 = vst.msk [vmem:[#allocation2 + $0x3fc] sm:$0xf] %vm51_vm3, %v8488_v50  ;;  %v8487_v56 = vld [vmem:[%s16074_s0 + $0x144] sm:$0xf] }
  0x8c   :  { %622 = vst.msk [vmem:[#allocation2 + $0x78] sm:$0xf] %vm615_vm4, %v532_v59  ;;  %v10449_v32 = vld [vmem:[%s16074_s0 + $0x14] sm:$0x1]  ;;  %v2062_v58 = vshrl.u32 %v8357_v43, 16  ;;  %v2065_v59 = vshll.u32 %v8357_v43, 16  ;;  %v3331_v43 = vsel %vm9562_vm2, %v10425_v48, %v10336_v61 }
  0x8d   :  { %v538_v0 = vpop.permute.xlu1 %537  ;;  %3394 = vrot.lane.b32.xlu0 %v3283_v53, %s9509_s11  ;;  %v2071_v53 = vshll.u32 %v8358_v38, 16  ;;  %v10454_v60 = vld [vmem:[%s16074_s0 + $0x28] sm:$0xf]  ;;  %3726 = vst.msk [vmem:[#allocation2 + $0x3c4] sm:$0xf] %vm51_vm3, %v3625_v55  ;;  %v1710_v2 = vrot.slane %v10438_v52, 5 }
  0x8e   :  { %625 = vst.msk [vmem:[#allocation2 + $0xb4] sm:$0xf] %vm615_vm4, %v538_v0  ;;  %v8641_v63 = vld [vmem:[%s16074_s0 + $0x18c] sm:$0xf]  ;;  %v8577_v1 = vld [vmem:[%s16074_s0 + $0x148] sm:$0xf] }
  0x8f   :  { %3861 = vrot.lane.b32.xlu1 %v8640_v54, %s9509_s11  ;;  %v536_v16 = vpop.permute.xlu0 %535  ;;  %v2075_v54 = vshrl.u32 %v8358_v38, 16  ;;  %2896 = vst.msk [vmem:[#allocation2 + $0x3e8] sm:$0xf] %vm51_vm3, %v8487_v56  ;;  %v10467_v0 = vld [vmem:[%s16074_s0 + $0xc] sm:$0xe]  ;;  %v3631_v6 = vrot.slane %v8577_v1, 5 }
  0x90   :  { %624 = vst.msk [vmem:[#allocation2 + $0xa0] sm:$0xf] %vm615_vm4, %v536_v16  ;;  %v8578_v3 = vld [vmem:[%s16074_s0 + $0x14c] sm:$0x1]  ;;  %v8196_v4 = vld [vmem:[%s16074_s0 + $0x64] sm:$0xf] }
  0x91   :  { %v542_v22 = vpop.permute.xlu1 %541  ;;  %3859 = vrot.lane.b32.xlu0 %v8639_v7, %s9509_s11  ;;  %3727 = vst.msk [vmem:[#allocation2 + $0x3d8] sm:$0xf] %vm51_vm3, %v3628_v34  ;;  %v8359_v5 = vld [vmem:[%s16074_s0 + $0x20] sm:$0x1]  ;;  %v3634_v7 = vrot.slane %v8578_v3, 5  ;;  %v10488_v9 = vrot.slane %v2071_v53, 5 }
  0x92   :  { %627 = vst.msk [vmem:[#allocation2 + $0xdc] sm:$0xf] %vm615_vm4, %v542_v22  ;;  %v8576_v8 = vld [vmem:[%s16074_s0 + $0x144] sm:$0xe]  ;;  %v2077_v10 = vrot.slane %v2075_v54, 4  ;;  %v2095_v11 = vshll.u32 %v10454_v60, 16 }
  0x93   :  { %1014 = vrot.lane.b32.xlu1 %v8194_v12, %s9509_s11  ;;  %v540_v36 = vpop.permute.xlu0 %539  ;;  %v8360_v12 = vld [vmem:[%s16074_s0 + $0x24] sm:$0xf]  ;;  %v8606_v13 = vrot.slane %v8576_v8, 9  ;;  %v2064_v15 = vrot.slane %v2062_v58, 4  ;;  %v2067_v16 = vrot.slane %v2065_v59, 5  ;;  %v3633_v18 = vrot.slane %v3631_v6, 4 }
  0x94   :  { %626 = vst.msk [vmem:[#allocation2 + $0xc8] sm:$0xf] %vm615_vm4, %v540_v36  ;;  %v10498_v17 = vld [vmem:[%s16074_s0 + $0x1c] sm:$0xf]  ;;  %v8195_v20 = vld [vmem:[%s16074_s0 + $0x60] sm:$0xf]  ;;  %v2078_v36 = vor.u32 %v2077_v10, %v10488_v9 }
  0x95   :  { %v546_v42 = vpop.permute.xlu1 %545  ;;  %1012 = vrot.lane.b32.xlu0 %v8193_v31, %s9509_s11  ;;  %v1713_v21 = vrot.slane %v10449_v32, 5  ;;  %v8309_v22 = vrot.slane %v10467_v0, 9  ;;  %v2099_v24 = vshrl.u32 %v10454_v60, 16  ;;  %v3632_v26 = vsel %vm10157_vm7, %v8606_v13, %v3631_v6  ;;  %v8490_v27 = vld [vmem:[%s16074_s0 + $0x154] sm:$0xf] }
  0x96   :  { %629 = vst.msk [vmem:[#allocation2 + $0x104] sm:$0xf] %vm615_vm4, %v546_v42  ;;  %v2081_v29 = vshll.u32 %v8359_v5, 16  ;;  %v2086_v30 = vshrl.u32 %v8360_v12, 16  ;;  %v2089_v31 = vshll.u32 %v8360_v12, 16  ;;  %v3635_v33 = vsel %vm10157_vm7, %v3633_v18, %v3634_v7 }
  0x97   :  { %3400 = vrot.lane.b32.xlu1 %v3317_v37, %s9509_s11  ;;  %v544_v57 = vpop.permute.xlu0 %543  ;;  %3728 = vst.msk [vmem:[#allocation2 + $0x3ec] sm:$0xf] %vm51_vm3, %v3632_v26  ;;  %2899 = vst.msk [vmem:[#allocation2 + $0x424] sm:$0xf] %vm51_vm3, %v8490_v27  ;;  %v8489_v35 = vld [vmem:[%s16074_s0 + $0x150] sm:$0xf]  ;;  %v3341_v42 = vsel %vm9562_vm2, %v10421_v46, %v10423_v47  ;;  %v2068_v44 = vor.u32 %v2067_v16, %v2064_v15 }
  0x98   :  { %628 = vst.msk [vmem:[#allocation2 + $0xf0] sm:$0xf] %vm615_vm4, %v544_v57  ;;  %v10526_v37 = vld [vmem:[%s16074_s0 + $0x20] sm:$0x1]  ;;  %v1717_v38 = vrot.slane %v10498_v17, 5  ;;  %v10532_v40 = vrot.slane %v2095_v11, 5 }
  0x99   :  { %v550_v62 = vpop.permute.xlu1 %549  ;;  %3398 = vrot.lane.b32.xlu0 %v3307_v51, %s9509_s11  ;;  %v8362_v39 = vld [vmem:[%s16074_s0 + $0x2c] sm:$0x1]  ;;  %3729 = vst.msk [vmem:[#allocation2 + $0x400] sm:$0xf] %vm51_vm3, %v3635_v33  ;;  %2898 = vst.msk [vmem:[#allocation2 + $0x410] sm:$0xf] %vm51_vm3, %v8489_v35 }
  0x9a   :  { %631 = vst.msk [vmem:[#allocation2 + $0x12c] sm:$0xf] %vm615_vm4, %v550_v62  ;;  %v8581_v49 = vld [vmem:[%s16074_s0 + $0x158] sm:$0x1]  ;;  %v8579_v50 = vld [vmem:[%s16074_s0 + $0x150] sm:$0xe] }
  0x9b   :  { %3865 = vrot.lane.b32.xlu1 %v8642_v45, %s9509_s11  ;;  %v548_v14 = vpop.permute.xlu0 %547  ;;  %v8580_v45 = vld [vmem:[%s16074_s0 + $0x154] sm:$0xf]  ;;  %v10557_v61 = vld [vmem:[%s16074_s0 + $0x18] sm:$0xe]  ;;  %v2101_v47 = vrot.slane %v2099_v24, 4  ;;  %v3641_v51 = vrot.slane %v8581_v49, 5 }
  0x9c   :  { %630 = vst.msk [vmem:[#allocation2 + $0x118] sm:$0xf] %vm615_vm4, %v548_v14  ;;  %v3638_v48 = vrot.slane %v8580_v45, 5  ;;  %v8607_v53 = vrot.slane %v8579_v50, 9  ;;  %v8644_v54 = vld [vmem:[%s16074_s0 + $0x19c] sm:$0xf] }
  0x9d   :  { %v554_v19 = vpop.permute.xlu1 %553  ;;  %3863 = vrot.lane.b32.xlu0 %v8641_v63, %s9509_s11  ;;  %v10566_v55 = vrot.slane %v1710_v2, 4  ;;  %v10568_v56 = vrot.slane %v2081_v29, 5  ;;  %v2088_v57 = vrot.slane %v2086_v30, 4  ;;  %v2091_v58 = vrot.slane %v2089_v31, 5  ;;  %v8364_v59 = vld [vmem:[%s16074_s0 + $0x34] sm:$0xf] }
  0x9e   :  { %633 = vst.msk [vmem:[#allocation2 + $0x154] sm:$0xf] %vm615_vm4, %v554_v19  ;;  %v10574_v60 = vrot.slane %v2078_v36, 4  ;;  %v2105_v34 = vshll.u32 %v8362_v39, 16  ;;  %v3640_v62 = vrot.slane %v3638_v48, 4  ;;  %v3639_v63 = vsel %vm10157_vm7, %v8607_v53, %v3638_v48 }
  0x9f   :  { %1018 = vrot.lane.b32.xlu1 %v8196_v4, %s9509_s11  ;;  %v552_v41 = vpop.permute.xlu0 %551  ;;  %v8492_v1 = vld [vmem:[%s16074_s0 + $0x160] sm:$0xf]  ;;  %v10581_v4 = vrot.slane %v2068_v44, 4  ;;  %v10585_v5 = vrot.slane %v1717_v38, 4  ;;  %v1720_v6 = vrot.slane %v10526_v37, 5  ;;  %v8310_v7 = vrot.slane %v10557_v61, 9 }
  0xa0   :  { %632 = vst.msk [vmem:[#allocation2 + $0x140] sm:$0xf] %vm615_vm4, %v552_v41  ;;  %v8491_v8 = vld [vmem:[%s16074_s0 + $0x15c] sm:$0xf]  ;;  %v8643_v11 = vld [vmem:[%s16074_s0 + $0x198] sm:$0xf]  ;;  %v2102_v12 = vor.u32 %v2101_v47, %v10532_v40  ;;  %v3642_v16 = vsel %vm10157_vm7, %v3640_v62, %v3641_v51  ;;  %v2092_v19 = vor.u32 %v2091_v58, %v2088_v57  ;;  %v1714_v57 = vsel %vm10157_vm7, %v10566_v55, %v1713_v21 }
  0xa1   :  { %v558_v46 = vpop.permute.xlu1 %557  ;;  %1016 = vrot.lane.b32.xlu0 %v8195_v20, %s9509_s11  ;;  %3730 = vst.msk [vmem:[#allocation2 + $0x414] sm:$0xf] %vm51_vm3, %v3639_v63  ;;  %2901 = vst.msk [vmem:[#allocation2 + $0x44c] sm:$0xf] %vm51_vm3, %v8492_v1  ;;  %v2119_v13 = vshll.u32 %v8364_v59, 16  ;;  %v2123_v14 = vshrl.u32 %v8364_v59, 16 }
  0xa2   :  { %635 = vst.msk [vmem:[#allocation2 + $0x17c] sm:$0xf] %vm615_vm4, %v558_v46  ;;  %v8363_v15 = vld [vmem:[%s16074_s0 + $0x30] sm:$0xf]  ;;  %v10613_v20 = vld [vmem:[%s16074_s0 + $0x28] sm:$0xf] }
  0xa3   :  { %3404 = vrot.lane.b32.xlu1 %v3341_v42, %s9509_s11  ;;  %v556_v3 = vpop.permute.xlu0 %555  ;;  %2900 = vst.msk [vmem:[#allocation2 + $0x438] sm:$0xf] %vm51_vm3, %v8491_v8  ;;  %v8198_v18 = vld [vmem:[%s16074_s0 + $0x70] sm:$0xf]  ;;  %3731 = vst.msk [vmem:[#allocation2 + $0x428] sm:$0xf] %vm51_vm3, %v3642_v16  ;;  %v2084_v16 = vsel %vm9562_vm2, %v10574_v60, %v10568_v56 }
  0xa4   :  { %634 = vst.msk [vmem:[#allocation2 + $0x168] sm:$0xf] %vm615_vm4, %v556_v3  ;;  %v8583_v24 = vld [vmem:[%s16074_s0 + $0x160] sm:$0xf]  ;;  %v8584_v26 = vld [vmem:[%s16074_s0 + $0x164] sm:$0x1] }
  0xa5   :  { %v562_v10 = vpop.permute.xlu1 %561  ;;  %3402 = vrot.lane.b32.xlu0 %v3331_v43, %s9509_s11  ;;  %v10623_v27 = vrot.slane %v2105_v34, 5  ;;  %v10628_v29 = vld [vmem:[%s16074_s0 + $0x2c] sm:$0x1]  ;;  %v8365_v30 = vld [vmem:[%s16074_s0 + $0x38] sm:$0x1]  ;;  %v3645_v31 = vrot.slane %v8583_v24, 5 }
  0xa6   :  { %637 = vst.msk [vmem:[#allocation2 + $0x1a4] sm:$0xf] %vm615_vm4, %v562_v10  ;;  %v8582_v33 = vld [vmem:[%s16074_s0 + $0x15c] sm:$0xe]  ;;  %v2110_v36 = vshrl.u32 %v8363_v15, 16  ;;  %v2113_v39 = vshll.u32 %v8363_v15, 16  ;;  %v1711_v15 = vsel %vm10157_vm7, %v8309_v22, %v1710_v2 }
  0xa7   :  { %3869 = vrot.lane.b32.xlu1 %v8644_v54, %s9509_s11  ;;  %v560_v35 = vpop.permute.xlu0 %559  ;;  %v3648_v41 = vrot.slane %v8584_v26, 5  ;;  %v8608_v42 = vrot.slane %v8582_v33, 9  ;;  %v8197_v44 = vld [vmem:[%s16074_s0 + $0x6c] sm:$0xf]  ;;  %v10640_v45 = vrot.slane %v2102_v12, 4  ;;  %v10642_v49 = vrot.slane %v2119_v13, 5 }
  0xa8   :  { %636 = vst.msk [vmem:[#allocation2 + $0x190] sm:$0xf] %vm615_vm4, %v560_v35  ;;  %v2125_v50 = vrot.slane %v2123_v14, 4  ;;  %v3647_v46 = vrot.slane %v3645_v31, 4  ;;  %v10646_v47 = vrot.slane %v2092_v19, 4  ;;  %v1724_v48 = vrot.slane %v10613_v20, 5 }
  0xa9   :  { %v566_v43 = vpop.permute.xlu1 %565  ;;  %3867 = vrot.lane.b32.xlu0 %v8643_v11, %s9509_s11  ;;  %v3646_v51 = vsel %vm10157_vm7, %v8608_v42, %v3645_v31  ;;  %v8494_v53 = vld [vmem:[%s16074_s0 + $0x16c] sm:$0xf]  ;;  %v8493_v54 = vld [vmem:[%s16074_s0 + $0x168] sm:$0xf]  ;;  %v10666_v58 = vld [vmem:[%s16074_s0 + $0x24] sm:$0xe] }
  0xaa   :  { %639 = vst.msk [vmem:[#allocation2 + $0x1cc] sm:$0xf] %vm615_vm4, %v566_v43  ;;  %v3649_v59 = vsel %vm10157_vm7, %v3647_v46, %v3648_v41  ;;  %v1727_v32 = vrot.slane %v10628_v29, 5  ;;  %v2129_v62 = vshll.u32 %v8365_v30, 16  ;;  %v2112_v63 = vrot.slane %v2110_v36, 4 }
  0xab   :  { %1022 = vrot.lane.b32.xlu1 %v8198_v18, %s9509_s11  ;;  %3732 = vst.msk [vmem:[#allocation2 + $0x43c] sm:$0xf] %vm51_vm3, %v3646_v51  ;;  %2903 = vst.msk [vmem:[#allocation2 + $0x474] sm:$0xf] %vm51_vm3, %v8494_v53  ;;  %v564_v34 = vpop.permute.xlu0 %563  ;;  %v2115_v21 = vrot.slane %v2113_v39, 5  ;;  %v2126_v1 = vor.u32 %v2125_v50, %v10642_v49  ;;  %v8311_v11 = vrot.slane %v10666_v58, 9  ;;  %v2074_v50 = vsel %vm9562_vm2, %v10581_v4, %v10488_v9 }
  0xac   :  { %2902 = vst.msk [vmem:[#allocation2 + $0x460] sm:$0xf] %vm51_vm3, %v8493_v54  ;;  %3733 = vst.msk [vmem:[#allocation2 + $0x450] sm:$0xf] %vm51_vm3, %v3649_v59  ;;  %v10680_v3 = vld [vmem:[%s16074_s0 + $0x34] sm:$0xf] }
  0xad   :  { %638 = vst.msk [vmem:[#allocation2 + $0x1b8] sm:$0xf] %vm615_vm4, %v564_v34  ;;  %v570_v55 = vpop.permute.xlu1 %569  ;;  %v8367_v8 = vld [vmem:[%s16074_s0 + $0x40] sm:$0xf]  ;;  %v8586_v10 = vld [vmem:[%s16074_s0 + $0x16c] sm:$0xf]  ;;  %1020 = vrot.lane.b32.xlu0 %v8197_v44, %s9509_s11  ;;  %v2116_v2 = vor.u32 %v2115_v21, %v2112_v63 }
  0xae   :  { %641 = vst.msk [vmem:[#allocation2 + $0x1f4] sm:$0xf] %vm615_vm4, %v570_v55  ;;  %v8587_v12 = vld [vmem:[%s16074_s0 + $0x170] sm:$0x1]  ;;  %v3652_v13 = vrot.slane %v8586_v10, 5  ;;  %v10715_v52 = vrot.slane %v1724_v48, 4 }
  0xaf   :  { %v8585_v14 = vld [vmem:[%s16074_s0 + $0x168] sm:$0xe]  ;;  %1822 = vrot.lane.b32.xlu1 %v1714_v57, %s9509_s11  ;;  %v10711_v18 = vld [vmem:[%s16074_s0 + $0x38] sm:$0x1]  ;;  %v3655_v19 = vrot.slane %v8587_v12, 5  ;;  %v568_v26 = vpop.permute.xlu0 %567  ;;  %v10717_v0 = vrot.slane %v2129_v62, 5 }
  0xb0   :  { %v8609_v24 = vrot.slane %v8585_v14, 9  ;;  %v3654_v22 = vrot.slane %v3652_v13, 4  ;;  %640 = vst.msk [vmem:[#allocation2 + $0x1e0] sm:$0xf] %vm615_vm4, %v568_v26  ;;  %v10720_v56 = vrot.slane %v2126_v1, 4  ;;  %v2143_v60 = vshll.u32 %v8367_v8, 16 }
  0xb1   :  { %v574_v30 = vpop.permute.xlu1 %573  ;;  %v2147_v31 = vshrl.u32 %v8367_v8, 16  ;;  %v8366_v33 = vld [vmem:[%s16074_s0 + $0x3c] sm:$0xf]  ;;  %1820 = vrot.lane.b32.xlu0 %v1711_v15, %s9509_s11  ;;  %v1731_v39 = vrot.slane %v10680_v3, 5  ;;  %v1734_v41 = vrot.slane %v10711_v18, 5  ;;  %v10761_v57 = vrot.slane %v2116_v2, 4 }
  0xb2   :  { %v3653_v35 = vsel %vm10157_vm7, %v8609_v24, %v3652_v13  ;;  %643 = vst.msk [vmem:[#allocation2 + $0x21c] sm:$0xf] %vm615_vm4, %v574_v30  ;;  %v8200_v36 = vld [vmem:[%s16074_s0 + $0x7c] sm:$0xf]  ;;  %v8370_v42 = vld [vmem:[%s16074_s0 + $0x4c] sm:$0xf]  ;;  %v3656_v43 = vsel %vm10157_vm7, %v3654_v22, %v3655_v19  ;;  %v1721_v8 = vsel %vm10157_vm7, %v10585_v5, %v1720_v6 }
  0xb3   :  { %3734 = vst.msk [vmem:[#allocation2 + $0x464] sm:$0xf] %vm51_vm3, %v3653_v35  ;;  %v8496_v44 = vld [vmem:[%s16074_s0 + $0x178] sm:$0xf]  ;;  %2447 = vrot.lane.b32.xlu1 %v2084_v16, %s9509_s11  ;;  %v10751_v46 = vld [vmem:[%s16074_s0 + $0x30] sm:$0xe]  ;;  %v572_v54 = vpop.permute.xlu0 %571 }
  0xb4   :  { %v8368_v51 = vld [vmem:[%s16074_s0 + $0x44] sm:$0x1]  ;;  %3735 = vst.msk [vmem:[#allocation2 + $0x478] sm:$0xf] %vm51_vm3, %v3656_v43  ;;  %2905 = vst.msk [vmem:[#allocation2 + $0x49c] sm:$0xf] %vm51_vm3, %v8496_v44 }
  0xb5   :  { %v8495_v53 = vld [vmem:[%s16074_s0 + $0x174] sm:$0xf]  ;;  %v2134_v9 = vshrl.u32 %v8366_v33, 16  ;;  %v8369_v4 = vld [vmem:[%s16074_s0 + $0x48] sm:$0xf]  ;;  %v578_v59 = vpop.permute.xlu1 %577  ;;  %v10771_v62 = vrot.slane %v2143_v60, 5  ;;  %2445 = vrot.lane.b32.xlu0 %v2074_v50, %s9509_s11 }
  0xb6   :  { %2904 = vst.msk [vmem:[#allocation2 + $0x488] sm:$0xf] %vm51_vm3, %v8495_v53  ;;  %v8199_v34 = vld [vmem:[%s16074_s0 + $0x78] sm:$0xf]  ;;  %v2149_v63 = vrot.slane %v2147_v31, 4  ;;  %v2137_v21 = vshll.u32 %v8366_v33, 16 }
  0xb7   :  { %642 = vst.msk [vmem:[#allocation2 + $0x208] sm:$0xf] %vm615_vm4, %v572_v54  ;;  %v2167_v55 = vshll.u32 %v8370_v42, 16  ;;  %v8589_v1 = vld [vmem:[%s16074_s0 + $0x178] sm:$0xf]  ;;  %v2171_v10 = vshrl.u32 %v8370_v42, 16  ;;  %1026 = vrot.lane.b32.xlu1 %v8200_v36, %s9509_s11  ;;  %v576_v24 = vpop.permute.xlu0 %575  ;;  %v1718_v42 = vsel %vm10157_vm7, %v8310_v7, %v1717_v38 }
  0xb8   :  { %645 = vst.msk [vmem:[#allocation2 + $0x244] sm:$0xf] %vm615_vm4, %v578_v59  ;;  %v8590_v12 = vld [vmem:[%s16074_s0 + $0x17c] sm:$0x1]  ;;  %v3659_v13 = vrot.slane %v8589_v1, 5  ;;  %v2158_v15 = vshrl.u32 %v8369_v4, 16  ;;  %v2150_v30 = vor.u32 %v2149_v63, %v10771_v62 }
  0xb9   :  { %v8588_v14 = vld [vmem:[%s16074_s0 + $0x174] sm:$0xe]  ;;  %v2161_v16 = vshll.u32 %v8369_v4, 16  ;;  %v3662_v19 = vrot.slane %v8590_v12, 5  ;;  %v10792_v5 = vrot.slane %v1731_v39, 4  ;;  %v8312_v6 = vrot.slane %v10751_v46, 9  ;;  %v582_v22 = vpop.permute.xlu1 %581  ;;  %1024 = vrot.lane.b32.xlu0 %v8199_v34, %s9509_s11 }
  0xba   :  { %v8610_v37 = vrot.slane %v8588_v14, 9  ;;  %v2153_v26 = vshll.u32 %v8368_v51, 16  ;;  %v3661_v2 = vrot.slane %v3659_v13, 4  ;;  %644 = vst.msk [vmem:[#allocation2 + $0x230] sm:$0xf] %vm615_vm4, %v576_v24  ;;  %v2136_v60 = vrot.slane %v2134_v9, 4 }
  0xbb   :  { %v2139_v31 = vrot.slane %v2137_v21, 5  ;;  %v10800_v33 = vld [vmem:[%s16074_s0 + $0x40] sm:$0xf]  ;;  %v10805_v35 = vld [vmem:[%s16074_s0 + $0x50] sm:$0x1]  ;;  %v10817_v43 = vrot.slane %v2167_v55, 5  ;;  %1826 = vrot.lane.b32.xlu1 %v1721_v8, %s9509_s11  ;;  %v580_v9 = vpop.permute.xlu0 %579  ;;  %v2108_v4 = vsel %vm9562_vm2, %v10640_v45, %v10623_v27 }
  0xbc   :  { %v3660_v36 = vsel %vm10157_vm7, %v8610_v37, %v3659_v13  ;;  %647 = vst.msk [vmem:[#allocation2 + $0x26c] sm:$0xf] %vm615_vm4, %v582_v22  ;;  %v2173_v44 = vrot.slane %v2171_v10, 4  ;;  %v3663_v50 = vsel %vm10157_vm7, %v3661_v2, %v3662_v19  ;;  %v667_v51 = vld [vmem:[%s16074_s0 + $0x4c] sm:$0xf]  ;;  %v2160_v61 = vrot.slane %v2158_v15, 4 }
  0xbd   :  { %3736 = vst.msk [vmem:[#allocation2 + $0x48c] sm:$0xf] %vm51_vm3, %v3660_v36  ;;  %v668_v17 = vld [vmem:[%s16074_s0 + $0x50] sm:$0x1]  ;;  %v2163_v38 = vrot.slane %v2161_v16, 5  ;;  %v791_v7 = vrot.slane %v667_v51, 5  ;;  %v991_v63 = vpop.permute.xlu1 %990  ;;  %v2140_v55 = vor.u32 %v2139_v31, %v2136_v60  ;;  %1824 = vrot.lane.b32.xlu0 %v1718_v42, %s9509_s11  ;;  %v2098_v19 = vsel %vm9562_vm2, %v10646_v47, %v10532_v40 }
  0xbe   :  { %3737 = vst.msk [vmem:[#allocation2 + $0x4a0] sm:$0xf] %vm51_vm3, %v3663_v50  ;;  %v794_v53 = vrot.slane %v668_v17, 5  ;;  %v666_v54 = vld [vmem:[%s16074_s0 + $0x48] sm:$0xe]  ;;  %v10837_v59 = vrot.slane %v2153_v26, 5  ;;  %v2174_v13 = vor.u32 %v2173_v44, %v10817_v43  ;;  %v1728_v36 = vsel %vm10157_vm7, %v10715_v52, %v1727_v32 }
  0xbf   :  { %v8171_v34 = vrot.slane %v666_v54, 9  ;;  %646 = vst.msk [vmem:[#allocation2 + $0x258] sm:$0xf] %vm615_vm4, %v580_v9  ;;  %v10840_v21 = vrot.slane %v2150_v30, 4  ;;  %v10845_v1 = vld [vmem:[%s16074_s0 + $0x44] sm:$0x1]  ;;  %2451 = vrot.lane.b32.xlu1 %v2108_v4, %s9509_s11  ;;  %v2164_v37 = vor.u32 %v2163_v38, %v2160_v61  ;;  %v989_v40 = vpop.permute.xlu0 %988 }
  0xc0   :  { %v10850_v8 = vld [vmem:[%s16074_s0 + $0x4c] sm:$0xf]  ;;  %v793_v27 = vrot.slane %v791_v7, 4  ;;  %1085 = vst.msk [vmem:[#allocation2 + $0x18] sm:$0xf] %vm615_vm4, %v991_v63  ;;  %v1738_v10 = vrot.slane %v10800_v33, 5 }
  0xc1   :  { %v8202_v45 = vld [vmem:[%s16074_s0 + $0x88] sm:$0xf]  ;;  %v10861_v12 = vld [vmem:[%s16074_s0 + $0x3c] sm:$0xe]  ;;  %v2177_v14 = vshll.u32 %v10805_v35, 16  ;;  %v792_v16 = vsel %vm10157_vm7, %v8171_v34, %v791_v7  ;;  %v1741_v47 = vrot.slane %v10845_v1, 5  ;;  %v995_v31 = vpop.permute.xlu1 %994  ;;  %2449 = vrot.lane.b32.xlu0 %v2098_v19, %s9509_s11 }
  0xc2   :  { %v8373_v15 = vld [vmem:[%s16074_s0 + $0x58] sm:$0xf]  ;;  %v10878_v24 = vld [vmem:[%s16074_s0 + $0x50] sm:$0x1]  ;;  %v795_v26 = vsel %vm10157_vm7, %v793_v27, %v794_v53  ;;  %903 = vst.msk [vmem:[#allocation2 + $0xf4] sm:$0xf] %vm51_vm3, %v792_v16 }
  0xc3   :  { %v8498_v2 = vld [vmem:[%s16074_s0 + $0x184] sm:$0xf]  ;;  %v8497_v22 = vld [vmem:[%s16074_s0 + $0x180] sm:$0xf]  ;;  %v1745_v30 = vrot.slane %v10850_v8, 5  ;;  %v10906_v42 = vrot.slane %v2140_v55, 4  ;;  %1030 = vrot.lane.b32.xlu1 %v8202_v45, %s9509_s11  ;;  %v993_v9 = vpop.permute.xlu0 %992 }
  0xc4   :  { %v8372_v60 = vld [vmem:[%s16074_s0 + $0x54] sm:$0xf]  ;;  %904 = vst.msk [vmem:[#allocation2 + $0x108] sm:$0xf] %vm51_vm3, %v795_v26  ;;  %2907 = vst.msk [vmem:[#allocation2 + $0x4c4] sm:$0xf] %vm51_vm3, %v8498_v2  ;;  %v1725_v2 = vsel %vm10157_vm7, %v8311_v11, %v1724_v48  ;;  %v2132_v48 = vsel %vm9562_vm2, %v10720_v56, %v10717_v0 }
  0xc5   :  { %2906 = vst.msk [vmem:[#allocation2 + $0x4b0] sm:$0xf] %vm51_vm3, %v8497_v22  ;;  %v8201_v35 = vld [vmem:[%s16074_s0 + $0x84] sm:$0xf]  ;;  %v10911_v44 = vld [vmem:[%s16074_s0 + $0x5c] sm:$0x1]  ;;  %v999_v45 = vpop.permute.xlu1 %998 }
  0xc6   :  { %1084 = vst.msk [vmem:[#allocation2 + $0x4] sm:$0xf] %vm615_vm4, %v989_v40  ;;  %v2191_v50 = vshll.u32 %v8373_v15, 16  ;;  %1087 = vst.msk [vmem:[#allocation2 + $0x40] sm:$0xf] %vm615_vm4, %v995_v31  ;;  %v10917_v51 = vrot.slane %v1738_v10, 4  ;;  %1028 = vrot.lane.b32.xlu0 %v8201_v35, %s9509_s11 }
  0xc7   :  { %v8313_v29 = vrot.slane %v10861_v12, 9  ;;  %v10920_v17 = vrot.slane %v2174_v13, 4  ;;  %v10922_v32 = vrot.slane %v2177_v14, 5  ;;  %v8376_v52 = vld [vmem:[%s16074_s0 + $0x64] sm:$0xf]  ;;  %v10928_v61 = vrot.slane %v2164_v37, 4  ;;  %1830 = vrot.lane.b32.xlu1 %v1728_v36, %s9509_s11  ;;  %v997_v20 = vpop.permute.xlu0 %996 }
  0xc8   :  { %v1748_v38 = vrot.slane %v10878_v24, 5  ;;  %v2195_v7 = vshrl.u32 %v8373_v15, 16  ;;  %v2182_v53 = vshrl.u32 %v8372_v60, 16  ;;  %v8592_v54 = vld [vmem:[%s16074_s0 + $0x184] sm:$0xf]  ;;  %v10936_v4 = vrot.slane %v1745_v30, 4 }
  0xc9   :  { %v2201_v34 = vshll.u32 %v10911_v44, 16  ;;  %v2185_v63 = vshll.u32 %v8372_v60, 16  ;;  %v8593_v55 = vld [vmem:[%s16074_s0 + $0x188] sm:$0x1]  ;;  %v3666_v27 = vrot.slane %v8592_v54, 5  ;;  %v10943_v13 = vrot.slane %v2191_v50, 5 }
  0xca   :  { %1086 = vst.msk [vmem:[#allocation2 + $0x2c] sm:$0xf] %vm615_vm4, %v993_v9  ;;  %v2215_v14 = vshll.u32 %v8376_v52, 16  ;;  %v2219_v15 = vshrl.u32 %v8376_v52, 16  ;;  %v10948_v16 = vld [vmem:[%s16074_s0 + $0x60] sm:$0xf]  ;;  %1828 = vrot.lane.b32.xlu0 %v1725_v2, %s9509_s11  ;;  %v1735_v44 = vsel %vm10157_vm7, %v10792_v5, %v1734_v41  ;;  %v2180_v33 = vsel %vm9562_vm2, %v10920_v17, %v10922_v32 }
  0xcb   :  { %1089 = vst.msk [vmem:[#allocation2 + $0x68] sm:$0xf] %vm615_vm4, %v999_v45  ;;  %v3668_v19 = vrot.slane %v3666_v27, 4  ;;  %v3669_v37 = vrot.slane %v8593_v55, 5  ;;  %v8591_v26 = vld [vmem:[%s16074_s0 + $0x180] sm:$0xe]  ;;  %2455 = vrot.lane.b32.xlu1 %v2132_v48, %s9509_s11 }
  0xcc   :  { %v10965_v22 = vld [vmem:[%s16074_s0 + $0x48] sm:$0xe]  ;;  %v10967_v40 = vrot.slane %v2195_v7, 4  ;;  %v10969_v60 = vrot.slane %v2182_v53, 4  ;;  %v8611_v31 = vrot.slane %v8591_v26, 9  ;;  %v9353_v35 = vld [vmem:[%s16075_s1 + $0x118] sm:$0xff]   ;;  %v1003_v53 = vpop.permute.xlu1 %1002  ;;  %v1001_v26 = vpop.permute.xlu0 %1000 }
  0xcd   :  { %v9292_v36 = vld [vmem:[#allocation2] ss:$20 sps:$4 sm:$0xff]   ;;  %v9294_v58 = vld [vmem:[#allocation2 + $0x4] ss:$20 sps:$4 sm:$0xff]   ;;  %v2187_v11 = vrot.slane %v2185_v63, 5  ;;  %v3670_v7 = vsel %vm10157_vm7, %v3668_v19, %v3669_v37  ;;  %v10991_v54 = vrot.slane %v2215_v14, 5  ;;  %9165 = vmatprep.subr.bf16.mxu0 %v9353_v35  ;;  %v2122_v19 = vsel %vm9562_vm2, %v10761_v57, %v10642_v49 }
  0xce   :  { %v10981_v50 = vld [vmem:[%s16074_s0 + $0x58] sm:$0xf]  ;;  %v10986_v52 = vld [vmem:[%s16074_s0 + $0x68] sm:$0x1]  ;;  %1088 = vst.msk [vmem:[#allocation2 + $0x54] sm:$0xf] %vm615_vm4, %v997_v20  ;;  %v3667_v9 = vsel %vm10157_vm7, %v8611_v31, %v3666_v27  ;;  %7073 = vmatprep.mubr.bf16.mxu0 %v9294_v58  ;;  %v2198_v20 = vor.u32 %v10967_v40, %v10943_v13  ;;  %2453 = vrot.lane.b32.xlu0 %v2122_v19, %s9509_s11 }
  0xcf   :  { %v2221_v0 = vrot.slane %v2219_v15, 4  ;;  %v2206_v56 = vshrl.u32 %v10948_v16, 16  ;;  %3739 = vst.msk [vmem:[#allocation2 + $0x4c8] sm:$0xf] %vm51_vm3, %v3670_v7  ;;  %v670_v63 = vld [vmem:[%s16074_s0 + $0x58] sm:$0xf]  ;;  %7074 = vmatmul.mubr.bf16.vlgmr.msra.gmra.mxu0 %v9292_v36  ;;  %v2188_v58 = vor.u32 %v2187_v11, %v10969_v60 }
  0xd0   :  { %1091 = vst.msk [vmem:[#allocation2 + $0x90] sm:$0xf] %vm615_vm4, %v1003_v53  ;;  %v8204_v55 = vld [vmem:[%s16074_s0 + $0x94] sm:$0xf]  ;;  %v2209_v45 = vshll.u32 %v10948_v16, 16  ;;  %v798_v14 = vrot.slane %v670_v63, 5  ;;  %9166 = vmatpush3.bf16.msra.mxu0 %v9353_v35  ;;  %v1007_v57 = vpop.permute.xlu1 %1006 }
  0xd1   :  { %3738 = vst.msk [vmem:[#allocation2 + $0x4b4] sm:$0xf] %vm51_vm3, %v3667_v9  ;;  %v671_v27 = vld [vmem:[%s16074_s0 + $0x5c] sm:$0x1]  ;;  %v669_v15 = vld [vmem:[%s16074_s0 + $0x54] sm:$0xe]  ;;  %v2222_v60 = vor.u32 %v2221_v0, %v10991_v54  ;;  %1034 = vrot.lane.b32.xlu1 %v8204_v55, %s9509_s11 }
  0xd2   :  { %v801_v16 = vrot.slane %v671_v27, 5  ;;  %v8172_v37 = vrot.slane %v669_v15, 9  ;;  %v9295_v2 = vld [vmem:[#allocation2 + $0x2c] ss:$20 sps:$4 sm:$0xff]   ;;  %v8314_v31 = vrot.slane %v10965_v22, 9  ;;  %v800_v48 = vrot.slane %v798_v14, 4  ;;  %v1005_v15 = vpop.permute.xlu0 %1004 }
  0xd3   :  { %v11025_v36 = vld [vmem:[%s16074_s0 + $0x5c] sm:$0x1]  ;;  %1090 = vst.msk [vmem:[#allocation2 + $0x7c] sm:$0xf] %vm615_vm4, %v1001_v26  ;;  %v8203_v7 = vld [vmem:[%s16074_s0 + $0x90] sm:$0xf]  ;;  %7081 = vmatprep.mubr.bf16.mxu0 %v9295_v2 }
  0xd4   :  { %v5673_v49 = vld [vmem:[#allocation2 + $0x3c] sm:$0xff]  ;;  %v1752_v53 = vrot.slane %v10981_v50, 5  ;;  %v11035_v40 = vld [vmem:[%s16074_s0 + $0x54] sm:$0xe]  ;;  %v2225_v11 = vshll.u32 %v10986_v52, 16  ;;  %v799_v35 = vsel %vm10157_vm7, %v8172_v37, %v798_v14  ;;  %v5670_v9 = vld [vmem:[#allocation2 + $0x28] sm:$0xff]  ;;  %v802_v27 = vsel %vm10157_vm7, %v800_v48, %v801_v16  ;;  %v1011_v41 = vpop.permute.xlu1 %1010  ;;  %1032 = vrot.lane.b32.xlu0 %v8203_v7, %s9509_s11 }
  0xd5   :  { %1093 = vst.msk [vmem:[#allocation2 + $0xb8] sm:$0xf] %vm615_vm4, %v1007_v57  ;;  %v11045_v63 = vrot.slane %v2201_v34, 5  ;;  %v8500_v52 = vld [vmem:[%s16074_s0 + $0x190] sm:$0xf]  ;;  %v2208_v34 = vrot.slane %v2206_v56, 4  ;;  %v8906_v5 = vcombine.low %v5670_v9, %v5673_v49  ;;  %1834 = vrot.lane.b32.xlu1 %v1735_v44, %s9509_s11  ;;  %v1732_v48 = vsel %vm10157_vm7, %v8312_v6, %v1731_v39 }
  0xd6   :  { %905 = vst.msk [vmem:[#allocation2 + $0x11c] sm:$0xf] %vm51_vm3, %v799_v35  ;;  %v8499_v0 = vld [vmem:[%s16074_s0 + $0x18c] sm:$0xf]  ;;  %v2211_v14 = vrot.slane %v2209_v45, 5  ;;  %v11065_v19 = vrot.slane %v2198_v20, 4  ;;  %v2156_v39 = vsel %vm9562_vm2, %v10840_v21, %v10837_v59  ;;  %v2146_v21 = vsel %vm9562_vm2, %v10906_v42, %v10771_v62 }
  0xd7   :  { %906 = vst.msk [vmem:[#allocation2 + $0x130] sm:$0xf] %vm51_vm3, %v802_v27  ;;  %2909 = vst.msk [vmem:[#allocation2 + $0x4ec] sm:$0xf] %vm51_vm3, %v8500_v52  ;;  %v11067_v16 = vrot.slane %v2188_v58, 4  ;;  %v1755_v55 = vrot.slane %v11025_v36, 5  ;;  %7082 = vmatmul.mubr.bf16.gmra.mxu0 %v8906_v5 }
  0xd8   :  { %2908 = vst.msk [vmem:[#allocation2 + $0x4d8] sm:$0xf] %vm51_vm3, %v8499_v0  ;;  %v8315_v18 = vrot.slane %v11035_v40, 9  ;;  %v11074_v56 = vrot.slane %v1752_v53, 4  ;;  %v11076_v45 = vrot.slane %v2222_v60, 4  ;;  %v11078_v37 = vrot.slane %v2225_v11, 5  ;;  %v1009_v60 = vpop.permute.xlu0 %1008  ;;  %v3377_v52 = vpop.permute.xlu1 %3376  ;;  %1832 = vrot.lane.b32.xlu0 %v1732_v48, %s9509_s11 }
  0xd9   :  { %1092 = vst.msk [vmem:[#allocation2 + $0xa4] sm:$0xf] %vm615_vm4, %v1005_v15  ;;  %1095 = vst.msk [vmem:[#allocation2 + $0xe0] sm:$0xf] %vm615_vm4, %v1011_v41  ;;  %v9297_v26 = vld [vmem:[#allocation2 + $0x54] ss:$20 sps:$4 sm:$0xff]   ;;  %v2212_v49 = vor.u32 %v2211_v14, %v2208_v34  ;;  %2459 = vrot.lane.b32.xlu1 %v2156_v39, %s9509_s11 }
  0xda   :  { %v11085_v2 = vld [vmem:[%s16074_s0 + $0x64] sm:$0xf]  ;;  %v8379_v20 = vld [vmem:[%s16074_s0 + $0x70] sm:$0xf]  ;;  %v11103_v57 = vld [vmem:[%s16074_s0 + $0x68] sm:$0x1]  ;;  %7089 = vmatprep.mubr.bf16.mxu0 %v9297_v26 }
  0xdb   :  { %v8595_v58 = vld [vmem:[%s16074_s0 + $0x190] sm:$0xf]  ;;  %v11108_v7 = vld [vmem:[%s16074_s0 + $0x60] sm:$0xe]  ;;  %v8596_v3 = vld [vmem:[%s16074_s0 + $0x194] sm:$0x1] }
  0xdc   :  { %v11120_v46 = vld [vmem:[%s16074_s0 + $0x74] sm:$0x1]  ;;  %v8378_v6 = vld [vmem:[%s16074_s0 + $0x6c] sm:$0xf]  ;;  %v3673_v11 = vrot.slane %v8595_v58, 5  ;;  %v3676_v35 = vrot.slane %v8596_v3, 5  ;;  %v3375_v58 = vpop.permute.xlu0 %3374  ;;  %2457 = vrot.lane.b32.xlu0 %v2146_v21, %s9509_s11 }
  0xdd   :  { %1094 = vst.msk [vmem:[#allocation2 + $0xcc] sm:$0xf] %vm615_vm4, %v1009_v60  ;;  %v5676_v9 = vld [vmem:[#allocation2 + $0x50] sm:$0xff]  ;;  %v5679_v27 = vld [vmem:[#allocation2 + $0x64] sm:$0xff]  ;;  %v2239_v0 = vshll.u32 %v8379_v20, 16  ;;  %v2243_v44 = vshrl.u32 %v8379_v20, 16  ;;  %v3842_v60 = vpop.permute.xlu1 %3841 }
  0xde   :  { %v8594_v59 = vld [vmem:[%s16074_s0 + $0x18c] sm:$0xe]  ;;  %3455 = vst.msk [vmem:[#allocation2 + $0x3d4] sm:$0xf] %vm615_vm4, %v3377_v52  ;;  %v3675_v34 = vrot.slane %v3673_v11, 4  ;;  %v11136_v15 = vrot.slane %v2212_v49, 4  ;;  %v8911_v39 = vcombine.low %v5676_v9, %v5679_v27 }
  0xdf   :  { %v8612_v14 = vrot.slane %v8594_v59, 9  ;;  %v1759_v41 = vrot.slane %v11085_v2, 5  ;;  %v2230_v26 = vshrl.u32 %v8378_v6, 16  ;;  %v8502_v20 = vld [vmem:[%s16074_s0 + $0xdc] sm:$0xf]  ;;  %v8316_v42 = vrot.slane %v11108_v7, 9 }
  0xe0   :  { %v8206_v62 = vld [vmem:[%s16074_s0 + $0xa0] sm:$0xf]  ;;  %v2233_v48 = vshll.u32 %v8378_v6, 16  ;;  %v3677_v49 = vsel %vm10157_vm7, %v3675_v34, %v3676_v35  ;;  %3454 = vst.msk [vmem:[#allocation2 + $0x3c0] sm:$0xf] %vm615_vm4, %v3375_v58  ;;  %v11155_v59 = vrot.slane %v2239_v0, 5  ;;  %7090 = vmatmul.mubr.bf16.gmra.mxu0 %v8911_v39  ;;  %v3840_v58 = vpop.permute.xlu0 %3839 }
  0xe1   :  { %v3674_v3 = vsel %vm10157_vm7, %v8612_v14, %v3673_v11  ;;  %v8205_v52 = vld [vmem:[%s16074_s0 + $0x9c] sm:$0xf]  ;;  %v11157_v5 = vrot.slane %v2243_v44, 4  ;;  %v2249_v6 = vshll.u32 %v11120_v46, 16  ;;  %v8501_v35 = vld [vmem:[%s16074_s0 + $0xd8] sm:$0xf]  ;;  %1038 = vrot.lane.b32.xlu1 %v8206_v62, %s9509_s11  ;;  %v1742_v44 = vsel %vm10157_vm7, %v10917_v51, %v1741_v47  ;;  %v3381_v47 = vpop.permute.xlu1 %3380 }
  0xe2   :  { %3741 = vst.msk [vmem:[#allocation2 + $0x4f0] sm:$0xf] %vm51_vm3, %v3677_v49  ;;  %3740 = vst.msk [vmem:[#allocation2 + $0x4dc] sm:$0xf] %vm51_vm3, %v3674_v3  ;;  %v9299_v11 = vld [vmem:[#allocation2 + $0x7c] ss:$20 sps:$4 sm:$0xff]   ;;  %1036 = vrot.lane.b32.xlu0 %v8205_v52, %s9509_s11  ;;  %v1749_v46 = vsel %vm10157_vm7, %v10936_v4, %v1748_v38 }
  0xe3   :  { %3920 = vst.msk [vmem:[#allocation2 + $0x3d8] sm:$0xf] %vm615_vm4, %v3842_v60  ;;  %v2968_v9 = vshll.u32 %v8502_v20, 16  ;;  %v2972_v27 = vshrl.u32 %v8502_v20, 16  ;;  %v673_v0 = vld [vmem:[%s16074_s0 + $0x64] sm:$0xf]  ;;  %7097 = vmatprep.mubr.bf16.mxu0 %v9299_v11 }
  0xe4   :  { %v11176_v34 = vrot.slane %v2230_v26, 4  ;;  %v674_v21 = vld [vmem:[%s16074_s0 + $0x68] sm:$0x1]  ;;  %v805_v14 = vrot.slane %v673_v0, 5  ;;  %v672_v20 = vld [vmem:[%s16074_s0 + $0x60] sm:$0xe]  ;;  %v3379_v32 = vpop.permute.xlu0 %3378 }
  0xe5   :  { %v11184_v62 = vrot.slane %v2233_v48, 5  ;;  %v2959_v1 = vshrl.u32 %v8501_v35, 16  ;;  %v2962_v49 = vshll.u32 %v8501_v35, 16  ;;  %v808_v3 = vrot.slane %v674_v21, 5  ;;  %3919 = vst.msk [vmem:[#allocation2 + $0x3c4] sm:$0xf] %vm615_vm4, %v3840_v58  ;;  %1838 = vrot.lane.b32.xlu1 %v1742_v44, %s9509_s11  ;;  %v3846_v21 = vpop.permute.xlu1 %3845 }
  0xe6   :  { %v807_v51 = vrot.slane %v805_v14, 4  ;;  %v8173_v26 = vrot.slane %v672_v20, 9  ;;  %v5682_v60 = vld [vmem:[#allocation2 + $0x78] sm:$0xff]  ;;  %v5685_v39 = vld [vmem:[#allocation2 + $0x8c] sm:$0xff]  ;;  %3457 = vst.msk [vmem:[#allocation2 + $0x3fc] sm:$0xf] %vm615_vm4, %v3381_v47  ;;  %v1739_v48 = vsel %vm10157_vm7, %v8313_v29, %v1738_v10  ;;  %v2170_v10 = vsel %vm9562_vm2, %v10928_v61, %v10817_v43 }
  0xe7   :  { %v11198_v35 = vld [vmem:[%s16074_s0 + $0xe0] sm:$0x1]  ;;  %v11200_v11 = vrot.slane %v2968_v9, 5  ;;  %v11202_v0 = vrot.slane %v2972_v27, 4  ;;  %v8214_v52 = vld [vmem:[%s16074_s0 + $0x10] sm:$0xf]  ;;  %1836 = vrot.lane.b32.xlu0 %v1739_v48, %s9509_s11  ;;  %v2236_v48 = vor.u32 %v11184_v62, %v11176_v34 }
  0xe8   :  { %v809_v12 = vsel %vm10157_vm7, %v807_v51, %v808_v3  ;;  %v806_v29 = vsel %vm10157_vm7, %v8173_v26, %v805_v14  ;;  %v8215_v9 = vld [vmem:[%s16074_s0 + $0x14] sm:$0x1]  ;;  %v8213_v17 = vld [vmem:[%s16074_s0 + $0xc] sm:$0xf]  ;;  %v11226_v43 = vrot.slane %v2959_v1, 4  ;;  %v2964_v61 = vrot.slane %v2962_v49, 5 }
  0xe9   :  { %908 = vst.msk [vmem:[#allocation2 + $0x158] sm:$0xf] %vm51_vm3, %v809_v12  ;;  %907 = vst.msk [vmem:[#allocation2 + $0x144] sm:$0xf] %vm51_vm3, %v806_v29  ;;  %v1174_v27 = vshll.u32 %v8214_v52, 16  ;;  %v1178_v44 = vshrl.u32 %v8214_v52, 16  ;;  %v8916_v14 = vcombine.low %v5682_v60, %v5685_v39  ;;  %v2246_v51 = vor.u32 %v11157_v5, %v11155_v59  ;;  %2463 = vrot.lane.b32.xlu1 %v2180_v33, %s9509_s11 }
  0xea   :  { %3456 = vst.msk [vmem:[#allocation2 + $0x3e8] sm:$0xf] %vm615_vm4, %v3379_v32  ;;  %v1184_v20 = vshll.u32 %v8215_v9, 16  ;;  %v1165_v58 = vshrl.u32 %v8213_v17, 16  ;;  %v1168_v3 = vshll.u32 %v8213_v17, 16  ;;  %v11238_v47 = vrot.slane %v1759_v41, 4  ;;  %v3844_v9 = vpop.permute.xlu0 %3843 }
  0xeb   :  { %3922 = vst.msk [vmem:[#allocation2 + $0x400] sm:$0xf] %vm615_vm4, %v3846_v21  ;;  %v9301_v1 = vld [vmem:[#allocation2 + $0xa4] ss:$20 sps:$4 sm:$0xff]   ;;  %v8208_v49 = vld [vmem:[%s16074_s0 + $0xac] sm:$0xf]  ;;  %7098 = vmatmul.mubr.bf16.gmra.mxu0 %v8916_v14  ;;  %v2975_v32 = vor.u32 %v11202_v0, %v11200_v11  ;;  %v3385_v21 = vpop.permute.xlu1 %3384  ;;  %2461 = vrot.lane.b32.xlu0 %v2170_v10, %s9509_s11 }
  0xec   :  { %v11242_v26 = vrot.slane %v1174_v27, 5  ;;  %v1180_v60 = vrot.slane %v1178_v44, 4  ;;  %v9310_v39 = vld [vmem:[%s16075_s1 + $0xb8] sm:$0xff]   ;;  %v2978_v12 = vshll.u32 %v11198_v35, 16  ;;  %v1167_v5 = vrot.slane %v1165_v58, 4  ;;  %7105 = vmatprep.mubr.bf16.mxu0 %v9301_v1  ;;  %v9313_v4 = vld [vmem:[%s16075_s1 + $0xb0] sm:$0xff]  }
  0xed   :  { %v11254_v29 = vld [vmem:[%s16074_s0 + $0x7c] sm:$0xf]  ;;  %v1170_v52 = vrot.slane %v1168_v3, 5  ;;  %v9303_v17 = vld [vmem:[#allocation2 + $0x3c0] ss:$20 sps:$4 sm:$0xff]   ;;  %v2965_v27 = vor.u32 %v2964_v61, %v11226_v43  ;;  %v1186_v35 = vrot.slane %v1184_v20, 5  ;;  %1042 = vrot.lane.b32.xlu1 %v8208_v49, %s9509_s11 }
  0xee   :  { %v9305_v33 = vld [vmem:[#allocation2 + $0x3c4] ss:$20 sps:$4 sm:$0xff]   ;;  %v1181_v62 = vor.u32 %v1180_v60, %v11242_v26  ;;  %3921 = vst.msk [vmem:[#allocation2 + $0x3ec] sm:$0xf] %vm615_vm4, %v3844_v9  ;;  %v11268_v14 = vrot.slane %v2249_v6, 5  ;;  %v11289_v20 = vrot.slane %v2246_v51, 4  ;;  %v3383_v38 = vpop.permute.xlu0 %3382 }
  0xef   :  { %v11262_v34 = vld [vmem:[%s16074_s0 + $0x78] sm:$0xf]  ;;  %v1171_v58 = vor.u32 %v1170_v52, %v1167_v5  ;;  %v8326_v0 = vld [vmem:[%s16074_s0 + $0x1c] sm:$0xf]  ;;  %v5688_v61 = vld [vmem:[#allocation2 + $0xa0] sm:$0xff]  ;;  %7265 = vmatprep.mubr.bf16.mxu1 %v9305_v33  ;;  %v11291_v3 = vrot.slane %v2236_v48, 4  ;;  %v3850_v48 = vpop.permute.xlu1 %3849 }
  0xf0   :  { %v5691_v44 = vld [vmem:[#allocation2 + $0xb4] sm:$0xff]  ;;  %3459 = vst.msk [vmem:[#allocation2 + $0x424] sm:$0xf] %vm615_vm4, %v3385_v21  ;;  %v1182_v6 = vrot.slane %v1181_v62, 4  ;;  %7266 = vmatmul.mubr.bf16.vlgmr.msra.gmra.mxu1 %v9303_v17  ;;  %v8207_v10 = vld [vmem:[%s16074_s0 + $0xa8] sm:$0xf] }
  0xf1   :  { %v8325_v43 = vld [vmem:[%s16074_s0 + $0x18] sm:$0xf]  ;;  %1982 = vst.msk [vmem:[#allocation2 + $0x20] sm:$0xf] %vm51_vm3, %v8326_v0  ;;  %v11293_v24 = vrot.slane %v2978_v12, 5  ;;  %v1172_v1 = vrot.slane %v1171_v58, 4  ;;  %7331 = vmatpush1.bf16.msra.mxu1 %v9310_v39  ;;  %v8921_v12 = vcombine.low %v5688_v61, %v5691_v44  ;;  %1040 = vrot.lane.b32.xlu0 %v8207_v10, %s9509_s11  ;;  %v1746_v44 = vsel %vm10157_vm7, %v8314_v31, %v1745_v30 }
  0xf2   :  { %1981 = vst.msk [vmem:[#allocation2 + $0xc] sm:$0xf] %vm51_vm3, %v8325_v43  ;;  %v11298_v60 = vrot.slane %v2975_v32, 4  ;;  %v11300_v49 = vrot.slane %v2965_v27, 4  ;;  %v2263_v5 = vshll.u32 %v11254_v29, 16  ;;  %v1187_v51 = vsel %vm9562_vm2, %v1182_v6, %v1186_v35  ;;  %7332 = vmatprep.subr.bf16.mxu1 %v9510_v25  ;;  %v5817_v27 = vld [vmem:[#allocation2 + $0x3fc] sm:$0xff]  ;;  %1842 = vrot.lane.b32.xlu1 %v1749_v46, %s9509_s11  ;;  %v3848_v22 = vpop.permute.xlu0 %3847 }
  0xf3   :  { %3458 = vst.msk [vmem:[#allocation2 + $0x410] sm:$0xf] %vm615_vm4, %v3383_v38  ;;  %v11310_v39 = vld [vmem:[%s16074_s0 + $0x70] sm:$0xf]  ;;  %v2267_v52 = vshrl.u32 %v11254_v29, 16  ;;  %v2254_v9 = vshrl.u32 %v11262_v34, 16  ;;  %v1177_v17 = vsel %vm9562_vm2, %v1172_v1, %v11242_v26  ;;  %7106 = vmatmul.mubr.bf16.gmra.mxu0 %v8921_v12  ;;  %v2204_v61 = vsel %vm9562_vm2, %v11065_v19, %v11045_v63  ;;  %v3389_v10 = vpop.permute.xlu1 %3388 }
  0xf4   :  { %1581 = vst.msk [vmem:[#allocation2 + $0x1c] sm:$0xf] %vm51_vm3, %v1187_v51  ;;  %v676_v33 = vld [vmem:[%s16074_s0 + $0x70] sm:$0xf]  ;;  %v9306_v32 = vld [vmem:[#allocation2 + $0xcc] ss:$20 sps:$4 sm:$0xff]   ;;  %v2194_v38 = vsel %vm9562_vm2, %v11067_v16, %v10943_v13 }
  0xf5   :  { %3924 = vst.msk [vmem:[#allocation2 + $0x428] sm:$0xf] %vm615_vm4, %v3850_v48  ;;  %v9314_v29 = vld [vmem:[%s16075_s1 + $0xa8] sm:$0xff]   ;;  %v11329_v62 = vld [vmem:[%s16074_s0 + $0x74] sm:$0x1]  ;;  %v812_v35 = vrot.slane %v676_v33, 5  ;;  %7113 = vmatprep.mubr.bf16.mxu0 %v9306_v32  ;;  %7333 = vmatpush1.bf16.msra.mxu1 %v9313_v4 }
  0xf6   :  { %1580 = vst.msk [vmem:[#allocation2 + $0x8] sm:$0xf] %vm51_vm3, %v1177_v17  ;;  %v677_v26 = vld [vmem:[%s16074_s0 + $0x74] sm:$0x1]  ;;  %v11345_v21 = vld [vmem:[%s16074_s0 + $0x6c] sm:$0xe]  ;;  %7334 = vmatprep.subr.bf16.mxu1 %v9510_v25  ;;  %1840 = vrot.lane.b32.xlu0 %v1746_v44, %s9509_s11 }
  0xf7   :  { %v2257_v58 = vshll.u32 %v11262_v34, 16  ;;  %v11351_v0 = vld [vmem:[%s16074_s0 + $0xe8] sm:$0xf]  ;;  %v815_v43 = vrot.slane %v677_v26, 5  ;;  %v675_v8 = vld [vmem:[%s16074_s0 + $0x6c] sm:$0xe]  ;;  %2467 = vrot.lane.b32.xlu1 %v2204_v61, %s9509_s11 }
  0xf8   :  { %v5814_v30 = vld [vmem:[#allocation2 + $0x3e8] sm:$0xff]  ;;  %v1766_v34 = vrot.slane %v11310_v39, 5  ;;  %v814_v46 = vrot.slane %v812_v35, 4  ;;  %v8174_v6 = vrot.slane %v675_v8, 9  ;;  %3923 = vst.msk [vmem:[#allocation2 + $0x414] sm:$0xf] %vm615_vm4, %v3848_v22  ;;  %v3854_v22 = vpop.permute.xlu1 %3853 }
  0xf9   :  { %v9308_v31 = vld [vmem:[#allocation2 + $0x3ec] ss:$20 sps:$4 sm:$0xff]   ;;  %v9026_v1 = vcombine.low %v5814_v30, %v5817_v27  ;;  %v11370_v63 = vld [vmem:[%s16074_s0 + $0xe4] sm:$0xf]  ;;  %3461 = vst.msk [vmem:[#allocation2 + $0x44c] sm:$0xf] %vm615_vm4, %v3389_v10  ;;  %7335 = vmatpush1.bf16.msra.mxu1 %v9314_v29 }
  0xfa   :  { %v5694_v19 = vld [vmem:[#allocation2 + $0xc8] sm:$0xff]  ;;  %v5697_v4 = vld [vmem:[#allocation2 + $0xdc] sm:$0xff]  ;;  %7273 = vmatprep.mubr.bf16.mxu1 %v9308_v31  ;;  %v8210_v51 = vld [vmem:[%s16074_s0 + $0xb8] sm:$0xf]  ;;  %v11385_v48 = vrot.slane %v2263_v5, 5  ;;  %v11387_v12 = vrot.slane %v2267_v52, 4  ;;  %v816_v17 = vsel %vm10157_vm7, %v814_v46, %v815_v43  ;;  %v813_v33 = vsel %vm10157_vm7, %v8174_v6, %v812_v35  ;;  %v3387_v35 = vpop.permute.xlu0 %3386  ;;  %7336 = vmatprep.subr.bf16.mxu1 %v9510_v25 }
  0xfb   :  { %v9317_v13 = vld [vmem:[%s16075_s1 + $0xa0] sm:$0xff]   ;;  %7274 = vmatmul.mubr.bf16.gmra.mxu1 %v9026_v1  ;;  %v1769_v32 = vrot.slane %v11329_v62, 5  ;;  %v11395_v27 = vrot.slane %v2254_v9, 4  ;;  %v11397_v26 = vrot.slane %v2257_v58, 5  ;;  %v2992_v5 = vshll.u32 %v11351_v0, 16  ;;  %2465 = vrot.lane.b32.xlu0 %v2194_v38, %s9509_s11  ;;  %v9321_v40 = vld [vmem:[%s16075_s1 + $0x90] sm:$0xff]  }
  0xfc   :  { %v11383_v16 = vld [vmem:[%s16074_s0 + $0x80] sm:$0x1]  ;;  %910 = vst.msk [vmem:[#allocation2 + $0x180] sm:$0xf] %vm51_vm3, %v816_v17  ;;  %909 = vst.msk [vmem:[#allocation2 + $0x16c] sm:$0xf] %vm51_vm3, %v813_v33  ;;  %v8926_v30 = vcombine.low %v5694_v19, %v5697_v4  ;;  %v2270_v10 = vor.u32 %v11387_v12, %v11385_v48  ;;  %1046 = vrot.lane.b32.xlu1 %v8210_v51, %s9509_s11  ;;  %v1756_v51 = vsel %vm10157_vm7, %v11074_v56, %v1755_v55 }
  0xfd   :  { %v8217_v52 = vld [vmem:[%s16074_s0 + $0x1c] sm:$0xf]  ;;  %v8317_v44 = vrot.slane %v11345_v21, 9  ;;  %v2996_v43 = vshrl.u32 %v11351_v0, 16  ;;  %v2983_v9 = vshrl.u32 %v11370_v63, 16  ;;  %v11418_v29 = vrot.slane %v1766_v34, 4  ;;  %7337 = vmatpush1.bf16.msra.mxu1 %v9317_v13 }
  0xfe   :  { %v8218_v58 = vld [vmem:[%s16074_s0 + $0x20] sm:$0x1]  ;;  %v1198_v8 = vshll.u32 %v8217_v52, 16  ;;  %3460 = vst.msk [vmem:[#allocation2 + $0x438] sm:$0xf] %vm615_vm4, %v3387_v35  ;;  %v2273_v0 = vshll.u32 %v11383_v16, 16  ;;  %7114 = vmatmul.mubr.bf16.gmra.mxu0 %v8926_v30  ;;  %v2260_v38 = vor.u32 %v11397_v26, %v11395_v27  ;;  %7338 = vmatprep.subr.bf16.mxu1 %v9510_v25  ;;  %v1753_v13 = vsel %vm10157_vm7, %v8315_v18, %v1752_v53 }
  0xff   :  { %v8209_v31 = vld [vmem:[%s16074_s0 + $0xb4] sm:$0xf]  ;;  %v2986_v61 = vshll.u32 %v11370_v63, 16  ;;  %v8216_v46 = vld [vmem:[%s16074_s0 + $0x18] sm:$0xf]  ;;  %v5823_v6 = vld [vmem:[#allocation2 + $0x424] sm:$0xff] }
 0x100   :  { %3926 = vst.msk [vmem:[#allocation2 + $0x450] sm:$0xf] %vm615_vm4, %v3854_v22  ;;  %v11429_v1 = vrot.slane %v1198_v8, 5  ;;  %v1202_v19 = vshrl.u32 %v8217_v52, 16  ;;  %v1208_v4 = vshll.u32 %v8218_v58, 16  ;;  %v9318_v63 = vld [vmem:[%s16075_s1 + $0x98] sm:$0xff]   ;;  %v3852_v52 = vpop.permute.xlu0 %3851  ;;  %1044 = vrot.lane.b32.xlu0 %v8209_v31, %s9509_s11  ;;  %1846 = vrot.lane.b32.xlu1 %v1756_v51, %s9509_s11 }
 0x101   :  { %v11440_v16 = vld [vmem:[%s16074_s0 + $0xec] sm:$0x1]  ;;  %v11442_v12 = vrot.slane %v2992_v5, 5  ;;  %v1189_v17 = vshrl.u32 %v8216_v46, 16  ;;  %v1192_v33 = vshll.u32 %v8216_v46, 16  ;;  %v5820_v35 = vld [vmem:[#allocation2 + $0x410] sm:$0xff]  ;;  %v3393_v5 = vpop.permute.xlu1 %3392  ;;  %7339 = vmatpush1.bf16.msra.mxu1 %v9318_v63  ;;  %v2218_v63 = vsel %vm9562_vm2, %v11136_v15, %v10991_v54 }
 0x102   :  { %v9311_v58 = vld [vmem:[#allocation2 + $0x414] ss:$20 sps:$4 sm:$0xff]   ;;  %v11449_v27 = vrot.slane %v2996_v43, 4  ;;  %v11451_v26 = vrot.slane %v2983_v9, 4  ;;  %v1204_v8 = vrot.slane %v1202_v19, 4  ;;  %v9031_v22 = vcombine.low %v5820_v35, %v5823_v6  ;;  %7340 = vmatprep.subr.bf16.mxu1 %v9510_v25 }
 0x103   :  { %3925 = vst.msk [vmem:[#allocation2 + $0x43c] sm:$0xf] %vm615_vm4, %v3852_v52  ;;  %v11455_v30 = vrot.slane %v2986_v61, 5  ;;  %v11460_v36 = vld [vmem:[%s16074_s0 + $0x88] sm:$0xf]  ;;  %v1191_v55 = vrot.slane %v1189_v17, 4  ;;  %7281 = vmatprep.mubr.bf16.mxu1 %v9311_v58  ;;  %v2228_v43 = vsel %vm9562_vm2, %v11076_v45, %v11078_v37 }
 0x104   :  { %v1194_v56 = vrot.slane %v1192_v33, 5  ;;  %3463 = vst.msk [vmem:[#allocation2 + $0x474] sm:$0xf] %vm615_vm4, %v3393_v5  ;;  %v1205_v9 = vor.u32 %v1204_v8, %v11429_v1  ;;  %v1210_v61 = vrot.slane %v1208_v4, 5  ;;  %v8328_v31 = vld [vmem:[%s16074_s0 + $0x28] sm:$0xf]  ;;  %7282 = vmatmul.mubr.bf16.gmra.mxu1 %v9031_v22  ;;  %v3391_v6 = vpop.permute.xlu0 %3390  ;;  %1844 = vrot.lane.b32.xlu0 %v1753_v13, %s9509_s11  ;;  %v2999_v51 = vor.u32 %v11449_v27, %v11442_v12 }
 0x105   :  { %v8327_v50 = vld [vmem:[%s16074_s0 + $0x24] sm:$0xf]  ;;  %v9370_v53 = vld [vmem:[%s16075_s1 + $0x110] sm:$0xff]   ;;  %v11488_v18 = vrot.slane %v2270_v10, 4  ;;  %v11490_v45 = vrot.slane %v2273_v0, 5  ;;  %v11492_v37 = vrot.slane %v2260_v38, 4  ;;  %v3858_v10 = vpop.permute.xlu1 %3857  ;;  %v2989_v8 = vor.u32 %v11455_v30, %v11451_v26  ;;  %2471 = vrot.lane.b32.xlu1 %v2228_v43, %s9509_s11  ;;  %7341 = vmatpush1.bf16.msra.mxu1 %v9321_v40 }
 0x106   :  { %v1195_v46 = vor.u32 %v1194_v56, %v1191_v55  ;;  %1984 = vst.msk [vmem:[#allocation2 + $0x48] sm:$0xf] %vm51_vm3, %v8328_v31  ;;  %1983 = vst.msk [vmem:[#allocation2 + $0x34] sm:$0xf] %vm51_vm3, %v8327_v50  ;;  %v3002_v19 = vshll.u32 %v11440_v16, 16  ;;  %v2287_v4 = vshll.u32 %v11460_v36, 16  ;;  %9167 = vmatprep.subr.bf16.mxu0 %v9370_v53  ;;  %v11545_v27 = vsel %vm10157_vm7, %v8316_v42, %v1759_v41 }
 0x107   :  { %v2291_v17 = vshrl.u32 %v11460_v36, 16  ;;  %v1206_v33 = vrot.slane %v1205_v9, 4  ;;  %v679_v0 = vld [vmem:[%s16074_s0 + $0x7c] sm:$0xf]  ;;  %3462 = vst.msk [vmem:[#allocation2 + $0x460] sm:$0xf] %vm615_vm4, %v3391_v6  ;;  %9168 = vmatpush3.bf16.msra.mxu0 %v9370_v53  ;;  %7342 = vmatprep.subr.bf16.mxu1 %v9510_v25 }
 0x108   :  { %v11511_v38 = vld [vmem:[%s16074_s0 + $0x84] sm:$0xf]  ;;  %v1196_v16 = vrot.slane %v1195_v46, 4  ;;  %v680_v52 = vld [vmem:[%s16074_s0 + $0x80] sm:$0x1]  ;;  %v819_v35 = vrot.slane %v679_v0, 5  ;;  %v3856_v41 = vpop.permute.xlu0 %3855  ;;  %2469 = vrot.lane.b32.xlu0 %v2218_v63, %s9509_s11 }
 0x109   :  { %3928 = vst.msk [vmem:[#allocation2 + $0x478] sm:$0xf] %vm615_vm4, %v3858_v10  ;;  %v5829_v58 = vld [vmem:[#allocation2 + $0x44c] sm:$0xff]  ;;  %v8212_v54 = vld [vmem:[%s16074_s0 + $0xc4] sm:$0xf]  ;;  %v1211_v22 = vsel %vm9562_vm2, %v1206_v33, %v1210_v61  ;;  %v822_v36 = vrot.slane %v680_v52, 5 }
 0x10a   :  { %v9322_v15 = vld [vmem:[%s16075_s1 + $0x88] sm:$0xff]   ;;  %v11531_v5 = vld [vmem:[%s16074_s0 + $0x7c] sm:$0xf]  ;;  %v678_v55 = vld [vmem:[%s16074_s0 + $0x78] sm:$0xe]  ;;  %v1201_v2 = vsel %vm9562_vm2, %v1196_v16, %v11429_v1  ;;  %v821_v7 = vrot.slane %v819_v35, 4  ;;  %v3397_v1 = vpop.permute.xlu1 %3396  ;;  %1050 = vrot.lane.b32.xlu1 %v8212_v54, %s9509_s11 }
 0x10b   :  { %v11550_v26 = vld [vmem:[%s16074_s0 + $0x80] sm:$0x1]  ;;  %v11555_v30 = vld [vmem:[%s16074_s0 + $0x8c] sm:$0x1]  ;;  %1583 = vst.msk [vmem:[#allocation2 + $0x44] sm:$0xf] %vm51_vm3, %v1211_v22  ;;  %7343 = vmatpush1.bf16.msra.mxu1 %v9322_v15 }
 0x10c   :  { %v8175_v56 = vrot.slane %v678_v55, 9  ;;  %v5826_v42 = vld [vmem:[#allocation2 + $0x438] sm:$0xff]  ;;  %v16086_v43 = vrot.slane %v11103_v57, 5  ;;  %v11566_v61 = vrot.slane %v2287_v4, 5  ;;  %v11568_v31 = vrot.slane %v2291_v17, 4  ;;  %7344 = vmatprep.subr.bf16.mxu1 %v9510_v25 }
 0x10d   :  { %v9315_v13 = vld [vmem:[#allocation2 + $0x43c] ss:$20 sps:$4 sm:$0xff]   ;;  %v2278_v50 = vshrl.u32 %v11511_v38, 16  ;;  %1582 = vst.msk [vmem:[#allocation2 + $0x30] sm:$0xf] %vm51_vm3, %v1201_v2  ;;  %v9036_v53 = vcombine.low %v5826_v42, %v5829_v58  ;;  %v2281_v57 = vshll.u32 %v11511_v38, 16  ;;  %v2252_v42 = vsel %vm9562_vm2, %v11289_v20, %v11268_v14 }
 0x10e   :  { %v1763_v9 = vsel %vm10157_vm7, %v11238_v47, %v16086_v43  ;;  %3927 = vst.msk [vmem:[#allocation2 + $0x464] sm:$0xf] %vm615_vm4, %v3856_v41  ;;  %v823_v47 = vsel %vm10157_vm7, %v821_v7, %v822_v36  ;;  %v820_v40 = vsel %vm10157_vm7, %v8175_v56, %v819_v35  ;;  %v8220_v46 = vld [vmem:[%s16074_s0 + $0x28] sm:$0xf]  ;;  %v8221_v6 = vld [vmem:[%s16074_s0 + $0x2c] sm:$0x1]  ;;  %7289 = vmatprep.mubr.bf16.mxu1 %v9315_v13  ;;  %v3395_v35 = vpop.permute.xlu0 %3394  ;;  %v3862_v55 = vpop.permute.xlu1 %3861 }
 0x10f   :  { %3465 = vst.msk [vmem:[#allocation2 + $0x49c] sm:$0xf] %vm615_vm4, %v3397_v1  ;;  %v11587_v4 = vrot.slane %v2999_v51, 4  ;;  %v11589_v17 = vrot.slane %v3002_v19, 5  ;;  %v11591_v33 = vrot.slane %v2989_v8, 4  ;;  %v1773_v0 = vrot.slane %v11531_v5, 5  ;;  %7290 = vmatmul.mubr.bf16.gmra.mxu1 %v9036_v53  ;;  %1850 = vrot.lane.b32.xlu1 %v1763_v9, %s9509_s11 }
 0x110   :  { %912 = vst.msk [vmem:[#allocation2 + $0x1a8] sm:$0xf] %vm51_vm3, %v823_v47  ;;  %911 = vst.msk [vmem:[#allocation2 + $0x194] sm:$0xf] %vm51_vm3, %v820_v40  ;;  %v8219_v10 = vld [vmem:[%s16074_s0 + $0x24] sm:$0xf]  ;;  %v2294_v54 = vor.u32 %v11568_v31, %v11566_v61  ;;  %v2242_v14 = vsel %vm9562_vm2, %v11291_v3, %v11155_v59 }
 0x111   :  { %v8211_v19 = vld [vmem:[%s16074_s0 + $0xc0] sm:$0xf]  ;;  %v1776_v63 = vrot.slane %v11550_v26, 5  ;;  %v1222_v38 = vshll.u32 %v8220_v46, 16  ;;  %v1226_v16 = vshrl.u32 %v8220_v46, 16  ;;  %v1232_v52 = vshll.u32 %v8221_v6, 16 }
 0x112   :  { %v9325_v58 = vld [vmem:[%s16075_s1 + $0x80] sm:$0xff]   ;;  %v11610_v51 = vld [vmem:[%s16074_s0 + $0x78] sm:$0xe]  ;;  %v2297_v8 = vshll.u32 %v11555_v30, 16  ;;  %v1213_v22 = vshrl.u32 %v8219_v10, 16  ;;  %v1216_v36 = vshll.u32 %v8219_v10, 16  ;;  %1048 = vrot.lane.b32.xlu0 %v8211_v19, %s9509_s11  ;;  %v3860_v9 = vpop.permute.xlu0 %3859 }
 0x113   :  { %3464 = vst.msk [vmem:[#allocation2 + $0x488] sm:$0xf] %vm615_vm4, %v3395_v35  ;;  %v11617_v15 = vrot.slane %v2278_v50, 4  ;;  %v11619_v2 = vrot.slane %v2281_v57, 5  ;;  %v11624_v7 = vld [vmem:[%s16074_s0 + $0xf4] sm:$0xf]  ;;  %7345 = vmatpush1.bf16.msra.mxu1 %v9325_v58  ;;  %2475 = vrot.lane.b32.xlu1 %v2252_v42, %s9509_s11 }
 0x114   :  { %v11626_v56 = vrot.slane %v1222_v38, 5  ;;  %v1228_v41 = vrot.slane %v1226_v16, 4  ;;  %3930 = vst.msk [vmem:[#allocation2 + $0x4a0] sm:$0xf] %vm615_vm4, %v3862_v55  ;;  %v5835_v30 = vld [vmem:[#allocation2 + $0x474] sm:$0xff]  ;;  %v11639_v43 = vrot.slane %v1773_v0, 4  ;;  %v1015_v38 = vpop.permute.xlu1 %1014  ;;  %7346 = vmatprep.subr.bf16.mxu1 %v9510_v25 }
 0x115   :  { %v9328_v13 = vld [vmem:[%s16075_s1 + $0xf8] sm:$0xff]   ;;  %v1215_v50 = vrot.slane %v1213_v22, 4  ;;  %v1218_v1 = vrot.slane %v1216_v36, 5  ;;  %v8318_v20 = vrot.slane %v11610_v51, 9  ;;  %v11655_v53 = vld [vmem:[%s16074_s0 + $0xf0] sm:$0xf] }
 0x116   :  { %v11644_v31 = vld [vmem:[%s16074_s0 + $0xf8] sm:$0x1]  ;;  %v1229_v57 = vor.u32 %v1228_v41, %v11626_v56  ;;  %v1234_v47 = vrot.slane %v1232_v52, 5  ;;  %v8330_v40 = vld [vmem:[%s16074_s0 + $0x34] sm:$0xf]  ;;  %v5832_v46 = vld [vmem:[#allocation2 + $0x460] sm:$0xff]  ;;  %v2284_v52 = vor.u32 %v11619_v2, %v11617_v15  ;;  %1848 = vrot.lane.b32.xlu0 %v11545_v27, %s9509_s11  ;;  %v2981_v27 = vsel %vm9562_vm2, %v11298_v60, %v11293_v24  ;;  %v1013_v60 = vpop.permute.xlu0 %1012 }
 0x117   :  { %v9319_v6 = vld [vmem:[#allocation2 + $0x464] ss:$20 sps:$4 sm:$0xff]   ;;  %v11661_v10 = vrot.slane %v2294_v54, 4  ;;  %v11663_v59 = vrot.slane %v2297_v8, 5  ;;  %v3016_v3 = vshll.u32 %v11624_v7, 16  ;;  %v1219_v19 = vor.u32 %v1218_v1, %v1215_v50  ;;  %7347 = vmatpush2.bf16.msra.mxu1 %v9328_v13  ;;  %3344 = vrot.lane.b32.xlu1 %v2981_v27, %s9509_s11 }
 0x118   :  { %1986 = vst.msk [vmem:[#allocation2 + $0x70] sm:$0xf] %vm51_vm3, %v8330_v40  ;;  %v9041_v16 = vcombine.low %v5832_v46, %v5835_v30  ;;  %v3020_v35 = vshrl.u32 %v11624_v7, 16  ;;  %v11675_v58 = vld [vmem:[%s16074_s0 + $0x94] sm:$0xf]  ;;  %v1230_v54 = vrot.slane %v1229_v57, 4  ;;  %7297 = vmatprep.mubr.bf16.mxu1 %v9319_v6  ;;  %v2971_v2 = vsel %vm9562_vm2, %v11300_v49, %v11200_v11  ;;  %v3401_v13 = vpop.permute.xlu1 %3400  ;;  %7348 = vmatprep.subr.bf16.mxu1 %v9510_v25 }
 0x119   :  { %3929 = vst.msk [vmem:[#allocation2 + $0x48c] sm:$0xf] %vm615_vm4, %v3860_v9  ;;  %v8329_v8 = vld [vmem:[%s16074_s0 + $0x30] sm:$0xf]  ;;  %1097 = vst.msk [vmem:[#allocation2 + $0x108] sm:$0xf] %vm615_vm4, %v1015_v38 }
 0x11a   :  { %v3026_v22 = vshll.u32 %v11644_v31, 16  ;;  %v3007_v36 = vshrl.u32 %v11655_v53, 16  ;;  %v3010_v55 = vshll.u32 %v11655_v53, 16  ;;  %v1220_v15 = vrot.slane %v1219_v19, 4  ;;  %1985 = vst.msk [vmem:[#allocation2 + $0x5c] sm:$0xf] %vm51_vm3, %v8329_v8  ;;  %7298 = vmatmul.mubr.bf16.gmra.mxu1 %v9041_v16  ;;  %2473 = vrot.lane.b32.xlu0 %v2242_v14, %s9509_s11 }
 0x11b   :  { %v11699_v7 = vld [vmem:[%s16074_s0 + $0x90] sm:$0xf]  ;;  %v1235_v41 = vsel %vm9562_vm2, %v1230_v54, %v1234_v47  ;;  %v682_v30 = vld [vmem:[%s16074_s0 + $0x88] sm:$0xf]  ;;  %v683_v24 = vld [vmem:[%s16074_s0 + $0x8c] sm:$0x1]  ;;  %v11753_v14 = vsel %vm10157_vm7, %v8317_v44, %v1766_v34  ;;  %v3399_v54 = vpop.permute.xlu0 %3398 }
 0x11c   :  { %v9329_v11 = vld [vmem:[%s16075_s1 + $0xf0] sm:$0xff]   ;;  %v2311_v49 = vshll.u32 %v11675_v58, 16  ;;  %1585 = vst.msk [vmem:[#allocation2 + $0x6c] sm:$0xf] %vm51_vm3, %v1235_v41  ;;  %v1225_v42 = vsel %vm9562_vm2, %v1220_v15, %v11626_v56  ;;  %v826_v31 = vrot.slane %v682_v30, 5  ;;  %v829_v50 = vrot.slane %v683_v24, 5  ;;  %v3866_v44 = vpop.permute.xlu1 %3865 }
 0x11d   :  { %v681_v1 = vld [vmem:[%s16074_s0 + $0x84] sm:$0xe]  ;;  %1096 = vst.msk [vmem:[#allocation2 + $0xf4] sm:$0xf] %vm615_vm4, %v1013_v60  ;;  %v11722_v53 = vrot.slane %v2284_v52, 4  ;;  %v11724_v57 = vrot.slane %v3016_v3, 5  ;;  %7349 = vmatpush2.bf16.msra.mxu1 %v9329_v11 }
 0x11e   :  { %v2315_v47 = vshrl.u32 %v11675_v58, 16  ;;  %1584 = vst.msk [vmem:[#allocation2 + $0x58] sm:$0xf] %vm51_vm3, %v1225_v42  ;;  %v11731_v56 = vld [vmem:[%s16074_s0 + $0x100] sm:$0xf]  ;;  %v8176_v40 = vrot.slane %v681_v1, 9  ;;  %7350 = vmatprep.subr.bf16.mxu1 %v9510_v25  ;;  %3342 = vrot.lane.b32.xlu0 %v2971_v2, %s9509_s11 }
 0x11f   :  { %3467 = vst.msk [vmem:[#allocation2 + $0x4c4] sm:$0xf] %vm615_vm4, %v3401_v13  ;;  %v5841_v9 = vld [vmem:[#allocation2 + $0x49c] sm:$0xff]  ;;  %v8614_v46 = vld [vmem:[%s16074_s0 + $0xe8] sm:$0xf]  ;;  %v11741_v3 = vrot.slane %v3020_v35, 4 }
 0x120   :  { %v9332_v6 = vld [vmem:[%s16075_s1 + $0xe8] sm:$0xff]   ;;  %v11743_v19 = vrot.slane %v3026_v22, 5  ;;  %v2302_v38 = vshrl.u32 %v11699_v7, 16  ;;  %v828_v16 = vrot.slane %v826_v31, 4  ;;  %v11755_v52 = vrot.slane %v3007_v36, 4  ;;  %v9335_v24 = vld [vmem:[%s16075_s1 + $0xe0] sm:$0xff]   ;;  %3809 = vrot.lane.b32.xlu1 %v8614_v46, %s9509_s11 }
 0x121   :  { %v2305_v35 = vshll.u32 %v11699_v7, 16  ;;  %v827_v58 = vsel %vm10157_vm7, %v8176_v40, %v826_v31  ;;  %v5838_v8 = vld [vmem:[#allocation2 + $0x488] sm:$0xff]  ;;  %v11760_v15 = vrot.slane %v3010_v55, 5  ;;  %v11762_v39 = vrot.slane %v2311_v49, 5  ;;  %3466 = vst.msk [vmem:[#allocation2 + $0x4b0] sm:$0xf] %vm615_vm4, %v3399_v54  ;;  %7351 = vmatpush2.bf16.msra.mxu1 %v9332_v6 }
 0x122   :  { %v9323_v22 = vld [vmem:[#allocation2 + $0x48c] ss:$20 sps:$4 sm:$0xff]   ;;  %v3040_v21 = vshll.u32 %v11731_v56, 16  ;;  %v830_v34 = vsel %vm10157_vm7, %v828_v16, %v829_v50  ;;  %913 = vst.msk [vmem:[#allocation2 + $0x1bc] sm:$0xf] %vm51_vm3, %v827_v58  ;;  %v9046_v36 = vcombine.low %v5838_v8, %v5841_v9  ;;  %v1770_v55 = vsel %vm10157_vm7, %v11418_v29, %v1769_v32  ;;  %v5703_v29 = vld [vmem:[#allocation2 + $0x104] sm:$0xff]  ;;  %v1019_v58 = vpop.permute.xlu1 %1018  ;;  %7352 = vmatprep.subr.bf16.mxu1 %v9510_v25 }
 0x123   :  { %v8613_v27 = vld [vmem:[%s16074_s0 + $0xe4] sm:$0xf]  ;;  %v11781_v7 = vld [vmem:[%s16074_s0 + $0x88] sm:$0xf]  ;;  %v11783_v41 = vrot.slane %v2315_v47, 4  ;;  %v3044_v30 = vshrl.u32 %v11731_v56, 16  ;;  %7305 = vmatprep.mubr.bf16.mxu1 %v9323_v22  ;;  %v3023_v60 = vor.u32 %v11741_v3, %v11724_v57  ;;  %v3864_v56 = vpop.permute.xlu0 %3863  ;;  %v3013_v3 = vor.u32 %v11760_v15, %v11755_v52 }
 0x124   :  { %914 = vst.msk [vmem:[#allocation2 + $0x1d0] sm:$0xf] %vm51_vm3, %v830_v34  ;;  %v8223_v62 = vld [vmem:[%s16074_s0 + $0x34] sm:$0xf]  ;;  %v8224_v32 = vld [vmem:[%s16074_s0 + $0x38] sm:$0x1]  ;;  %7306 = vmatmul.mubr.bf16.gmra.mxu1 %v9046_v36  ;;  %3807 = vrot.lane.b32.xlu0 %v8613_v27, %s9509_s11  ;;  %v2276_v15 = vsel %vm9562_vm2, %v11488_v18, %v11490_v45 }
 0x125   :  { %3932 = vst.msk [vmem:[#allocation2 + $0x4c8] sm:$0xf] %vm615_vm4, %v3866_v44  ;;  %v11800_v11 = vrot.slane %v2302_v38, 4  ;;  %v1246_v49 = vshll.u32 %v8223_v62, 16  ;;  %v1250_v42 = vshrl.u32 %v8223_v62, 16  ;;  %v11811_v50 = vrot.slane %v2305_v35, 5  ;;  %1854 = vrot.lane.b32.xlu1 %v1770_v55, %s9509_s11  ;;  %7353 = vmatpush2.bf16.msra.mxu1 %v9335_v24 }
 0x126   :  { %v8222_v31 = vld [vmem:[%s16074_s0 + $0x30] sm:$0xf]  ;;  %v11809_v2 = vld [vmem:[%s16074_s0 + $0x98] sm:$0x1]  ;;  %v1256_v1 = vshll.u32 %v8224_v32, 16  ;;  %v11815_v38 = vrot.slane %v3040_v21, 5  ;;  %v2318_v45 = vor.u32 %v11783_v41, %v11762_v39  ;;  %7354 = vmatprep.subr.bf16.mxu1 %v9510_v25 }
 0x127   :  { %v1237_v13 = vshrl.u32 %v8222_v31, 16  ;;  %v1240_v47 = vshll.u32 %v8222_v31, 16  ;;  %v5700_v40 = vld [vmem:[#allocation2 + $0xf0] sm:$0xff]  ;;  %v11817_v46 = vrot.slane %v1246_v49, 5  ;;  %v1252_v16 = vrot.slane %v1250_v42, 4  ;;  %v1017_v55 = vpop.permute.xlu0 %1016 }
 0x128   :  { %v9326_v9 = vld [vmem:[#allocation2 + $0xf4] ss:$20 sps:$4 sm:$0xff]   ;;  %3931 = vst.msk [vmem:[#allocation2 + $0x4b4] sm:$0xf] %vm615_vm4, %v3864_v56  ;;  %v8931_v35 = vcombine.low %v5700_v40, %v5703_v29  ;;  %v11824_v54 = vld [vmem:[%s16074_s0 + $0x8c] sm:$0x1]  ;;  %v2308_v41 = vor.u32 %v11811_v50, %v11800_v11  ;;  %1852 = vrot.lane.b32.xlu0 %v11753_v14, %s9509_s11  ;;  %v2266_v14 = vsel %vm9562_vm2, %v11492_v37, %v11385_v48 }
 0x129   :  { %v8512_v6 = vld [vmem:[%s16074_s0 + $0x104] sm:$0x1]  ;;  %v11829_v52 = vrot.slane %v3044_v30, 4  ;;  %v1239_v8 = vrot.slane %v1237_v13, 4  ;;  %v1242_v22 = vrot.slane %v1240_v47, 5  ;;  %7121 = vmatprep.mubr.bf16.mxu0 %v9326_v9  ;;  %v1780_v21 = vrot.slane %v11781_v7, 5  ;;  %2479 = vrot.lane.b32.xlu1 %v2276_v15, %s9509_s11 }
 0x12a   :  { %1099 = vst.msk [vmem:[#allocation2 + $0x130] sm:$0xf] %vm615_vm4, %v1019_v58  ;;  %v8510_v34 = vld [vmem:[%s16074_s0 + $0xfc] sm:$0xf]  ;;  %v1253_v44 = vor.u32 %v1252_v16, %v11817_v46  ;;  %v1258_v36 = vrot.slane %v1256_v1, 5  ;;  %7122 = vmatmul.mubr.bf16.gmra.mxu0 %v8931_v35  ;;  %v11846_v30 = vrot.slane %v3023_v60, 4 }
 0x12b   :  { %v8332_v27 = vld [vmem:[%s16074_s0 + $0x40] sm:$0xf]  ;;  %v11851_v18 = vld [vmem:[%s16074_s0 + $0x84] sm:$0xe]  ;;  %v2321_v62 = vshll.u32 %v11809_v2, 16  ;;  %v1243_v32 = vor.u32 %v1242_v22, %v1239_v8  ;;  %v9336_v60 = vld [vmem:[%s16075_s1 + $0xd8] sm:$0xff]   ;;  %v3405_v2 = vpop.permute.xlu1 %3404  ;;  %v3047_v24 = vor.u32 %v11829_v52, %v11815_v38  ;;  %v3403_v8 = vpop.permute.xlu0 %3402  ;;  %v3005_v22 = vsel %vm9562_vm2, %v11587_v4, %v11589_v17 }
 0x12c   :  { %1988 = vst.msk [vmem:[#allocation2 + $0x98] sm:$0xf] %vm51_vm3, %v8332_v27  ;;  %v8331_v29 = vld [vmem:[%s16074_s0 + $0x3c] sm:$0xf]  ;;  %v11863_v49 = vrot.slane %v3013_v3, 4  ;;  %v3050_v42 = vshll.u32 %v8512_v6, 16  ;;  %7355 = vmatpush2.bf16.msra.mxu1 %v9336_v60  ;;  %2477 = vrot.lane.b32.xlu0 %v2266_v14, %s9509_s11 }
 0x12d   :  { %v1254_v31 = vrot.slane %v1253_v44, 4  ;;  %1987 = vst.msk [vmem:[#allocation2 + $0x84] sm:$0xf] %vm51_vm3, %v8331_v29  ;;  %v3031_v1 = vshrl.u32 %v8510_v34, 16  ;;  %v3034_v13 = vshll.u32 %v8510_v34, 16  ;;  %v1244_v47 = vrot.slane %v1243_v32, 4  ;;  %7356 = vmatprep.subr.bf16.mxu1 %v9510_v25  ;;  %3348 = vrot.lane.b32.xlu1 %v3005_v22, %s9509_s11 }
 0x12e   :  { %1098 = vst.msk [vmem:[#allocation2 + $0x11c] sm:$0xf] %vm615_vm4, %v1017_v55  ;;  %3469 = vst.msk [vmem:[#allocation2 + $0x4ec] sm:$0xf] %vm615_vm4, %v3405_v2  ;;  %v5847_v11 = vld [vmem:[#allocation2 + $0x4c4] sm:$0xff]  ;;  %v9339_v50 = vld [vmem:[%s16075_s1 + $0xd0] sm:$0xff]  }
 0x12f   :  { %v11880_v56 = vrot.slane %v1780_v21, 4  ;;  %v1783_v40 = vrot.slane %v11824_v54, 5  ;;  %v8319_v9 = vrot.slane %v11851_v18, 9  ;;  %v1259_v3 = vsel %vm9562_vm2, %v1254_v31, %v1258_v36  ;;  %v685_v6 = vld [vmem:[%s16074_s0 + $0x94] sm:$0xf]  ;;  %v3870_v44 = vpop.permute.xlu1 %3869  ;;  %v9342_v29 = vld [vmem:[%s16075_s1 + $0xc8] sm:$0xff]  }
 0x130   :  { %v11891_v16 = vrot.slane %v2318_v45, 4  ;;  %v11893_v58 = vrot.slane %v2321_v62, 5  ;;  %1587 = vst.msk [vmem:[#allocation2 + $0x94] sm:$0xf] %vm51_vm3, %v1259_v3  ;;  %v1249_v35 = vsel %vm9562_vm2, %v1244_v47, %v11817_v46  ;;  %v686_v52 = vld [vmem:[%s16074_s0 + $0x98] sm:$0x1]  ;;  %v2995_v31 = vsel %vm9562_vm2, %v11591_v33, %v11442_v12  ;;  %7357 = vmatpush2.bf16.msra.mxu1 %v9339_v50 }
 0x131   :  { %v5844_v48 = vld [vmem:[#allocation2 + $0x4b0] sm:$0xff]  ;;  %v11909_v15 = vrot.slane %v2308_v41, 4  ;;  %v11911_v46 = vrot.slane %v3050_v42, 5  ;;  %1586 = vst.msk [vmem:[#allocation2 + $0x80] sm:$0xf] %vm51_vm3, %v1249_v35  ;;  %v833_v34 = vrot.slane %v685_v6, 5  ;;  %v1777_v12 = vsel %vm10157_vm7, %v11639_v43, %v1776_v63  ;;  %7358 = vmatprep.subr.bf16.mxu1 %v9510_v25  ;;  %3346 = vrot.lane.b32.xlu0 %v2995_v31, %s9509_s11 }
 0x132   :  { %v9330_v37 = vld [vmem:[#allocation2 + $0x4b4] ss:$20 sps:$4 sm:$0xff]   ;;  %3468 = vst.msk [vmem:[#allocation2 + $0x4d8] sm:$0xf] %vm615_vm4, %v3403_v8  ;;  %v9051_v36 = vcombine.low %v5844_v48, %v5847_v11  ;;  %v11916_v27 = vrot.slane %v3047_v24, 4  ;;  %v11918_v45 = vrot.slane %v3031_v1, 4  ;;  %v11978_v43 = vsel %vm10157_vm7, %v8318_v20, %v1773_v0 }
 0x133   :  { %v11920_v62 = vrot.slane %v3034_v13, 5  ;;  %v684_v4 = vld [vmem:[%s16074_s0 + $0x90] sm:$0xe]  ;;  %7313 = vmatprep.mubr.bf16.mxu1 %v9330_v37  ;;  %3934 = vst.msk [vmem:[#allocation2 + $0x4f0] sm:$0xf] %vm615_vm4, %v3870_v44  ;;  %v835_v60 = vrot.slane %v833_v34, 4  ;;  %v3868_v13 = vpop.permute.xlu0 %3867  ;;  %v1023_v6 = vpop.permute.xlu1 %1022  ;;  %v1781_v54 = vsel %vm10157_vm7, %v8319_v9, %v1780_v21 }
 0x134   :  { %v5709_v17 = vld [vmem:[#allocation2 + $0x12c] sm:$0xff]  ;;  %v8616_v32 = vld [vmem:[%s16074_s0 + $0xf4] sm:$0xf]  ;;  %v836_v41 = vrot.slane %v686_v52, 5  ;;  %v8177_v42 = vrot.slane %v684_v4, 9  ;;  %7314 = vmatmul.mubr.bf16.gmra.mxu1 %v9051_v36  ;;  %v9343_v0 = vld [vmem:[%s16075_s1 + $0xc0] sm:$0xff]  }
 0x135   :  { %v11936_v55 = vld [vmem:[%s16074_s0 + $0x94] sm:$0xf]  ;;  %v11946_v2 = vld [vmem:[%s16074_s0 + $0x98] sm:$0x1]  ;;  %v11951_v24 = vld [vmem:[%s16074_s0 + $0xa0] sm:$0xf]  ;;  %3813 = vrot.lane.b32.xlu1 %v8616_v32, %s9509_s11  ;;  %7359 = vmatpush2.bf16.msra.mxu1 %v9342_v29 }
 0x136   :  { %v8226_v1 = vld [vmem:[%s16074_s0 + $0x40] sm:$0xf]  ;;  %v5706_v47 = vld [vmem:[#allocation2 + $0x118] sm:$0xff]  ;;  %v837_v33 = vsel %vm10157_vm7, %v835_v60, %v836_v41  ;;  %v834_v3 = vsel %vm10157_vm7, %v8177_v42, %v833_v34  ;;  %v8227_v14 = vld [vmem:[%s16074_s0 + $0x44] sm:$0x1]  ;;  %v2335_v51 = vshll.u32 %v11951_v24, 16  ;;  %7360 = vmatprep.subr.bf16.mxu1 %v9510_v25 }
 0x137   :  { %v9333_v11 = vld [vmem:[#allocation2 + $0x11c] ss:$20 sps:$4 sm:$0xff]   ;;  %v1270_v35 = vshll.u32 %v8226_v1, 16  ;;  %3933 = vst.msk [vmem:[#allocation2 + $0x4dc] sm:$0xf] %vm615_vm4, %v3868_v13  ;;  %v8936_v26 = vcombine.low %v5706_v47, %v5709_v17  ;;  %v1274_v52 = vshrl.u32 %v8226_v1, 16  ;;  %v1021_v60 = vpop.permute.xlu0 %1020  ;;  %v1823_v13 = vpop.permute.xlu1 %1822 }
 0x138   :  { %v8615_v63 = vld [vmem:[%s16074_s0 + $0xf0] sm:$0xf]  ;;  %v8390_v50 = vld [vmem:[%s16074_s0 + $0x9c] sm:$0xf]  ;;  %916 = vst.msk [vmem:[#allocation2 + $0x1f8] sm:$0xf] %vm51_vm3, %v837_v33  ;;  %7129 = vmatprep.mubr.bf16.mxu0 %v9333_v11 }
 0x139   :  { %915 = vst.msk [vmem:[#allocation2 + $0x1e4] sm:$0xf] %vm51_vm3, %v834_v3  ;;  %v1280_v8 = vshll.u32 %v8227_v14, 16  ;;  %v8225_v5 = vld [vmem:[%s16074_s0 + $0x3c] sm:$0xf]  ;;  %v11998_v48 = vrot.slane %v1270_v35, 5  ;;  %7130 = vmatmul.mubr.bf16.gmra.mxu0 %v8936_v26  ;;  %3811 = vrot.lane.b32.xlu0 %v8615_v63, %s9509_s11  ;;  %v2300_v63 = vsel %vm9562_vm2, %v11661_v10, %v11663_v59  ;;  %v3037_v59 = vor.u32 %v11920_v62, %v11918_v45 }
 0x13a   :  { %1101 = vst.msk [vmem:[#allocation2 + $0x158] sm:$0xf] %vm615_vm4, %v1023_v6  ;;  %v8514_v20 = vld [vmem:[%s16074_s0 + $0x10c] sm:$0xf]  ;;  %v1261_v37 = vshrl.u32 %v8225_v5, 16  ;;  %v1264_v22 = vshll.u32 %v8225_v5, 16  ;;  %1858 = vrot.lane.b32.xlu1 %v1777_v12, %s9509_s11  ;;  %7361 = vmatpush2.bf16.msra.mxu1 %v9343_v0 }
 0x13b   :  { %v1787_v34 = vrot.slane %v11936_v55, 5  ;;  %v1790_v44 = vrot.slane %v11946_v2, 5  ;;  %v2339_v36 = vshrl.u32 %v11951_v24, 16  ;;  %v8513_v4 = vld [vmem:[%s16074_s0 + $0x108] sm:$0xf]  ;;  %v1276_v17 = vrot.slane %v1274_v52, 4 }
 0x13c   :  { %v2326_v41 = vshrl.u32 %v8390_v50, 16  ;;  %v2329_v42 = vshll.u32 %v8390_v50, 16  ;;  %v1263_v31 = vrot.slane %v1261_v37, 4  ;;  %v1266_v1 = vrot.slane %v1264_v22, 5  ;;  %v8334_v32 = vld [vmem:[%s16074_s0 + $0x4c] sm:$0xf]  ;;  %v2448_v22 = vpop.permute.xlu1 %2447 }
 0x13d   :  { %1100 = vst.msk [vmem:[#allocation2 + $0x144] sm:$0xf] %vm615_vm4, %v1021_v60  ;;  %v3064_v24 = vshll.u32 %v8514_v20, 16  ;;  %v3068_v47 = vshrl.u32 %v8514_v20, 16  ;;  %v1277_v11 = vor.u32 %v1276_v17, %v11998_v48  ;;  %v1282_v33 = vrot.slane %v1280_v8, 5  ;;  %v5853_v3 = vld [vmem:[#allocation2 + $0x4ec] sm:$0xff]  ;;  %1856 = vrot.lane.b32.xlu0 %v11978_v43, %s9509_s11 }
 0x13e   :  { %1990 = vst.msk [vmem:[#allocation2 + $0xc0] sm:$0xf] %vm51_vm3, %v8334_v32  ;;  %v8333_v29 = vld [vmem:[%s16074_s0 + $0x48] sm:$0xf]  ;;  %v12022_v25 = vld [vmem:[%s16074_s0 + $0xa4] sm:$0x1]  ;;  %v1267_v26 = vor.u32 %v1266_v1, %v1263_v31  ;;  %v2290_v50 = vsel %vm9562_vm2, %v11722_v53, %v11566_v61  ;;  %2483 = vrot.lane.b32.xlu1 %v2300_v63, %s9509_s11 }
 0x13f   :  { %1917 = vst.msk [vmem:[#allocation2 + $0x1c] sm:$0xf] %vm615_vm4, %v1823_v13  ;;  %v12024_v14 = vrot.slane %v2335_v51, 5  ;;  %v3055_v35 = vshrl.u32 %v8513_v4, 16  ;;  %v3058_v6 = vshll.u32 %v8513_v4, 16  ;;  %v12036_v52 = vrot.slane %v2339_v36, 4  ;;  %v1821_v51 = vpop.permute.xlu0 %1820 }
 0x140   :  { %1989 = vst.msk [vmem:[#allocation2 + $0xac] sm:$0xf] %vm51_vm3, %v8333_v29  ;;  %v12041_v8 = vld [vmem:[%s16074_s0 + $0x110] sm:$0x1]  ;;  %v1278_v5 = vrot.slane %v1277_v11, 4  ;;  %v5850_v20 = vld [vmem:[#allocation2 + $0x4d8] sm:$0xff] }
 0x141   :  { %v688_v12 = vld [vmem:[%s16074_s0 + $0xa0] sm:$0xf]  ;;  %v9337_v10 = vld [vmem:[#allocation2 + $0x4dc] ss:$20 sps:$4 sm:$0xff]   ;;  %v12048_v61 = vrot.slane %v2326_v41, 4  ;;  %v12050_v53 = vrot.slane %v2329_v42, 5  ;;  %v9056_v36 = vcombine.low %v5850_v20, %v5853_v3  ;;  %v3019_v3 = vsel %vm9562_vm2, %v11863_v49, %v11724_v57  ;;  %2481 = vrot.lane.b32.xlu0 %v2290_v50, %s9509_s11 }
 0x142   :  { %v1268_v37 = vrot.slane %v1267_v26, 4  ;;  %1916 = vst.msk [vmem:[#allocation2 + $0x8] sm:$0xf] %vm615_vm4, %v1821_v51  ;;  %v12056_v4 = vld [vmem:[%s16074_s0 + $0x90] sm:$0xe]  ;;  %v12058_v17 = vrot.slane %v3064_v24, 5  ;;  %v1283_v45 = vsel %vm9562_vm2, %v1278_v5, %v1282_v33  ;;  %7321 = vmatprep.mubr.bf16.mxu1 %v9337_v10  ;;  %v1027_v26 = vpop.permute.xlu1 %1026 }
 0x143   :  { %v12060_v0 = vrot.slane %v3068_v47, 4  ;;  %v689_v62 = vld [vmem:[%s16074_s0 + $0xa4] sm:$0x1]  ;;  %2542 = vst.msk [vmem:[#allocation2 + $0x20] sm:$0xf] %vm615_vm4, %v2448_v22  ;;  %v5715_v60 = vld [vmem:[#allocation2 + $0x154] sm:$0xff]  ;;  %7322 = vmatmul.mubr.bf16.gmra.mxu1 %v9056_v36  ;;  %v2446_v11 = vpop.permute.xlu0 %2445 }
 0x144   :  { %v12070_v41 = vrot.slane %v3055_v35, 4  ;;  %v12072_v42 = vrot.slane %v3058_v6, 5  ;;  %1589 = vst.msk [vmem:[#allocation2 + $0xbc] sm:$0xf] %vm51_vm3, %v1283_v45  ;;  %v1273_v31 = vsel %vm9562_vm2, %v1268_v37, %v11998_v48  ;;  %v840_v1 = vrot.slane %v688_v12, 5  ;;  %v5712_v33 = vld [vmem:[#allocation2 + $0x140] sm:$0xff] }
 0x145   :  { %v687_v32 = vld [vmem:[%s16074_s0 + $0x9c] sm:$0xe]  ;;  %v2345_v43 = vshll.u32 %v12022_v25, 16  ;;  %v3074_v13 = vshll.u32 %v12041_v8, 16  ;;  %1588 = vst.msk [vmem:[#allocation2 + $0xa8] sm:$0xf] %vm51_vm3, %v1273_v31  ;;  %v3029_v48 = vsel %vm9562_vm2, %v11846_v30, %v11743_v19  ;;  %v2342_v25 = vor.u32 %v12036_v52, %v12024_v14  ;;  %3350 = vrot.lane.b32.xlu0 %v3019_v3, %s9509_s11 }
 0x146   :  { %v843_v24 = vrot.slane %v689_v62, 5  ;;  %v8178_v47 = vrot.slane %v687_v32, 9  ;;  %v9340_v29 = vld [vmem:[#allocation2 + $0x144] ss:$20 sps:$4 sm:$0xff]   ;;  %v12098_v35 = vld [vmem:[%s16074_s0 + $0xac] sm:$0xf]  ;;  %v8941_v63 = vcombine.low %v5712_v33, %v5715_v60  ;;  %v2332_v30 = vor.u32 %v12050_v53, %v12048_v61  ;;  %3352 = vrot.lane.b32.xlu1 %v3029_v48, %s9509_s11 }
 0x147   :  { %v842_v6 = vrot.slane %v840_v1, 4  ;;  %2541 = vst.msk [vmem:[#allocation2 + $0xc] sm:$0xf] %vm615_vm4, %v2446_v11  ;;  %v8320_v19 = vrot.slane %v12056_v4, 9  ;;  %v8229_v49 = vld [vmem:[%s16074_s0 + $0x4c] sm:$0xf]  ;;  %7137 = vmatprep.mubr.bf16.mxu0 %v9340_v29  ;;  %v3071_v5 = vor.u32 %v12060_v0, %v12058_v17  ;;  %v3061_v12 = vor.u32 %v12072_v42, %v12070_v41  ;;  %v1025_v36 = vpop.permute.xlu0 %1024  ;;  %v1827_v42 = vpop.permute.xlu1 %1826 }
 0x148   :  { %v841_v57 = vsel %vm10157_vm7, %v8178_v47, %v840_v1  ;;  %1103 = vst.msk [vmem:[#allocation2 + $0x180] sm:$0xf] %vm615_vm4, %v1027_v26  ;;  %v8618_v52 = vld [vmem:[%s16074_s0 + $0x100] sm:$0xf]  ;;  %v12114_v8 = vrot.slane %v3037_v59, 4  ;;  %v9385_v10 = vld [vmem:[%s16075_s1 + $0x108] sm:$0xff]   ;;  %7138 = vmatmul.mubr.bf16.gmra.mxu0 %v8941_v63 }
 0x149   :  { %v12123_v51 = vld [vmem:[%s16074_s0 + $0xa8] sm:$0xf]  ;;  %v844_v50 = vsel %vm10157_vm7, %v842_v6, %v843_v24  ;;  %917 = vst.msk [vmem:[#allocation2 + $0x20c] sm:$0xf] %vm51_vm3, %v841_v57  ;;  %v8230_v20 = vld [vmem:[%s16074_s0 + $0x50] sm:$0x1]  ;;  %9169 = vmatprep.subr.bf16.mxu0 %v9385_v10  ;;  %v1784_v57 = vsel %vm10157_vm7, %v11880_v56, %v1783_v40  ;;  %v2324_v40 = vsel %vm9562_vm2, %v11891_v16, %v11893_v58 }
 0x14a   :  { %v12137_v59 = vrot.slane %v1787_v34, 4  ;;  %v12139_v61 = vrot.slane %v2345_v43, 5  ;;  %v2359_v53 = vshll.u32 %v12098_v35, 16  ;;  %918 = vst.msk [vmem:[#allocation2 + $0x220] sm:$0xf] %vm51_vm3, %v844_v50  ;;  %v1294_v37 = vshll.u32 %v8229_v49, 16  ;;  %9170 = vmatpush3.bf16.msra.mxu0 %v9385_v10  ;;  %3817 = vrot.lane.b32.xlu1 %v8618_v52, %s9509_s11 }
 0x14b   :  { %v8228_v22 = vld [vmem:[%s16074_s0 + $0x48] sm:$0xf]  ;;  %v12146_v0 = vrot.slane %v2342_v25, 4  ;;  %v12148_v45 = vrot.slane %v3074_v13, 5  ;;  %v12153_v62 = vld [vmem:[%s16074_s0 + $0xa0] sm:$0xf]  ;;  %v1825_v26 = vpop.permute.xlu0 %1824  ;;  %v3043_v58 = vsel %vm9562_vm2, %v12114_v8, %v11815_v38 }
 0x14c   :  { %v1298_v60 = vshrl.u32 %v8229_v49, 16  ;;  %v1304_v41 = vshll.u32 %v8230_v20, 16  ;;  %1102 = vst.msk [vmem:[#allocation2 + $0x16c] sm:$0xf] %vm615_vm4, %v1025_v36  ;;  %v8617_v31 = vld [vmem:[%s16074_s0 + $0xfc] sm:$0xf]  ;;  %v1791_v38 = vsel %vm10157_vm7, %v12137_v59, %v1790_v44 }
 0x14d   :  { %v12159_v1 = vrot.slane %v2332_v30, 4  ;;  %v2363_v32 = vshrl.u32 %v12098_v35, 16  ;;  %v2350_v43 = vshrl.u32 %v12123_v51, 16  ;;  %v12163_v13 = vrot.slane %v1294_v37, 5  ;;  %1919 = vst.msk [vmem:[#allocation2 + $0x44] sm:$0xf] %vm615_vm4, %v1827_v42  ;;  %3815 = vrot.lane.b32.xlu0 %v8617_v31, %s9509_s11 }
 0x14e   :  { %v12167_v24 = vrot.slane %v3071_v5, 4  ;;  %v12169_v47 = vrot.slane %v3061_v12, 4  ;;  %v1300_v11 = vrot.slane %v1298_v60, 4  ;;  %v1285_v33 = vshrl.u32 %v8228_v22, 16  ;;  %v8336_v29 = vld [vmem:[%s16074_s0 + $0x58] sm:$0xf]  ;;  %v2452_v5 = vpop.permute.xlu1 %2451  ;;  %1862 = vrot.lane.b32.xlu1 %v1784_v57, %s9509_s11 }
 0x14f   :  { %v1794_v48 = vrot.slane %v12153_v62, 5  ;;  %v12176_v25 = vrot.slane %v2359_v53, 5  ;;  %v1306_v35 = vrot.slane %v1304_v41, 5  ;;  %v1288_v3 = vshll.u32 %v8228_v22, 16  ;;  %1992 = vst.msk [vmem:[#allocation2 + $0xe8] sm:$0xf] %vm51_vm3, %v8336_v29  ;;  %v2450_v36 = vpop.permute.xlu0 %2449 }
 0x150   :  { %v8335_v6 = vld [vmem:[%s16074_s0 + $0x54] sm:$0xf]  ;;  %v9344_v63 = vld [vmem:[#allocation2 + $0x8] ss:$20 sps:$4 sm:$0xff]   ;;  %v9346_v30 = vld [vmem:[#allocation2 + $0xc] ss:$20 sps:$4 sm:$0xff]   ;;  %v1301_v49 = vor.u32 %v1300_v11, %v12163_v13 }
 0x151   :  { %v1287_v52 = vrot.slane %v1285_v33, 4  ;;  %1991 = vst.msk [vmem:[#allocation2 + $0xd4] sm:$0xf] %vm51_vm3, %v8335_v6  ;;  %v12190_v12 = vrot.slane %v2363_v32, 4  ;;  %v12192_v50 = vrot.slane %v2350_v43, 4  ;;  %v2353_v20 = vshll.u32 %v12123_v51, 16  ;;  %7362 = vmatprep.mubr.bf16.mxu1 %v9346_v30  ;;  %1860 = vrot.lane.b32.xlu0 %v1781_v54, %s9509_s11 }
 0x152   :  { %1918 = vst.msk [vmem:[#allocation2 + $0x30] sm:$0xf] %vm615_vm4, %v1825_v26  ;;  %v1290_v10 = vrot.slane %v1288_v3, 5  ;;  %2544 = vst.msk [vmem:[#allocation2 + $0x48] sm:$0xf] %vm615_vm4, %v2452_v5  ;;  %v5721_v56 = vld [vmem:[#allocation2 + $0x17c] sm:$0xff]  ;;  %v2314_v51 = vsel %vm9562_vm2, %v11909_v15, %v11762_v39  ;;  %7363 = vmatmul.mubr.bf16.vlgmr.msra.gmra.mxu1 %v9344_v63  ;;  %v3053_v39 = vsel %vm9562_vm2, %v11916_v27, %v11911_v46  ;;  %v1031_v32 = vpop.permute.xlu1 %1030  ;;  %2487 = vrot.lane.b32.xlu1 %v2324_v40, %s9509_s11 }
 0x153   :  { %v12214_v7 = vld [vmem:[%s16074_s0 + $0xa4] sm:$0x1]  ;;  %v12219_v21 = vld [vmem:[%s16074_s0 + $0x9c] sm:$0xe]  ;;  %v8517_v18 = vld [vmem:[%s16074_s0 + $0x118] sm:$0xf] }
 0x154   :  { %v1302_v9 = vrot.slane %v1301_v49, 4  ;;  %v691_v16 = vld [vmem:[%s16074_s0 + $0xac] sm:$0xf]  ;;  %v8516_v15 = vld [vmem:[%s16074_s0 + $0x114] sm:$0xf]  ;;  %v1291_v53 = vor.u32 %v1290_v10, %v1287_v52  ;;  %v3088_v33 = vshll.u32 %v8517_v18, 16  ;;  %v2366_v10 = vor.u32 %v12190_v12, %v12176_v25 }
 0x155   :  { %v692_v37 = vld [vmem:[%s16074_s0 + $0xb0] sm:$0x1]  ;;  %v690_v22 = vld [vmem:[%s16074_s0 + $0xa8] sm:$0xe]  ;;  %v9347_v27 = vld [vmem:[#allocation2 + $0x16c] ss:$20 sps:$4 sm:$0xff]   ;;  %2485 = vrot.lane.b32.xlu0 %v2314_v51, %s9509_s11 }
 0x156   :  { %v5718_v46 = vld [vmem:[#allocation2 + $0x168] sm:$0xff]  ;;  %v1307_v60 = vsel %vm9562_vm2, %v1302_v9, %v1306_v35  ;;  %v847_v41 = vrot.slane %v691_v16, 5  ;;  %v850_v42 = vrot.slane %v692_v37, 5  ;;  %v8179_v31 = vrot.slane %v690_v22, 9  ;;  %2543 = vst.msk [vmem:[#allocation2 + $0x34] sm:$0xf] %vm615_vm4, %v2450_v36  ;;  %7145 = vmatprep.mubr.bf16.mxu0 %v9347_v27  ;;  %3356 = vrot.lane.b32.xlu1 %v3053_v39, %s9509_s11 }
 0x157   :  { %v8946_v43 = vcombine.low %v5718_v46, %v5721_v56  ;;  %v8395_v11 = vld [vmem:[%s16074_s0 + $0xb0] sm:$0x1]  ;;  %v3092_v29 = vshrl.u32 %v8517_v18, 16  ;;  %1591 = vst.msk [vmem:[#allocation2 + $0xe4] sm:$0xf] %vm51_vm3, %v1307_v60  ;;  %v1292_v3 = vrot.slane %v1291_v53, 4  ;;  %v1831_v18 = vpop.permute.xlu1 %1830 }
 0x158   :  { %1105 = vst.msk [vmem:[#allocation2 + $0x1a8] sm:$0xf] %vm615_vm4, %v1031_v32  ;;  %v12254_v35 = vrot.slane %v2353_v20, 5  ;;  %v3079_v6 = vshrl.u32 %v8516_v15, 16  ;;  %v849_v26 = vrot.slane %v847_v41, 4  ;;  %v848_v63 = vsel %vm10157_vm7, %v8179_v31, %v847_v41  ;;  %v1029_v20 = vpop.permute.xlu0 %1028 }
 0x159   :  { %7146 = vmatmul.mubr.bf16.gmra.mxu0 %v8946_v43  ;;  %v1797_v30 = vrot.slane %v12214_v7, 5  ;;  %v8321_v57 = vrot.slane %v12219_v21, 9  ;;  %v3082_v49 = vshll.u32 %v8516_v15, 16  ;;  %v1297_v52 = vsel %vm9562_vm2, %v1292_v3, %v12163_v13  ;;  %919 = vst.msk [vmem:[#allocation2 + $0x234] sm:$0xf] %vm51_vm3, %v848_v63  ;;  %v5674_v37 = vld [vmem:[#allocation2 + $0x44] sm:$0xff]  ;;  %3354 = vrot.lane.b32.xlu0 %v3043_v58, %s9509_s11 }
 0x15a   :  { %v8232_v5 = vld [vmem:[%s16074_s0 + $0x58] sm:$0xf]  ;;  %v2369_v54 = vshll.u32 %v8395_v11, 16  ;;  %1590 = vst.msk [vmem:[#allocation2 + $0xd0] sm:$0xf] %vm51_vm3, %v1297_v52  ;;  %v851_v56 = vsel %vm10157_vm7, %v849_v26, %v850_v42  ;;  %v12279_v9 = vrot.slane %v1794_v48, 4  ;;  %v2356_v22 = vor.u32 %v12254_v35, %v12192_v50 }
 0x15b   :  { %v8233_v13 = vld [vmem:[%s16074_s0 + $0x5c] sm:$0x1]  ;;  %v1318_v40 = vshll.u32 %v8232_v5, 16  ;;  %1104 = vst.msk [vmem:[#allocation2 + $0x194] sm:$0xf] %vm615_vm4, %v1029_v20  ;;  %v12284_v16 = vrot.slane %v3088_v33, 5  ;;  %v2456_v35 = vpop.permute.xlu1 %2455 }
 0x15c   :  { %v8518_v12 = vld [vmem:[%s16074_s0 + $0x11c] sm:$0x1]  ;;  %v12286_v15 = vrot.slane %v3092_v29, 4  ;;  %920 = vst.msk [vmem:[#allocation2 + $0x248] sm:$0xf] %vm51_vm3, %v851_v56  ;;  %v1322_v53 = vshrl.u32 %v8232_v5, 16  ;;  %v1829_v50 = vpop.permute.xlu0 %1828 }
 0x15d   :  { %1921 = vst.msk [vmem:[#allocation2 + $0x6c] sm:$0xf] %vm615_vm4, %v1831_v18  ;;  %v12293_v36 = vrot.slane %v3079_v6, 4  ;;  %v12295_v46 = vrot.slane %v1318_v40, 5  ;;  %v1328_v27 = vshll.u32 %v8233_v13, 16  ;;  %v3084_v41 = vrot.slane %v3082_v49, 5 }
 0x15e   :  { %v8231_v60 = vld [vmem:[%s16074_s0 + $0x54] sm:$0xf]  ;;  %v8620_v51 = vld [vmem:[%s16074_s0 + $0x10c] sm:$0xf]  ;;  %v1324_v42 = vrot.slane %v1322_v53, 4  ;;  %v12304_v33 = vrot.slane %v2366_v10, 4  ;;  %v3095_v20 = vor.u32 %v12286_v15, %v12284_v16 }
 0x15f   :  { %v1309_v31 = vshrl.u32 %v8231_v60, 16  ;;  %v1312_v32 = vshll.u32 %v8231_v60, 16  ;;  %v5671_v43 = vld [vmem:[#allocation2 + $0x30] sm:$0xff]  ;;  %v12306_v29 = vrot.slane %v2369_v54, 5  ;;  %v3098_v3 = vshll.u32 %v8518_v12, 16  ;;  %v5727_v5 = vld [vmem:[#allocation2 + $0x1a4] sm:$0xff]  ;;  %3821 = vrot.lane.b32.xlu1 %v8620_v51, %s9509_s11 }
 0x160   :  { %v9349_v11 = vld [vmem:[#allocation2 + $0x34] ss:$20 sps:$4 sm:$0xff]   ;;  %1920 = vst.msk [vmem:[#allocation2 + $0x58] sm:$0xf] %vm615_vm4, %v1829_v50  ;;  %v8908_v39 = vcombine.low %v5671_v43, %v5674_v37  ;;  %v8397_v26 = vld [vmem:[%s16074_s0 + $0xb8] sm:$0xf]  ;;  %v1325_v63 = vor.u32 %v1324_v42, %v12295_v46  ;;  %v3085_v58 = vor.u32 %v3084_v41, %v12293_v36  ;;  %v2454_v18 = vpop.permute.xlu0 %2453  ;;  %v1788_v42 = vsel %vm10157_vm7, %v8320_v19, %v1787_v34 }
 0x161   :  { %v8619_v6 = vld [vmem:[%s16074_s0 + $0x108] sm:$0xf]  ;;  %v1330_v49 = vrot.slane %v1328_v27, 5  ;;  %v1311_v52 = vrot.slane %v1309_v31, 4  ;;  %7370 = vmatprep.mubr.bf16.mxu1 %v9349_v11  ;;  %2546 = vst.msk [vmem:[#allocation2 + $0x70] sm:$0xf] %vm615_vm4, %v2456_v35  ;;  %v2348_v31 = vsel %vm9562_vm2, %v12146_v0, %v12139_v61 }
 0x162   :  { %v8396_v10 = vld [vmem:[%s16074_s0 + $0xb4] sm:$0xf]  ;;  %v1314_v54 = vrot.slane %v1312_v32, 5  ;;  %v8338_v56 = vld [vmem:[%s16074_s0 + $0x64] sm:$0xf]  ;;  %7371 = vmatmul.mubr.bf16.gmra.mxu1 %v8908_v39  ;;  %v12337_v8 = vrot.slane %v2356_v22, 4  ;;  %v1035_v22 = vpop.permute.xlu1 %1034  ;;  %3819 = vrot.lane.b32.xlu0 %v8619_v6, %s9509_s11 }
 0x163   :  { %v12343_v13 = vld [vmem:[%s16074_s0 + $0xac] sm:$0xf]  ;;  %v1326_v40 = vrot.slane %v1325_v63, 4  ;;  %1994 = vst.msk [vmem:[#allocation2 + $0x110] sm:$0xf] %vm51_vm3, %v8338_v56  ;;  %v5724_v12 = vld [vmem:[#allocation2 + $0x190] sm:$0xff]  ;;  %1866 = vrot.lane.b32.xlu1 %v1791_v38, %s9509_s11  ;;  %v2338_v38 = vsel %vm9562_vm2, %v12159_v1, %v12024_v14 }
 0x164   :  { %v8337_v2 = vld [vmem:[%s16074_s0 + $0x60] sm:$0xf]  ;;  %v9351_v15 = vld [vmem:[#allocation2 + $0x194] ss:$20 sps:$4 sm:$0xff]   ;;  %v12349_v44 = vrot.slane %v3098_v3, 5  ;;  %v2383_v59 = vshll.u32 %v8397_v26, 16  ;;  %v1315_v37 = vor.u32 %v1314_v54, %v1311_v52  ;;  %v8951_v36 = vcombine.low %v5724_v12, %v5727_v5  ;;  %v1033_v11 = vpop.permute.xlu0 %1032 }
 0x165   :  { %v2387_v53 = vshrl.u32 %v8397_v26, 16  ;;  %1993 = vst.msk [vmem:[#allocation2 + $0xfc] sm:$0xf] %vm51_vm3, %v8337_v2  ;;  %v2374_v27 = vshrl.u32 %v8396_v10, 16  ;;  %v2377_v60 = vshll.u32 %v8396_v10, 16  ;;  %v1331_v51 = vsel %vm9562_vm2, %v1326_v40, %v1330_v49  ;;  %7153 = vmatprep.mubr.bf16.mxu0 %v9351_v15 }
 0x166   :  { %2545 = vst.msk [vmem:[#allocation2 + $0x5c] sm:$0xf] %vm615_vm4, %v2454_v18  ;;  %v12358_v41 = vld [vmem:[%s16074_s0 + $0x124] sm:$0xf]  ;;  %1107 = vst.msk [vmem:[#allocation2 + $0x1d0] sm:$0xf] %vm615_vm4, %v1035_v22  ;;  %7154 = vmatmul.mubr.bf16.gmra.mxu0 %v8951_v36  ;;  %v1835_v26 = vpop.permute.xlu1 %1834  ;;  %1864 = vrot.lane.b32.xlu0 %v1788_v42, %s9509_s11  ;;  %v3077_v15 = vsel %vm9562_vm2, %v12167_v24, %v12148_v45 }
 0x167   :  { %v12372_v32 = vrot.slane %v3095_v20, 4  ;;  %1593 = vst.msk [vmem:[#allocation2 + $0x10c] sm:$0xf] %vm51_vm3, %v1331_v51  ;;  %v1316_v50 = vrot.slane %v1315_v37, 4  ;;  %v694_v43 = vld [vmem:[%s16074_s0 + $0xb8] sm:$0xf]  ;;  %2491 = vrot.lane.b32.xlu1 %v2348_v31, %s9509_s11 }
 0x168   :  { %v695_v55 = vld [vmem:[%s16074_s0 + $0xbc] sm:$0x1]  ;;  %v12382_v34 = vrot.slane %v3085_v58, 4  ;;  %v1801_v4 = vrot.slane %v12343_v13, 5  ;;  %v854_v19 = vrot.slane %v694_v43, 5  ;;  %v12388_v3 = vrot.slane %v2383_v59, 5  ;;  %v1833_v12 = vpop.permute.xlu0 %1832 }
 0x169   :  { %v857_v61 = vrot.slane %v695_v55, 5  ;;  %v693_v0 = vld [vmem:[%s16074_s0 + $0xb4] sm:$0xe]  ;;  %v12390_v35 = vrot.slane %v2387_v53, 4  ;;  %v1321_v39 = vsel %vm9562_vm2, %v1316_v50, %v12295_v46  ;;  %1106 = vst.msk [vmem:[#allocation2 + $0x1bc] sm:$0xf] %vm615_vm4, %v1033_v11 }
 0x16a   :  { %v8180_v6 = vrot.slane %v693_v0, 9  ;;  %v12399_v63 = vld [vmem:[%s16074_s0 + $0xb0] sm:$0x1]  ;;  %v12401_v49 = vrot.slane %v2374_v27, 4  ;;  %v12403_v52 = vrot.slane %v2377_v60, 5  ;;  %v3112_v5 = vshll.u32 %v12358_v41, 16  ;;  %v2460_v22 = vpop.permute.xlu1 %2459  ;;  %2489 = vrot.lane.b32.xlu0 %v2338_v38, %s9509_s11 }
 0x16b   :  { %1592 = vst.msk [vmem:[#allocation2 + $0xf8] sm:$0xf] %vm51_vm3, %v1321_v39  ;;  %v856_v20 = vrot.slane %v854_v19, 4  ;;  %v5680_v46 = vld [vmem:[#allocation2 + $0x6c] sm:$0xff]  ;;  %v12412_v10 = vld [vmem:[%s16074_s0 + $0xbc] sm:$0x1]  ;;  %v3067_v27 = vsel %vm9562_vm2, %v12169_v47, %v12058_v17  ;;  %3360 = vrot.lane.b32.xlu1 %v3077_v15, %s9509_s11  ;;  %v2390_v55 = vor.u32 %v12390_v35, %v12388_v3 }
 0x16c   :  { %1923 = vst.msk [vmem:[#allocation2 + $0x94] sm:$0xf] %vm615_vm4, %v1835_v26  ;;  %v3116_v54 = vshrl.u32 %v12358_v41, 16  ;;  %v855_v56 = vsel %vm10157_vm7, %v8180_v6, %v854_v19  ;;  %v12425_v58 = vld [vmem:[%s16074_s0 + $0x128] sm:$0x1]  ;;  %v1804_v60 = vrot.slane %v12399_v63, 5  ;;  %v2458_v11 = vpop.permute.xlu0 %2457 }
 0x16d   :  { %v858_v40 = vsel %vm10157_vm7, %v856_v20, %v857_v61  ;;  %921 = vst.msk [vmem:[#allocation2 + $0x25c] sm:$0xf] %vm51_vm3, %v855_v56  ;;  %v8235_v2 = vld [vmem:[%s16074_s0 + $0x64] sm:$0xf]  ;;  %v8236_v18 = vld [vmem:[%s16074_s0 + $0x68] sm:$0x1]  ;;  %v2380_v61 = vor.u32 %v12403_v52, %v12401_v49 }
 0x16e   :  { %v5677_v14 = vld [vmem:[#allocation2 + $0x58] sm:$0xff]  ;;  %922 = vst.msk [vmem:[#allocation2 + $0x270] sm:$0xf] %vm51_vm3, %v858_v40  ;;  %v1342_v59 = vshll.u32 %v8235_v2, 16  ;;  %v1346_v53 = vshrl.u32 %v8235_v2, 16  ;;  %v1352_v37 = vshll.u32 %v8236_v18, 16  ;;  %3358 = vrot.lane.b32.xlu0 %v3067_v27, %s9509_s11 }
 0x16f   :  { %v9354_v1 = vld [vmem:[#allocation2 + $0x5c] ss:$20 sps:$4 sm:$0xff]   ;;  %1922 = vst.msk [vmem:[#allocation2 + $0x80] sm:$0xf] %vm615_vm4, %v1833_v12  ;;  %v8913_v36 = vcombine.low %v5677_v14, %v5680_v46  ;;  %v12447_v51 = vrot.slane %v3112_v5, 5  ;;  %v12457_v42 = vrot.slane %v3116_v54, 4  ;;  %v1039_v54 = vpop.permute.xlu1 %1038 }
 0x170   :  { %v8519_v45 = vld [vmem:[%s16074_s0 + $0x120] sm:$0xf]  ;;  %7378 = vmatprep.mubr.bf16.mxu1 %v9354_v1  ;;  %2548 = vst.msk [vmem:[#allocation2 + $0x98] sm:$0xf] %vm615_vm4, %v2460_v22  ;;  %v5733_v41 = vld [vmem:[#allocation2 + $0x1cc] sm:$0xff]  ;;  %v12459_v17 = vrot.slane %v1342_v59, 5  ;;  %v1798_v22 = vsel %vm10157_vm7, %v12279_v9, %v1797_v30 }
 0x171   :  { %v8234_v24 = vld [vmem:[%s16074_s0 + $0x60] sm:$0xf]  ;;  %v1348_v47 = vrot.slane %v1346_v53, 4  ;;  %7379 = vmatmul.mubr.bf16.gmra.mxu1 %v8913_v36  ;;  %v8622_v50 = vld [vmem:[%s16074_s0 + $0x118] sm:$0xf]  ;;  %v2393_v19 = vshll.u32 %v12412_v10, 16  ;;  %v3119_v2 = vor.u32 %v12457_v42, %v12447_v51 }
 0x172   :  { %v1333_v31 = vshrl.u32 %v8234_v24, 16  ;;  %v12468_v43 = vld [vmem:[%s16074_s0 + $0xa8] sm:$0xe]  ;;  %v1336_v0 = vshll.u32 %v8234_v24, 16  ;;  %v5730_v39 = vld [vmem:[#allocation2 + $0x1b8] sm:$0xff]  ;;  %v3122_v26 = vshll.u32 %v12425_v58, 16  ;;  %3825 = vrot.lane.b32.xlu1 %v8622_v50, %s9509_s11 }
 0x173   :  { %v9356_v6 = vld [vmem:[#allocation2 + $0x1bc] ss:$20 sps:$4 sm:$0xff]   ;;  %v1349_v5 = vor.u32 %v1348_v47, %v12459_v17  ;;  %v1354_v20 = vrot.slane %v1352_v37, 5  ;;  %2547 = vst.msk [vmem:[#allocation2 + $0x84] sm:$0xf] %vm615_vm4, %v2458_v11  ;;  %v8956_v56 = vcombine.low %v5730_v39, %v5733_v41  ;;  %v3103_v10 = vshrl.u32 %v8519_v45, 16  ;;  %v1037_v37 = vpop.permute.xlu0 %1036  ;;  %v1839_v7 = vpop.permute.xlu1 %1838 }
 0x174   :  { %v1335_v46 = vrot.slane %v1333_v31, 4  ;;  %v8621_v35 = vld [vmem:[%s16074_s0 + $0x114] sm:$0xf]  ;;  %v3106_v49 = vshll.u32 %v8519_v45, 16  ;;  %v1338_v52 = vrot.slane %v1336_v0, 5  ;;  %7161 = vmatprep.mubr.bf16.mxu0 %v9356_v6  ;;  %v12488_v58 = vrot.slane %v1801_v4, 4 }
 0x175   :  { %v8340_v38 = vld [vmem:[%s16074_s0 + $0x70] sm:$0xf]  ;;  %1109 = vst.msk [vmem:[#allocation2 + $0x1f8] sm:$0xf] %vm615_vm4, %v1039_v54  ;;  %v8322_v40 = vrot.slane %v12468_v43, 9  ;;  %v1350_v18 = vrot.slane %v1349_v5, 4  ;;  %7162 = vmatmul.mubr.bf16.gmra.mxu0 %v8956_v56  ;;  %3823 = vrot.lane.b32.xlu0 %v8621_v35, %s9509_s11  ;;  %v1795_v47 = vsel %vm10157_vm7, %v8321_v57, %v1794_v48  ;;  %v2372_v6 = vsel %vm9562_vm2, %v12304_v33, %v12306_v29 }
 0x176   :  { %1996 = vst.msk [vmem:[#allocation2 + $0x138] sm:$0xf] %vm51_vm3, %v8340_v38  ;;  %v8339_v12 = vld [vmem:[%s16074_s0 + $0x6c] sm:$0xf]  ;;  %v12498_v14 = vrot.slane %v2390_v55, 4  ;;  %v12500_v1 = vrot.slane %v2393_v19, 5  ;;  %v1339_v59 = vor.u32 %v1338_v52, %v1335_v46  ;;  %1870 = vrot.lane.b32.xlu1 %v1798_v22, %s9509_s11  ;;  %v2362_v33 = vsel %vm9562_vm2, %v12337_v8, %v12176_v25 }
 0x177   :  { %v12502_v15 = vrot.slane %v2380_v61, 4  ;;  %v12507_v53 = vld [vmem:[%s16074_s0 + $0xc4] sm:$0xf]  ;;  %1995 = vst.msk [vmem:[#allocation2 + $0x124] sm:$0xf] %vm51_vm3, %v8339_v12  ;;  %v1355_v36 = vsel %vm9562_vm2, %v1350_v18, %v1354_v20  ;;  %v12527_v41 = vrot.slane %v3122_v26, 5  ;;  %v1837_v0 = vpop.permute.xlu0 %1836  ;;  %v2464_v5 = vpop.permute.xlu1 %2463 }
 0x178   :  { %v8399_v27 = vld [vmem:[%s16074_s0 + $0xc0] sm:$0xf]  ;;  %v8470_v45 = vld [vmem:[%s16074_s0 + $0xdc] sm:$0xf]  ;;  %v8469_v24 = vld [vmem:[%s16074_s0 + $0xd8] sm:$0xf] }
 0x179   :  { %1108 = vst.msk [vmem:[#allocation2 + $0x1e4] sm:$0xf] %vm615_vm4, %v1037_v37  ;;  %v12529_v30 = vrot.slane %v3103_v10, 4  ;;  %v12531_v9 = vrot.slane %v3106_v49, 5  ;;  %v1340_v42 = vrot.slane %v1339_v59, 4  ;;  %v5686_v31 = vld [vmem:[#allocation2 + $0x94] sm:$0xff]  ;;  %1868 = vrot.lane.b32.xlu0 %v1795_v47, %s9509_s11  ;;  %v3101_v10 = vsel %vm9562_vm2, %v12372_v32, %v12349_v44 }
 0x17a   :  { %1595 = vst.msk [vmem:[#allocation2 + $0x134] sm:$0xf] %vm51_vm3, %v1355_v36  ;;  %2879 = vst.msk [vmem:[#allocation2 + $0x294] sm:$0xf] %vm51_vm3, %v8470_v45  ;;  %v12544_v50 = vrot.slane %v3119_v2, 4  ;;  %v2407_v48 = vshll.u32 %v12507_v53, 16  ;;  %v3091_v49 = vsel %vm9562_vm2, %v12382_v34, %v12284_v16  ;;  %2495 = vrot.lane.b32.xlu1 %v2372_v6, %s9509_s11 }
 0x17b   :  { %2878 = vst.msk [vmem:[#allocation2 + $0x280] sm:$0xf] %vm51_vm3, %v8469_v24  ;;  %v12549_v55 = vld [vmem:[%s16074_s0 + $0xb8] sm:$0xf]  ;;  %v12554_v19 = vld [vmem:[%s16074_s0 + $0xbc] sm:$0x1]  ;;  %v1345_v62 = vsel %vm9562_vm2, %v1340_v42, %v12459_v17  ;;  %v3109_v44 = vor.u32 %v12531_v9, %v12529_v30  ;;  %v2462_v18 = vpop.permute.xlu0 %2461 }
 0x17c   :  { %1925 = vst.msk [vmem:[#allocation2 + $0xbc] sm:$0xf] %vm615_vm4, %v1839_v7  ;;  %v2411_v21 = vshrl.u32 %v12507_v53, 16  ;;  %v2398_v57 = vshrl.u32 %v8399_v27, 16  ;;  %v8550_v61 = vld [vmem:[%s16074_s0 + $0xdc] sm:$0xf] }
 0x17d   :  { %v5683_v11 = vld [vmem:[#allocation2 + $0x80] sm:$0xff]  ;;  %1594 = vst.msk [vmem:[#allocation2 + $0x120] sm:$0xf] %vm51_vm3, %v1345_v62  ;;  %v2401_v17 = vshll.u32 %v8399_v27, 16  ;;  %v1808_v46 = vrot.slane %v12549_v55, 5  ;;  %v3568_v54 = vrot.slane %v8550_v61, 5  ;;  %v1043_v27 = vpop.permute.xlu1 %1042  ;;  %2493 = vrot.lane.b32.xlu0 %v2362_v33, %s9509_s11 }
 0x17e   :  { %v9358_v39 = vld [vmem:[#allocation2 + $0x84] ss:$20 sps:$4 sm:$0xff]   ;;  %v8551_v26 = vld [vmem:[%s16074_s0 + $0xe0] sm:$0x1]  ;;  %1924 = vst.msk [vmem:[#allocation2 + $0xa8] sm:$0xf] %vm615_vm4, %v1837_v0  ;;  %v8918_v20 = vcombine.low %v5683_v11, %v5686_v31  ;;  %3364 = vrot.lane.b32.xlu1 %v3101_v10, %s9509_s11 }
 0x17f   :  { %v3571_v56 = vrot.slane %v8551_v26, 5  ;;  %v8549_v35 = vld [vmem:[%s16074_s0 + $0xd8] sm:$0xe]  ;;  %7386 = vmatprep.mubr.bf16.mxu1 %v9358_v39  ;;  %2550 = vst.msk [vmem:[#allocation2 + $0xc0] sm:$0xf] %vm615_vm4, %v2464_v5  ;;  %v1811_v32 = vrot.slane %v12554_v19, 5  ;;  %v1041_v39 = vpop.permute.xlu0 %1040 }
 0x180   :  { %v5739_v29 = vld [vmem:[#allocation2 + $0x1f4] sm:$0xff]  ;;  %v12595_v52 = vld [vmem:[%s16074_s0 + $0xc8] sm:$0x1]  ;;  %v8523_v25 = vld [vmem:[%s16074_s0 + $0x130] sm:$0xf]  ;;  %v8597_v8 = vrot.slane %v8549_v35, 9  ;;  %7387 = vmatmul.mubr.bf16.gmra.mxu1 %v8918_v20 }
 0x181   :  { %v12604_v38 = vrot.slane %v2407_v48, 5  ;;  %v8522_v16 = vld [vmem:[%s16074_s0 + $0x12c] sm:$0xf]  ;;  %v3570_v34 = vrot.slane %v3568_v54, 4  ;;  %v9398_v2 = vld [vmem:[%s16075_s1 + $0x100] sm:$0xff]   ;;  %v12612_v53 = vrot.slane %v2411_v21, 4  ;;  %3362 = vrot.lane.b32.xlu0 %v3091_v49, %s9509_s11 }
 0x182   :  { %v5736_v12 = vld [vmem:[#allocation2 + $0x1e0] sm:$0xff]  ;;  %v12614_v37 = vrot.slane %v2398_v57, 4  ;;  %v12616_v22 = vrot.slane %v2401_v17, 5  ;;  %v3569_v36 = vsel %vm10157_vm7, %v8597_v8, %v3568_v54  ;;  %2549 = vst.msk [vmem:[#allocation2 + $0xac] sm:$0xf] %vm615_vm4, %v2462_v18  ;;  %v3136_v24 = vshll.u32 %v8523_v25, 16  ;;  %9171 = vmatprep.subr.bf16.mxu0 %v9398_v2 }
 0x183   :  { %v9360_v59 = vld [vmem:[#allocation2 + $0x1e4] ss:$20 sps:$4 sm:$0xff]   ;;  %v8961_v45 = vcombine.low %v5736_v12, %v5739_v29  ;;  %v3140_v7 = vshrl.u32 %v8523_v25, 16  ;;  %v3572_v30 = vsel %vm10157_vm7, %v3570_v34, %v3571_v56  ;;  %3710 = vst.msk [vmem:[#allocation2 + $0x284] sm:$0xf] %vm51_vm3, %v3569_v36  ;;  %v3127_v47 = vshrl.u32 %v8522_v16, 16  ;;  %9172 = vmatpush3.bf16.msra.mxu0 %v9398_v2  ;;  %v1843_v56 = vpop.permute.xlu1 %1842  ;;  %v1841_v36 = vpop.permute.xlu0 %1840 }
 0x184   :  { %v8238_v9 = vld [vmem:[%s16074_s0 + $0x70] sm:$0xf]  ;;  %v8239_v42 = vld [vmem:[%s16074_s0 + $0x74] sm:$0x1]  ;;  %7169 = vmatprep.mubr.bf16.mxu0 %v9360_v59  ;;  %1111 = vst.msk [vmem:[#allocation2 + $0x220] sm:$0xf] %vm615_vm4, %v1043_v27  ;;  %v2414_v26 = vor.u32 %v12612_v53, %v12604_v38  ;;  %v2404_v5 = vor.u32 %v12616_v22, %v12614_v37 }
 0x185   :  { %v3130_v31 = vshll.u32 %v8522_v16, 16  ;;  %3711 = vst.msk [vmem:[#allocation2 + $0x298] sm:$0xf] %vm51_vm3, %v3572_v30  ;;  %v1366_v62 = vshll.u32 %v8238_v9, 16  ;;  %v1370_v48 = vshrl.u32 %v8238_v9, 16  ;;  %7170 = vmatmul.mubr.bf16.gmra.mxu0 %v8961_v45  ;;  %v2417_v57 = vshll.u32 %v12595_v52, 16 }
 0x186   :  { %v8237_v21 = vld [vmem:[%s16074_s0 + $0x6c] sm:$0xf]  ;;  %v1376_v61 = vshll.u32 %v8239_v42, 16  ;;  %v8624_v6 = vld [vmem:[%s16074_s0 + $0x124] sm:$0xf]  ;;  %v12661_v29 = vrot.slane %v3136_v24, 5 }
 0x187   :  { %v1357_v0 = vshrl.u32 %v8237_v21, 16  ;;  %v1360_v11 = vshll.u32 %v8237_v21, 16  ;;  %v12644_v17 = vld [vmem:[%s16074_s0 + $0xb4] sm:$0xe]  ;;  %v12650_v20 = vrot.slane %v1366_v62, 5  ;;  %v1372_v54 = vrot.slane %v1370_v48, 4  ;;  %3829 = vrot.lane.b32.xlu1 %v8624_v6, %s9509_s11  ;;  %v2468_v9 = vpop.permute.xlu1 %2467 }
 0x188   :  { %1110 = vst.msk [vmem:[#allocation2 + $0x20c] sm:$0xf] %vm615_vm4, %v1041_v39  ;;  %v8623_v35 = vld [vmem:[%s16074_s0 + $0x120] sm:$0xf]  ;;  %v12659_v33 = vld [vmem:[%s16074_s0 + $0x134] sm:$0x1] }
 0x189   :  { %v12663_v10 = vrot.slane %v3140_v7, 4  ;;  %v1359_v52 = vrot.slane %v1357_v0, 4  ;;  %v1362_v25 = vrot.slane %v1360_v11, 5  ;;  %1927 = vst.msk [vmem:[#allocation2 + $0xe4] sm:$0xf] %vm615_vm4, %v1843_v56  ;;  %v5692_v8 = vld [vmem:[#allocation2 + $0xbc] sm:$0xff]  ;;  %v1373_v2 = vor.u32 %v1372_v54, %v12650_v20  ;;  %3827 = vrot.lane.b32.xlu0 %v8623_v35, %s9509_s11 }
 0x18a   :  { %v12667_v16 = vrot.slane %v3127_v47, 4  ;;  %v12669_v34 = vrot.slane %v3130_v31, 5  ;;  %v1378_v18 = vrot.slane %v1376_v61, 5  ;;  %v8342_v12 = vld [vmem:[%s16074_s0 + $0x7c] sm:$0xf]  ;;  %v12676_v59 = vrot.slane %v3109_v44, 4 }
 0x18b   :  { %v12680_v49 = vrot.slane %v1808_v46, 4  ;;  %v8323_v53 = vrot.slane %v12644_v17, 9  ;;  %v1363_v37 = vor.u32 %v1362_v25, %v1359_v52  ;;  %1998 = vst.msk [vmem:[#allocation2 + $0x160] sm:$0xf] %vm51_vm3, %v8342_v12  ;;  %v8341_v22 = vld [vmem:[%s16074_s0 + $0x78] sm:$0xf]  ;;  %v1805_v44 = vsel %vm10157_vm7, %v12488_v58, %v1804_v60  ;;  %v1047_v35 = vpop.permute.xlu1 %1046 }
 0x18c   :  { %v5689_v27 = vld [vmem:[#allocation2 + $0xa8] sm:$0xff]  ;;  %v12692_v24 = vrot.slane %v2414_v26, 4  ;;  %v12694_v7 = vrot.slane %v2417_v57, 5  ;;  %v1374_v30 = vrot.slane %v1373_v2, 4  ;;  %1997 = vst.msk [vmem:[#allocation2 + $0x14c] sm:$0xf] %vm51_vm3, %v8341_v22  ;;  %v3143_v47 = vor.u32 %v12663_v10, %v12661_v29  ;;  %1874 = vrot.lane.b32.xlu1 %v1805_v44, %s9509_s11 }
 0x18d   :  { %v9362_v45 = vld [vmem:[#allocation2 + $0xac] ss:$20 sps:$4 sm:$0xff]   ;;  %1926 = vst.msk [vmem:[#allocation2 + $0xd0] sm:$0xf] %vm615_vm4, %v1841_v36  ;;  %v8923_v42 = vcombine.low %v5689_v27, %v5692_v8  ;;  %v3146_v63 = vshll.u32 %v12659_v33, 16  ;;  %v1364_v58 = vrot.slane %v1363_v37, 4  ;;  %v3133_v21 = vor.u32 %v12669_v34, %v12667_v16 }
 0x18e   :  { %v12704_v60 = vld [vmem:[%s16074_s0 + $0xc4] sm:$0xf]  ;;  %v8403_v31 = vld [vmem:[%s16074_s0 + $0xd0] sm:$0xf]  ;;  %7394 = vmatprep.mubr.bf16.mxu1 %v9362_v45  ;;  %2552 = vst.msk [vmem:[#allocation2 + $0xe8] sm:$0xf] %vm615_vm4, %v2468_v9  ;;  %v1379_v0 = vsel %vm9562_vm2, %v1374_v30, %v1378_v18  ;;  %v1802_v11 = vsel %vm10157_vm7, %v8322_v40, %v1801_v4  ;;  %v2466_v4 = vpop.permute.xlu0 %2465  ;;  %v2386_v2 = vsel %vm9562_vm2, %v12502_v15, %v12388_v3 }
 0x18f   :  { %v5745_v62 = vld [vmem:[#allocation2 + $0x21c] sm:$0xff]  ;;  %v12711_v48 = vrot.slane %v2404_v5, 4  ;;  %v12718_v57 = vld [vmem:[%s16074_s0 + $0xc8] sm:$0x1]  ;;  %7395 = vmatmul.mubr.bf16.gmra.mxu1 %v8923_v42  ;;  %1597 = vst.msk [vmem:[#allocation2 + $0x15c] sm:$0xf] %vm51_vm3, %v1379_v0  ;;  %v1369_v39 = vsel %vm9562_vm2, %v1364_v58, %v12650_v20  ;;  %v2396_v5 = vsel %vm9562_vm2, %v12498_v14, %v12500_v1  ;;  %1872 = vrot.lane.b32.xlu0 %v1802_v11, %s9509_s11  ;;  %v1847_v44 = vpop.permute.xlu1 %1846 }
 0x190   :  { %v12723_v61 = vld [vmem:[%s16074_s0 + $0xc0] sm:$0xe]  ;;  %v12741_v6 = vld [vmem:[%s16074_s0 + $0xcc] sm:$0xf]  ;;  %v8472_v13 = vld [vmem:[%s16074_s0 + $0xe8] sm:$0xf]  ;;  %2499 = vrot.lane.b32.xlu1 %v2396_v5, %s9509_s11  ;;  %v3125_v18 = vsel %vm9562_vm2, %v12544_v50, %v12527_v41  ;;  %v3115_v58 = vsel %vm9562_vm2, %v12676_v59, %v12447_v51  ;;  %v12846_v5 = vsel %vm10157_vm7, %v8323_v53, %v1808_v46 }
 0x191   :  { %v8471_v43 = vld [vmem:[%s16074_s0 + $0xe4] sm:$0xf]  ;;  %v5742_v40 = vld [vmem:[#allocation2 + $0x208] sm:$0xff]  ;;  %v1815_v20 = vrot.slane %v12704_v60, 5  ;;  %1596 = vst.msk [vmem:[#allocation2 + $0x148] sm:$0xf] %vm51_vm3, %v1369_v39 }
 0x192   :  { %v9364_v26 = vld [vmem:[#allocation2 + $0x20c] ss:$20 sps:$4 sm:$0xff]   ;;  %v2431_v54 = vshll.u32 %v8403_v31, 16  ;;  %v2435_v56 = vshrl.u32 %v8403_v31, 16  ;;  %2881 = vst.msk [vmem:[#allocation2 + $0x2bc] sm:$0xf] %vm51_vm3, %v8472_v13  ;;  %v8966_v33 = vcombine.low %v5742_v40, %v5745_v62  ;;  %v1045_v27 = vpop.permute.xlu0 %1044 }
 0x193   :  { %2880 = vst.msk [vmem:[#allocation2 + $0x2a8] sm:$0xf] %vm51_vm3, %v8471_v43  ;;  %v12758_v10 = vrot.slane %v3143_v47, 4  ;;  %v12760_v52 = vrot.slane %v3146_v63, 5  ;;  %v1818_v14 = vrot.slane %v12718_v57, 5  ;;  %7177 = vmatprep.mubr.bf16.mxu0 %v9364_v26  ;;  %v12770_v25 = vrot.slane %v3133_v21, 4  ;;  %2497 = vrot.lane.b32.xlu0 %v2386_v2, %s9509_s11 }
 0x194   :  { %2551 = vst.msk [vmem:[#allocation2 + $0xd4] sm:$0xf] %vm615_vm4, %v2466_v4  ;;  %v12766_v1 = vld [vmem:[%s16074_s0 + $0xd4] sm:$0x1]  ;;  %1113 = vst.msk [vmem:[#allocation2 + $0x248] sm:$0xf] %vm615_vm4, %v1047_v35  ;;  %7178 = vmatmul.mubr.bf16.gmra.mxu0 %v8966_v33  ;;  %3368 = vrot.lane.b32.xlu1 %v3125_v18, %s9509_s11  ;;  %v2472_v35 = vpop.permute.xlu1 %2471 }
 0x195   :  { %v2422_v8 = vshrl.u32 %v12741_v6, 16  ;;  %v12776_v16 = vld [vmem:[%s16074_s0 + $0xf4] sm:$0xf]  ;;  %v8553_v34 = vld [vmem:[%s16074_s0 + $0xe8] sm:$0xf]  ;;  %v8324_v12 = vrot.slane %v12723_v61, 9 }
 0x196   :  { %v8554_v37 = vld [vmem:[%s16074_s0 + $0xec] sm:$0x1]  ;;  %v3575_v22 = vrot.slane %v8553_v34, 5  ;;  %v8552_v36 = vld [vmem:[%s16074_s0 + $0xe4] sm:$0xe]  ;;  %v12799_v3 = vrot.slane %v1815_v20, 4  ;;  %v1845_v4 = vpop.permute.xlu0 %1844 }
 0x197   :  { %v12801_v15 = vrot.slane %v2431_v54, 5  ;;  %v12803_v45 = vrot.slane %v2435_v56, 4  ;;  %v2441_v41 = vshll.u32 %v12766_v1, 16  ;;  %v8789_v50 = vld [vmem:[%s16074_s0 + $0xf0] sm:$0xf]  ;;  %v2425_v30 = vshll.u32 %v12741_v6, 16  ;;  %3366 = vrot.lane.b32.xlu0 %v3115_v58, %s9509_s11 }
 0x198   :  { %1112 = vst.msk [vmem:[#allocation2 + $0x234] sm:$0xf] %vm615_vm4, %v1045_v27  ;;  %v12814_v9 = vld [vmem:[%s16074_s0 + $0xe8] sm:$0xf]  ;;  %v3577_v42 = vrot.slane %v3575_v22, 4  ;;  %v3578_v47 = vrot.slane %v8554_v37, 5 }
 0x199   :  { %v8598_v63 = vrot.slane %v8552_v36, 9  ;;  %1929 = vst.msk [vmem:[#allocation2 + $0x10c] sm:$0xf] %vm615_vm4, %v1847_v44  ;;  %v5698_v31 = vld [vmem:[#allocation2 + $0xe4] sm:$0xff]  ;;  %v12822_v62 = vrot.slane %v2422_v8, 4  ;;  %v4890_v21 = vshll.u32 %v12776_v16, 16 }
 0x19a   :  { %v4894_v0 = vshrl.u32 %v12776_v16, 16  ;;  %v8241_v11 = vld [vmem:[%s16074_s0 + $0x7c] sm:$0xf]  ;;  %v8626_v39 = vld [vmem:[%s16074_s0 + $0x130] sm:$0xf]  ;;  %v4881_v6 = vshrl.u32 %v8789_v50, 16  ;;  %v3579_v51 = vsel %vm10157_vm7, %v3577_v42, %v3578_v47  ;;  %v2438_v16 = vor.u32 %v12803_v45, %v12801_v15 }
 0x19b   :  { %v3576_v59 = vsel %vm10157_vm7, %v8598_v63, %v3575_v22  ;;  %v8242_v13 = vld [vmem:[%s16074_s0 + $0x80] sm:$0x1]  ;;  %v1390_v43 = vshll.u32 %v8241_v11, 16  ;;  %v5695_v40 = vld [vmem:[#allocation2 + $0xd0] sm:$0xff]  ;;  %v4884_v54 = vshll.u32 %v8789_v50, 16  ;;  %v4529_v46 = vrot.slane %v12814_v9, 5  ;;  %3833 = vrot.lane.b32.xlu1 %v8626_v39, %s9509_s11 }
 0x19c   :  { %v9366_v26 = vld [vmem:[#allocation2 + $0xd4] ss:$20 sps:$4 sm:$0xff]   ;;  %3713 = vst.msk [vmem:[#allocation2 + $0x2c0] sm:$0xf] %vm51_vm3, %v3579_v51  ;;  %3712 = vst.msk [vmem:[#allocation2 + $0x2ac] sm:$0xf] %vm51_vm3, %v3576_v59  ;;  %v8928_v33 = vcombine.low %v5695_v40, %v5698_v31  ;;  %v1812_v63 = vsel %vm10157_vm7, %v12680_v49, %v1811_v32 }
 0x19d   :  { %v8240_v56 = vld [vmem:[%s16074_s0 + $0x78] sm:$0xf]  ;;  %1928 = vst.msk [vmem:[#allocation2 + $0xf8] sm:$0xf] %vm615_vm4, %v1845_v4  ;;  %v8625_v55 = vld [vmem:[%s16074_s0 + $0x12c] sm:$0xf]  ;;  %7402 = vmatprep.mubr.bf16.mxu1 %v9366_v26 }
 0x19e   :  { %v12858_v17 = vrot.slane %v1390_v43, 5  ;;  %v1394_v53 = vshrl.u32 %v8241_v11, 16  ;;  %2554 = vst.msk [vmem:[#allocation2 + $0x110] sm:$0xf] %vm615_vm4, %v2472_v35  ;;  %v5751_v8 = vld [vmem:[#allocation2 + $0x244] sm:$0xff]  ;;  %v2427_v34 = vrot.slane %v2425_v30, 5  ;;  %7403 = vmatmul.mubr.bf16.gmra.mxu1 %v8928_v33  ;;  %v2470_v30 = vpop.permute.xlu0 %2469  ;;  %3831 = vrot.lane.b32.xlu0 %v8625_v55, %s9509_s11 }
 0x19f   :  { %v12867_v2 = vld [vmem:[%s16074_s0 + $0xec] sm:$0x1]  ;;  %v8791_v18 = vld [vmem:[%s16074_s0 + $0xf8] sm:$0x1]  ;;  %v12872_v37 = vrot.slane %v4890_v21, 5  ;;  %v1400_v22 = vshll.u32 %v8242_v13, 16  ;;  %1878 = vrot.lane.b32.xlu1 %v1812_v63, %s9509_s11 }
 0x1a0   :  { %v12875_v36 = vrot.slane %v4894_v0, 4  ;;  %v1396_v27 = vrot.slane %v1394_v53, 4  ;;  %v1381_v45 = vshrl.u32 %v8240_v56, 16  ;;  %v1384_v50 = vshll.u32 %v8240_v56, 16  ;;  %v8344_v44 = vld [vmem:[%s16074_s0 + $0x88] sm:$0xf]  ;;  %v1051_v0 = vpop.permute.xlu1 %1050 }
 0x1a1   :  { %v5748_v42 = vld [vmem:[#allocation2 + $0x230] sm:$0xff]  ;;  %v12885_v58 = vrot.slane %v4881_v6, 4  ;;  %v12887_v31 = vrot.slane %v4884_v54, 5  ;;  %v1402_v21 = vrot.slane %v1400_v22, 5  ;;  %2000 = vst.msk [vmem:[#allocation2 + $0x188] sm:$0xf] %vm51_vm3, %v8344_v44  ;;  %v2428_v6 = vor.u32 %v2427_v34, %v12822_v62 }
 0x1a2   :  { %v9368_v47 = vld [vmem:[#allocation2 + $0x234] ss:$20 sps:$4 sm:$0xff]   ;;  %2553 = vst.msk [vmem:[#allocation2 + $0xfc] sm:$0xf] %vm615_vm4, %v2470_v30  ;;  %v8971_v11 = vcombine.low %v5748_v42, %v5751_v8  ;;  %v1397_v39 = vor.u32 %v1396_v27, %v12858_v17  ;;  %v1383_v51 = vrot.slane %v1381_v45, 4  ;;  %v1386_v59 = vrot.slane %v1384_v50, 5  ;;  %v1049_v26 = vpop.permute.xlu0 %1048  ;;  %1876 = vrot.lane.b32.xlu0 %v12846_v5, %s9509_s11 }
 0x1a3   :  { %v8343_v19 = vld [vmem:[%s16074_s0 + $0x84] sm:$0xf]  ;;  %7185 = vmatprep.mubr.bf16.mxu0 %v9368_v47  ;;  %1115 = vst.msk [vmem:[#allocation2 + $0x270] sm:$0xf] %vm615_vm4, %v1051_v0  ;;  %v12897_v32 = vrot.slane %v2438_v16, 4  ;;  %v12901_v49 = vrot.slane %v2441_v41, 5  ;;  %v2420_v54 = vsel %vm9562_vm2, %v12692_v24, %v12694_v7  ;;  %v4897_v56 = vor.u32 %v12875_v36, %v12872_v37 }
 0x1a4   :  { %v12907_v13 = vld [vmem:[%s16074_s0 + $0xe4] sm:$0xe]  ;;  %v4900_v43 = vshll.u32 %v8791_v18, 16  ;;  %1999 = vst.msk [vmem:[#allocation2 + $0x174] sm:$0xf] %vm51_vm3, %v8343_v19  ;;  %7186 = vmatmul.mubr.bf16.gmra.mxu0 %v8971_v11  ;;  %v12913_v4 = vrot.slane %v4529_v46, 4  ;;  %v1387_v40 = vor.u32 %v1386_v59, %v1383_v51  ;;  %v1851_v53 = vpop.permute.xlu1 %1850  ;;  %v4887_v7 = vor.u32 %v12887_v31, %v12885_v58  ;;  %2503 = vrot.lane.b32.xlu1 %v2420_v54, %s9509_s11 }
 0x1a5   :  { %v4532_v1 = vrot.slane %v12867_v2, 5  ;;  %v12919_v41 = vld [vmem:[%s16074_s0 + $0xf4] sm:$0xf]  ;;  %v1398_v62 = vrot.slane %v1397_v39, 4  ;;  %v12930_v35 = vld [vmem:[%s16074_s0 + $0xf8] sm:$0x1]  ;;  %v2410_v5 = vsel %vm9562_vm2, %v12711_v48, %v12604_v38  ;;  %v3149_v38 = vsel %vm9562_vm2, %v12758_v10, %v12760_v52 }
 0x1a6   :  { %v8793_v33 = vld [vmem:[%s16074_s0 + $0x100] sm:$0xf]  ;;  %v8474_v55 = vld [vmem:[%s16074_s0 + $0xf4] sm:$0xf]  ;;  %1114 = vst.msk [vmem:[#allocation2 + $0x25c] sm:$0xf] %vm615_vm4, %v1049_v26  ;;  %v1849_v58 = vpop.permute.xlu0 %1848  ;;  %2501 = vrot.lane.b32.xlu0 %v2410_v5, %s9509_s11  ;;  %v3139_v52 = vsel %vm9562_vm2, %v12770_v25, %v12661_v29  ;;  %v2444_v57 = vsel %vm9562_vm2, %v12897_v32, %v12901_v49 }
 0x1a7   :  { %v8741_v24 = vrot.slane %v12907_v13, 9  ;;  %v12945_v8 = vld [vmem:[%s16074_s0 + $0xf0] sm:$0xe]  ;;  %v1403_v16 = vsel %vm9562_vm2, %v1398_v62, %v1402_v21  ;;  %v1388_v34 = vrot.slane %v1387_v40, 4  ;;  %2883 = vst.msk [vmem:[#allocation2 + $0x2e4] sm:$0xf] %vm51_vm3, %v8474_v55 }
 0x1a8   :  { %v8473_v18 = vld [vmem:[%s16074_s0 + $0xf0] sm:$0xf]  ;;  %1931 = vst.msk [vmem:[#allocation2 + $0x134] sm:$0xf] %vm615_vm4, %v1851_v53  ;;  %v12956_v36 = vrot.slane %v2428_v6, 4  ;;  %v12958_v27 = vrot.slane %v4900_v43, 5  ;;  %v2476_v11 = vpop.permute.xlu1 %2475  ;;  %3372 = vrot.lane.b32.xlu1 %v3149_v38, %s9509_s11 }
 0x1a9   :  { %v5704_v22 = vld [vmem:[#allocation2 + $0x10c] sm:$0xff]  ;;  %v4536_v45 = vrot.slane %v12919_v41, 5  ;;  %1599 = vst.msk [vmem:[#allocation2 + $0x184] sm:$0xf] %vm51_vm3, %v1403_v16  ;;  %v8794_v50 = vld [vmem:[%s16074_s0 + $0x104] sm:$0x1]  ;;  %v1393_v44 = vsel %vm9562_vm2, %v1388_v34, %v12858_v17 }
 0x1aa   :  { %2882 = vst.msk [vmem:[#allocation2 + $0x2d0] sm:$0xf] %vm51_vm3, %v8473_v18  ;;  %v4914_v30 = vshll.u32 %v8793_v33, 16  ;;  %v4918_v42 = vshrl.u32 %v8793_v33, 16  ;;  %v8792_v47 = vld [vmem:[%s16074_s0 + $0xfc] sm:$0xf]  ;;  %v13029_v18 = vsel %vm10157_vm7, %v8324_v12, %v1815_v20  ;;  %3370 = vrot.lane.b32.xlu0 %v3139_v52, %s9509_s11 }
 0x1ab   :  { %v8556_v63 = vld [vmem:[%s16074_s0 + $0xf4] sm:$0xf]  ;;  %v5701_v31 = vld [vmem:[#allocation2 + $0xf8] sm:$0xff]  ;;  %v12984_v48 = vrot.slane %v4897_v56, 4  ;;  %v4539_v17 = vrot.slane %v12930_v35, 5  ;;  %v8742_v0 = vrot.slane %v12945_v8, 9 }
 0x1ac   :  { %v9371_v21 = vld [vmem:[#allocation2 + $0xfc] ss:$20 sps:$4 sm:$0xff]   ;;  %1598 = vst.msk [vmem:[#allocation2 + $0x170] sm:$0xf] %vm51_vm3, %v1393_v44  ;;  %v8933_v39 = vcombine.low %v5701_v31, %v5704_v22  ;;  %v12990_v51 = vrot.slane %v4887_v7, 4  ;;  %v4924_v59 = vshll.u32 %v8794_v50, 16  ;;  %v2474_v7 = vpop.permute.xlu0 %2473  ;;  %v3345_v44 = vpop.permute.xlu1 %3344 }
 0x1ad   :  { %1930 = vst.msk [vmem:[#allocation2 + $0x120] sm:$0xf] %vm615_vm4, %v1849_v58  ;;  %v8796_v19 = vld [vmem:[%s16074_s0 + $0x10c] sm:$0xf]  ;;  %v8557_v10 = vld [vmem:[%s16074_s0 + $0xf8] sm:$0x1]  ;;  %7410 = vmatprep.mubr.bf16.mxu1 %v9371_v21 }
 0x1ae   :  { %2556 = vst.msk [vmem:[#allocation2 + $0x138] sm:$0xf] %vm615_vm4, %v2476_v11  ;;  %v5757_v6 = vld [vmem:[#allocation2 + $0x26c] sm:$0xff]  ;;  %v8628_v43 = vld [vmem:[%s16074_s0 + $0x13c] sm:$0xf]  ;;  %v4905_v62 = vshrl.u32 %v8792_v47, 16  ;;  %7411 = vmatmul.mubr.bf16.gmra.mxu1 %v8933_v39 }
 0x1af   :  { %v4908_v40 = vshll.u32 %v8792_v47, 16  ;;  %v13010_v26 = vld [vmem:[%s16074_s0 + $0x100] sm:$0xf]  ;;  %v3582_v54 = vrot.slane %v8556_v63, 5  ;;  %v8555_v56 = vld [vmem:[%s16074_s0 + $0xf0] sm:$0xe]  ;;  %v1819_v47 = vsel %vm10157_vm7, %v12799_v3, %v1818_v14  ;;  %3837 = vrot.lane.b32.xlu1 %v8628_v43, %s9509_s11 }
 0x1b0   :  { %v13016_v29 = vrot.slane %v4914_v30, 5  ;;  %v4920_v25 = vrot.slane %v4918_v42, 4  ;;  %v13021_v33 = vld [vmem:[%s16074_s0 + $0x104] sm:$0x1]  ;;  %v3585_v55 = vrot.slane %v8557_v10, 5  ;;  %v8599_v53 = vrot.slane %v8555_v56, 9 }
 0x1b1   :  { %v5754_v16 = vld [vmem:[#allocation2 + $0x258] sm:$0xff]  ;;  %v13033_v22 = vrot.slane %v4536_v45, 4  ;;  %v4938_v50 = vshll.u32 %v8796_v19, 16  ;;  %v3584_v5 = vrot.slane %v3582_v54, 4  ;;  %2555 = vst.msk [vmem:[#allocation2 + $0x124] sm:$0xf] %vm615_vm4, %v2474_v7 }
 0x1b2   :  { %v9373_v34 = vld [vmem:[#allocation2 + $0x25c] ss:$20 sps:$4 sm:$0xff]   ;;  %v8976_v30 = vcombine.low %v5754_v16, %v5757_v6  ;;  %v8627_v60 = vld [vmem:[%s16074_s0 + $0x138] sm:$0xf]  ;;  %v13039_v42 = vrot.slane %v4924_v59, 5  ;;  %v4942_v61 = vshrl.u32 %v8796_v19, 16  ;;  %v3583_v12 = vsel %vm10157_vm7, %v8599_v53, %v3582_v54  ;;  %v3343_v59 = vpop.permute.xlu0 %3342  ;;  %v3810_v6 = vpop.permute.xlu1 %3809 }
 0x1b3   :  { %v8795_v20 = vld [vmem:[%s16074_s0 + $0x108] sm:$0xf]  ;;  %7193 = vmatprep.mubr.bf16.mxu0 %v9373_v34  ;;  %3439 = vst.msk [vmem:[#allocation2 + $0x294] sm:$0xf] %vm615_vm4, %v3345_v44  ;;  %v4907_v63 = vrot.slane %v4905_v62, 4  ;;  %v4910_v58 = vrot.slane %v4908_v40, 5  ;;  %v3586_v21 = vsel %vm10157_vm7, %v3584_v5, %v3585_v55  ;;  %v4921_v14 = vor.u32 %v4920_v25, %v13016_v29  ;;  %3835 = vrot.lane.b32.xlu0 %v8627_v60, %s9509_s11 }
 0x1b4   :  { %v13056_v31 = vld [vmem:[%s16074_s0 + $0xfc] sm:$0xe]  ;;  %3714 = vst.msk [vmem:[#allocation2 + $0x2d4] sm:$0xf] %vm51_vm3, %v3583_v12  ;;  %7194 = vmatmul.mubr.bf16.gmra.mxu0 %v8976_v30  ;;  %v4543_v3 = vrot.slane %v13010_v26, 5  ;;  %v4546_v38 = vrot.slane %v13021_v33, 5  ;;  %1882 = vrot.lane.b32.xlu1 %v1819_v47, %s9509_s11 }
 0x1b5   :  { %3715 = vst.msk [vmem:[#allocation2 + $0x2e8] sm:$0xf] %vm51_vm3, %v3586_v21  ;;  %v8244_v11 = vld [vmem:[%s16074_s0 + $0x88] sm:$0xf]  ;;  %v8245_v39 = vld [vmem:[%s16074_s0 + $0x8c] sm:$0x1]  ;;  %v4911_v55 = vor.u32 %v4910_v58, %v4907_v63 }
 0x1b6   :  { %v13076_v19 = vrot.slane %v4938_v50, 5  ;;  %v4929_v32 = vshrl.u32 %v8795_v20, 16  ;;  %v1414_v49 = vshll.u32 %v8244_v11, 16  ;;  %v1418_v10 = vshrl.u32 %v8244_v11, 16  ;;  %v8243_v52 = vld [vmem:[%s16074_s0 + $0x84] sm:$0xf]  ;;  %v3808_v60 = vpop.permute.xlu0 %3807  ;;  %v1855_v21 = vpop.permute.xlu1 %1854 }
 0x1b7   :  { %3438 = vst.msk [vmem:[#allocation2 + $0x280] sm:$0xf] %vm615_vm4, %v3343_v59  ;;  %v8797_v43 = vld [vmem:[%s16074_s0 + $0x110] sm:$0x1]  ;;  %v4944_v62 = vrot.slane %v4942_v61, 4  ;;  %v4932_v40 = vshll.u32 %v8795_v20, 16  ;;  %1880 = vrot.lane.b32.xlu0 %v13029_v18, %s9509_s11  ;;  %v2434_v18 = vsel %vm9562_vm2, %v12956_v36, %v12801_v15 }
 0x1b8   :  { %v1424_v54 = vshll.u32 %v8245_v39, 16  ;;  %v1405_v56 = vshrl.u32 %v8243_v52, 16  ;;  %3904 = vst.msk [vmem:[#allocation2 + $0x298] sm:$0xf] %vm615_vm4, %v3810_v6  ;;  %v5710_v25 = vld [vmem:[#allocation2 + $0x134] sm:$0xff]  ;;  %v13087_v53 = vrot.slane %v1414_v49, 5  ;;  %2507 = vrot.lane.b32.xlu1 %v2444_v57, %s9509_s11 }
 0x1b9   :  { %v1420_v7 = vrot.slane %v1418_v10, 4  ;;  %v1408_v16 = vshll.u32 %v8243_v52, 16  ;;  %v13090_v34 = vrot.slane %v4921_v14, 4  ;;  %v13094_v50 = vrot.slane %v4543_v3, 4  ;;  %v8346_v30 = vld [vmem:[%s16074_s0 + $0x94] sm:$0xf] }
 0x1ba   :  { %v8743_v5 = vrot.slane %v13056_v31, 9  ;;  %v1407_v44 = vrot.slane %v1405_v56, 4  ;;  %v5707_v61 = vld [vmem:[#allocation2 + $0x120] sm:$0xff]  ;;  %v4948_v12 = vshll.u32 %v8797_v43, 16  ;;  %v1426_v47 = vrot.slane %v1424_v54, 5  ;;  %v1853_v9 = vpop.permute.xlu0 %1852  ;;  %v2480_v8 = vpop.permute.xlu1 %2479 }
 0x1bb   :  { %v9375_v20 = vld [vmem:[#allocation2 + $0x124] ss:$20 sps:$4 sm:$0xff]   ;;  %v1421_v63 = vor.u32 %v1420_v7, %v13087_v53  ;;  %v1410_v58 = vrot.slane %v1408_v16, 5  ;;  %2002 = vst.msk [vmem:[#allocation2 + $0x1b0] sm:$0xf] %vm51_vm3, %v8346_v30  ;;  %v8938_v14 = vcombine.low %v5707_v61, %v5710_v25  ;;  %v4945_v11 = vor.u32 %v4944_v62, %v13076_v19  ;;  %2505 = vrot.lane.b32.xlu0 %v2434_v18, %s9509_s11 }
 0x1bc   :  { %3903 = vst.msk [vmem:[#allocation2 + $0x284] sm:$0xf] %vm615_vm4, %v3808_v60  ;;  %v13104_v39 = vrot.slane %v4929_v32, 4  ;;  %v13106_v59 = vrot.slane %v4932_v40, 5  ;;  %v13111_v49 = vld [vmem:[%s16074_s0 + $0x10c] sm:$0xf]  ;;  %7418 = vmatprep.mubr.bf16.mxu1 %v9375_v20  ;;  %v4533_v40 = vsel %vm10157_vm7, %v12913_v4, %v4532_v1  ;;  %v4530_v54 = vsel %vm10157_vm7, %v8741_v24, %v4529_v46  ;;  %v13195_v60 = vpop.f32.mrf.mxu0 }
 0x1bd   :  { %v8345_v10 = vld [vmem:[%s16074_s0 + $0x90] sm:$0xf]  ;;  %1933 = vst.msk [vmem:[#allocation2 + $0x15c] sm:$0xf] %vm615_vm4, %v1855_v21  ;;  %v13119_v52 = vrot.slane %v4911_v55, 4  ;;  %v1422_v6 = vrot.slane %v1421_v63, 4  ;;  %v1411_v43 = vor.u32 %v1410_v58, %v1407_v44  ;;  %7419 = vmatmul.mubr.bf16.gmra.mxu1 %v8938_v14  ;;  %v13165_v46 = vsel %vm10157_vm7, %v8742_v0, %v4536_v45  ;;  %4641 = vrot.lane.b32.xlu1 %v4533_v40, %s9509_s11 }
 0x1be   :  { %v13124_v32 = vld [vmem:[%s16074_s0 + $0x110] sm:$0x1]  ;;  %v8799_v62 = vld [vmem:[%s16074_s0 + $0x118] sm:$0xf]  ;;  %2001 = vst.msk [vmem:[#allocation2 + $0x19c] sm:$0xf] %vm51_vm3, %v8345_v10  ;;  %v4935_v45 = vor.u32 %v13106_v59, %v13104_v39  ;;  %v4903_v61 = vsel %vm9562_vm2, %v12984_v48, %v12958_v27  ;;  %v4893_v20 = vsel %vm9562_vm2, %v12990_v51, %v12872_v37  ;;  %v2478_v27 = vpop.permute.xlu0 %2477  ;;  %v4540_v37 = vsel %vm10157_vm7, %v13033_v22, %v4539_v17  ;;  %v3349_v39 = vpop.permute.xlu1 %3348 }
 0x1bf   :  { %v13149_v57 = vld [vmem:[%s16074_s0 + $0x108] sm:$0xe]  ;;  %v8800_v15 = vld [vmem:[%s16074_s0 + $0x11c] sm:$0x1]  ;;  %v13157_v2 = vld [vmem:[%s16074_s0 + $0x114] sm:$0xf]  ;;  %v1427_v4 = vsel %vm9562_vm2, %v1422_v6, %v1426_v47  ;;  %4639 = vrot.lane.b32.xlu0 %v4530_v54, %s9509_s11  ;;  %v4927_v54 = vsel %vm9562_vm2, %v13090_v34, %v13039_v42 }
 0x1c0   :  { %v13167_v13 = vrot.slane %v4948_v12, 5  ;;  %v1412_v1 = vrot.slane %v1411_v43, 4  ;;  %v8476_v24 = vld [vmem:[%s16074_s0 + $0x100] sm:$0xf]  ;;  %v8475_v41 = vld [vmem:[%s16074_s0 + $0xfc] sm:$0xf] }
 0x1c1   :  { %1932 = vst.msk [vmem:[#allocation2 + $0x148] sm:$0xf] %vm615_vm4, %v1853_v9  ;;  %v13178_v36 = vrot.slane %v4945_v11, 4  ;;  %v4550_v0 = vrot.slane %v13111_v49, 5  ;;  %v4962_v56 = vshll.u32 %v8799_v62, 16  ;;  %v5763_v55 = vld [vmem:[#allocation2 + $0x294] sm:$0xff]  ;;  %v7077_v11 = vpop.f32.mrf.mxu0  ;;  %5266 = vrot.lane.b32.xlu1 %v4903_v61, %s9509_s11 }
 0x1c2   :  { %1601 = vst.msk [vmem:[#allocation2 + $0x1ac] sm:$0xf] %vm51_vm3, %v1427_v4  ;;  %2885 = vst.msk [vmem:[#allocation2 + $0x30c] sm:$0xf] %vm51_vm3, %v8476_v24  ;;  %v8802_v25 = vld [vmem:[%s16074_s0 + $0x124] sm:$0xf]  ;;  %v1417_v16 = vsel %vm9562_vm2, %v1412_v1, %v13087_v53 }
 0x1c3   :  { %2884 = vst.msk [vmem:[#allocation2 + $0x2f8] sm:$0xf] %vm51_vm3, %v8475_v41  ;;  %v4553_v7 = vrot.slane %v13124_v32, 5  ;;  %v4966_v44 = vshrl.u32 %v8799_v62, 16  ;;  %v4972_v30 = vshll.u32 %v8800_v15, 16  ;;  %v8744_v12 = vrot.slane %v13149_v57, 9  ;;  %v13242_v15 = vpop.f32.mrf.mxu0  ;;  %v3347_v41 = vpop.permute.xlu0 %3346  ;;  %5264 = vrot.lane.b32.xlu0 %v4893_v20, %s9509_s11 }
 0x1c4   :  { %2558 = vst.msk [vmem:[#allocation2 + $0x160] sm:$0xf] %vm615_vm4, %v2480_v8  ;;  %v4953_v53 = vshrl.u32 %v13157_v2, 16  ;;  %v8559_v63 = vld [vmem:[%s16074_s0 + $0x100] sm:$0xf]  ;;  %v4956_v51 = vshll.u32 %v13157_v2, 16  ;;  %v13254_v2 = vsel %vm10157_vm7, %v13094_v50, %v4546_v38 }
 0x1c5   :  { %1600 = vst.msk [vmem:[#allocation2 + $0x198] sm:$0xf] %vm51_vm3, %v1417_v16  ;;  %v8560_v47 = vld [vmem:[%s16074_s0 + $0x104] sm:$0x1]  ;;  %v4986_v21 = vshll.u32 %v8802_v25, 16  ;;  %v4990_v14 = vshrl.u32 %v8802_v25, 16  ;;  %v3814_v25 = vpop.permute.xlu1 %3813  ;;  %4645 = vrot.lane.b32.xlu1 %v4540_v37, %s9509_s11 }
 0x1c6   :  { %v5760_v48 = vld [vmem:[#allocation2 + $0x280] sm:$0xff]  ;;  %2557 = vst.msk [vmem:[#allocation2 + $0x14c] sm:$0xf] %vm615_vm4, %v2478_v27  ;;  %v13222_v10 = vrot.slane %v4935_v45, 4  ;;  %v13226_v6 = vrot.slane %v4550_v0, 4  ;;  %v13228_v35 = vrot.slane %v4962_v56, 5  ;;  %v7080_v56 = vpop.f32.mrf.mxu0 }
 0x1c7   :  { %v9377_v58 = vld [vmem:[#allocation2 + $0x284] ss:$20 sps:$4 sm:$0xff]   ;;  %v8981_v59 = vcombine.low %v5760_v48, %v5763_v55  ;;  %v8558_v17 = vld [vmem:[%s16074_s0 + $0xfc] sm:$0xe]  ;;  %3441 = vst.msk [vmem:[#allocation2 + $0x2bc] sm:$0xf] %vm615_vm4, %v3349_v39  ;;  %4643 = vrot.lane.b32.xlu0 %v13165_v46, %s9509_s11 }
 0x1c8   :  { %7201 = vmatprep.mubr.bf16.mxu0 %v9377_v58  ;;  %v13235_v22 = vrot.slane %v4966_v44, 4  ;;  %v13237_v43 = vrot.slane %v4972_v30, 5  ;;  %v8801_v62 = vld [vmem:[%s16074_s0 + $0x120] sm:$0xf]  ;;  %v3589_v18 = vrot.slane %v8559_v63, 5  ;;  %v3592_v40 = vrot.slane %v8560_v47, 5 }
 0x1c9   :  { %7202 = vmatmul.mubr.bf16.gmra.mxu0 %v8981_v59  ;;  %v13256_v9 = vrot.slane %v4953_v53, 4  ;;  %v13261_v4 = vld [vmem:[%s16074_s0 + $0x118] sm:$0xf]  ;;  %v13266_v1 = vld [vmem:[%s16074_s0 + $0x128] sm:$0x1]  ;;  %v8600_v24 = vrot.slane %v8558_v17, 9  ;;  %v4917_v63 = vsel %vm9562_vm2, %v13119_v52, %v13016_v29  ;;  %v3812_v17 = vpop.permute.xlu0 %3811  ;;  %5270 = vrot.lane.b32.xlu1 %v4927_v54, %s9509_s11  ;;  %v4544_v29 = vsel %vm10157_vm7, %v8743_v5, %v4543_v3 }
 0x1ca   :  { %v13268_v33 = vrot.slane %v4956_v51, 5  ;;  %v13270_v8 = vrot.slane %v4986_v21, 5  ;;  %v13272_v38 = vrot.slane %v4990_v14, 4  ;;  %v3591_v50 = vrot.slane %v3589_v18, 4  ;;  %v8247_v45 = vld [vmem:[%s16074_s0 + $0x94] sm:$0xf]  ;;  %v13302_v51 = vpop.f32.mrf.mxu0 }
 0x1cb   :  { %3440 = vst.msk [vmem:[#allocation2 + $0x2a8] sm:$0xf] %vm615_vm4, %v3347_v41  ;;  %v4977_v55 = vshrl.u32 %v8801_v62, 16  ;;  %v4980_v16 = vshll.u32 %v8801_v62, 16  ;;  %v3590_v44 = vsel %vm10157_vm7, %v8600_v24, %v3589_v18  ;;  %v8248_v30 = vld [vmem:[%s16074_s0 + $0x98] sm:$0x1]  ;;  %v4969_v47 = vor.u32 %v13235_v22, %v13228_v35  ;;  %5268 = vrot.lane.b32.xlu0 %v4917_v63, %s9509_s11 }
 0x1cc   :  { %v1438_v61 = vshll.u32 %v8247_v45, 16  ;;  %3906 = vst.msk [vmem:[#allocation2 + $0x2c0] sm:$0xf] %vm615_vm4, %v3814_v25  ;;  %v5716_v53 = vld [vmem:[#allocation2 + $0x15c] sm:$0xff]  ;;  %v3593_v48 = vsel %vm10157_vm7, %v3591_v50, %v3592_v40  ;;  %v1442_v20 = vshrl.u32 %v8247_v45, 16  ;;  %v4557_v21 = vrot.slane %v13261_v4, 5  ;;  %v1859_v50 = vpop.permute.xlu1 %1858 }
 0x1cd   :  { %v13294_v27 = vld [vmem:[%s16074_s0 + $0x11c] sm:$0x1]  ;;  %3716 = vst.msk [vmem:[#allocation2 + $0x2fc] sm:$0xf] %vm51_vm3, %v3590_v44  ;;  %v8246_v58 = vld [vmem:[%s16074_s0 + $0x90] sm:$0xf]  ;;  %v4959_v37 = vor.u32 %v13268_v33, %v13256_v9  ;;  %v4993_v56 = vor.u32 %v13272_v38, %v13270_v8  ;;  %4649 = vrot.lane.b32.xlu1 %v13254_v2, %s9509_s11  ;;  %v4951_v52 = vsel %vm9562_vm2, %v13178_v36, %v13167_v13 }
 0x1ce   :  { %v13309_v14 = vld [vmem:[%s16074_s0 + $0x114] sm:$0xe]  ;;  %v4996_v11 = vshll.u32 %v13266_v1, 16  ;;  %3717 = vst.msk [vmem:[#allocation2 + $0x310] sm:$0xf] %vm51_vm3, %v3593_v48  ;;  %v13313_v39 = vrot.slane %v1438_v61, 5  ;;  %v7085_v1 = vpop.f32.mrf.mxu0  ;;  %v4941_v57 = vsel %vm9562_vm2, %v13222_v10, %v13076_v19 }
 0x1cf   :  { %v1448_v59 = vshll.u32 %v8248_v30, 16  ;;  %v5713_v22 = vld [vmem:[#allocation2 + $0x148] sm:$0xff]  ;;  %v13320_v18 = vld [vmem:[%s16074_s0 + $0x124] sm:$0xf]  ;;  %v1444_v40 = vrot.slane %v1442_v20, 4  ;;  %v1429_v24 = vshrl.u32 %v8246_v58, 16  ;;  %4647 = vrot.lane.b32.xlu0 %v4544_v29, %s9509_s11 }
 0x1d0   :  { %v9379_v62 = vld [vmem:[#allocation2 + $0x14c] ss:$20 sps:$4 sm:$0xff]   ;;  %v1432_v41 = vshll.u32 %v8246_v58, 16  ;;  %3905 = vst.msk [vmem:[#allocation2 + $0x2ac] sm:$0xf] %vm615_vm4, %v3812_v17  ;;  %v8943_v45 = vcombine.low %v5713_v22, %v5716_v53  ;;  %v13325_v25 = vrot.slane %v4977_v55, 4  ;;  %v13345_v53 = vpop.f32.mrf.mxu0  ;;  %v1857_v17 = vpop.permute.xlu0 %1856 }
 0x1d1   :  { %v13327_v44 = vrot.slane %v4980_v16, 5  ;;  %v13332_v9 = vld [vmem:[%s16074_s0 + $0x128] sm:$0x1]  ;;  %v8348_v33 = vld [vmem:[%s16074_s0 + $0xa0] sm:$0xf]  ;;  %7426 = vmatprep.mubr.bf16.mxu1 %v9379_v62  ;;  %v1445_v38 = vor.u32 %v1444_v40, %v13313_v39  ;;  %v1450_v55 = vrot.slane %v1448_v59, 5  ;;  %v2484_v40 = vpop.permute.xlu1 %2483  ;;  %5274 = vrot.lane.b32.xlu1 %v4951_v52, %s9509_s11 }
 0x1d2   :  { %1935 = vst.msk [vmem:[#allocation2 + $0x184] sm:$0xf] %vm615_vm4, %v1859_v50  ;;  %v1431_v16 = vrot.slane %v1429_v24, 4  ;;  %v1434_v30 = vrot.slane %v1432_v41, 5  ;;  %v8347_v61 = vld [vmem:[%s16074_s0 + $0x9c] sm:$0xf]  ;;  %7427 = vmatmul.mubr.bf16.gmra.mxu1 %v8943_v45  ;;  %v7088_v62 = vpop.f32.mrf.mxu0 }
 0x1d3   :  { %2004 = vst.msk [vmem:[#allocation2 + $0x1d8] sm:$0xf] %vm51_vm3, %v8348_v33  ;;  %v13353_v46 = vrot.slane %v4969_v47, 4  ;;  %v13357_v48 = vrot.slane %v4557_v21, 4  ;;  %v4560_v20 = vrot.slane %v13294_v27, 5  ;;  %v8745_v58 = vrot.slane %v13309_v14, 9  ;;  %5272 = vrot.lane.b32.xlu0 %v4941_v57, %s9509_s11 }
 0x1d4   :  { %v13364_v59 = vld [vmem:[%s16074_s0 + $0x130] sm:$0xf]  ;;  %2003 = vst.msk [vmem:[#allocation2 + $0x1c4] sm:$0xf] %vm51_vm3, %v8347_v61  ;;  %v13367_v42 = vrot.slane %v4959_v37, 4  ;;  %v13369_v34 = vrot.slane %v4996_v11, 5  ;;  %v1435_v22 = vor.u32 %v1434_v30, %v1431_v16  ;;  %v4983_v24 = vor.u32 %v13327_v44, %v13325_v25  ;;  %v13402_v16 = vpop.f32.mrf.mxu0  ;;  %v2482_v3 = vpop.permute.xlu0 %2481 }
 0x1d5   :  { %v13374_v54 = vld [vmem:[%s16074_s0 + $0x120] sm:$0xe]  ;;  %v1446_v47 = vrot.slane %v1445_v38, 4  ;;  %1934 = vst.msk [vmem:[#allocation2 + $0x170] sm:$0xf] %vm615_vm4, %v1857_v17  ;;  %v4564_v41 = vrot.slane %v13320_v18, 5  ;;  %v4975_v19 = vsel %vm9562_vm2, %v13353_v46, %v13237_v43  ;;  %v13489_v32 = vsel %vm10157_vm7, %v8745_v58, %v4557_v21  ;;  %v13593_v18 = vpop.f32.mrf.mxu1 }
 0x1d6   :  { %v4567_v37 = vrot.slane %v13332_v9, 5  ;;  %v8806_v11 = vld [vmem:[%s16074_s0 + $0x134] sm:$0x1]  ;;  %v8804_v1 = vld [vmem:[%s16074_s0 + $0x12c] sm:$0xf]  ;;  %v5769_v50 = vld [vmem:[#allocation2 + $0x2bc] sm:$0xff]  ;;  %v7093_v61 = vpop.f32.mrf.mxu0 }
 0x1d7   :  { %2560 = vst.msk [vmem:[#allocation2 + $0x188] sm:$0xf] %vm615_vm4, %v2484_v40  ;;  %v13394_v45 = vrot.slane %v4993_v56, 4  ;;  %v1451_v25 = vsel %vm9562_vm2, %v1446_v47, %v1450_v55  ;;  %v1436_v44 = vrot.slane %v1435_v22, 4  ;;  %v5010_v33 = vshll.u32 %v13364_v59, 16  ;;  %v5766_v5 = vld [vmem:[#allocation2 + $0x2a8] sm:$0xff] }
 0x1d8   :  { %v8478_v38 = vld [vmem:[%s16074_s0 + $0x10c] sm:$0xf]  ;;  %v8746_v63 = vrot.slane %v13374_v54, 9  ;;  %1603 = vst.msk [vmem:[#allocation2 + $0x1d4] sm:$0xf] %vm51_vm3, %v1451_v25  ;;  %v5014_v56 = vshrl.u32 %v13364_v59, 16  ;;  %v3353_v59 = vpop.permute.xlu1 %3352  ;;  %v8986_v17 = vcombine.low %v5766_v5, %v5769_v50  ;;  %v13439_v47 = vsel %vm10157_vm7, %v8744_v12, %v4550_v0  ;;  %v3351_v25 = vpop.permute.xlu0 %3350 }
 0x1d9   :  { %v13422_v26 = vld [vmem:[%s16074_s0 + $0x130] sm:$0xf]  ;;  %2887 = vst.msk [vmem:[#allocation2 + $0x334] sm:$0xf] %vm51_vm3, %v8478_v38  ;;  %v8477_v31 = vld [vmem:[%s16074_s0 + $0x108] sm:$0xf]  ;;  %v1441_v36 = vsel %vm9562_vm2, %v1436_v44, %v13313_v39  ;;  %v4554_v0 = vsel %vm10157_vm7, %v13226_v6, %v4553_v7  ;;  %v13520_v5 = vsel %vm10157_vm7, %v13357_v48, %v4560_v20  ;;  %4651 = vrot.lane.b32.xlu0 %v13439_v47, %s9509_s11 }
 0x1da   :  { %v9381_v13 = vld [vmem:[#allocation2 + $0x2ac] ss:$20 sps:$4 sm:$0xff]   ;;  %v5020_v2 = vshll.u32 %v8806_v11, 16  ;;  %v5001_v55 = vshrl.u32 %v8804_v1, 16  ;;  %v5004_v30 = vshll.u32 %v8804_v1, 16  ;;  %v13441_v22 = vrot.slane %v4983_v24, 4  ;;  %v13476_v1 = vpop.f32.mrf.mxu0  ;;  %4653 = vrot.lane.b32.xlu1 %v4554_v0, %s9509_s11 }
 0x1db   :  { %2886 = vst.msk [vmem:[#allocation2 + $0x320] sm:$0xf] %vm51_vm3, %v8477_v31  ;;  %v13445_v39 = vrot.slane %v4564_v41, 4  ;;  %1602 = vst.msk [vmem:[#allocation2 + $0x1c0] sm:$0xf] %vm51_vm3, %v1441_v36  ;;  %7209 = vmatprep.mubr.bf16.mxu0 %v9381_v13  ;;  %v13467_v12 = vrot.slane %v5010_v33, 5 }
 0x1dc   :  { %2559 = vst.msk [vmem:[#allocation2 + $0x174] sm:$0xf] %vm615_vm4, %v2482_v3  ;;  %v13451_v62 = vld [vmem:[%s16074_s0 + $0x134] sm:$0x1]  ;;  %v8562_v49 = vld [vmem:[%s16074_s0 + $0x10c] sm:$0xf]  ;;  %7210 = vmatmul.mubr.bf16.gmra.mxu0 %v8986_v17  ;;  %v7096_v33 = vpop.f32.mrf.mxu0  ;;  %v3818_v38 = vpop.permute.xlu1 %3817 }
 0x1dd   :  { %3443 = vst.msk [vmem:[#allocation2 + $0x2e4] sm:$0xf] %vm615_vm4, %v3353_v59  ;;  %v4571_v40 = vrot.slane %v13422_v26, 5  ;;  %v8808_v24 = vld [vmem:[%s16074_s0 + $0x13c] sm:$0xf]  ;;  %v13491_v7 = vrot.slane %v5014_v56, 4 }
 0x1de   :  { %v8563_v11 = vld [vmem:[%s16074_s0 + $0x110] sm:$0x1]  ;;  %v13496_v10 = vld [vmem:[%s16074_s0 + $0x12c] sm:$0xe]  ;;  %v3596_v6 = vrot.slane %v8562_v49, 5  ;;  %v13501_v4 = vrot.slane %v5020_v2, 5  ;;  %v3816_v49 = vpop.permute.xlu0 %3815  ;;  %5278 = vrot.lane.b32.xlu1 %v4975_v19, %s9509_s11 }
 0x1df   :  { %v8561_v50 = vld [vmem:[%s16074_s0 + $0x108] sm:$0xe]  ;;  %v13503_v14 = vrot.slane %v5001_v55, 4  ;;  %v13505_v44 = vrot.slane %v5004_v30, 5  ;;  %v13510_v21 = vld [vmem:[%s16074_s0 + $0x138] sm:$0xf]  ;;  %v13531_v30 = vpop.f32.mrf.mxu0 }
 0x1e0   :  { %v3599_v58 = vrot.slane %v8563_v11, 5  ;;  %3442 = vst.msk [vmem:[#allocation2 + $0x2d0] sm:$0xf] %vm615_vm4, %v3351_v25  ;;  %v5034_v29 = vshll.u32 %v8808_v24, 16  ;;  %v5038_v52 = vshrl.u32 %v8808_v24, 16  ;;  %v3598_v56 = vrot.slane %v3596_v6, 4 }
 0x1e1   :  { %v8601_v31 = vrot.slane %v8561_v50, 9  ;;  %3908 = vst.msk [vmem:[#allocation2 + $0x2e8] sm:$0xf] %vm615_vm4, %v3818_v38  ;;  %v5722_v3 = vld [vmem:[#allocation2 + $0x184] sm:$0xff]  ;;  %v13524_v13 = vrot.slane %v4571_v40, 4  ;;  %v4574_v36 = vrot.slane %v13451_v62, 5  ;;  %v4965_v24 = vsel %vm9562_vm2, %v13367_v42, %v13228_v35 }
 0x1e2   :  { %v8747_v2 = vrot.slane %v13496_v10, 9  ;;  %v8250_v55 = vld [vmem:[%s16074_s0 + $0xa0] sm:$0xf]  ;;  %v5025_v48 = vshrl.u32 %v13510_v21, 16  ;;  %v5028_v20 = vshll.u32 %v13510_v21, 16  ;;  %v3600_v61 = vsel %vm10157_vm7, %v3598_v56, %v3599_v58  ;;  %v7101_v21 = vpop.f32.mrf.mxu0  ;;  %v1863_v58 = vpop.permute.xlu1 %1862  ;;  %16087 = vst [vmem:[#allocation6_spill] sm:$0xff] %v13593_v18  ;;  %5276 = vrot.lane.b32.xlu0 %v4965_v24, %s9509_s11  ;;  %4657 = vrot.lane.b32.xlu1 %v13520_v5, %s9509_s11 }
 0x1e3   :  { %v13537_v27 = vld [vmem:[%s16074_s0 + $0x140] sm:$0x1]  ;;  %v3597_v59 = vsel %vm10157_vm7, %v8601_v31, %v3596_v6  ;;  %v8251_v17 = vld [vmem:[%s16074_s0 + $0xa4] sm:$0x1]  ;;  %v5719_v57 = vld [vmem:[#allocation2 + $0x170] sm:$0xff]  ;;  %v5017_v11 = vor.u32 %v13491_v7, %v13467_v12  ;;  %v5007_v50 = vor.u32 %v13505_v44, %v13503_v14  ;;  %v1462_v6 = vshll.u32 %v8250_v55, 16 }
 0x1e4   :  { %v9383_v0 = vld [vmem:[#allocation2 + $0x174] ss:$20 sps:$4 sm:$0xff]   ;;  %3719 = vst.msk [vmem:[#allocation2 + $0x338] sm:$0xf] %vm51_vm3, %v3600_v61  ;;  %3718 = vst.msk [vmem:[#allocation2 + $0x324] sm:$0xf] %vm51_vm3, %v3597_v59  ;;  %v8948_v35 = vcombine.low %v5719_v57, %v5722_v3  ;;  %v4999_v14 = vsel %vm9562_vm2, %v13394_v45, %v13369_v34  ;;  %v13579_v44 = vsel %vm10157_vm7, %v8746_v63, %v4564_v41  ;;  %v13591_v56 = vpop.f32.mrf.mxu0 }
 0x1e5   :  { %v8249_v25 = vld [vmem:[%s16074_s0 + $0x9c] sm:$0xf]  ;;  %3907 = vst.msk [vmem:[#allocation2 + $0x2d4] sm:$0xf] %vm615_vm4, %v3816_v49  ;;  %v13562_v42 = vrot.slane %v5034_v29, 5  ;;  %v13564_v7 = vrot.slane %v5038_v52, 4  ;;  %7434 = vmatprep.mubr.bf16.mxu1 %v9383_v0 }
 0x1e6   :  { %v1466_v33 = vshrl.u32 %v8250_v55, 16  ;;  %1937 = vst.msk [vmem:[#allocation2 + $0x1ac] sm:$0xf] %vm615_vm4, %v1863_v58  ;;  %v13584_v47 = vld [vmem:[%s16074_s0 + $0x13c] sm:$0xf]  ;;  %v13586_v38 = vrot.slane %v1462_v6, 5  ;;  %7435 = vmatmul.mubr.bf16.gmra.mxu1 %v8948_v35  ;;  %v1861_v55 = vpop.permute.xlu0 %1860  ;;  %v7104_v19 = vpop.f32.mrf.mxu0  ;;  %v4989_v6 = vsel %vm9562_vm2, %v13441_v22, %v13270_v8  ;;  %4655 = vrot.lane.b32.xlu0 %v13489_v32, %s9509_s11 }
 0x1e7   :  { %v1472_v29 = vshll.u32 %v8251_v17, 16  ;;  %v8350_v52 = vld [vmem:[%s16074_s0 + $0xac] sm:$0xf]  ;;  %v5044_v54 = vshll.u32 %v13537_v27, 16  ;;  %v1453_v63 = vshrl.u32 %v8249_v25, 16  ;;  %v1456_v31 = vshll.u32 %v8249_v25, 16  ;;  %v7269_v27 = vpop.f32.mrf.mxu1  ;;  %5282 = vrot.lane.b32.xlu1 %v4999_v14, %s9509_s11 }
 0x1e8   :  { %v1468_v41 = vrot.slane %v1466_v33, 4  ;;  %2006 = vst.msk [vmem:[#allocation2 + $0x200] sm:$0xf] %vm51_vm3, %v8350_v52  ;;  %v8349_v3 = vld [vmem:[%s16074_s0 + $0xa8] sm:$0xf]  ;;  %v13606_v61 = vrot.slane %v5017_v11, 4  ;;  %v13637_v25 = vsel %vm10157_vm7, %v13445_v39, %v4567_v37  ;;  %v5041_v21 = vor.u32 %v13564_v7, %v13562_v42  ;;  %v13651_v9 = vpop.f32.mrf.mxu0 }
 0x1e9   :  { %v13608_v59 = vrot.slane %v5007_v50, 4  ;;  %v13610_v17 = vrot.slane %v5025_v48, 4  ;;  %v13612_v43 = vrot.slane %v5028_v20, 5  ;;  %v13617_v46 = vld [vmem:[%s16074_s0 + $0x138] sm:$0xe]  ;;  %v1474_v57 = vrot.slane %v1472_v29, 5  ;;  %v2488_v20 = vpop.permute.xlu1 %2487  ;;  %v13653_v37 = vpop.f32.mrf.mxu1 }
 0x1ea   :  { %2005 = vst.msk [vmem:[#allocation2 + $0x1ec] sm:$0xf] %vm51_vm3, %v8349_v3  ;;  %v1469_v49 = vor.u32 %v1468_v41, %v13586_v38  ;;  %v1455_v0 = vrot.slane %v1453_v63, 4  ;;  %v1458_v11 = vrot.slane %v1456_v31, 5  ;;  %v13625_v48 = vld [vmem:[%s16074_s0 + $0x148] sm:$0xf]  ;;  %v13662_v39 = vsel %vm10157_vm7, %v13524_v13, %v4574_v36  ;;  %v2486_v52 = vpop.permute.xlu0 %2485  ;;  %v7109_v31 = vpop.f32.mrf.mxu0  ;;  %5280 = vrot.lane.b32.xlu0 %v4989_v6, %s9509_s11 }
 0x1eb   :  { %1936 = vst.msk [vmem:[#allocation2 + $0x198] sm:$0xf] %vm615_vm4, %v1861_v55  ;;  %v5775_v50 = vld [vmem:[#allocation2 + $0x2e4] sm:$0xff]  ;;  %v13644_v24 = vld [vmem:[%s16074_s0 + $0x140] sm:$0x1]  ;;  %v4578_v58 = vrot.slane %v13584_v47, 5  ;;  %v5031_v13 = vor.u32 %v13612_v43, %v13610_v17  ;;  %v7272_v3 = vpop.f32.mrf.mxu1  ;;  %4661 = vrot.lane.b32.xlu1 %v13637_v25, %s9509_s11 }
 0x1ec   :  { %v8812_v35 = vld [vmem:[%s16074_s0 + $0x14c] sm:$0x1]  ;;  %2562 = vst.msk [vmem:[#allocation2 + $0x1b0] sm:$0xf] %vm615_vm4, %v2488_v20  ;;  %16088 = vst [vmem:[#allocation7_spill] sm:$0xff] %v13653_v37  ;;  %v13664_v7 = vrot.slane %v5044_v54, 5  ;;  %v1459_v47 = vor.u32 %v1458_v11, %v1455_v0  ;;  %v13702_v32 = vpop.f32.mrf.mxu0 }
 0x1ed   :  { %v1470_v33 = vrot.slane %v1469_v49, 4  ;;  %v13669_v29 = vld [vmem:[%s16074_s0 + $0x144] sm:$0xf]  ;;  %v8480_v5 = vld [vmem:[%s16074_s0 + $0x118] sm:$0xf]  ;;  %v5772_v62 = vld [vmem:[#allocation2 + $0x2d0] sm:$0xff]  ;;  %v3357_v43 = vpop.permute.xlu1 %3356  ;;  %v13704_v20 = vpop.f32.mrf.mxu1 }
 0x1ee   :  { %v9386_v41 = vld [vmem:[#allocation2 + $0x2d4] ss:$20 sps:$4 sm:$0xff]   ;;  %v8748_v36 = vrot.slane %v13617_v46, 9  ;;  %v5058_v54 = vshll.u32 %v13625_v48, 16  ;;  %v5062_v63 = vshrl.u32 %v13625_v48, 16  ;;  %v8991_v55 = vcombine.low %v5772_v62, %v5775_v50  ;;  %16089 = vst [vmem:[#allocation8_spill] sm:$0xff] %v13704_v20  ;;  %v3355_v10 = vpop.permute.xlu0 %3354  ;;  %4659 = vrot.lane.b32.xlu0 %v13579_v44, %s9509_s11 }
 0x1ef   :  { %2889 = vst.msk [vmem:[#allocation2 + $0x35c] sm:$0xf] %vm51_vm3, %v8480_v5  ;;  %v1475_v19 = vsel %vm9562_vm2, %v1470_v33, %v1474_v57  ;;  %v1460_v27 = vrot.slane %v1459_v47, 4  ;;  %v5068_v49 = vshll.u32 %v8812_v35, 16  ;;  %v8479_v17 = vld [vmem:[%s16074_s0 + $0x114] sm:$0xf]  ;;  %7217 = vmatprep.mubr.bf16.mxu0 %v9386_v41  ;;  %v5023_v50 = vsel %vm9562_vm2, %v13606_v61, %v13501_v4  ;;  %v7112_v5 = vpop.f32.mrf.mxu0 }
 0x1f0   :  { %2561 = vst.msk [vmem:[#allocation2 + $0x19c] sm:$0xf] %vm615_vm4, %v2486_v52  ;;  %v13688_v46 = vrot.slane %v5041_v21, 4  ;;  %v13690_v0 = vrot.slane %v4578_v58, 4  ;;  %v5049_v57 = vshrl.u32 %v13669_v29, 16  ;;  %7218 = vmatmul.mubr.bf16.gmra.mxu0 %v8991_v55  ;;  %v13722_v21 = vsel %vm10157_vm7, %v8747_v2, %v4571_v40  ;;  %v7277_v52 = vpop.f32.mrf.mxu1  ;;  %5286 = vrot.lane.b32.xlu1 %v5023_v50, %s9509_s11 }
 0x1f1   :  { %1605 = vst.msk [vmem:[#allocation2 + $0x1fc] sm:$0xf] %vm51_vm3, %v1475_v19  ;;  %v13698_v48 = vld [vmem:[%s16074_s0 + $0x148] sm:$0xf]  ;;  %2888 = vst.msk [vmem:[#allocation2 + $0x348] sm:$0xf] %vm51_vm3, %v8479_v17  ;;  %v1465_v35 = vsel %vm9562_vm2, %v1460_v27, %v13586_v38  ;;  %v5013_v40 = vsel %vm9562_vm2, %v13608_v59, %v13467_v12  ;;  %v13746_v14 = vsel %vm10157_vm7, %v8748_v36, %v4578_v58  ;;  %v3822_v36 = vpop.permute.xlu1 %3821  ;;  %v13785_v8 = vpop.f32.mrf.mxu0 }
 0x1f2   :  { %3445 = vst.msk [vmem:[#allocation2 + $0x30c] sm:$0xf] %vm615_vm4, %v3357_v43  ;;  %v13730_v34 = vld [vmem:[%s16074_s0 + $0x14c] sm:$0x1]  ;;  %v8565_v45 = vld [vmem:[%s16074_s0 + $0x118] sm:$0xf]  ;;  %v13787_v22 = vpop.f32.mrf.mxu1  ;;  %5284 = vrot.lane.b32.xlu0 %v5013_v40, %s9509_s11 }
 0x1f3   :  { %v8566_v26 = vld [vmem:[%s16074_s0 + $0x11c] sm:$0x1]  ;;  %v13742_v2 = vrot.slane %v5031_v13, 4  ;;  %1604 = vst.msk [vmem:[#allocation2 + $0x1e8] sm:$0xf] %vm51_vm3, %v1465_v35  ;;  %v5052_v38 = vshll.u32 %v13669_v29, 16  ;;  %v3820_v35 = vpop.permute.xlu0 %3819 }
 0x1f4   :  { %v8814_v33 = vld [vmem:[%s16074_s0 + $0x154] sm:$0xf]  ;;  %3444 = vst.msk [vmem:[#allocation2 + $0x2f8] sm:$0xf] %vm615_vm4, %v3355_v10  ;;  %v13757_v62 = vrot.slane %v5058_v54, 5  ;;  %v13759_v58 = vrot.slane %v5062_v63, 4  ;;  %v7280_v52 = vpop.f32.mrf.mxu1  ;;  %4665 = vrot.lane.b32.xlu1 %v13662_v39, %s9509_s11 }
 0x1f5   :  { %v8564_v47 = vld [vmem:[%s16074_s0 + $0x114] sm:$0xe]  ;;  %v13761_v41 = vrot.slane %v5068_v49, 5  ;;  %v13766_v29 = vld [vmem:[%s16074_s0 + $0x150] sm:$0xf]  ;;  %v3603_v13 = vrot.slane %v8565_v45, 5 }
 0x1f6   :  { %v5728_v54 = vld [vmem:[#allocation2 + $0x1ac] sm:$0xff]  ;;  %v16079_v31 = vrot.slane %v13698_v48, 5  ;;  %v13782_v3 = vld [vmem:[%s16074_s0 + $0x144] sm:$0xe]  ;;  %v3606_v55 = vrot.slane %v8566_v26, 5  ;;  %v8602_v19 = vrot.slane %v8564_v47, 9  ;;  %v1867_v47 = vpop.permute.xlu1 %1866  ;;  %4663 = vrot.lane.b32.xlu0 %v13722_v21, %s9509_s11  ;;  %v16095_v21 = vsel %vm9562_vm2, %v13688_v46, %v13664_v7 }
 0x1f7   :  { %3910 = vst.msk [vmem:[#allocation2 + $0x310] sm:$0xf] %vm615_vm4, %v3822_v36  ;;  %16090 = vst [vmem:[#allocation9_spill] sm:$0xff] %v13787_v22  ;;  %v13791_v6 = vrot.slane %v5049_v57, 4  ;;  %v13796_v27 = vld [vmem:[%s16074_s0 + $0x158] sm:$0x1]  ;;  %v7117_v57 = vpop.f32.mrf.mxu0 }
 0x1f8   :  { %v5082_v49 = vshll.u32 %v8814_v33, 16  ;;  %v5086_v17 = vshrl.u32 %v8814_v33, 16  ;;  %v3605_v43 = vrot.slane %v3603_v13, 4  ;;  %v5725_v45 = vld [vmem:[#allocation2 + $0x198] sm:$0xff]  ;;  %v13798_v10 = vrot.slane %v5052_v38, 5  ;;  %v1865_v57 = vpop.permute.xlu0 %1864  ;;  %5290 = vrot.lane.b32.xlu1 %v16095_v21, %s9509_s11 }
 0x1f9   :  { %v9388_v26 = vld [vmem:[#allocation2 + $0x19c] ss:$20 sps:$4 sm:$0xff]   ;;  %v5073_v5 = vshrl.u32 %v13766_v29, 16  ;;  %v3604_v25 = vsel %vm10157_vm7, %v8602_v19, %v3603_v13  ;;  %3909 = vst.msk [vmem:[#allocation2 + $0x2fc] sm:$0xf] %vm615_vm4, %v3820_v35  ;;  %v8953_v36 = vcombine.low %v5725_v45, %v5728_v54  ;;  %v5076_v11 = vshll.u32 %v13766_v29, 16 }
 0x1fa   :  { %v3607_v38 = vsel %vm10157_vm7, %v3605_v43, %v3606_v55  ;;  %3720 = vst.msk [vmem:[#allocation2 + $0x34c] sm:$0xf] %vm51_vm3, %v3604_v25  ;;  %7442 = vmatprep.mubr.bf16.mxu1 %v9388_v26  ;;  %v5065_v54 = vor.u32 %v13759_v58, %v13757_v62  ;;  %v13820_v29 = vrot.slane %v16079_v31, 4  ;;  %v8253_v44 = vld [vmem:[%s16074_s0 + $0xac] sm:$0xf]  ;;  %v13831_v43 = vpop.f32.mrf.mxu0  ;;  %v13833_v58 = vpop.f32.mrf.mxu1  ;;  %v13841_v35 = vrot.slane %v5082_v49, 5 }
 0x1fb   :  { %3721 = vst.msk [vmem:[#allocation2 + $0x360] sm:$0xf] %vm51_vm3, %v3607_v38  ;;  %v8254_v19 = vld [vmem:[%s16074_s0 + $0xb0] sm:$0x1]  ;;  %16091 = vst [vmem:[#allocation10_spill] sm:$0xff] %v13833_v58  ;;  %7443 = vmatmul.mubr.bf16.gmra.mxu1 %v8953_v36  ;;  %v13843_v45 = vrot.slane %v5086_v17, 4 }
 0x1fc   :  { %1939 = vst.msk [vmem:[#allocation2 + $0x1d4] sm:$0xf] %vm615_vm4, %v1867_v47  ;;  %v1486_v26 = vshll.u32 %v8253_v44, 16  ;;  %v1490_v25 = vshrl.u32 %v8253_v44, 16  ;;  %v8252_v47 = vld [vmem:[%s16074_s0 + $0xa8] sm:$0xf]  ;;  %v7120_v61 = vpop.f32.mrf.mxu0  ;;  %v7285_v50 = vpop.f32.mrf.mxu1 }
 0x1fd   :  { %v13848_v52 = vrot.slane %v5073_v5, 4  ;;  %v1496_v36 = vshll.u32 %v8254_v19, 16  ;;  %v1477_v38 = vshrl.u32 %v8252_v47, 16  ;;  %v1480_v13 = vshll.u32 %v8252_v47, 16  ;;  %v8817_v4 = vld [vmem:[%s16074_s0 + $0x160] sm:$0xf]  ;;  %v2492_v47 = vpop.permute.xlu1 %2491 }
 0x1fe   :  { %1938 = vst.msk [vmem:[#allocation2 + $0x1c0] sm:$0xf] %vm615_vm4, %v1865_v57  ;;  %v13854_v49 = vrot.slane %v5076_v11, 5  ;;  %v13859_v17 = vld [vmem:[%s16074_s0 + $0x154] sm:$0xf]  ;;  %v13861_v5 = vrot.slane %v1486_v26, 5  ;;  %v5055_v11 = vor.u32 %v13798_v10, %v13791_v6  ;;  %v13887_v40 = vpop.f32.mrf.mxu1  ;;  %v5089_v10 = vor.u32 %v13843_v45, %v13841_v35 }
 0x1ff   :  { %v1492_v44 = vrot.slane %v1490_v25, 4  ;;  %v5106_v19 = vshll.u32 %v8817_v4, 16  ;;  %v5781_v57 = vld [vmem:[#allocation2 + $0x30c] sm:$0xff]  ;;  %v13874_v61 = vld [vmem:[%s16074_s0 + $0x158] sm:$0x1]  ;;  %v1479_v25 = vrot.slane %v1477_v38, 4 }
 0x200   :  { %v13879_v26 = vld [vmem:[%s16074_s0 + $0x150] sm:$0xe]  ;;  %v1482_v50 = vrot.slane %v1480_v13, 5  ;;  %v13884_v12 = vld [vmem:[%s16074_s0 + $0x164] sm:$0x1]  ;;  %v5110_v59 = vshrl.u32 %v8817_v4, 16 }
 0x201   :  { %2564 = vst.msk [vmem:[#allocation2 + $0x1d8] sm:$0xf] %vm615_vm4, %v2492_v47  ;;  %16092 = vst [vmem:[#allocation11_spill] sm:$0xff] %v13887_v40  ;;  %v13891_v6 = vrot.slane %v5065_v54, 4  ;;  %v1493_v13 = vor.u32 %v1492_v44, %v13861_v5  ;;  %v1498_v38 = vrot.slane %v1496_v36, 5  ;;  %v2490_v47 = vpop.permute.xlu0 %2489  ;;  %v5778_v31 = vld [vmem:[#allocation2 + $0x2f8] sm:$0xff]  ;;  %v7288_v36 = vpop.f32.mrf.mxu1 }
 0x202   :  { %v8816_v33 = vld [vmem:[%s16074_s0 + $0x15c] sm:$0xf]  ;;  %v8352_v4 = vld [vmem:[%s16074_s0 + $0xb8] sm:$0xf]  ;;  %v4592_v39 = vrot.slane %v13859_v17, 5  ;;  %v1483_v54 = vor.u32 %v1482_v50, %v1479_v25  ;;  %v13903_v55 = vrot.slane %v5106_v19, 5  ;;  %v8996_v44 = vcombine.low %v5778_v31, %v5781_v57  ;;  %v3361_v19 = vpop.permute.xlu1 %3360 }
 0x203   :  { %v9390_v63 = vld [vmem:[#allocation2 + $0x2fc] ss:$20 sps:$4 sm:$0xff]   ;;  %v13905_v45 = vrot.slane %v5110_v59, 4  ;;  %2008 = vst.msk [vmem:[#allocation2 + $0x228] sm:$0xf] %vm51_vm3, %v8352_v4  ;;  %v1494_v40 = vrot.slane %v1493_v13, 4  ;;  %v5079_v31 = vor.u32 %v13854_v49, %v13848_v52 }
 0x204   :  { %2563 = vst.msk [vmem:[#allocation2 + $0x1c4] sm:$0xf] %vm615_vm4, %v2490_v47  ;;  %v5097_v58 = vshrl.u32 %v8816_v33, 16  ;;  %v5100_v22 = vshll.u32 %v8816_v33, 16  ;;  %v8351_v20 = vld [vmem:[%s16074_s0 + $0xb4] sm:$0xf]  ;;  %7225 = vmatprep.mubr.bf16.mxu0 %v9390_v63  ;;  %v13924_v33 = vpop.f32.mrf.mxu1 }
 0x205   :  { %v13914_v25 = vrot.slane %v5055_v11, 4  ;;  %v16093_v50 = vshll.u32 %v13796_v27, 16  ;;  %v1484_v57 = vrot.slane %v1483_v54, 4  ;;  %2007 = vst.msk [vmem:[#allocation2 + $0x214] sm:$0xf] %vm51_vm3, %v8351_v20  ;;  %7226 = vmatmul.mubr.bf16.gmra.mxu0 %v8996_v44  ;;  %16094 = vst [vmem:[#allocation12_spill] sm:$0xff] %v13924_v33  ;;  %v1499_v52 = vsel %vm9562_vm2, %v1494_v40, %v1498_v38  ;;  %v3359_v11 = vpop.permute.xlu0 %3358 }
 0x206   :  { %3447 = vst.msk [vmem:[#allocation2 + $0x334] sm:$0xf] %vm615_vm4, %v3361_v19  ;;  %v4595_v63 = vrot.slane %v13874_v61, 5  ;;  %v8750_v27 = vrot.slane %v13879_v26, 9  ;;  %v5116_v20 = vshll.u32 %v13884_v12, 16  ;;  %v16096_v13 = vrot.slane %v13644_v24, 5  ;;  %v7293_v40 = vpop.f32.mrf.mxu1 }
 0x207   :  { %v13918_v59 = vrot.slane %v16093_v50, 5  ;;  %v8482_v49 = vld [vmem:[%s16074_s0 + $0x124] sm:$0xf]  ;;  %v13945_v46 = vrot.slane %v5089_v10, 4  ;;  %v13949_v26 = vrot.slane %v4592_v39, 4  ;;  %v1489_v12 = vsel %vm9562_vm2, %v1484_v57, %v13861_v5 }
 0x208   :  { %v4582_v7 = vsel %vm10157_vm7, %v13690_v0, %v16096_v13  ;;  %1607 = vst.msk [vmem:[#allocation2 + $0x224] sm:$0xf] %vm51_vm3, %v1499_v52  ;;  %2891 = vst.msk [vmem:[#allocation2 + $0x384] sm:$0xf] %vm51_vm3, %v8482_v49  ;;  %v8481_v24 = vld [vmem:[%s16074_s0 + $0x120] sm:$0xf]  ;;  %v5113_v4 = vor.u32 %v13905_v45, %v13903_v55  ;;  %v5071_v45 = vsel %vm9562_vm2, %v13891_v6, %v13761_v41 }
 0x209   :  { %v8820_v0 = vld [vmem:[%s16074_s0 + $0x16c] sm:$0xf]  ;;  %3446 = vst.msk [vmem:[#allocation2 + $0x320] sm:$0xf] %vm615_vm4, %v3359_v11  ;;  %v16097_v10 = vrot.slane %v13698_v48, 5  ;;  %v16098_v38 = vrot.slane %v13782_v3, 9  ;;  %v16099_v3 = vsel %vm9562_vm2, %v13742_v2, %v13562_v42  ;;  %v5061_v44 = vsel %vm9562_vm2, %v13914_v25, %v13757_v62  ;;  %v14019_v62 = vpop.f32.mrf.mxu1  ;;  %4669 = vrot.lane.b32.xlu1 %v4582_v7, %s9509_s11  ;;  %v3824_v57 = vpop.permute.xlu0 %3823 }
 0x20a   :  { %1606 = vst.msk [vmem:[#allocation2 + $0x210] sm:$0xf] %vm51_vm3, %v1489_v12  ;;  %v13974_v47 = vrot.slane %v5097_v58, 4  ;;  %v5102_v54 = vrot.slane %v5100_v22, 5  ;;  %v13979_v36 = vld [vmem:[%s16074_s0 + $0x160] sm:$0xf]  ;;  %5288 = vrot.lane.b32.xlu0 %v16099_v3, %s9509_s11  ;;  %v3826_v22 = vpop.permute.xlu1 %3825  ;;  %v14031_v49 = vsel %vm10157_vm7, %v8750_v27, %v4592_v39 }
 0x20b   :  { %v13969_v5 = vsel %vm10157_vm7, %v16098_v38, %v16097_v10  ;;  %v13984_v48 = vld [vmem:[%s16074_s0 + $0x164] sm:$0x1]  ;;  %2890 = vst.msk [vmem:[#allocation2 + $0x370] sm:$0xf] %vm51_vm3, %v8481_v24  ;;  %v5734_v58 = vld [vmem:[#allocation2 + $0x1d4] sm:$0xff]  ;;  %v16100_v19 = vrot.slane %v13730_v34, 5  ;;  %v7296_v7 = vpop.f32.mrf.mxu1 }
 0x20c   :  { %v14008_v42 = vrot.slane %v5079_v31, 4  ;;  %v14013_v2 = vld [vmem:[%s16074_s0 + $0x170] sm:$0x1]  ;;  %v8819_v41 = vld [vmem:[%s16074_s0 + $0x168] sm:$0xf]  ;;  %16101 = vst [vmem:[#allocation13_spill] sm:$0xff] %v14019_v62 }
 0x20d   :  { %v14006_v50 = vsel %vm10157_vm7, %v13820_v29, %v16100_v19  ;;  %3912 = vst.msk [vmem:[#allocation2 + $0x338] sm:$0xf] %vm615_vm4, %v3826_v22  ;;  %v14022_v34 = vrot.slane %v5116_v20, 5  ;;  %v5130_v29 = vshll.u32 %v8820_v0, 16  ;;  %v5134_v6 = vshrl.u32 %v8820_v0, 16  ;;  %v5731_v21 = vld [vmem:[#allocation2 + $0x1c0] sm:$0xff]  ;;  %v14054_v3 = vpop.f32.mrf.mxu1  ;;  %5294 = vrot.lane.b32.xlu1 %v5071_v45, %s9509_s11 }
 0x20e   :  { %v5121_v25 = vshrl.u32 %v8819_v41, 16  ;;  %v8568_v31 = vld [vmem:[%s16074_s0 + $0x124] sm:$0xf]  ;;  %v4599_v11 = vrot.slane %v13979_v36, 5  ;;  %v5124_v20 = vshll.u32 %v8819_v41, 16  ;;  %v8958_v12 = vcombine.low %v5731_v21, %v5734_v58  ;;  %4667 = vrot.lane.b32.xlu0 %v13746_v14, %s9509_s11  ;;  %v1871_v27 = vpop.permute.xlu1 %1870  ;;  %16102 = vst [vmem:[#allocation14_spill] sm:$0xff] %v14054_v3  ;;  %v1869_v41 = vpop.permute.xlu0 %1868 }
 0x20f   :  { %v9392_v52 = vld [vmem:[#allocation2 + $0x1c4] ss:$20 sps:$4 sm:$0xff]   ;;  %v3610_v13 = vrot.slane %v8568_v31, 5  ;;  %3911 = vst.msk [vmem:[#allocation2 + $0x324] sm:$0xf] %vm615_vm4, %v3824_v57  ;;  %v14035_v24 = vrot.slane %v5113_v4, 4  ;;  %v5103_v0 = vor.u32 %v5102_v54, %v13974_v47  ;;  %v14074_v45 = vsel %vm10157_vm7, %v13949_v26, %v4595_v63  ;;  %v7301_v63 = vpop.f32.mrf.mxu1  ;;  %v14211_v36 = vpop.f32.mrf.mxu0 }
 0x210   :  { %v4602_v40 = vrot.slane %v13984_v48, 5  ;;  %v8569_v17 = vld [vmem:[%s16074_s0 + $0x128] sm:$0x1]  ;;  %v8567_v39 = vld [vmem:[%s16074_s0 + $0x120] sm:$0xe]  ;;  %7450 = vmatprep.mubr.bf16.mxu1 %v9392_v52  ;;  %v5140_v38 = vshll.u32 %v14013_v2, 16  ;;  %v5095_v2 = vsel %vm9562_vm2, %v13945_v46, %v13918_v59 }
 0x211   :  { %v14050_v10 = vld [vmem:[%s16074_s0 + $0x15c] sm:$0xe]  ;;  %v3612_v4 = vrot.slane %v3610_v13, 4  ;;  %v3613_v47 = vrot.slane %v8569_v17, 5  ;;  %v8603_v54 = vrot.slane %v8567_v39, 9  ;;  %7451 = vmatmul.mubr.bf16.gmra.mxu1 %v8958_v12  ;;  %v14057_v14 = vrot.slane %v5130_v29, 5  ;;  %v14115_v39 = vpop.f32.mrf.mxu1  ;;  %4673 = vrot.lane.b32.xlu1 %v14006_v50, %s9509_s11 }
 0x212   :  { %1941 = vst.msk [vmem:[#allocation2 + $0x1fc] sm:$0xf] %vm615_vm4, %v1871_v27  ;;  %v14059_v22 = vrot.slane %v5134_v6, 4  ;;  %v14061_v58 = vrot.slane %v5121_v25, 4  ;;  %v14063_v19 = vrot.slane %v5124_v20, 5  ;;  %v14092_v46 = vrot.slane %v5103_v0, 4  ;;  %5292 = vrot.lane.b32.xlu0 %v5061_v44, %s9509_s11  ;;  %v2496_v52 = vpop.permute.xlu1 %2495 }
 0x213   :  { %v3614_v29 = vsel %vm10157_vm7, %v3612_v4, %v3613_v47  ;;  %v3611_v6 = vsel %vm10157_vm7, %v8603_v54, %v3610_v13  ;;  %v14083_v25 = vld [vmem:[%s16074_s0 + $0x16c] sm:$0xf]  ;;  %v8256_v61 = vld [vmem:[%s16074_s0 + $0xb8] sm:$0xf]  ;;  %v8257_v59 = vld [vmem:[%s16074_s0 + $0xbc] sm:$0x1]  ;;  %v5085_v13 = vsel %vm9562_vm2, %v14008_v42, %v13841_v35  ;;  %v2494_v47 = vpop.permute.xlu0 %2493 }
 0x214   :  { %1940 = vst.msk [vmem:[#allocation2 + $0x1e8] sm:$0xf] %vm615_vm4, %v1869_v41  ;;  %v14096_v26 = vrot.slane %v4599_v11, 4  ;;  %v1510_v57 = vshll.u32 %v8256_v61, 16  ;;  %v8255_v21 = vld [vmem:[%s16074_s0 + $0xb4] sm:$0xf]  ;;  %v5137_v44 = vor.u32 %v14059_v22, %v14057_v14  ;;  %v5127_v50 = vor.u32 %v14063_v19, %v14061_v58 }
 0x215   :  { %3723 = vst.msk [vmem:[#allocation2 + $0x388] sm:$0xf] %vm51_vm3, %v3614_v29  ;;  %3722 = vst.msk [vmem:[#allocation2 + $0x374] sm:$0xf] %vm51_vm3, %v3611_v6  ;;  %v5787_v20 = vld [vmem:[#allocation2 + $0x334] sm:$0xff]  ;;  %v1514_v12 = vshrl.u32 %v8256_v61, 16  ;;  %5298 = vrot.lane.b32.xlu1 %v5095_v2, %s9509_s11  ;;  %v5119_v2 = vsel %vm9562_vm2, %v14035_v24, %v14022_v34 }
 0x216   :  { %v14112_v7 = vld [vmem:[%s16074_s0 + $0x170] sm:$0x1]  ;;  %v1520_v0 = vshll.u32 %v8257_v59, 16  ;;  %v1501_v17 = vshrl.u32 %v8255_v21, 16  ;;  %2566 = vst.msk [vmem:[#allocation2 + $0x200] sm:$0xf] %vm615_vm4, %v2496_v52  ;;  %v7304_v59 = vpop.f32.mrf.mxu1  ;;  %4671 = vrot.lane.b32.xlu0 %v13969_v5, %s9509_s11  ;;  %v3365_v58 = vpop.permute.xlu1 %3364 }
 0x217   :  { %16103 = vst [vmem:[#allocation15_spill] sm:$0xff] %v14115_v39  ;;  %v4606_v35 = vrot.slane %v14083_v25, 5  ;;  %v14122_v42 = vrot.slane %v1510_v57, 5  ;;  %v1504_v27 = vshll.u32 %v8255_v21, 16  ;;  %v8823_v4 = vld [vmem:[%s16074_s0 + $0x178] sm:$0xf] }
 0x218   :  { %v5784_v54 = vld [vmem:[#allocation2 + $0x320] sm:$0xff]  ;;  %v14127_v29 = vrot.slane %v5140_v38, 5  ;;  %v14134_v22 = vld [vmem:[%s16074_s0 + $0x168] sm:$0xe]  ;;  %v1516_v6 = vrot.slane %v1514_v12, 4  ;;  %v1503_v61 = vrot.slane %v1501_v17, 4 }
 0x219   :  { %v9394_v41 = vld [vmem:[#allocation2 + $0x324] ss:$20 sps:$4 sm:$0xff]   ;;  %2565 = vst.msk [vmem:[#allocation2 + $0x1ec] sm:$0xf] %vm615_vm4, %v2494_v47  ;;  %v9001_v63 = vcombine.low %v5784_v54, %v5787_v20  ;;  %v1506_v57 = vrot.slane %v1504_v27, 5  ;;  %v5154_v21 = vshll.u32 %v8823_v4, 16  ;;  %v14147_v27 = vpop.f32.mrf.mxu1  ;;  %4677 = vrot.lane.b32.xlu1 %v14074_v45, %s9509_s11 }
 0x21a   :  { %v5158_v52 = vshrl.u32 %v8823_v4, 16  ;;  %v8822_v38 = vld [vmem:[%s16074_s0 + $0x174] sm:$0xf]  ;;  %7233 = vmatprep.mubr.bf16.mxu0 %v9394_v41  ;;  %v1517_v19 = vor.u32 %v1516_v6, %v14122_v42  ;;  %v1522_v12 = vrot.slane %v1520_v0, 5  ;;  %v8354_v20 = vld [vmem:[%s16074_s0 + $0xc4] sm:$0xf]  ;;  %v3363_v41 = vpop.permute.xlu0 %3362  ;;  %5296 = vrot.lane.b32.xlu0 %v5085_v13, %s9509_s11 }
 0x21b   :  { %v5145_v17 = vshrl.u32 %v8822_v38, 16  ;;  %v5148_v31 = vshll.u32 %v8822_v38, 16  ;;  %3449 = vst.msk [vmem:[#allocation2 + $0x35c] sm:$0xf] %vm615_vm4, %v3365_v58  ;;  %7234 = vmatmul.mubr.bf16.gmra.mxu0 %v9001_v63  ;;  %16104 = vst [vmem:[#allocation16_spill] sm:$0xff] %v14147_v27  ;;  %v14150_v4 = vrot.slane %v5137_v44, 4  ;;  %v1507_v47 = vor.u32 %v1506_v57, %v1503_v61  ;;  %v7309_v59 = vpop.f32.mrf.mxu1 }
 0x21c   :  { %v4608_v5 = vrot.slane %v4606_v35, 4  ;;  %v4609_v0 = vrot.slane %v14112_v7, 5  ;;  %2010 = vst.msk [vmem:[#allocation2 + $0x250] sm:$0xf] %vm51_vm3, %v8354_v20  ;;  %v8353_v54 = vld [vmem:[%s16074_s0 + $0xc0] sm:$0xf] }
 0x21d   :  { %v1518_v44 = vrot.slane %v1517_v19, 4  ;;  %v14166_v6 = vld [vmem:[%s16074_s0 + $0x17c] sm:$0x1]  ;;  %v14168_v7 = vrot.slane %v5154_v21, 5  ;;  %v14170_v61 = vrot.slane %v5158_v52, 4  ;;  %v8752_v63 = vrot.slane %v14134_v22, 9  ;;  %v3830_v21 = vpop.permute.xlu1 %3829  ;;  %5302 = vrot.lane.b32.xlu1 %v5119_v2, %s9509_s11 }
 0x21e   :  { %2009 = vst.msk [vmem:[#allocation2 + $0x23c] sm:$0xf] %vm51_vm3, %v8353_v54  ;;  %v1508_v57 = vrot.slane %v1507_v47, 4  ;;  %v14175_v38 = vrot.slane %v5145_v17, 4  ;;  %v14177_v58 = vrot.slane %v5148_v31, 5  ;;  %v5740_v52 = vld [vmem:[#allocation2 + $0x1fc] sm:$0xff]  ;;  %v14190_v22 = vsel %vm10157_vm7, %v14096_v26, %v4602_v40  ;;  %4675 = vrot.lane.b32.xlu0 %v14031_v49, %s9509_s11 }
 0x21f   :  { %3448 = vst.msk [vmem:[#allocation2 + $0x348] sm:$0xf] %vm615_vm4, %v3363_v41  ;;  %v14182_v19 = vld [vmem:[%s16074_s0 + $0x178] sm:$0xf]  ;;  %v16105_v31 = vrot.slane %v14050_v10, 9  ;;  %v14200_v20 = vrot.slane %v5127_v50, 4  ;;  %v1523_v13 = vsel %vm9562_vm2, %v1518_v44, %v1522_v12  ;;  %v14213_v10 = vpop.f32.mrf.mxu1  ;;  %v5143_v26 = vsel %vm9562_vm2, %v14150_v4, %v14127_v29 }
 0x220   :  { %v8484_v48 = vld [vmem:[%s16074_s0 + $0x130] sm:$0xf]  ;;  %v8483_v40 = vld [vmem:[%s16074_s0 + $0x12c] sm:$0xf]  ;;  %3914 = vst.msk [vmem:[#allocation2 + $0x360] sm:$0xf] %vm615_vm4, %v3830_v21  ;;  %v14227_v50 = vsel %vm10157_vm7, %v4608_v5, %v4609_v0  ;;  %v1513_v45 = vsel %vm9562_vm2, %v1508_v57, %v14122_v42  ;;  %v3828_v5 = vpop.permute.xlu0 %3827  ;;  %v5161_v47 = vor.u32 %v14170_v61, %v14168_v7  ;;  %v7125_v57 = vpop.f32.mrf.mxu0 }
 0x221   :  { %v14198_v17 = vsel %vm10157_vm7, %v16105_v31, %v4599_v11  ;;  %16106 = vst [vmem:[#allocation17_spill] sm:$0xff] %v14213_v10  ;;  %v5109_v11 = vsel %vm9562_vm2, %v14092_v46, %v13903_v55  ;;  %1609 = vst.msk [vmem:[#allocation2 + $0x24c] sm:$0xf] %vm51_vm3, %v1523_v13  ;;  %v14236_v12 = vld [vmem:[%s16074_s0 + $0x174] sm:$0xe]  ;;  %v5737_v0 = vld [vmem:[#allocation2 + $0x1e8] sm:$0xff]  ;;  %v7312_v21 = vpop.f32.mrf.mxu1  ;;  %v14260_v13 = vsel %vm10157_vm7, %v8752_v63, %v4606_v35  ;;  %v1875_v25 = vpop.permute.xlu1 %1874  ;;  %4681 = vrot.lane.b32.xlu1 %v14190_v22, %s9509_s11 }
 0x222   :  { %2893 = vst.msk [vmem:[#allocation2 + $0x3ac] sm:$0xf] %vm51_vm3, %v8484_v48  ;;  %2892 = vst.msk [vmem:[#allocation2 + $0x398] sm:$0xf] %vm51_vm3, %v8483_v40  ;;  %v8826_v55 = vld [vmem:[%s16074_s0 + $0x184] sm:$0xf]  ;;  %v8963_v31 = vcombine.low %v5737_v0, %v5740_v52  ;;  %v14280_v52 = vpop.f32.mrf.mxu0  ;;  %5300 = vrot.lane.b32.xlu0 %v5109_v11, %s9509_s11 }
 0x223   :  { %v8827_v46 = vld [vmem:[%s16074_s0 + $0x188] sm:$0x1]  ;;  %v9396_v42 = vld [vmem:[#allocation2 + $0x1ec] ss:$20 sps:$4 sm:$0xff]   ;;  %1608 = vst.msk [vmem:[#allocation2 + $0x238] sm:$0xf] %vm51_vm3, %v1513_v45 }
 0x224   :  { %v5164_v54 = vshll.u32 %v14166_v6, 16  ;;  %v14253_v41 = vld [vmem:[%s16074_s0 + $0x17c] sm:$0x1]  ;;  %v5178_v44 = vshll.u32 %v8826_v55, 16  ;;  %v5182_v59 = vshrl.u32 %v8826_v55, 16  ;;  %v5151_v6 = vor.u32 %v14177_v58, %v14175_v38  ;;  %7458 = vmatprep.mubr.bf16.mxu1 %v9396_v42  ;;  %v1873_v0 = vpop.permute.xlu0 %1872  ;;  %v7128_v24 = vpop.f32.mrf.mxu0 }
 0x225   :  { %3913 = vst.msk [vmem:[#allocation2 + $0x34c] sm:$0xf] %vm615_vm4, %v3828_v5  ;;  %v4613_v61 = vrot.slane %v14182_v19, 5  ;;  %v8825_v48 = vld [vmem:[%s16074_s0 + $0x180] sm:$0xf]  ;;  %v8753_v35 = vrot.slane %v14236_v12, 9  ;;  %7459 = vmatmul.mubr.bf16.gmra.mxu1 %v8963_v31  ;;  %5306 = vrot.lane.b32.xlu1 %v5143_v26, %s9509_s11 }
 0x226   :  { %v8571_v40 = vld [vmem:[%s16074_s0 + $0x130] sm:$0xf]  ;;  %v14274_v63 = vrot.slane %v5178_v44, 5  ;;  %v5184_v38 = vrot.slane %v5182_v59, 4  ;;  %v5169_v58 = vshrl.u32 %v8825_v48, 16  ;;  %v5188_v49 = vshll.u32 %v8827_v46, 16  ;;  %4679 = vrot.lane.b32.xlu0 %v14198_v17, %s9509_s11 }
 0x227   :  { %v8572_v19 = vld [vmem:[%s16074_s0 + $0x134] sm:$0x1]  ;;  %1943 = vst.msk [vmem:[#allocation2 + $0x224] sm:$0xf] %vm615_vm4, %v1875_v25  ;;  %v5172_v45 = vshll.u32 %v8825_v48, 16  ;;  %v3617_v12 = vrot.slane %v8571_v40, 5  ;;  %v14326_v11 = vsel %vm10157_vm7, %v8753_v35, %v4613_v61 }
 0x228   :  { %v3620_v55 = vrot.slane %v8572_v19, 5  ;;  %v8570_v5 = vld [vmem:[%s16074_s0 + $0x12c] sm:$0xe]  ;;  %v14295_v44 = vrot.slane %v5161_v47, 4  ;;  %v14297_v59 = vrot.slane %v5164_v54, 5  ;;  %v4615_v2 = vrot.slane %v4613_v61, 4  ;;  %v2500_v47 = vpop.permute.xlu1 %2499  ;;  %v14320_v19 = vpop.f32.mrf.mxu1 }
 0x229   :  { %v8604_v34 = vrot.slane %v8570_v5, 9  ;;  %1942 = vst.msk [vmem:[#allocation2 + $0x210] sm:$0xf] %vm615_vm4, %v1873_v0  ;;  %v4616_v46 = vrot.slane %v14253_v41, 5  ;;  %v5185_v57 = vor.u32 %v5184_v38, %v14274_v63  ;;  %v3619_v21 = vrot.slane %v3617_v12, 4  ;;  %v5793_v54 = vld [vmem:[#allocation2 + $0x35c] sm:$0xff]  ;;  %v2498_v5 = vpop.permute.xlu0 %2497  ;;  %4685 = vrot.lane.b32.xlu1 %v14227_v50, %s9509_s11 }
 0x22a   :  { %v14305_v31 = vld [vmem:[%s16074_s0 + $0x184] sm:$0xf]  ;;  %v14308_v48 = vrot.slane %v5151_v6, 4  ;;  %v14310_v40 = vrot.slane %v5169_v58, 4  ;;  %v14312_v25 = vrot.slane %v5172_v45, 5  ;;  %16107 = vst [vmem:[#allocation18_spill] sm:$0xff] %v14320_v19 }
 0x22b   :  { %v3618_v41 = vsel %vm10157_vm7, %v8604_v34, %v3617_v12  ;;  %v8259_v38 = vld [vmem:[%s16074_s0 + $0xc4] sm:$0xf]  ;;  %2568 = vst.msk [vmem:[#allocation2 + $0x228] sm:$0xf] %vm615_vm4, %v2500_v47  ;;  %v14328_v6 = vrot.slane %v5188_v49, 5  ;;  %v3621_v58 = vsel %vm10157_vm7, %v3619_v21, %v3620_v55  ;;  %v7317_v47 = vpop.f32.mrf.mxu1  ;;  %v14360_v35 = vrot.slane %v5185_v57, 4 }
 0x22c   :  { %3724 = vst.msk [vmem:[#allocation2 + $0x39c] sm:$0xf] %vm51_vm3, %v3618_v41  ;;  %v8260_v45 = vld [vmem:[%s16074_s0 + $0xc8] sm:$0x1]  ;;  %v1534_v12 = vshll.u32 %v8259_v38, 16  ;;  %v1538_v24 = vshrl.u32 %v8259_v38, 16 }
 0x22d   :  { %v8258_v22 = vld [vmem:[%s16074_s0 + $0xc0] sm:$0xf]  ;;  %v5790_v0 = vld [vmem:[#allocation2 + $0x348] sm:$0xff]  ;;  %3725 = vst.msk [vmem:[#allocation2 + $0x3b0] sm:$0xf] %vm51_vm3, %v3621_v58  ;;  %v1544_v21 = vshll.u32 %v8260_v45, 16  ;;  %v14358_v58 = vsel %vm10157_vm7, %v4615_v2, %v4616_v46  ;;  %v5175_v2 = vor.u32 %v14312_v25, %v14310_v40 }
 0x22e   :  { %v9399_v61 = vld [vmem:[#allocation2 + $0x34c] ss:$20 sps:$4 sm:$0xff]   ;;  %v14347_v49 = vld [vmem:[%s16074_s0 + $0x188] sm:$0x1]  ;;  %2567 = vst.msk [vmem:[#allocation2 + $0x214] sm:$0xf] %vm615_vm4, %v2498_v5  ;;  %v9006_v41 = vcombine.low %v5790_v0, %v5793_v54  ;;  %v3369_v54 = vpop.permute.xlu1 %3368  ;;  %v14378_v5 = vpop.f32.mrf.mxu0 }
 0x22f   :  { %v14353_v34 = vld [vmem:[%s16074_s0 + $0x180] sm:$0xe]  ;;  %v14362_v42 = vrot.slane %v1534_v12, 5  ;;  %v8829_v55 = vld [vmem:[%s16074_s0 + $0x190] sm:$0xf]  ;;  %7241 = vmatprep.mubr.bf16.mxu0 %v9399_v61  ;;  %v1540_v46 = vrot.slane %v1538_v24, 4  ;;  %v14380_v0 = vpop.f32.mrf.mxu1  ;;  %v3367_v24 = vpop.permute.xlu0 %3366 }
 0x230   :  { %v8830_v38 = vld [vmem:[%s16074_s0 + $0x194] sm:$0x1]  ;;  %v1525_v57 = vshrl.u32 %v8258_v22, 16  ;;  %v1528_v45 = vshll.u32 %v8258_v22, 16  ;;  %v8828_v12 = vld [vmem:[%s16074_s0 + $0x18c] sm:$0xf]  ;;  %7242 = vmatmul.mubr.bf16.gmra.mxu0 %v9006_v41  ;;  %v7133_v4 = vpop.f32.mrf.mxu0 }
 0x231   :  { %3451 = vst.msk [vmem:[#allocation2 + $0x384] sm:$0xf] %vm615_vm4, %v3369_v54  ;;  %16108 = vst [vmem:[#allocation19_spill] sm:$0xff] %v14380_v0  ;;  %v1546_v17 = vrot.slane %v1544_v21, 5  ;;  %v5202_v40 = vshll.u32 %v8829_v55, 16  ;;  %v5206_v25 = vshrl.u32 %v8829_v55, 16  ;;  %v1541_v47 = vor.u32 %v1540_v46, %v14362_v42  ;;  %v7320_v26 = vpop.f32.mrf.mxu1 }
 0x232   :  { %v5212_v22 = vshll.u32 %v8830_v38, 16  ;;  %v8356_v61 = vld [vmem:[%s16074_s0 + $0xd0] sm:$0xf]  ;;  %v1527_v41 = vrot.slane %v1525_v57, 4  ;;  %v1530_v54 = vrot.slane %v1528_v45, 5  ;;  %v5193_v0 = vshrl.u32 %v8828_v12, 16 }
 0x233   :  { %2012 = vst.msk [vmem:[#allocation2 + $0x278] sm:$0xf] %vm51_vm3, %v8356_v61  ;;  %v8355_v29 = vld [vmem:[%s16074_s0 + $0xcc] sm:$0xf]  ;;  %v16109_v55 = vrot.slane %v14305_v31, 5  ;;  %v4623_v38 = vrot.slane %v14347_v49, 5  ;;  %v16110_v45 = vsel %vm9562_vm2, %v14200_v20, %v14057_v14  ;;  %v3834_v61 = vpop.permute.xlu1 %3833  ;;  %v5157_v14 = vsel %vm9562_vm2, %v14308_v48, %v14168_v7 }
 0x234   :  { %3450 = vst.msk [vmem:[#allocation2 + $0x370] sm:$0xf] %vm615_vm4, %v3367_v24  ;;  %v8754_v46 = vrot.slane %v14353_v34, 9  ;;  %v5196_v57 = vshll.u32 %v8828_v12, 16  ;;  %5304 = vrot.lane.b32.xlu0 %v16110_v45, %s9509_s11  ;;  %v5746_v24 = vld [vmem:[#allocation2 + $0x224] sm:$0xff]  ;;  %v14408_v4 = vrot.slane %v5175_v2, 4  ;;  %v14418_v34 = vpop.f32.mrf.mxu0 }
 0x235   :  { %v4622_v21 = vrot.slane %v16109_v55, 4  ;;  %2011 = vst.msk [vmem:[#allocation2 + $0x264] sm:$0xf] %vm51_vm3, %v8355_v29  ;;  %v1542_v26 = vrot.slane %v1541_v47, 4  ;;  %v1531_v55 = vor.u32 %v1530_v54, %v1527_v41  ;;  %v14410_v19 = vrot.slane %v5202_v40, 5  ;;  %16111 = vst [vmem:[#allocation20_spill] sm:$0xff] %v14418_v34  ;;  %v3832_v47 = vpop.permute.xlu0 %3831 }
 0x236   :  { %v14415_v49 = vld [vmem:[%s16074_s0 + $0x190] sm:$0xf]  ;;  %3916 = vst.msk [vmem:[#allocation2 + $0x388] sm:$0xf] %vm615_vm4, %v3834_v61  ;;  %v14430_v2 = vrot.slane %v5206_v25, 4  ;;  %v14432_v12 = vrot.slane %v5212_v22, 5  ;;  %v7136_v29 = vpop.f32.mrf.mxu0 }
 0x237   :  { %v14437_v40 = vld [vmem:[%s16074_s0 + $0x194] sm:$0x1]  ;;  %v8646_v50 = vld [vmem:[%s16074_s0 + $0xe8] sm:$0xf]  ;;  %v1547_v41 = vsel %vm9562_vm2, %v1542_v26, %v1546_v17  ;;  %v1532_v54 = vrot.slane %v1531_v55, 4  ;;  %v14444_v25 = vrot.slane %v5193_v0, 4 }
 0x238   :  { %v5743_v7 = vld [vmem:[#allocation2 + $0x210] sm:$0xff]  ;;  %v14446_v22 = vrot.slane %v5196_v57, 5  ;;  %3915 = vst.msk [vmem:[#allocation2 + $0x374] sm:$0xf] %vm615_vm4, %v3832_v47  ;;  %v16112_v61 = vrot.slane %v14305_v31, 5  ;;  %v16080_v10 = vrot.slane %v14415_v49, 5  ;;  %4683 = vrot.lane.b32.xlu0 %v14260_v13, %s9509_s11  ;;  %v1879_v31 = vpop.permute.xlu1 %1878 }
 0x239   :  { %v9401_v48 = vld [vmem:[#allocation2 + $0x214] ss:$20 sps:$4 sm:$0xff]   ;;  %v8968_v45 = vcombine.low %v5743_v7, %v5746_v24  ;;  %1611 = vst.msk [vmem:[#allocation2 + $0x274] sm:$0xf] %vm51_vm3, %v1547_v41  ;;  %v8647_v0 = vld [vmem:[%s16074_s0 + $0xec] sm:$0x1]  ;;  %v1537_v24 = vsel %vm9562_vm2, %v1532_v54, %v14362_v42  ;;  %v14480_v7 = vpop.f32.mrf.mxu1  ;;  %v16114_v42 = vsel %vm9562_vm2, %v14295_v44, %v14297_v59  ;;  %v1877_v59 = vpop.permute.xlu0 %1876 }
 0x23a   :  { %v14453_v20 = vsel %vm10157_vm7, %v8754_v46, %v16112_v61  ;;  %v3993_v17 = vshll.u32 %v8646_v50, 16  ;;  %v8645_v57 = vld [vmem:[%s16074_s0 + $0xe4] sm:$0xf]  ;;  %7466 = vmatprep.mubr.bf16.mxu1 %v9401_v48  ;;  %v14467_v46 = vsel %vm10157_vm7, %v4622_v21, %v4623_v38  ;;  %v3997_v55 = vshrl.u32 %v8646_v50, 16  ;;  %v8832_v47 = vld [vmem:[%s16074_s0 + $0x19c] sm:$0xf]  ;;  %5310 = vrot.lane.b32.xlu1 %v16114_v42, %s9509_s11 }
 0x23b   :  { %v8833_v13 = vld [vmem:[%s16074_s0 + $0x1a0] sm:$0x1]  ;;  %1945 = vst.msk [vmem:[#allocation2 + $0x24c] sm:$0xf] %vm615_vm4, %v1879_v31  ;;  %16113 = vst [vmem:[#allocation21_spill] sm:$0xff] %v14480_v7  ;;  %7467 = vmatmul.mubr.bf16.gmra.mxu1 %v8968_v45  ;;  %v5209_v38 = vor.u32 %v14430_v2, %v14410_v19  ;;  %v4003_v41 = vshll.u32 %v8647_v0, 16  ;;  %v5199_v54 = vor.u32 %v14446_v22, %v14444_v25 }
 0x23c   :  { %1610 = vst.msk [vmem:[#allocation2 + $0x260] sm:$0xf] %vm51_vm3, %v1537_v24  ;;  %v14498_v50 = vld [vmem:[%s16074_s0 + $0x18c] sm:$0xe]  ;;  %v14500_v48 = vrot.slane %v3993_v17, 5  ;;  %v3999_v29 = vrot.slane %v3997_v55, 4  ;;  %v7325_v17 = vpop.f32.mrf.mxu1  ;;  %5308 = vrot.lane.b32.xlu0 %v5157_v14, %s9509_s11  ;;  %v2504_v22 = vpop.permute.xlu1 %2503 }
 0x23d   :  { %v14505_v44 = vld [vmem:[%s16074_s0 + $0x198] sm:$0xf]  ;;  %v3984_v45 = vshrl.u32 %v8645_v57, 16  ;;  %v3987_v2 = vshll.u32 %v8645_v57, 16  ;;  %v8758_v61 = vld [vmem:[%s16074_s0 + $0xf4] sm:$0xf] }
 0x23e   :  { %1944 = vst.msk [vmem:[#allocation2 + $0x238] sm:$0xf] %vm615_vm4, %v1877_v59  ;;  %v4629_v0 = vrot.slane %v16080_v10, 4  ;;  %v5226_v31 = vshll.u32 %v8832_v47, 16  ;;  %v5230_v24 = vshrl.u32 %v8832_v47, 16  ;;  %v5236_v42 = vshll.u32 %v8833_v13, 16  ;;  %v14528_v13 = vpop.f32.mrf.mxu0  ;;  %4689 = vrot.lane.b32.xlu1 %v14358_v58, %s9509_s11 }
 0x23f   :  { %4801 = vst.msk [vmem:[#allocation2 + $0x2a0] sm:$0xf] %vm51_vm3, %v8758_v61  ;;  %v8757_v25 = vld [vmem:[%s16074_s0 + $0xf0] sm:$0xf]  ;;  %v5799_v57 = vld [vmem:[#allocation2 + $0x384] sm:$0xff]  ;;  %v4000_v55 = vor.u32 %v3999_v29, %v14500_v48  ;;  %v4005_v59 = vrot.slane %v4003_v41, 5  ;;  %v14530_v61 = vpop.f32.mrf.mxu1 }
 0x240   :  { %v3986_v17 = vrot.slane %v3984_v45, 4  ;;  %v3989_v21 = vrot.slane %v3987_v2, 5  ;;  %4800 = vst.msk [vmem:[#allocation2 + $0x28c] sm:$0xf] %vm51_vm3, %v8757_v25  ;;  %v14525_v47 = vld [vmem:[%s16074_s0 + $0x19c] sm:$0xf]  ;;  %v2502_v25 = vpop.permute.xlu0 %2501  ;;  %v7141_v41 = vpop.f32.mrf.mxu0  ;;  %4687 = vrot.lane.b32.xlu0 %v14326_v11, %s9509_s11 }
 0x241   :  { %2570 = vst.msk [vmem:[#allocation2 + $0x250] sm:$0xf] %vm615_vm4, %v2504_v22  ;;  %16115 = vst [vmem:[#allocation22_spill] sm:$0xff] %v14530_v61  ;;  %v14534_v14 = vrot.slane %v5209_v38, 4  ;;  %v5217_v29 = vshrl.u32 %v14505_v44, 16  ;;  %v5220_v45 = vshll.u32 %v14505_v44, 16  ;;  %v7328_v7 = vpop.f32.mrf.mxu1 }
 0x242   :  { %v14542_v2 = vld [vmem:[%s16074_s0 + $0x1a0] sm:$0x1]  ;;  %v5796_v22 = vld [vmem:[#allocation2 + $0x370] sm:$0xff]  ;;  %v14544_v26 = vrot.slane %v5199_v54, 4  ;;  %v4001_v61 = vrot.slane %v4000_v55, 4  ;;  %v3990_v58 = vor.u32 %v3989_v21, %v3986_v17  ;;  %v16081_v38 = vrot.slane %v14525_v47, 5  ;;  %v3373_v21 = vpop.permute.xlu1 %3372  ;;  %v14577_v11 = vpop.f32.mrf.mxu0 }
 0x243   :  { %v9403_v10 = vld [vmem:[#allocation2 + $0x374] ss:$20 sps:$4 sm:$0xff]   ;;  %2569 = vst.msk [vmem:[#allocation2 + $0x23c] sm:$0xf] %vm615_vm4, %v2502_v25  ;;  %v9011_v27 = vcombine.low %v5796_v22, %v5799_v57  ;;  %v14548_v44 = vrot.slane %v5226_v31, 5  ;;  %v14550_v39 = vrot.slane %v5230_v24, 4  ;;  %v5215_v25 = vsel %vm9562_vm2, %v14534_v14, %v14432_v12 }
 0x244   :  { %v14552_v3 = vrot.slane %v5236_v42, 5  ;;  %v8405_v54 = vld [vmem:[%s16074_s0 + $0x18] sm:$0xe]  ;;  %7249 = vmatprep.mubr.bf16.mxu0 %v9403_v10  ;;  %v16116_v55 = vrot.slane %v14437_v40, 5  ;;  %v4006_v31 = vsel %vm9562_vm2, %v4001_v61, %v4005_v59  ;;  %v3991_v24 = vrot.slane %v3990_v58, 4  ;;  %v7144_v12 = vpop.f32.mrf.mxu0 }
 0x245   :  { %v14571_v57 = vld [vmem:[%s16074_s0 + $0x198] sm:$0xe]  ;;  %v8406_v10 = vld [vmem:[%s16074_s0 + $0x1c] sm:$0xf]  ;;  %3453 = vst.msk [vmem:[#allocation2 + $0x3ac] sm:$0xf] %vm615_vm4, %v3373_v21  ;;  %7250 = vmatmul.mubr.bf16.gmra.mxu0 %v9011_v27  ;;  %v16117_v40 = vsel %vm9562_vm2, %v14360_v35, %v14328_v6  ;;  %v3371_v27 = vpop.permute.xlu0 %3370 }
 0x246   :  { %v14563_v7 = vsel %vm10157_vm7, %v4629_v0, %v16116_v55  ;;  %5314 = vrot.lane.b32.xlu1 %v16117_v40, %s9509_s11  ;;  %4400 = vst.msk [vmem:[#allocation2 + $0x29c] sm:$0xf] %vm51_vm3, %v4006_v31  ;;  %v14586_v0 = vrot.slane %v5217_v29, 4  ;;  %v14588_v59 = vrot.slane %v5220_v45, 5  ;;  %v8407_v17 = vld [vmem:[%s16074_s0 + $0x20] sm:$0x1]  ;;  %v3996_v6 = vsel %vm9562_vm2, %v3991_v24, %v14500_v48  ;;  %v3838_v24 = vpop.permute.xlu1 %3837 }
 0x247   :  { %v8453_v61 = vrot.slane %v8405_v54, 9  ;;  %v2671_v41 = vrot.slane %v8406_v10, 5  ;;  %v14602_v35 = vrot.slane %v16081_v38, 4  ;;  %v2674_v29 = vrot.slane %v8407_v17, 5  ;;  %v8649_v45 = vld [vmem:[%s16074_s0 + $0xf4] sm:$0xf] }
 0x248   :  { %v8650_v22 = vld [vmem:[%s16074_s0 + $0xf8] sm:$0x1]  ;;  %3452 = vst.msk [vmem:[#allocation2 + $0x398] sm:$0xf] %vm615_vm4, %v3371_v27  ;;  %v8648_v21 = vld [vmem:[%s16074_s0 + $0xf0] sm:$0xf]  ;;  %v16118_v31 = vsel %vm9562_vm2, %v14408_v4, %v14274_v63  ;;  %v14633_v27 = vpop.f32.mrf.mxu1 }
 0x249   :  { %4399 = vst.msk [vmem:[#allocation2 + $0x288] sm:$0xf] %vm51_vm3, %v3996_v6  ;;  %v2672_v58 = vsel %vm10157_vm7, %v8453_v61, %v2671_v41  ;;  %v2673_v54 = vrot.slane %v2671_v41, 4  ;;  %v8408_v55 = vld [vmem:[%s16074_s0 + $0x24] sm:$0xe]  ;;  %5312 = vrot.lane.b32.xlu0 %v16118_v31, %s9509_s11  ;;  %v5752_v10 = vld [vmem:[#allocation2 + $0x24c] sm:$0xff]  ;;  %v5233_v6 = vor.u32 %v14550_v39, %v14548_v44 }
 0x24a   :  { %2813 = vst.msk [vmem:[#allocation2 + $0x10] sm:$0xf] %vm51_vm3, %v2672_v58  ;;  %v4017_v40 = vshll.u32 %v8649_v45, 16  ;;  %v4021_v17 = vshrl.u32 %v8649_v45, 16  ;;  %v4027_v61 = vshll.u32 %v8650_v22, 16  ;;  %v4008_v41 = vshrl.u32 %v8648_v21, 16  ;;  %4693 = vrot.lane.b32.xlu1 %v14467_v46, %s9509_s11  ;;  %v3836_v58 = vpop.permute.xlu0 %3835 }
 0x24b   :  { %3918 = vst.msk [vmem:[#allocation2 + $0x3b0] sm:$0xf] %vm615_vm4, %v3838_v24  ;;  %v2675_v63 = vsel %vm10157_vm7, %v2673_v54, %v2674_v29  ;;  %v4011_v4 = vshll.u32 %v8648_v21, 16  ;;  %v8409_v45 = vld [vmem:[%s16074_s0 + $0x28] sm:$0xf]  ;;  %v8454_v12 = vrot.slane %v8408_v55, 9  ;;  %v5223_v46 = vor.u32 %v14588_v59, %v14586_v0  ;;  %v7366_v21 = vpop.f32.mrf.mxu1  ;;  %v1883_v0 = vpop.permute.xlu1 %1882 }
 0x24c   :  { %v8410_v22 = vld [vmem:[%s16074_s0 + $0x2c] sm:$0x1]  ;;  %v5749_v31 = vld [vmem:[#allocation2 + $0x238] sm:$0xff]  ;;  %2814 = vst.msk [vmem:[#allocation2 + $0x24] sm:$0xf] %vm51_vm3, %v2675_v63  ;;  %v14650_v39 = vrot.slane %v4017_v40, 5 }
 0x24d   :  { %v9405_v24 = vld [vmem:[#allocation2 + $0x23c] ss:$20 sps:$4 sm:$0xff]   ;;  %v4023_v29 = vrot.slane %v4021_v17, 4  ;;  %v4029_v54 = vrot.slane %v4027_v61, 5  ;;  %3917 = vst.msk [vmem:[#allocation2 + $0x39c] sm:$0xf] %vm615_vm4, %v3836_v58  ;;  %v8973_v14 = vcombine.low %v5749_v31, %v5752_v10  ;;  %4691 = vrot.lane.b32.xlu0 %v14453_v20, %s9509_s11  ;;  %v14667_v63 = vpop.f32.mrf.mxu1 }
 0x24e   :  { %v4010_v38 = vrot.slane %v4008_v41, 4  ;;  %v4013_v42 = vrot.slane %v4011_v4, 5  ;;  %v2678_v55 = vrot.slane %v8409_v45, 5  ;;  %v8835_v48 = vld [vmem:[%s16074_s0 + $0x1a8] sm:$0xf]  ;;  %7474 = vmatprep.mubr.bf16.mxu1 %v9405_v24  ;;  %v2681_v40 = vrot.slane %v8410_v22, 5  ;;  %v14665_v41 = vpop.f32.mrf.mxu0  ;;  %5318 = vrot.lane.b32.xlu1 %v5215_v25, %s9509_s11  ;;  %v1881_v31 = vpop.permute.xlu0 %1880 }
 0x24f   :  { %v4024_v59 = vor.u32 %v4023_v29, %v14650_v39  ;;  %v14662_v10 = vld [vmem:[%s16074_s0 + $0x1ac] sm:$0x1]  ;;  %v5250_v17 = vshll.u32 %v8835_v48, 16  ;;  %v5254_v61 = vshrl.u32 %v8835_v48, 16  ;;  %1947 = vst.msk [vmem:[#allocation2 + $0x274] sm:$0xf] %vm615_vm4, %v1883_v0  ;;  %7475 = vmatmul.mubr.bf16.gmra.mxu1 %v8973_v14  ;;  %v16119_v0 = vsel %vm9562_vm2, %v14544_v26, %v14410_v19 }
 0x250   :  { %v14670_v20 = vrot.slane %v5233_v6, 4  ;;  %v4014_v4 = vor.u32 %v4013_v42, %v4010_v38  ;;  %v2679_v45 = vsel %vm10157_vm7, %v8454_v12, %v2678_v55  ;;  %v2680_v22 = vrot.slane %v2678_v55, 4  ;;  %v8834_v48 = vld [vmem:[%s16074_s0 + $0x1a4] sm:$0xf]  ;;  %v8760_v58 = vld [vmem:[%s16074_s0 + $0x100] sm:$0xf]  ;;  %v7149_v6 = vpop.f32.mrf.mxu0  ;;  %v7369_v12 = vpop.f32.mrf.mxu1 }
 0x251   :  { %v14680_v24 = vrot.slane %v5223_v46, 4  ;;  %v4025_v14 = vrot.slane %v4024_v59, 4  ;;  %2815 = vst.msk [vmem:[#allocation2 + $0x38] sm:$0xf] %vm51_vm3, %v2679_v45  ;;  %v14683_v25 = vrot.slane %v5250_v17, 5  ;;  %v14685_v38 = vrot.slane %v5254_v61, 4  ;;  %5316 = vrot.lane.b32.xlu0 %v16119_v0, %s9509_s11  ;;  %v2508_v59 = vpop.permute.xlu1 %2507 }
 0x252   :  { %4803 = vst.msk [vmem:[#allocation2 + $0x2c8] sm:$0xf] %vm51_vm3, %v8760_v58  ;;  %v8759_v42 = vld [vmem:[%s16074_s0 + $0xfc] sm:$0xf]  ;;  %v4015_v29 = vrot.slane %v4014_v4, 4  ;;  %v2682_v46 = vsel %vm10157_vm7, %v2680_v22, %v2681_v40  ;;  %v5260_v21 = vshll.u32 %v14662_v10, 16  ;;  %v14712_v19 = vpop.f32.mrf.mxu0  ;;  %4697 = vrot.lane.b32.xlu1 %v14563_v7, %s9509_s11 }
 0x253   :  { %1946 = vst.msk [vmem:[#allocation2 + $0x260] sm:$0xf] %vm615_vm4, %v1881_v31  ;;  %v5241_v55 = vshrl.u32 %v8834_v48, 16  ;;  %v5805_v17 = vld [vmem:[#allocation2 + $0x3ac] sm:$0xff]  ;;  %v4030_v61 = vsel %vm9562_vm2, %v4025_v14, %v4029_v54  ;;  %v5244_v40 = vshll.u32 %v8834_v48, 16  ;;  %v16120_v26 = vrot.slane %v14415_v49, 5  ;;  %v2506_v14 = vpop.permute.xlu0 %2505 }
 0x254   :  { %4802 = vst.msk [vmem:[#allocation2 + $0x2b4] sm:$0xf] %vm51_vm3, %v8759_v42  ;;  %2816 = vst.msk [vmem:[#allocation2 + $0x4c] sm:$0xf] %vm51_vm3, %v2682_v46  ;;  %v8411_v10 = vld [vmem:[%s16074_s0 + $0x30] sm:$0xe]  ;;  %v4020_v48 = vsel %vm9562_vm2, %v4015_v29, %v14650_v39  ;;  %v5239_v49 = vsel %vm9562_vm2, %v14670_v20, %v14552_v3  ;;  %v7152_v39 = vpop.f32.mrf.mxu0  ;;  %v5229_v46 = vsel %vm9562_vm2, %v14680_v24, %v14548_v44 }
 0x255   :  { %v8412_v4 = vld [vmem:[%s16074_s0 + $0x34] sm:$0xf]  ;;  %2572 = vst.msk [vmem:[#allocation2 + $0x278] sm:$0xf] %vm615_vm4, %v2508_v59  ;;  %v16121_v54 = vrot.slane %v14498_v50, 9  ;;  %v5243_v58 = vrot.slane %v5241_v55, 4  ;;  %v5257_v50 = vor.u32 %v14685_v38, %v14683_v25 }
 0x256   :  { %v9411_v22 = vld [vmem:[#allocation2 + $0x10] ss:$20 sps:$4 sm:$0xff]   ;;  %4402 = vst.msk [vmem:[#allocation2 + $0x2c4] sm:$0xf] %vm51_vm3, %v4030_v61  ;;  %v8455_v31 = vrot.slane %v8411_v10, 9  ;;  %v5802_v42 = vld [vmem:[#allocation2 + $0x398] sm:$0xff]  ;;  %5322 = vrot.lane.b32.xlu1 %v5239_v49, %s9509_s11 }
 0x257   :  { %v4628_v45 = vsel %vm10157_vm7, %v16121_v54, %v16120_v26  ;;  %v9407_v6 = vld [vmem:[#allocation2 + $0x39c] ss:$20 sps:$4 sm:$0xff]   ;;  %4401 = vst.msk [vmem:[#allocation2 + $0x2b0] sm:$0xf] %vm51_vm3, %v4020_v48  ;;  %v5246_v7 = vrot.slane %v5244_v40, 5  ;;  %v2685_v12 = vrot.slane %v8412_v4, 5  ;;  %v9016_v29 = vcombine.low %v5802_v42, %v5805_v17  ;;  %v14764_v40 = vpop.f32.mrf.mxu1  ;;  %v4640_v54 = vpop.permute.xlu0 %4639 }
 0x258   :  { %2571 = vst.msk [vmem:[#allocation2 + $0x264] sm:$0xf] %vm615_vm4, %v2506_v14  ;;  %v16122_v55 = vrot.slane %v14542_v2, 5  ;;  %v8413_v20 = vld [vmem:[%s16074_s0 + $0x38] sm:$0x1]  ;;  %4695 = vrot.lane.b32.xlu0 %v4628_v45, %s9509_s11  ;;  %7257 = vmatprep.mubr.bf16.mxu0 %v9407_v6  ;;  %v4642_v2 = vpop.permute.xlu1 %4641  ;;  %v14753_v44 = vrot.slane %v5260_v21, 5 }
 0x259   :  { %v8652_v38 = vld [vmem:[%s16074_s0 + $0x100] sm:$0xf]  ;;  %v8653_v0 = vld [vmem:[%s16074_s0 + $0x104] sm:$0x1]  ;;  %v5247_v24 = vor.u32 %v5246_v7, %v5243_v58  ;;  %v2687_v59 = vrot.slane %v2685_v12, 4  ;;  %7258 = vmatmul.mubr.bf16.gmra.mxu0 %v9016_v29  ;;  %v2688_v21 = vrot.slane %v8413_v20, 5  ;;  %v7374_v42 = vpop.f32.mrf.mxu1 }
 0x25a   :  { %v4638_v3 = vsel %vm10157_vm7, %v14602_v35, %v16122_v55  ;;  %v2686_v35 = vsel %vm10157_vm7, %v8455_v31, %v2685_v12  ;;  %v8651_v17 = vld [vmem:[%s16074_s0 + $0xfc] sm:$0xf]  ;;  %4736 = vst.msk [vmem:[#allocation2 + $0x29c] sm:$0xf] %vm615_vm4, %v4642_v2  ;;  %v4041_v10 = vshll.u32 %v8652_v38, 16  ;;  %v4045_v4 = vshrl.u32 %v8652_v38, 16  ;;  %9173 = vmatprep.mubr.msk.bf16.mxu0 %vm6944_vm8, %v9411_v22 }
 0x25b   :  { %v8414_v61 = vld [vmem:[%s16074_s0 + $0x3c] sm:$0xe]  ;;  %2817 = vst.msk [vmem:[#allocation2 + $0x60] sm:$0xf] %vm51_vm3, %v2686_v35  ;;  %v4051_v26 = vshll.u32 %v8653_v0, 16  ;;  %v14769_v45 = vrot.slane %v5257_v50, 4  ;;  %v2689_v49 = vsel %vm10157_vm7, %v2687_v59, %v2688_v21  ;;  %4701 = vrot.lane.b32.xlu1 %v4638_v3, %s9509_s11  ;;  %v5265_v21 = vpop.permute.xlu0 %5264 }
 0x25c   :  { %v14771_v48 = vrot.slane %v5247_v24, 4  ;;  %v4032_v58 = vshrl.u32 %v8651_v17, 16  ;;  %v4035_v31 = vshll.u32 %v8651_v17, 16  ;;  %v8415_v14 = vld [vmem:[%s16074_s0 + $0x40] sm:$0xf]  ;;  %v14779_v7 = vrot.slane %v4041_v10, 5  ;;  %5320 = vrot.lane.b32.xlu0 %v5229_v46, %s9509_s11  ;;  %v5267_v50 = vpop.permute.xlu1 %5266  ;;  %v14793_v46 = vpop.f32.mrf.mxu0 }
 0x25d   :  { %4735 = vst.msk [vmem:[#allocation2 + $0x288] sm:$0xf] %vm615_vm4, %v4640_v54  ;;  %v9412_v6 = vld [vmem:[#allocation2 + $0x38] ss:$20 sps:$4 sm:$0xff]   ;;  %v4047_v22 = vrot.slane %v4045_v4, 4  ;;  %v16123_v12 = vrot.slane %v14525_v47, 5  ;;  %v14795_v47 = vpop.f32.mrf.mxu1 }
 0x25e   :  { %v16124_v39 = vrot.slane %v14571_v57, 9  ;;  %v5758_v55 = vld [vmem:[#allocation2 + $0x274] sm:$0xff]  ;;  %2818 = vst.msk [vmem:[#allocation2 + $0x74] sm:$0xf] %vm51_vm3, %v2689_v49  ;;  %v4053_v20 = vrot.slane %v4051_v26, 5  ;;  %v4034_v38 = vrot.slane %v4032_v58, 4  ;;  %v5263_v26 = vsel %vm9562_vm2, %v14769_v45, %v14753_v44 }
 0x25f   :  { %v4037_v0 = vrot.slane %v4035_v31, 5  ;;  %v8416_v2 = vld [vmem:[%s16074_s0 + $0x44] sm:$0x1]  ;;  %5361 = vst.msk [vmem:[#allocation2 + $0x2a0] sm:$0xf] %vm615_vm4, %v5267_v50  ;;  %16125 = vst [vmem:[#allocation23_spill] sm:$0xff] %v14793_v46  ;;  %v4048_v57 = vor.u32 %v4047_v22, %v14779_v7  ;;  %v7377_v58 = vpop.f32.mrf.mxu1  ;;  %v5253_v50 = vsel %vm9562_vm2, %v14771_v48, %v14683_v25  ;;  %5326 = vrot.lane.b32.xlu1 %v5263_v26, %s9509_s11 }
 0x260   :  { %v4635_v29 = vsel %vm10157_vm7, %v16124_v39, %v16123_v12  ;;  %v8456_v24 = vrot.slane %v8414_v61, 9  ;;  %v2692_v35 = vrot.slane %v8415_v14, 5  ;;  %v2695_v59 = vrot.slane %v8416_v2, 5  ;;  %v8762_v17 = vld [vmem:[%s16074_s0 + $0x10c] sm:$0xf]  ;;  %v5755_v10 = vld [vmem:[#allocation2 + $0x260] sm:$0xff]  ;;  %v7157_v61 = vpop.f32.mrf.mxu0  ;;  %v4646_v22 = vpop.permute.xlu1 %4645 }
 0x261   :  { %v9409_v4 = vld [vmem:[#allocation2 + $0x264] ss:$20 sps:$4 sm:$0xff]   ;;  %v4038_v54 = vor.u32 %v4037_v0, %v4034_v38  ;;  %4805 = vst.msk [vmem:[#allocation2 + $0x2f0] sm:$0xf] %vm51_vm3, %v8762_v17  ;;  %v8761_v3 = vld [vmem:[%s16074_s0 + $0x108] sm:$0xf]  ;;  %v8978_v31 = vcombine.low %v5755_v10, %v5758_v55  ;;  %4699 = vrot.lane.b32.xlu0 %v4635_v29, %s9509_s11  ;;  %9174 = vmatmul.mubr.msk.bf16.vlgmr.msra.gmra.mxu0 %vm6944_vm8, %v9412_v6 }
 0x262   :  { %5360 = vst.msk [vmem:[#allocation2 + $0x28c] sm:$0xf] %vm615_vm4, %v5265_v21  ;;  %v4049_v14 = vrot.slane %v4048_v57, 4  ;;  %v2693_v42 = vsel %vm10157_vm7, %v8456_v24, %v2692_v35  ;;  %v2694_v49 = vrot.slane %v2692_v35, 4  ;;  %v8417_v44 = vld [vmem:[%s16074_s0 + $0x48] sm:$0xe]  ;;  %7482 = vmatprep.mubr.bf16.mxu1 %v9409_v4  ;;  %v14830_v38 = vpop.f32.mrf.mxu0  ;;  %v4644_v24 = vpop.permute.xlu0 %4643 }
 0x263   :  { %4804 = vst.msk [vmem:[#allocation2 + $0x2dc] sm:$0xf] %vm51_vm3, %v8761_v3  ;;  %v8418_v45 = vld [vmem:[%s16074_s0 + $0x4c] sm:$0xf]  ;;  %v4039_v12 = vrot.slane %v4038_v54, 4  ;;  %v8457_v55 = vrot.slane %v8417_v44, 9  ;;  %7483 = vmatmul.mubr.bf16.gmra.mxu1 %v8978_v31 }
 0x264   :  { %2819 = vst.msk [vmem:[#allocation2 + $0x88] sm:$0xf] %vm51_vm3, %v2693_v42  ;;  %v8419_v39 = vld [vmem:[%s16074_s0 + $0x50] sm:$0x1]  ;;  %16126 = vst [vmem:[#allocation24_spill] sm:$0xff] %v14830_v38  ;;  %v4054_v29 = vsel %vm9562_vm2, %v4049_v14, %v4053_v20  ;;  %v2696_v25 = vsel %vm10157_vm7, %v2694_v49, %v2695_v59  ;;  %v2699_v48 = vrot.slane %v8418_v45, 5  ;;  %v7160_v21 = vpop.f32.mrf.mxu0  ;;  %v5271_v54 = vpop.permute.xlu1 %5270 }
 0x265   :  { %4738 = vst.msk [vmem:[#allocation2 + $0x2c4] sm:$0xf] %vm615_vm4, %v4646_v22  ;;  %v2702_v0 = vrot.slane %v8419_v39, 5  ;;  %v8655_v2 = vld [vmem:[%s16074_s0 + $0x10c] sm:$0xf]  ;;  %v4044_v6 = vsel %vm9562_vm2, %v4039_v12, %v14779_v7  ;;  %5324 = vrot.lane.b32.xlu0 %v5253_v50, %s9509_s11  ;;  %v14861_v14 = vpop.f32.mrf.mxu1 }
 0x266   :  { %v8656_v57 = vld [vmem:[%s16074_s0 + $0x110] sm:$0x1]  ;;  %4404 = vst.msk [vmem:[#allocation2 + $0x2ec] sm:$0xf] %vm51_vm3, %v4054_v29  ;;  %2820 = vst.msk [vmem:[#allocation2 + $0x9c] sm:$0xf] %vm51_vm3, %v2696_v25  ;;  %v2700_v4 = vsel %vm10157_vm7, %v8457_v55, %v2699_v48  ;;  %v5269_v50 = vpop.permute.xlu0 %5268  ;;  %v14885_v21 = vpop.f32.mrf.mxu0 }
 0x267   :  { %v4065_v20 = vshll.u32 %v8655_v2, 16  ;;  %v4069_v35 = vshrl.u32 %v8655_v2, 16  ;;  %v4075_v59 = vshll.u32 %v8656_v57, 16  ;;  %v8654_v17 = vld [vmem:[%s16074_s0 + $0x108] sm:$0xf]  ;;  %v2701_v26 = vrot.slane %v2699_v48, 4  ;;  %v7382_v48 = vpop.f32.mrf.mxu1 }
 0x268   :  { %4737 = vst.msk [vmem:[#allocation2 + $0x2b0] sm:$0xf] %vm615_vm4, %v4644_v24  ;;  %v9415_v10 = vld [vmem:[#allocation2 + $0x60] ss:$20 sps:$4 sm:$0xff]   ;;  %v4056_v7 = vshrl.u32 %v8654_v17, 16  ;;  %v4059_v31 = vshll.u32 %v8654_v17, 16 }
 0x269   :  { %4403 = vst.msk [vmem:[#allocation2 + $0x2d8] sm:$0xf] %vm51_vm3, %v4044_v6  ;;  %v5764_v3 = vld [vmem:[#allocation2 + $0x29c] sm:$0xff]  ;;  %2821 = vst.msk [vmem:[#allocation2 + $0xb0] sm:$0xf] %vm51_vm3, %v2700_v4  ;;  %v14858_v61 = vrot.slane %v4065_v20, 5  ;;  %9177 = vmatprep.mubr.msk.bf16.mxu0 %vm6944_vm8, %v9415_v10  ;;  %v2703_v42 = vsel %vm10157_vm7, %v2701_v26, %v2702_v0  ;;  %v4650_v6 = vpop.permute.xlu1 %4649  ;;  %v14887_v10 = vpop.f32.mrf.mxu1 }
 0x26a   :  { %v4071_v58 = vrot.slane %v4069_v35, 4  ;;  %5363 = vst.msk [vmem:[#allocation2 + $0x2c8] sm:$0xf] %vm615_vm4, %v5271_v54  ;;  %v4077_v49 = vrot.slane %v4075_v59, 5  ;;  %v4058_v44 = vrot.slane %v4056_v7, 4  ;;  %v5761_v12 = vld [vmem:[#allocation2 + $0x288] sm:$0xff]  ;;  %v4648_v54 = vpop.permute.xlu0 %4647 }
 0x26b   :  { %v8420_v45 = vld [vmem:[%s16074_s0 + $0x54] sm:$0xe]  ;;  %v8421_v22 = vld [vmem:[%s16074_s0 + $0x58] sm:$0xf]  ;;  %v9413_v39 = vld [vmem:[#allocation2 + $0x28c] ss:$20 sps:$4 sm:$0xff]   ;;  %v8983_v0 = vcombine.low %v5761_v12, %v5764_v3 }
 0x26c   :  { %2822 = vst.msk [vmem:[#allocation2 + $0xc4] sm:$0xf] %vm51_vm3, %v2703_v42  ;;  %v4072_v55 = vor.u32 %v4071_v58, %v14858_v61  ;;  %v4061_v29 = vrot.slane %v4059_v31, 5  ;;  %v8422_v25 = vld [vmem:[%s16074_s0 + $0x5c] sm:$0x1]  ;;  %v8458_v2 = vrot.slane %v8420_v45, 9  ;;  %7490 = vmatprep.mubr.bf16.mxu1 %v9413_v39  ;;  %v7385_v45 = vpop.f32.mrf.mxu1 }
 0x26d   :  { %5362 = vst.msk [vmem:[#allocation2 + $0x2b4] sm:$0xf] %vm615_vm4, %v5269_v50  ;;  %v2706_v57 = vrot.slane %v8421_v22, 5  ;;  %v2709_v24 = vrot.slane %v8422_v25, 5  ;;  %v8764_v59 = vld [vmem:[%s16074_s0 + $0x118] sm:$0xf]  ;;  %7491 = vmatmul.mubr.bf16.gmra.mxu1 %v8983_v0  ;;  %v5275_v39 = vpop.permute.xlu1 %5274 }
 0x26e   :  { %v4073_v20 = vrot.slane %v4072_v55, 4  ;;  %v4062_v35 = vor.u32 %v4061_v29, %v4058_v44  ;;  %v8763_v17 = vld [vmem:[%s16074_s0 + $0x114] sm:$0xf]  ;;  %4740 = vst.msk [vmem:[#allocation2 + $0x2ec] sm:$0xf] %vm615_vm4, %v4650_v6  ;;  %16127 = vst [vmem:[#allocation25_spill] sm:$0xff] %v14885_v21  ;;  %v7165_v44 = vpop.f32.mrf.mxu0 }
 0x26f   :  { %v9416_v4 = vld [vmem:[#allocation2 + $0x88] ss:$20 sps:$4 sm:$0xff]   ;;  %v2707_v26 = vsel %vm10157_vm7, %v8458_v2, %v2706_v57  ;;  %v2708_v7 = vrot.slane %v2706_v57, 4  ;;  %4807 = vst.msk [vmem:[#allocation2 + $0x318] sm:$0xf] %vm51_vm3, %v8764_v59 }
 0x270   :  { %4806 = vst.msk [vmem:[#allocation2 + $0x304] sm:$0xf] %vm51_vm3, %v8763_v17  ;;  %v4078_v3 = vsel %vm9562_vm2, %v4073_v20, %v4077_v49  ;;  %v4063_v58 = vrot.slane %v4062_v35, 4  ;;  %2823 = vst.msk [vmem:[#allocation2 + $0xd8] sm:$0xf] %vm51_vm3, %v2707_v26  ;;  %9178 = vmatmul.mubr.msk.bf16.gmra.mxu0 %vm6944_vm8, %v9416_v4  ;;  %v14921_v2 = vpop.f32.mrf.mxu0  ;;  %v5273_v20 = vpop.permute.xlu0 %5272 }
 0x271   :  { %v8423_v31 = vld [vmem:[%s16074_s0 + $0x60] sm:$0xe]  ;;  %v8424_v42 = vld [vmem:[%s16074_s0 + $0x64] sm:$0xf]  ;;  %4739 = vst.msk [vmem:[#allocation2 + $0x2d8] sm:$0xf] %vm615_vm4, %v4648_v54  ;;  %v2710_v49 = vsel %vm10157_vm7, %v2708_v7, %v2709_v24 }
 0x272   :  { %4406 = vst.msk [vmem:[#allocation2 + $0x314] sm:$0xf] %vm51_vm3, %v4078_v3  ;;  %v8425_v22 = vld [vmem:[%s16074_s0 + $0x68] sm:$0x1]  ;;  %v8459_v50 = vrot.slane %v8423_v31, 9  ;;  %v2713_v12 = vrot.slane %v8424_v42, 5  ;;  %v4068_v29 = vsel %vm9562_vm2, %v4063_v58, %v14858_v61  ;;  %v7168_v26 = vpop.f32.mrf.mxu0  ;;  %v4654_v42 = vpop.permute.xlu1 %4653 }
 0x273   :  { %v5770_v55 = vld [vmem:[#allocation2 + $0x2c4] sm:$0xff]  ;;  %2824 = vst.msk [vmem:[#allocation2 + $0xec] sm:$0xf] %vm51_vm3, %v2710_v49  ;;  %v2716_v25 = vrot.slane %v8425_v22, 5  ;;  %v8658_v48 = vld [vmem:[%s16074_s0 + $0x118] sm:$0xf] }
 0x274   :  { %v8659_v0 = vld [vmem:[%s16074_s0 + $0x11c] sm:$0x1]  ;;  %5365 = vst.msk [vmem:[#allocation2 + $0x2f0] sm:$0xf] %vm615_vm4, %v5275_v39  ;;  %16128 = vst [vmem:[#allocation26_spill] sm:$0xff] %v14921_v2  ;;  %v2714_v61 = vsel %vm10157_vm7, %v8459_v50, %v2713_v12  ;;  %v2715_v24 = vrot.slane %v2713_v12, 4  ;;  %v14944_v12 = vpop.f32.mrf.mxu1 }
 0x275   :  { %v9419_v57 = vld [vmem:[#allocation2 + $0xb0] ss:$20 sps:$4 sm:$0xff]   ;;  %4405 = vst.msk [vmem:[#allocation2 + $0x300] sm:$0xf] %vm51_vm3, %v4068_v29  ;;  %v4089_v6 = vshll.u32 %v8658_v48, 16  ;;  %v4093_v17 = vshrl.u32 %v8658_v48, 16 }
 0x276   :  { %v5767_v35 = vld [vmem:[#allocation2 + $0x2b0] sm:$0xff]  ;;  %2825 = vst.msk [vmem:[#allocation2 + $0x100] sm:$0xf] %vm51_vm3, %v2714_v61  ;;  %v4099_v4 = vshll.u32 %v8659_v0, 16  ;;  %9181 = vmatprep.mubr.msk.bf16.mxu0 %vm6944_vm8, %v9419_v57  ;;  %v2717_v54 = vsel %vm10157_vm7, %v2715_v24, %v2716_v25  ;;  %v8426_v31 = vld [vmem:[%s16074_s0 + $0x6c] sm:$0xe]  ;;  %v4652_v25 = vpop.permute.xlu0 %4651 }
 0x277   :  { %v9417_v59 = vld [vmem:[#allocation2 + $0x2b4] ss:$20 sps:$4 sm:$0xff]   ;;  %5364 = vst.msk [vmem:[#allocation2 + $0x2dc] sm:$0xf] %vm615_vm4, %v5273_v20  ;;  %v8988_v7 = vcombine.low %v5767_v35, %v5770_v55  ;;  %v14931_v3 = vrot.slane %v4089_v6, 5  ;;  %v4095_v44 = vrot.slane %v4093_v17, 4  ;;  %v7390_v20 = vpop.f32.mrf.mxu1 }
 0x278   :  { %v8657_v58 = vld [vmem:[%s16074_s0 + $0x114] sm:$0xf]  ;;  %7498 = vmatprep.mubr.bf16.mxu1 %v9417_v59  ;;  %2826 = vst.msk [vmem:[#allocation2 + $0x114] sm:$0xf] %vm51_vm3, %v2717_v54  ;;  %v4101_v45 = vrot.slane %v4099_v4, 5  ;;  %v8460_v55 = vrot.slane %v8426_v31, 9  ;;  %v5279_v4 = vpop.permute.xlu1 %5278 }
 0x279   :  { %v4080_v49 = vshrl.u32 %v8657_v58, 16  ;;  %v4083_v22 = vshll.u32 %v8657_v58, 16  ;;  %v8427_v50 = vld [vmem:[%s16074_s0 + $0x70] sm:$0xf]  ;;  %4742 = vst.msk [vmem:[#allocation2 + $0x314] sm:$0xf] %vm615_vm4, %v4654_v42  ;;  %7499 = vmatmul.mubr.bf16.gmra.mxu1 %v8988_v7  ;;  %v4096_v48 = vor.u32 %v4095_v44, %v14931_v3  ;;  %v14970_v42 = vpop.f32.mrf.mxu0  ;;  %v14972_v44 = vpop.f32.mrf.mxu1 }
 0x27a   :  { %v8428_v39 = vld [vmem:[%s16074_s0 + $0x74] sm:$0x1]  ;;  %v2720_v29 = vrot.slane %v8427_v50, 5  ;;  %v8766_v61 = vld [vmem:[%s16074_s0 + $0x124] sm:$0xf]  ;;  %16129 = vst [vmem:[#allocation27_spill] sm:$0xff] %v14970_v42 }
 0x27b   :  { %v4082_v0 = vrot.slane %v4080_v49, 4  ;;  %v4085_v57 = vrot.slane %v4083_v22, 5  ;;  %v8765_v24 = vld [vmem:[%s16074_s0 + $0x120] sm:$0xf]  ;;  %4741 = vst.msk [vmem:[#allocation2 + $0x300] sm:$0xf] %vm615_vm4, %v4652_v25 }
 0x27c   :  { %v9420_v6 = vld [vmem:[#allocation2 + $0xd8] ss:$20 sps:$4 sm:$0xff]   ;;  %v2721_v35 = vsel %vm10157_vm7, %v8460_v55, %v2720_v29  ;;  %v2722_v59 = vrot.slane %v2720_v29, 4  ;;  %v2723_v17 = vrot.slane %v8428_v39, 5  ;;  %4809 = vst.msk [vmem:[#allocation2 + $0x340] sm:$0xf] %vm51_vm3, %v8766_v61  ;;  %v5277_v55 = vpop.permute.xlu0 %5276  ;;  %v7173_v61 = vpop.f32.mrf.mxu0 }
 0x27d   :  { %4808 = vst.msk [vmem:[#allocation2 + $0x32c] sm:$0xf] %vm51_vm3, %v8765_v24  ;;  %v5776_v26 = vld [vmem:[#allocation2 + $0x2ec] sm:$0xff]  ;;  %v4097_v7 = vrot.slane %v4096_v48, 4  ;;  %v4086_v54 = vor.u32 %v4085_v57, %v4082_v0  ;;  %2827 = vst.msk [vmem:[#allocation2 + $0x128] sm:$0xf] %vm51_vm3, %v2721_v35  ;;  %9182 = vmatmul.mubr.msk.bf16.gmra.mxu0 %vm6944_vm8, %v9420_v6  ;;  %v7393_v24 = vpop.f32.mrf.mxu1 }
 0x27e   :  { %v8429_v58 = vld [vmem:[%s16074_s0 + $0x78] sm:$0xe]  ;;  %v8430_v31 = vld [vmem:[%s16074_s0 + $0x7c] sm:$0xf]  ;;  %5367 = vst.msk [vmem:[#allocation2 + $0x318] sm:$0xf] %vm615_vm4, %v5279_v4  ;;  %v2724_v49 = vsel %vm10157_vm7, %v2722_v59, %v2723_v17  ;;  %v4658_v17 = vpop.permute.xlu1 %4657 }
 0x27f   :  { %v8431_v22 = vld [vmem:[%s16074_s0 + $0x80] sm:$0x1]  ;;  %v8461_v50 = vrot.slane %v8429_v58, 9  ;;  %v2727_v39 = vrot.slane %v8430_v31, 5  ;;  %v5773_v29 = vld [vmem:[#allocation2 + $0x2d8] sm:$0xff]  ;;  %v4102_v48 = vsel %vm9562_vm2, %v4097_v7, %v4101_v45  ;;  %v4087_v0 = vrot.slane %v4086_v54, 4 }
 0x280   :  { %v9421_v25 = vld [vmem:[#allocation2 + $0x2dc] ss:$20 sps:$4 sm:$0xff]   ;;  %2828 = vst.msk [vmem:[#allocation2 + $0x13c] sm:$0xf] %vm51_vm3, %v2724_v49  ;;  %v2730_v57 = vrot.slane %v8431_v22, 5  ;;  %v8993_v20 = vcombine.low %v5773_v29, %v5776_v26 }
 0x281   :  { %5366 = vst.msk [vmem:[#allocation2 + $0x304] sm:$0xf] %vm615_vm4, %v5277_v55  ;;  %v9423_v6 = vld [vmem:[#allocation2 + $0x100] ss:$20 sps:$4 sm:$0xff]   ;;  %v2728_v35 = vsel %vm10157_vm7, %v8461_v50, %v2727_v39  ;;  %v2729_v59 = vrot.slane %v2727_v39, 4  ;;  %7506 = vmatprep.mubr.bf16.mxu1 %v9421_v25  ;;  %v4092_v45 = vsel %vm9562_vm2, %v4087_v0, %v14931_v3  ;;  %v15002_v3 = vpop.f32.mrf.mxu0  ;;  %v4656_v50 = vpop.permute.xlu0 %4655 }
 0x282   :  { %4408 = vst.msk [vmem:[#allocation2 + $0x33c] sm:$0xf] %vm51_vm3, %v4102_v48  ;;  %2829 = vst.msk [vmem:[#allocation2 + $0x150] sm:$0xf] %vm51_vm3, %v2728_v35  ;;  %v8661_v4 = vld [vmem:[%s16074_s0 + $0x124] sm:$0xf]  ;;  %9185 = vmatprep.mubr.msk.bf16.mxu0 %vm6944_vm8, %v9423_v6  ;;  %7507 = vmatmul.mubr.bf16.gmra.mxu1 %v8993_v20  ;;  %v5283_v6 = vpop.permute.xlu1 %5282 }
 0x283   :  { %v8662_v26 = vld [vmem:[%s16074_s0 + $0x128] sm:$0x1]  ;;  %v8660_v7 = vld [vmem:[%s16074_s0 + $0x120] sm:$0xf]  ;;  %4744 = vst.msk [vmem:[#allocation2 + $0x33c] sm:$0xf] %vm615_vm4, %v4658_v17  ;;  %v2731_v54 = vsel %vm10157_vm7, %v2729_v59, %v2730_v57  ;;  %v7176_v48 = vpop.f32.mrf.mxu0 }
 0x284   :  { %4407 = vst.msk [vmem:[#allocation2 + $0x328] sm:$0xf] %vm51_vm3, %v4092_v45  ;;  %16130 = vst [vmem:[#allocation28_spill] sm:$0xff] %v15002_v3  ;;  %v4113_v58 = vshll.u32 %v8661_v4, 16  ;;  %v4117_v31 = vshrl.u32 %v8661_v4, 16  ;;  %v4123_v49 = vshll.u32 %v8662_v26, 16  ;;  %v15018_v26 = vpop.f32.mrf.mxu1 }
 0x285   :  { %v8432_v22 = vld [vmem:[%s16074_s0 + $0x84] sm:$0xe]  ;;  %2830 = vst.msk [vmem:[#allocation2 + $0x164] sm:$0xf] %vm51_vm3, %v2731_v54  ;;  %v4104_v39 = vshrl.u32 %v8660_v7, 16  ;;  %v4107_v55 = vshll.u32 %v8660_v7, 16 }
 0x286   :  { %v8433_v29 = vld [vmem:[%s16074_s0 + $0x88] sm:$0xf]  ;;  %v8434_v25 = vld [vmem:[%s16074_s0 + $0x8c] sm:$0x1]  ;;  %4743 = vst.msk [vmem:[#allocation2 + $0x328] sm:$0xf] %vm615_vm4, %v4656_v50 }
 0x287   :  { %v4115_v0 = vrot.slane %v4113_v58, 5  ;;  %v4119_v57 = vrot.slane %v4117_v31, 4  ;;  %v4125_v61 = vrot.slane %v4123_v49, 5  ;;  %v8462_v24 = vrot.slane %v8432_v22, 9  ;;  %v5782_v20 = vld [vmem:[#allocation2 + $0x314] sm:$0xff]  ;;  %v5281_v58 = vpop.permute.xlu0 %5280 }
 0x288   :  { %v4106_v35 = vrot.slane %v4104_v39, 4  ;;  %v4109_v59 = vrot.slane %v4107_v55, 5  ;;  %v2734_v17 = vrot.slane %v8433_v29, 5  ;;  %v2737_v45 = vrot.slane %v8434_v25, 5  ;;  %v9424_v4 = vld [vmem:[#allocation2 + $0x128] ss:$20 sps:$4 sm:$0xff]   ;;  %v7398_v29 = vpop.f32.mrf.mxu1 }
 0x289   :  { %5369 = vst.msk [vmem:[#allocation2 + $0x340] sm:$0xf] %vm615_vm4, %v5283_v6  ;;  %v4120_v7 = vor.u32 %v4119_v57, %v4115_v0  ;;  %v8768_v54 = vld [vmem:[%s16074_s0 + $0x130] sm:$0xf]  ;;  %v5779_v31 = vld [vmem:[#allocation2 + $0x300] sm:$0xff]  ;;  %9186 = vmatmul.mubr.msk.bf16.gmra.mxu0 %vm6944_vm8, %v9424_v4  ;;  %v4662_v6 = vpop.permute.xlu1 %4661 }
 0x28a   :  { %v9425_v49 = vld [vmem:[#allocation2 + $0x304] ss:$20 sps:$4 sm:$0xff]   ;;  %v4110_v22 = vor.u32 %v4109_v59, %v4106_v35  ;;  %v2735_v50 = vsel %vm10157_vm7, %v8462_v24, %v2734_v17  ;;  %v2736_v39 = vrot.slane %v2734_v17, 4  ;;  %4811 = vst.msk [vmem:[#allocation2 + $0x368] sm:$0xf] %vm51_vm3, %v8768_v54  ;;  %v8998_v48 = vcombine.low %v5779_v31, %v5782_v20  ;;  %v15051_v31 = vpop.f32.mrf.mxu1 }
 0x28b   :  { %v8767_v55 = vld [vmem:[%s16074_s0 + $0x12c] sm:$0xf]  ;;  %5368 = vst.msk [vmem:[#allocation2 + $0x32c] sm:$0xf] %vm615_vm4, %v5281_v58  ;;  %v4121_v25 = vrot.slane %v4120_v7, 4  ;;  %v7908_v24 = vld [vmem:[%s16076_s2] sm:$0xff]  ;;  %7514 = vmatprep.mubr.bf16.mxu1 %v9425_v49  ;;  %v15049_v58 = vpop.f32.mrf.mxu0 }
 0x28c   :  { %2831 = vst.msk [vmem:[#allocation2 + $0x178] sm:$0xf] %vm51_vm3, %v2735_v50  ;;  %4810 = vst.msk [vmem:[#allocation2 + $0x354] sm:$0xf] %vm51_vm3, %v8767_v55  ;;  %v8435_v57 = vld [vmem:[%s16074_s0 + $0x90] sm:$0xe]  ;;  %v2738_v59 = vsel %vm10157_vm7, %v2736_v39, %v2737_v45  ;;  %7982 = vperm.xlu0 %9274, %v7908_v24   ;;  %7515 = vmatmul.mubr.bf16.gmra.mxu1 %v8998_v48  ;;  %v4660_v50 = vpop.permute.xlu0 %4659  ;;  %v7401_v29 = vpop.f32.mrf.mxu1 }
 0x28d   :  { %v4111_v35 = vrot.slane %v4110_v22, 4  ;;  %v8436_v20 = vld [vmem:[%s16074_s0 + $0x94] sm:$0xf]  ;;  %v8437_v17 = vld [vmem:[%s16074_s0 + $0x98] sm:$0x1]  ;;  %v8463_v4 = vrot.slane %v8435_v57, 9  ;;  %v4126_v54 = vsel %vm9562_vm2, %v4121_v25, %v4125_v61 }
 0x28e   :  { %v9427_v7 = vld [vmem:[#allocation2 + $0x150] ss:$20 sps:$4 sm:$0xff]   ;;  %16131 = vst [vmem:[#allocation29_spill] sm:$0xff] %v15049_v58  ;;  %2832 = vst.msk [vmem:[#allocation2 + $0x18c] sm:$0xf] %vm51_vm3, %v2738_v59  ;;  %v2741_v45 = vrot.slane %v8436_v20, 5 }
 0x28f   :  { %v2744_v49 = vrot.slane %v8437_v17, 5  ;;  %4410 = vst.msk [vmem:[#allocation2 + $0x364] sm:$0xf] %vm51_vm3, %v4126_v54  ;;  %v4116_v22 = vsel %vm9562_vm2, %v4111_v35, %v4115_v0  ;;  %v8664_v39 = vld [vmem:[%s16074_s0 + $0x130] sm:$0xf]  ;;  %9189 = vmatprep.mubr.msk.bf16.mxu0 %vm6944_vm8, %v9427_v7  ;;  %v7181_v0 = vpop.f32.mrf.mxu0 }
 0x290   :  { %v8665_v61 = vld [vmem:[%s16074_s0 + $0x134] sm:$0x1]  ;;  %v8663_v55 = vld [vmem:[%s16074_s0 + $0x12c] sm:$0xf]  ;;  %4746 = vst.msk [vmem:[#allocation2 + $0x364] sm:$0xf] %vm615_vm4, %v4662_v6  ;;  %v2742_v25 = vsel %vm10157_vm7, %v8463_v4, %v2741_v45  ;;  %v5287_v6 = vpop.permute.xlu1 %5286  ;;  %v5285_v0 = vpop.permute.xlu0 %5284 }
 0x291   :  { %4409 = vst.msk [vmem:[#allocation2 + $0x350] sm:$0xf] %vm51_vm3, %v4116_v22  ;;  %v2743_v48 = vrot.slane %v2741_v45, 4  ;;  %v4137_v57 = vshll.u32 %v8664_v39, 16  ;;  %v4141_v24 = vshrl.u32 %v8664_v39, 16  ;;  %v7910_v59 = vld [vmem:[%s16076_s2 + $0x10] sm:$0xff]  ;;  %v15083_v54 = vpop.f32.mrf.mxu0 }
 0x292   :  { %v8438_v35 = vld [vmem:[%s16074_s0 + $0x9c] sm:$0xe]  ;;  %4745 = vst.msk [vmem:[#allocation2 + $0x350] sm:$0xf] %vm615_vm4, %v4660_v50  ;;  %v4147_v20 = vshll.u32 %v8665_v61, 16  ;;  %v4128_v17 = vshrl.u32 %v8663_v55, 16  ;;  %7992 = vperm.xlu0 %9274, %v7910_v59  }
 0x293   :  { %2833 = vst.msk [vmem:[#allocation2 + $0x1a0] sm:$0xf] %vm51_vm3, %v2742_v25  ;;  %v4131_v7 = vshll.u32 %v8663_v55, 16  ;;  %v8439_v4 = vld [vmem:[%s16074_s0 + $0xa0] sm:$0xf]  ;;  %16132 = vst [vmem:[#allocation30_spill] sm:$0xff] %v15083_v54  ;;  %v2745_v45 = vsel %vm10157_vm7, %v2743_v48, %v2744_v49  ;;  %v7184_v49 = vpop.f32.mrf.mxu0 }
 0x294   :  { %5371 = vst.msk [vmem:[#allocation2 + $0x368] sm:$0xf] %vm615_vm4, %v5287_v6  ;;  %v15087_v22 = vrot.slane %v4137_v57, 5  ;;  %v4143_v50 = vrot.slane %v4141_v24, 4  ;;  %v8440_v39 = vld [vmem:[%s16074_s0 + $0xa4] sm:$0x1]  ;;  %v4666_v33 = vpop.permute.xlu1 %4665 }
 0x295   :  { %v8464_v61 = vrot.slane %v8438_v35, 9  ;;  %v7912_v55 = vld [vmem:[%s16077_s3] sm:$0xff]  ;;  %v9429_v29 = vld [vmem:[#allocation2 + $0x328] ss:$20 sps:$4 sm:$0xff]   ;;  %2834 = vst.msk [vmem:[#allocation2 + $0x1b4] sm:$0xf] %vm51_vm3, %v2745_v45 }
 0x296   :  { %v4149_v25 = vrot.slane %v4147_v20, 5  ;;  %5370 = vst.msk [vmem:[#allocation2 + $0x354] sm:$0xf] %vm615_vm4, %v5285_v0  ;;  %v9431_v48 = vld [vmem:[#allocation2 + $0x32c] ss:$20 sps:$4 sm:$0xff]   ;;  %v4144_v57 = vor.u32 %v4143_v50, %v15087_v22  ;;  %v4130_v24 = vrot.slane %v4128_v17, 4  ;;  %8010 = vperm.xlu0 %9274, %v7912_v55   ;;  %v15104_v50 = vpop.f32.mrf.mxu1  ;;  %v4664_v55 = vpop.permute.xlu0 %4663 }
 0x297   :  { %v4133_v59 = vrot.slane %v4131_v7, 5  ;;  %v2748_v6 = vrot.slane %v8439_v4, 5  ;;  %v7909_v35 = vld [vmem:[%s16076_s2 + $0x8] sm:$0xff]  ;;  %v2751_v37 = vrot.slane %v8440_v39, 5  ;;  %v7914_v20 = vld [vmem:[%s16077_s3 + $0x10] sm:$0xff]  ;;  %7522 = vmatprep.mubr.bf16.mxu1 %v9431_v48 }
 0x298   :  { %v9428_v62 = vld [vmem:[#allocation2 + $0x178] ss:$20 sps:$4 sm:$0xff]   ;;  %7987 = vperm.xlu1 %9275, %v7909_v35   ;;  %v4145_v45 = vrot.slane %v4144_v57, 4  ;;  %v8770_v4 = vld [vmem:[%s16074_s0 + $0x13c] sm:$0xf]  ;;  %7523 = vmatmul.mubr.bf16.gmra.mxu1 %v9429_v29  ;;  %v5291_v35 = vpop.permute.xlu1 %5290 }
 0x299   :  { %v4134_v0 = vor.u32 %v4133_v59, %v4130_v24  ;;  %v2749_v17 = vsel %vm10157_vm7, %v8464_v61, %v2748_v6  ;;  %v2750_v7 = vrot.slane %v2748_v6, 4  ;;  %v8769_v39 = vld [vmem:[%s16074_s0 + $0x138] sm:$0xf]  ;;  %9190 = vmatmul.mubr.msk.bf16.gmra.mxu0 %vm6944_vm8, %v9428_v62  ;;  %4813 = vst.msk [vmem:[#allocation2 + $0x390] sm:$0xf] %vm51_vm3, %v8770_v4  ;;  %v7406_v24 = vpop.f32.mrf.mxu1 }
 0x29a   :  { %2835 = vst.msk [vmem:[#allocation2 + $0x1c8] sm:$0xf] %vm51_vm3, %v2749_v17  ;;  %4812 = vst.msk [vmem:[#allocation2 + $0x37c] sm:$0xf] %vm51_vm3, %v8769_v39  ;;  %v8441_v61 = vld [vmem:[%s16074_s0 + $0xa8] sm:$0xe]  ;;  %v4150_v29 = vsel %vm9562_vm2, %v4145_v45, %v4149_v25  ;;  %8020 = vperm.xlu0 %9274, %v7914_v20  }
 0x29b   :  { %v8442_v49 = vld [vmem:[%s16074_s0 + $0xac] sm:$0xf]  ;;  %v8443_v62 = vld [vmem:[%s16074_s0 + $0xb0] sm:$0x1]  ;;  %v4135_v48 = vrot.slane %v4134_v0, 4  ;;  %v2752_v57 = vsel %vm10157_vm7, %v2750_v7, %v2751_v37  ;;  %v8465_v59 = vrot.slane %v8441_v61, 9  ;;  %v15144_v7 = vpop.f32.mrf.mxu0  ;;  %v15146_v39 = vpop.f32.mrf.mxu1 }
 0x29c   :  { %v8667_v6 = vld [vmem:[%s16074_s0 + $0x13c] sm:$0xf]  ;;  %4412 = vst.msk [vmem:[#allocation2 + $0x38c] sm:$0xf] %vm51_vm3, %v4150_v29  ;;  %2836 = vst.msk [vmem:[#allocation2 + $0x1dc] sm:$0xf] %vm51_vm3, %v2752_v57 }
 0x29d   :  { %v2755_v17 = vrot.slane %v8442_v49, 5  ;;  %v2758_v4 = vrot.slane %v8443_v62, 5  ;;  %v8668_v25 = vld [vmem:[%s16074_s0 + $0x140] sm:$0x1]  ;;  %v4161_v45 = vshll.u32 %v8667_v6, 16  ;;  %v4140_v0 = vsel %vm9562_vm2, %v4135_v48, %v15087_v22  ;;  %16133 = vst [vmem:[#allocation31_spill] sm:$0xff] %v15144_v7  ;;  %v5289_v62 = vpop.permute.xlu0 %5288  ;;  %v7189_v22 = vpop.f32.mrf.mxu0 }
 0x29e   :  { %v9432_v37 = vld [vmem:[#allocation2 + $0x1a0] ss:$20 sps:$4 sm:$0xff]   ;;  %4748 = vst.msk [vmem:[#allocation2 + $0x38c] sm:$0xf] %vm615_vm4, %v4666_v33  ;;  %5373 = vst.msk [vmem:[#allocation2 + $0x390] sm:$0xf] %vm615_vm4, %v5291_v35  ;;  %v7409_v48 = vpop.f32.mrf.mxu1 }
 0x29f   :  { %v4165_v61 = vshrl.u32 %v8667_v6, 16  ;;  %v4171_v49 = vshll.u32 %v8668_v25, 16  ;;  %4411 = vst.msk [vmem:[#allocation2 + $0x378] sm:$0xf] %vm51_vm3, %v4140_v0  ;;  %v9434_v29 = vld [vmem:[#allocation2 + $0x350] ss:$20 sps:$4 sm:$0xff]   ;;  %v2756_v33 = vsel %vm10157_vm7, %v8465_v59, %v2755_v17  ;;  %9193 = vmatprep.mubr.msk.bf16.mxu0 %vm6944_vm8, %v9432_v37 }
 0x2a0   :  { %v9436_v20 = vld [vmem:[#allocation2 + $0x354] ss:$20 sps:$4 sm:$0xff]   ;;  %v2757_v57 = vrot.slane %v2755_v17, 4  ;;  %4747 = vst.msk [vmem:[#allocation2 + $0x378] sm:$0xf] %vm615_vm4, %v4664_v55  ;;  %v15155_v24 = vrot.slane %v4161_v45, 5  ;;  %v4670_v17 = vpop.permute.xlu1 %4669 }
 0x2a1   :  { %5372 = vst.msk [vmem:[#allocation2 + $0x37c] sm:$0xf] %vm615_vm4, %v5289_v62  ;;  %v4167_v6 = vrot.slane %v4165_v61, 4  ;;  %v4173_v35 = vrot.slane %v4171_v49, 5  ;;  %v8666_v25 = vld [vmem:[%s16074_s0 + $0x138] sm:$0xf]  ;;  %7530 = vmatprep.mubr.bf16.mxu1 %v9436_v20  ;;  %v15173_v62 = vpop.f32.mrf.mxu0  ;;  %v4668_v48 = vpop.permute.xlu0 %4667 }
 0x2a2   :  { %2837 = vst.msk [vmem:[#allocation2 + $0x1f0] sm:$0xf] %vm51_vm3, %v2756_v33  ;;  %v7911_v59 = vld [vmem:[%s16076_s2 + $0x18] sm:$0xff]  ;;  %v2759_v55 = vsel %vm10157_vm7, %v2757_v57, %v2758_v4  ;;  %v4152_v37 = vshrl.u32 %v8666_v25, 16  ;;  %v4155_v0 = vshll.u32 %v8666_v25, 16  ;;  %16134 = vst [vmem:[#allocation32_spill] sm:$0xff] %v15173_v62  ;;  %7531 = vmatmul.mubr.bf16.gmra.mxu1 %v9434_v29 }
 0x2a3   :  { %v8444_v45 = vld [vmem:[%s16074_s0 + $0xb4] sm:$0xe]  ;;  %v8445_v61 = vld [vmem:[%s16074_s0 + $0xb8] sm:$0xf]  ;;  %7997 = vperm.xlu1 %9275, %v7911_v59   ;;  %2838 = vst.msk [vmem:[#allocation2 + $0x204] sm:$0xf] %vm51_vm3, %v2759_v55  ;;  %v4168_v49 = vor.u32 %v4167_v6, %v15155_v24 }
 0x2a4   :  { %v8446_v4 = vld [vmem:[%s16074_s0 + $0xbc] sm:$0x1]  ;;  %v8466_v20 = vrot.slane %v8444_v45, 9  ;;  %v2762_v33 = vrot.slane %v8445_v61, 5  ;;  %v4154_v57 = vrot.slane %v4152_v37, 4  ;;  %v4157_v22 = vrot.slane %v4155_v0, 5  ;;  %v7192_v61 = vpop.f32.mrf.mxu0  ;;  %v5295_v29 = vpop.permute.xlu1 %5294 }
 0x2a5   :  { %v2765_v25 = vrot.slane %v8446_v4, 5  ;;  %v8772_v59 = vld [vmem:[%s16074_s0 + $0x148] sm:$0xf]  ;;  %v4169_v18 = vrot.slane %v4168_v49, 4  ;;  %v8771_v0 = vld [vmem:[%s16074_s0 + $0x144] sm:$0xf] }
 0x2a6   :  { %v7913_v6 = vld [vmem:[%s16077_s3 + $0x8] sm:$0xff]  ;;  %v2763_v62 = vsel %vm10157_vm7, %v8466_v20, %v2762_v33  ;;  %v2764_v45 = vrot.slane %v2762_v33, 4  ;;  %4815 = vst.msk [vmem:[#allocation2 + $0x3b8] sm:$0xf] %vm51_vm3, %v8772_v59  ;;  %v4158_v37 = vor.u32 %v4157_v22, %v4154_v57  ;;  %v8447_v4 = vld [vmem:[%s16074_s0 + $0xc0] sm:$0xe] }
 0x2a7   :  { %v9433_v55 = vld [vmem:[#allocation2 + $0x1c8] ss:$20 sps:$4 sm:$0xff]   ;;  %2839 = vst.msk [vmem:[#allocation2 + $0x218] sm:$0xf] %vm51_vm3, %v2763_v62  ;;  %8015 = vperm.xlu1 %9275, %v7913_v6   ;;  %v4174_v49 = vsel %vm9562_vm2, %v4169_v18, %v4173_v35  ;;  %4814 = vst.msk [vmem:[#allocation2 + $0x3a4] sm:$0xf] %vm51_vm3, %v8771_v0  ;;  %v15201_v62 = vpop.f32.mrf.mxu1 }
 0x2a8   :  { %9194 = vmatmul.mubr.msk.bf16.gmra.mxu0 %vm6944_vm8, %v9433_v55  ;;  %v2766_v20 = vsel %vm10157_vm7, %v2764_v45, %v2765_v25  ;;  %5375 = vst.msk [vmem:[#allocation2 + $0x3b8] sm:$0xf] %vm615_vm4, %v5295_v29  ;;  %v8448_v33 = vld [vmem:[%s16074_s0 + $0xc4] sm:$0xf]  ;;  %v8449_v57 = vld [vmem:[%s16074_s0 + $0xc8] sm:$0x1]  ;;  %v5293_v25 = vpop.permute.xlu0 %5292 }
 0x2a9   :  { %v8467_v22 = vrot.slane %v8447_v4, 9  ;;  %v7915_v18 = vld [vmem:[%s16077_s3 + $0x18] sm:$0xff]  ;;  %4414 = vst.msk [vmem:[#allocation2 + $0x3b4] sm:$0xf] %vm51_vm3, %v4174_v49  ;;  %v4159_v35 = vrot.slane %v4158_v37, 4  ;;  %v7414_v6 = vpop.f32.mrf.mxu1  ;;  %v2769_v45 = vrot.slane %v8448_v33, 5 }
 0x2aa   :  { %2840 = vst.msk [vmem:[#allocation2 + $0x22c] sm:$0xf] %vm51_vm3, %v2766_v20  ;;  %v9439_v59 = vld [vmem:[#allocation2 + $0x378] ss:$20 sps:$4 sm:$0xff]   ;;  %v9441_v55 = vld [vmem:[#allocation2 + $0x37c] ss:$20 sps:$4 sm:$0xff]  }
 0x2ab   :  { %4750 = vst.msk [vmem:[#allocation2 + $0x3b4] sm:$0xf] %vm615_vm4, %v4670_v17  ;;  %5374 = vst.msk [vmem:[#allocation2 + $0x3a4] sm:$0xf] %vm615_vm4, %v5293_v25  ;;  %v2772_v61 = vrot.slane %v8449_v57, 5  ;;  %v4164_v37 = vsel %vm9562_vm2, %v4159_v35, %v15155_v24  ;;  %v15225_v17 = vpop.permute.xlu1 %4673  ;;  %8025 = vperm.xlu1 %9275, %v7915_v18   ;;  %7538 = vmatprep.mubr.bf16.mxu1 %v9441_v55  ;;  %v2770_v49 = vsel %vm10157_vm7, %v8467_v22, %v2769_v45  ;;  %v15233_v35 = vpop.f32.mrf.mxu0 }
 0x2ac   :  { %v8670_v29 = vld [vmem:[%s16074_s0 + $0x148] sm:$0xf]  ;;  %v9437_v0 = vld [vmem:[#allocation2 + $0x1f0] ss:$20 sps:$4 sm:$0xff]   ;;  %v8671_v4 = vld [vmem:[%s16074_s0 + $0x14c] sm:$0x1]  ;;  %v15235_v25 = vpop.f32.mrf.mxu1  ;;  %v4672_v55 = vpop.permute.xlu0 %4671  ;;  %7539 = vmatmul.mubr.bf16.gmra.mxu1 %v9439_v59 }
 0x2ad   :  { %4413 = vst.msk [vmem:[#allocation2 + $0x3a0] sm:$0xf] %vm51_vm3, %v4164_v37  ;;  %v2771_v20 = vrot.slane %v2769_v45, 4  ;;  %v4185_v33 = vshll.u32 %v8670_v29, 16  ;;  %v4189_v57 = vshrl.u32 %v8670_v29, 16  ;;  %16135 = vst [vmem:[#allocation33_spill] sm:$0xff] %v15233_v35  ;;  %9197 = vmatprep.mubr.msk.bf16.mxu0 %vm6944_vm8, %v9437_v0  ;;  %v7197_v0 = vpop.f32.mrf.mxu0 }
 0x2ae   :  { %v8669_v24 = vld [vmem:[%s16074_s0 + $0x144] sm:$0xf]  ;;  %4749 = vst.msk [vmem:[#allocation2 + $0x3a0] sm:$0xf] %vm615_vm4, %v4668_v48  ;;  %v4195_v18 = vshll.u32 %v8671_v4, 16 }
 0x2af   :  { %2841 = vst.msk [vmem:[#allocation2 + $0x240] sm:$0xf] %vm51_vm3, %v2770_v49  ;;  %v4176_v6 = vshrl.u32 %v8669_v24, 16  ;;  %v4179_v22 = vshll.u32 %v8669_v24, 16  ;;  %v8450_v45 = vld [vmem:[%s16074_s0 + $0xcc] sm:$0xe]  ;;  %v2773_v29 = vsel %vm10157_vm7, %v2771_v20, %v2772_v61  ;;  %v7417_v49 = vpop.f32.mrf.mxu1  ;;  %v5299_v58 = vpop.permute.xlu1 %5298 }
 0x2b0   :  { %v4187_v37 = vrot.slane %v4185_v33, 5  ;;  %v4191_v35 = vrot.slane %v4189_v57, 4  ;;  %v8451_v48 = vld [vmem:[%s16074_s0 + $0xd0] sm:$0xf]  ;;  %2842 = vst.msk [vmem:[#allocation2 + $0x254] sm:$0xf] %vm51_vm3, %v2773_v29  ;;  %v15252_v3 = vpop.f32.mrf.mxu0 }
 0x2b1   :  { %v4197_v4 = vrot.slane %v4195_v18, 5  ;;  %v4178_v24 = vrot.slane %v4176_v6, 4  ;;  %v4181_v59 = vrot.slane %v4179_v22, 5  ;;  %v8452_v7 = vld [vmem:[%s16074_s0 + $0xd4] sm:$0x1]  ;;  %v8468_v54 = vrot.slane %v8450_v45, 9  ;;  %v5297_v6 = vpop.permute.xlu0 %5296 }
 0x2b2   :  { %v9438_v61 = vld [vmem:[#allocation2 + $0x218] ss:$20 sps:$4 sm:$0xff]   ;;  %v4192_v20 = vor.u32 %v4191_v35, %v4187_v37  ;;  %v2776_v33 = vrot.slane %v8451_v48, 5  ;;  %v2779_v57 = vrot.slane %v8452_v7, 5  ;;  %16136 = vst [vmem:[#allocation34_spill] sm:$0xff] %v15252_v3  ;;  %v7200_v7 = vpop.f32.mrf.mxu0 }
 0x2b3   :  { %v4182_v42 = vor.u32 %v4181_v59, %v4178_v24  ;;  %v8774_v29 = vld [vmem:[%s16074_s0 + $0x154] sm:$0xf]  ;;  %v8773_v18 = vld [vmem:[%s16074_s0 + $0x150] sm:$0xf]  ;;  %9198 = vmatmul.mubr.msk.bf16.gmra.mxu0 %vm6944_vm8, %v9438_v61  ;;  %v15277_v61 = vpop.permute.xlu1 %4677  ;;  %v8776_v2 = vld [vmem:[%s16074_s0 + $0x160] sm:$0xf] }
 0x2b4   :  { %v4193_v22 = vrot.slane %v4192_v20, 4  ;;  %v2777_v35 = vsel %vm10157_vm7, %v8468_v54, %v2776_v33  ;;  %v2778_v45 = vrot.slane %v2776_v33, 4  ;;  %4817 = vst.msk [vmem:[#allocation2 + $0x3e0] sm:$0xf] %vm51_vm3, %v8774_v29  ;;  %4816 = vst.msk [vmem:[#allocation2 + $0x3cc] sm:$0xf] %vm51_vm3, %v8773_v18  ;;  %v15283_v18 = vpop.f32.mrf.mxu1 }
 0x2b5   :  { %v8837_v48 = vld [vmem:[%s16074_s0 + $0xf0] sm:$0xe]  ;;  %v8838_v0 = vld [vmem:[%s16074_s0 + $0xf4] sm:$0xf]  ;;  %v4183_v49 = vrot.slane %v4182_v42, 4  ;;  %16137 = vst [vmem:[#allocation35_spill] sm:$0xff] %v15283_v18 }
 0x2b6   :  { %2843 = vst.msk [vmem:[#allocation2 + $0x268] sm:$0xf] %vm51_vm3, %v2777_v35  ;;  %v8839_v54 = vld [vmem:[%s16074_s0 + $0xf8] sm:$0x1]  ;;  %v8885_v24 = vrot.slane %v8837_v48, 9  ;;  %v5490_v59 = vrot.slane %v8838_v0, 5  ;;  %v4198_v20 = vsel %vm9562_vm2, %v4193_v22, %v4197_v4  ;;  %v2780_v42 = vsel %vm10157_vm7, %v2778_v45, %v2779_v57  ;;  %v15294_v57 = vpop.permute.xlu0 %4675  ;;  %v7422_v45 = vpop.f32.mrf.mxu1 }
 0x2b7   :  { %5377 = vst.msk [vmem:[#allocation2 + $0x3e0] sm:$0xf] %vm615_vm4, %v5299_v58  ;;  %5376 = vst.msk [vmem:[#allocation2 + $0x3cc] sm:$0xf] %vm615_vm4, %v5297_v6  ;;  %v9444_v33 = vld [vmem:[#allocation2 + $0x3a0] ss:$20 sps:$4 sm:$0xff]   ;;  %v4188_v58 = vsel %vm9562_vm2, %v4183_v49, %v4187_v37 }
 0x2b8   :  { %v5493_v29 = vrot.slane %v8839_v54, 5  ;;  %4416 = vst.msk [vmem:[#allocation2 + $0x3dc] sm:$0xf] %vm51_vm3, %v4198_v20  ;;  %2844 = vst.msk [vmem:[#allocation2 + $0x27c] sm:$0xf] %vm51_vm3, %v2780_v42  ;;  %v5491_v35 = vsel %vm10157_vm7, %v8885_v24, %v5490_v59  ;;  %v5492_v7 = vrot.slane %v5490_v59, 4  ;;  %v5303_v24 = vpop.permute.xlu1 %5302 }
 0x2b9   :  { %v9446_v6 = vld [vmem:[#allocation2 + $0x3a4] ss:$20 sps:$4 sm:$0xff]   ;;  %v8673_v4 = vld [vmem:[%s16074_s0 + $0x154] sm:$0xf]  ;;  %4752 = vst.msk [vmem:[#allocation2 + $0x3dc] sm:$0xf] %vm615_vm4, %v15225_v17 }
 0x2ba   :  { %v9442_v22 = vld [vmem:[#allocation2 + $0x240] ss:$20 sps:$4 sm:$0xff]   ;;  %4415 = vst.msk [vmem:[#allocation2 + $0x3c8] sm:$0xf] %vm51_vm3, %v4188_v58  ;;  %5632 = vst.msk [vmem:[#allocation2 + $0x290] sm:$0xf] %vm51_vm3, %v5491_v35  ;;  %7546 = vmatprep.mubr.bf16.mxu1 %v9446_v6  ;;  %v5494_v48 = vsel %vm10157_vm7, %v5492_v7, %v5493_v29  ;;  %v15317_v29 = vpop.f32.mrf.mxu1 }
 0x2bb   :  { %v8674_v37 = vld [vmem:[%s16074_s0 + $0x158] sm:$0x1]  ;;  %4751 = vst.msk [vmem:[#allocation2 + $0x3c8] sm:$0xf] %vm615_vm4, %v4672_v55  ;;  %v4209_v0 = vshll.u32 %v8673_v4, 16  ;;  %v4213_v49 = vshrl.u32 %v8673_v4, 16  ;;  %9201 = vmatprep.mubr.msk.bf16.mxu0 %vm6944_vm8, %v9442_v22  ;;  %7547 = vmatmul.mubr.bf16.gmra.mxu1 %v9444_v33  ;;  %v5301_v22 = vpop.permute.xlu0 %5300 }
 0x2bc   :  { %v4219_v54 = vshll.u32 %v8674_v37, 16  ;;  %v8672_v17 = vld [vmem:[%s16074_s0 + $0x150] sm:$0xf]  ;;  %5633 = vst.msk [vmem:[#allocation2 + $0x2a4] sm:$0xf] %vm51_vm3, %v5494_v48  ;;  %16138 = vst [vmem:[#allocation36_spill] sm:$0xff] %v15317_v29 }
 0x2bd   :  { %v4200_v59 = vshrl.u32 %v8672_v17, 16  ;;  %v4203_v20 = vshll.u32 %v8672_v17, 16  ;;  %v8840_v55 = vld [vmem:[%s16074_s0 + $0xfc] sm:$0xe]  ;;  %v8841_v42 = vld [vmem:[%s16074_s0 + $0x100] sm:$0xf]  ;;  %v7425_v17 = vpop.f32.mrf.mxu1 }
 0x2be   :  { %v4211_v58 = vrot.slane %v4209_v0, 5  ;;  %v4215_v6 = vrot.slane %v4213_v49, 4  ;;  %v4221_v35 = vrot.slane %v4219_v54, 5  ;;  %v8842_v7 = vld [vmem:[%s16074_s0 + $0x104] sm:$0x1]  ;;  %v8886_v4 = vrot.slane %v8840_v55, 9  ;;  %v15331_v54 = vpop.permute.xlu1 %4681 }
 0x2bf   :  { %v4202_v33 = vrot.slane %v4200_v59, 4  ;;  %v4205_v37 = vrot.slane %v4203_v20, 5  ;;  %v5497_v45 = vrot.slane %v8841_v42, 5  ;;  %v5500_v48 = vrot.slane %v8842_v7, 5  ;;  %v8775_v0 = vld [vmem:[%s16074_s0 + $0x15c] sm:$0xf]  ;;  %v15337_v7 = vpop.f32.mrf.mxu0 }
 0x2c0   :  { %v4216_v3 = vor.u32 %v4215_v6, %v4211_v58  ;;  %v8843_v49 = vld [vmem:[%s16074_s0 + $0x108] sm:$0xe]  ;;  %4819 = vst.msk [vmem:[#allocation2 + $0x408] sm:$0xf] %vm51_vm3, %v8776_v2  ;;  %4818 = vst.msk [vmem:[#allocation2 + $0x3f4] sm:$0xf] %vm51_vm3, %v8775_v0 }
 0x2c1   :  { %v9443_v59 = vld [vmem:[#allocation2 + $0x268] ss:$20 sps:$4 sm:$0xff]   ;;  %v4206_v20 = vor.u32 %v4205_v37, %v4202_v33  ;;  %v5498_v55 = vsel %vm10157_vm7, %v8886_v4, %v5497_v45  ;;  %v5499_v42 = vrot.slane %v5497_v45, 4  ;;  %v8887_v6 = vrot.slane %v8843_v49, 9  ;;  %16139 = vst [vmem:[#allocation37_spill] sm:$0xff] %v15337_v7  ;;  %v15345_v4 = vpop.permute.xlu0 %4679  ;;  %v7205_v0 = vpop.f32.mrf.mxu0 }
 0x2c2   :  { %v4217_v17 = vrot.slane %v4216_v3, 4  ;;  %5634 = vst.msk [vmem:[#allocation2 + $0x2b8] sm:$0xf] %vm51_vm3, %v5498_v55  ;;  %v8844_v33 = vld [vmem:[%s16074_s0 + $0x10c] sm:$0xf]  ;;  %9202 = vmatmul.mubr.msk.bf16.gmra.mxu0 %vm6944_vm8, %v9443_v59  ;;  %v5307_v55 = vpop.permute.xlu1 %5306 }
 0x2c3   :  { %5379 = vst.msk [vmem:[#allocation2 + $0x408] sm:$0xf] %vm615_vm4, %v5303_v24  ;;  %5378 = vst.msk [vmem:[#allocation2 + $0x3f4] sm:$0xf] %vm615_vm4, %v5301_v22  ;;  %v4207_v2 = vrot.slane %v4206_v20, 4  ;;  %v5501_v37 = vsel %vm10157_vm7, %v5499_v42, %v5500_v48  ;;  %v5504_v48 = vrot.slane %v8844_v33, 5 }
 0x2c4   :  { %v9449_v45 = vld [vmem:[#allocation2 + $0x3c8] ss:$20 sps:$4 sm:$0xff]   ;;  %v9451_v3 = vld [vmem:[#allocation2 + $0x3cc] ss:$20 sps:$4 sm:$0xff]   ;;  %v9447_v49 = vld [vmem:[#allocation2 + $0x290] ss:$20 sps:$4 sm:$0xff]   ;;  %v4222_v24 = vsel %vm9562_vm2, %v4217_v17, %v4221_v35  ;;  %v15365_v17 = vpop.f32.mrf.mxu0 }
 0x2c5   :  { %5635 = vst.msk [vmem:[#allocation2 + $0x2cc] sm:$0xf] %vm51_vm3, %v5501_v37  ;;  %v8845_v22 = vld [vmem:[%s16074_s0 + $0x110] sm:$0x1]  ;;  %4418 = vst.msk [vmem:[#allocation2 + $0x404] sm:$0xf] %vm51_vm3, %v4222_v24  ;;  %v4212_v59 = vsel %vm9562_vm2, %v4207_v2, %v4211_v58  ;;  %7554 = vmatprep.mubr.bf16.mxu1 %v9451_v3  ;;  %9205 = vmatprep.mubr.msk.bf16.mxu0 %vm6944_vm8, %v9447_v49  ;;  %v5305_v3 = vpop.permute.xlu0 %5304  ;;  %v5505_v0 = vsel %vm10157_vm7, %v8887_v6, %v5504_v48 }
 0x2c6   :  { %v5507_v20 = vrot.slane %v8845_v22, 5  ;;  %v8676_v42 = vld [vmem:[%s16074_s0 + $0x160] sm:$0xf]  ;;  %v8677_v35 = vld [vmem:[%s16074_s0 + $0x164] sm:$0x1]  ;;  %16140 = vst [vmem:[#allocation38_spill] sm:$0xff] %v15365_v17  ;;  %7555 = vmatmul.mubr.bf16.gmra.mxu1 %v9449_v45  ;;  %v15385_v7 = vpop.permute.xlu1 %4685 }
 0x2c7   :  { %4754 = vst.msk [vmem:[#allocation2 + $0x404] sm:$0xf] %vm615_vm4, %v15277_v61  ;;  %v4233_v58 = vshll.u32 %v8676_v42, 16  ;;  %v4237_v33 = vshrl.u32 %v8676_v42, 16  ;;  %v4243_v2 = vshll.u32 %v8677_v35, 16  ;;  %v5506_v49 = vrot.slane %v5504_v48, 4 }
 0x2c8   :  { %4417 = vst.msk [vmem:[#allocation2 + $0x3f0] sm:$0xf] %vm51_vm3, %v4212_v59  ;;  %v8675_v37 = vld [vmem:[%s16074_s0 + $0x15c] sm:$0xf]  ;;  %v8846_v22 = vld [vmem:[%s16074_s0 + $0x114] sm:$0xe]  ;;  %v7208_v59 = vpop.f32.mrf.mxu0 }
 0x2c9   :  { %4753 = vst.msk [vmem:[#allocation2 + $0x3f0] sm:$0xf] %vm615_vm4, %v15294_v57  ;;  %v4224_v24 = vshrl.u32 %v8675_v37, 16  ;;  %v4227_v61 = vshll.u32 %v8675_v37, 16  ;;  %v4235_v42 = vrot.slane %v4233_v58, 5  ;;  %v4239_v35 = vrot.slane %v4237_v33, 4 }
 0x2ca   :  { %5636 = vst.msk [vmem:[#allocation2 + $0x2e0] sm:$0xf] %vm51_vm3, %v5505_v0  ;;  %v4245_v45 = vrot.slane %v4243_v2, 5  ;;  %v8847_v57 = vld [vmem:[%s16074_s0 + $0x118] sm:$0xf]  ;;  %v8888_v17 = vrot.slane %v8846_v22, 9  ;;  %v5508_v6 = vsel %vm10157_vm7, %v5506_v49, %v5507_v20  ;;  %v15392_v0 = vpop.f32.mrf.mxu1  ;;  %v15401_v49 = vpop.permute.xlu0 %4683 }
 0x2cb   :  { %v4226_v48 = vrot.slane %v4224_v24, 4  ;;  %v4229_v37 = vrot.slane %v4227_v61, 5  ;;  %v8848_v59 = vld [vmem:[%s16074_s0 + $0x11c] sm:$0x1]  ;;  %5637 = vst.msk [vmem:[#allocation2 + $0x2f4] sm:$0xf] %vm51_vm3, %v5508_v6  ;;  %v4240_v58 = vor.u32 %v4239_v35, %v4235_v42  ;;  %v5311_v29 = vpop.permute.xlu1 %5310 }
 0x2cc   :  { %v5511_v33 = vrot.slane %v8847_v57, 5  ;;  %v5514_v2 = vrot.slane %v8848_v59, 5  ;;  %v8778_v22 = vld [vmem:[%s16074_s0 + $0x16c] sm:$0xf]  ;;  %v8777_v20 = vld [vmem:[%s16074_s0 + $0x168] sm:$0xf]  ;;  %v7430_v57 = vpop.f32.mrf.mxu1 }
 0x2cd   :  { %v9448_v24 = vld [vmem:[#allocation2 + $0x2b8] ss:$20 sps:$4 sm:$0xff]   ;;  %v4230_v61 = vor.u32 %v4229_v37, %v4226_v48  ;;  %4821 = vst.msk [vmem:[#allocation2 + $0x430] sm:$0xf] %vm51_vm3, %v8778_v22  ;;  %4820 = vst.msk [vmem:[#allocation2 + $0x41c] sm:$0xf] %vm51_vm3, %v8777_v20 }
 0x2ce   :  { %v8849_v35 = vld [vmem:[%s16074_s0 + $0x120] sm:$0xe]  ;;  %v4241_v6 = vrot.slane %v4240_v58, 4  ;;  %v5512_v59 = vsel %vm10157_vm7, %v8888_v17, %v5511_v33  ;;  %v5513_v21 = vrot.slane %v5511_v33, 4  ;;  %5381 = vst.msk [vmem:[#allocation2 + $0x430] sm:$0xf] %vm615_vm4, %v5307_v55  ;;  %9206 = vmatmul.mubr.msk.bf16.gmra.mxu0 %vm6944_vm8, %v9448_v24  ;;  %v15420_v20 = vpop.f32.mrf.mxu1 }
 0x2cf   :  { %5380 = vst.msk [vmem:[#allocation2 + $0x41c] sm:$0xf] %vm615_vm4, %v5305_v3  ;;  %v8850_v48 = vld [vmem:[%s16074_s0 + $0x124] sm:$0xf]  ;;  %v8851_v37 = vld [vmem:[%s16074_s0 + $0x128] sm:$0x1] }
 0x2d0   :  { %v4231_v22 = vrot.slane %v4230_v61, 4  ;;  %5638 = vst.msk [vmem:[#allocation2 + $0x308] sm:$0xf] %vm51_vm3, %v5512_v59  ;;  %v8889_v58 = vrot.slane %v8849_v35, 9  ;;  %v5518_v17 = vrot.slane %v8850_v48, 5  ;;  %v5521_v33 = vrot.slane %v8851_v37, 5 }
 0x2d1   :  { %v4246_v55 = vsel %vm9562_vm2, %v4241_v6, %v4245_v45  ;;  %v5515_v3 = vsel %vm10157_vm7, %v5513_v21, %v5514_v2  ;;  %v9454_v57 = vld [vmem:[#allocation2 + $0x3f0] ss:$20 sps:$4 sm:$0xff]   ;;  %v9456_v38 = vld [vmem:[#allocation2 + $0x3f4] ss:$20 sps:$4 sm:$0xff]   ;;  %v8679_v45 = vld [vmem:[%s16074_s0 + $0x16c] sm:$0xf]  ;;  %v5309_v6 = vpop.permute.xlu0 %5308  ;;  %v7433_v21 = vpop.f32.mrf.mxu1 }
 0x2d2   :  { %4420 = vst.msk [vmem:[#allocation2 + $0x42c] sm:$0xf] %vm51_vm3, %v4246_v55  ;;  %v4236_v24 = vsel %vm9562_vm2, %v4231_v22, %v4235_v42  ;;  %5639 = vst.msk [vmem:[#allocation2 + $0x31c] sm:$0xf] %vm51_vm3, %v5515_v3  ;;  %v5519_v61 = vsel %vm10157_vm7, %v8889_v58, %v5518_v17  ;;  %v5520_v35 = vrot.slane %v5518_v17, 4  ;;  %7562 = vmatprep.mubr.bf16.mxu1 %v9456_v38  ;;  %v4257_v2 = vshll.u32 %v8679_v45, 16  ;;  %v15449_v58 = vpop.f32.mrf.mxu0 }
 0x2d3   :  { %4756 = vst.msk [vmem:[#allocation2 + $0x42c] sm:$0xf] %vm615_vm4, %v15331_v54  ;;  %v8680_v42 = vld [vmem:[%s16074_s0 + $0x170] sm:$0x1]  ;;  %v4261_v59 = vshrl.u32 %v8679_v45, 16  ;;  %7563 = vmatmul.mubr.bf16.gmra.mxu1 %v9454_v57  ;;  %16141 = vst [vmem:[#allocation39_spill] sm:$0xff] %v15449_v58 }
 0x2d4   :  { %4419 = vst.msk [vmem:[#allocation2 + $0x418] sm:$0xf] %vm51_vm3, %v4236_v24  ;;  %5640 = vst.msk [vmem:[#allocation2 + $0x330] sm:$0xf] %vm51_vm3, %v5519_v61  ;;  %v8678_v48 = vld [vmem:[%s16074_s0 + $0x168] sm:$0xf]  ;;  %v5522_v54 = vsel %vm10157_vm7, %v5520_v35, %v5521_v33  ;;  %v7213_v35 = vpop.f32.mrf.mxu0 }
 0x2d5   :  { %v9452_v37 = vld [vmem:[#allocation2 + $0x2e0] ss:$20 sps:$4 sm:$0xff]   ;;  %4755 = vst.msk [vmem:[#allocation2 + $0x418] sm:$0xf] %vm615_vm4, %v15345_v4  ;;  %v4267_v38 = vshll.u32 %v8680_v42, 16  ;;  %v4248_v22 = vshrl.u32 %v8678_v48, 16 }
 0x2d6   :  { %5641 = vst.msk [vmem:[#allocation2 + $0x344] sm:$0xf] %vm51_vm3, %v5522_v54  ;;  %v4259_v17 = vrot.slane %v4257_v2, 5  ;;  %v4263_v55 = vrot.slane %v4261_v59, 4  ;;  %v4251_v3 = vshll.u32 %v8678_v48, 16  ;;  %9209 = vmatprep.mubr.msk.bf16.mxu0 %vm6944_vm8, %v9452_v37  ;;  %v15462_v59 = vpop.permute.xlu1 %4689 }
 0x2d7   :  { %v8852_v24 = vld [vmem:[%s16074_s0 + $0x12c] sm:$0xe]  ;;  %v4269_v4 = vrot.slane %v4267_v38, 5  ;;  %v4250_v61 = vrot.slane %v4248_v22, 4  ;;  %v8853_v33 = vld [vmem:[%s16074_s0 + $0x130] sm:$0xf]  ;;  %v15470_v38 = vpop.permute.xlu0 %4687  ;;  %v15472_v22 = vpop.f32.mrf.mxu0 }
 0x2d8   :  { %v8854_v57 = vld [vmem:[%s16074_s0 + $0x134] sm:$0x1]  ;;  %v4264_v45 = vor.u32 %v4263_v55, %v4259_v17  ;;  %v4253_v21 = vrot.slane %v4251_v3, 5  ;;  %v8890_v42 = vrot.slane %v8852_v24, 9  ;;  %v5525_v2 = vrot.slane %v8853_v33, 5  ;;  %16142 = vst [vmem:[#allocation40_spill] sm:$0xff] %v15472_v22 }
 0x2d9   :  { %v5528_v48 = vrot.slane %v8854_v57, 5  ;;  %v8780_v37 = vld [vmem:[%s16074_s0 + $0x178] sm:$0xf]  ;;  %v8779_v54 = vld [vmem:[%s16074_s0 + $0x174] sm:$0xf] }
 0x2da   :  { %v9453_v35 = vld [vmem:[#allocation2 + $0x308] ss:$20 sps:$4 sm:$0xff]   ;;  %v4265_v55 = vrot.slane %v4264_v45, 4  ;;  %v4254_v3 = vor.u32 %v4253_v21, %v4250_v61  ;;  %v5526_v24 = vsel %vm10157_vm7, %v8890_v42, %v5525_v2  ;;  %v5527_v33 = vrot.slane %v5525_v2, 4  ;;  %4823 = vst.msk [vmem:[#allocation2 + $0x458] sm:$0xf] %vm51_vm3, %v8780_v37  ;;  %v7216_v45 = vpop.f32.mrf.mxu0 }
 0x2db   :  { %4822 = vst.msk [vmem:[#allocation2 + $0x444] sm:$0xf] %vm51_vm3, %v8779_v54  ;;  %5642 = vst.msk [vmem:[#allocation2 + $0x358] sm:$0xf] %vm51_vm3, %v5526_v24  ;;  %v8855_v57 = vld [vmem:[%s16074_s0 + $0x138] sm:$0xe]  ;;  %9210 = vmatmul.mubr.msk.bf16.gmra.mxu0 %vm6944_vm8, %v9453_v35  ;;  %v5315_v24 = vpop.permute.xlu1 %5314 }
 0x2dc   :  { %5383 = vst.msk [vmem:[#allocation2 + $0x458] sm:$0xf] %vm615_vm4, %v5311_v29  ;;  %5382 = vst.msk [vmem:[#allocation2 + $0x444] sm:$0xf] %vm615_vm4, %v5309_v6  ;;  %v4270_v61 = vsel %vm9562_vm2, %v4265_v55, %v4269_v4  ;;  %v4255_v21 = vrot.slane %v4254_v3, 4  ;;  %v5529_v42 = vsel %vm10157_vm7, %v5527_v33, %v5528_v48  ;;  %v15494_v6 = vpop.f32.mrf.mxu1  ;;  %v8891_v35 = vrot.slane %v8855_v57, 9 }
 0x2dd   :  { %v9459_v2 = vld [vmem:[#allocation2 + $0x418] ss:$20 sps:$4 sm:$0xff]   ;;  %v9461_v37 = vld [vmem:[#allocation2 + $0x41c] ss:$20 sps:$4 sm:$0xff]   ;;  %4422 = vst.msk [vmem:[#allocation2 + $0x454] sm:$0xf] %vm51_vm3, %v4270_v61  ;;  %v5313_v61 = vpop.permute.xlu0 %5312 }
 0x2de   :  { %v9457_v54 = vld [vmem:[#allocation2 + $0x330] ss:$20 sps:$4 sm:$0xff]   ;;  %5643 = vst.msk [vmem:[#allocation2 + $0x36c] sm:$0xf] %vm51_vm3, %v5529_v42  ;;  %v8856_v29 = vld [vmem:[%s16074_s0 + $0x13c] sm:$0xf]  ;;  %v4260_v4 = vsel %vm9562_vm2, %v4255_v21, %v4259_v17  ;;  %7570 = vmatprep.mubr.bf16.mxu1 %v9461_v37  ;;  %v7438_v57 = vpop.f32.mrf.mxu1 }
 0x2df   :  { %4758 = vst.msk [vmem:[#allocation2 + $0x454] sm:$0xf] %vm615_vm4, %v15385_v7  ;;  %v8857_v48 = vld [vmem:[%s16074_s0 + $0x140] sm:$0x1]  ;;  %v5532_v55 = vrot.slane %v8856_v29, 5  ;;  %9213 = vmatprep.mubr.msk.bf16.mxu0 %vm6944_vm8, %v9457_v54  ;;  %7571 = vmatmul.mubr.bf16.gmra.mxu1 %v9459_v2 }
 0x2e0   :  { %v8682_v3 = vld [vmem:[%s16074_s0 + $0x178] sm:$0xf]  ;;  %4421 = vst.msk [vmem:[#allocation2 + $0x440] sm:$0xf] %vm51_vm3, %v4260_v4  ;;  %v5535_v7 = vrot.slane %v8857_v48, 5 }
 0x2e1   :  { %v8683_v17 = vld [vmem:[%s16074_s0 + $0x17c] sm:$0x1]  ;;  %v4281_v33 = vshll.u32 %v8682_v3, 16  ;;  %v4285_v45 = vshrl.u32 %v8682_v3, 16  ;;  %4757 = vst.msk [vmem:[#allocation2 + $0x440] sm:$0xf] %vm615_vm4, %v15401_v49  ;;  %v5533_v21 = vsel %vm10157_vm7, %v8891_v35, %v5532_v55  ;;  %v15525_v35 = vpop.f32.mrf.mxu1 }
 0x2e2   :  { %v5534_v42 = vrot.slane %v5532_v55, 4  ;;  %v4291_v37 = vshll.u32 %v8683_v17, 16  ;;  %v8681_v54 = vld [vmem:[%s16074_s0 + $0x174] sm:$0xf]  ;;  %v8858_v29 = vld [vmem:[%s16074_s0 + $0x144] sm:$0xe] }
 0x2e3   :  { %5644 = vst.msk [vmem:[#allocation2 + $0x380] sm:$0xf] %vm51_vm3, %v5533_v21  ;;  %v4283_v2 = vrot.slane %v4281_v33, 5  ;;  %v4287_v4 = vrot.slane %v4285_v45, 4  ;;  %v4272_v48 = vshrl.u32 %v8681_v54, 16  ;;  %v4275_v3 = vshll.u32 %v8681_v54, 16  ;;  %v7441_v34 = vpop.f32.mrf.mxu1 }
 0x2e4   :  { %v8859_v49 = vld [vmem:[%s16074_s0 + $0x148] sm:$0xf]  ;;  %v5536_v55 = vsel %vm10157_vm7, %v5534_v42, %v5535_v7  ;;  %v4293_v17 = vrot.slane %v4291_v37, 5  ;;  %v8860_v57 = vld [vmem:[%s16074_s0 + $0x14c] sm:$0x1]  ;;  %v8892_v22 = vrot.slane %v8858_v29, 9  ;;  %v15537_v7 = vpop.permute.xlu1 %4693  ;;  %v15547_v34 = vpop.f32.mrf.mxu0 }
 0x2e5   :  { %5645 = vst.msk [vmem:[#allocation2 + $0x394] sm:$0xf] %vm51_vm3, %v5536_v55  ;;  %v4288_v33 = vor.u32 %v4287_v4, %v4283_v2  ;;  %v4274_v45 = vrot.slane %v4272_v48, 4  ;;  %v4277_v21 = vrot.slane %v4275_v3, 5  ;;  %v5539_v54 = vrot.slane %v8859_v49, 5  ;;  %v15545_v3 = vpop.permute.xlu0 %4691  ;;  %16143 = vst [vmem:[#allocation41_spill] sm:$0xff] %v15547_v34 }
 0x2e6   :  { %v8782_v58 = vld [vmem:[%s16074_s0 + $0x184] sm:$0xf]  ;;  %v9458_v46 = vld [vmem:[#allocation2 + $0x358] ss:$20 sps:$4 sm:$0xff]   ;;  %v5542_v18 = vrot.slane %v8860_v57, 5 }
 0x2e7   :  { %4825 = vst.msk [vmem:[#allocation2 + $0x480] sm:$0xf] %vm51_vm3, %v8782_v58  ;;  %v4289_v42 = vrot.slane %v4288_v33, 4  ;;  %v4278_v37 = vor.u32 %v4277_v21, %v4274_v45  ;;  %v5540_v29 = vsel %vm10157_vm7, %v8892_v22, %v5539_v54  ;;  %v5541_v4 = vrot.slane %v5539_v54, 4  ;;  %v8781_v48 = vld [vmem:[%s16074_s0 + $0x180] sm:$0xf]  ;;  %9214 = vmatmul.mubr.msk.bf16.gmra.mxu0 %vm6944_vm8, %v9458_v46  ;;  %v7221_v45 = vpop.f32.mrf.mxu0 }
 0x2e8   :  { %5385 = vst.msk [vmem:[#allocation2 + $0x480] sm:$0xf] %vm615_vm4, %v5315_v24  ;;  %v8861_v58 = vld [vmem:[%s16074_s0 + $0x150] sm:$0xe]  ;;  %v8862_v22 = vld [vmem:[%s16074_s0 + $0x154] sm:$0xf] }
 0x2e9   :  { %5646 = vst.msk [vmem:[#allocation2 + $0x3a8] sm:$0xf] %vm51_vm3, %v5540_v29  ;;  %4824 = vst.msk [vmem:[#allocation2 + $0x46c] sm:$0xf] %vm51_vm3, %v8781_v48  ;;  %v8863_v24 = vld [vmem:[%s16074_s0 + $0x158] sm:$0x1]  ;;  %v4294_v49 = vsel %vm9562_vm2, %v4289_v42, %v4293_v17  ;;  %v5543_v55 = vsel %vm10157_vm7, %v5541_v4, %v5542_v18 }
 0x2ea   :  { %v4279_v46 = vrot.slane %v4278_v37, 4  ;;  %5384 = vst.msk [vmem:[#allocation2 + $0x46c] sm:$0xf] %vm615_vm4, %v5313_v61  ;;  %v9464_v57 = vld [vmem:[#allocation2 + $0x440] ss:$20 sps:$4 sm:$0xff]   ;;  %v8893_v21 = vrot.slane %v8861_v58, 9  ;;  %v15581_v37 = vpop.f32.mrf.mxu0  ;;  %v5319_v58 = vpop.permute.xlu1 %5318 }
 0x2eb   :  { %v9466_v33 = vld [vmem:[#allocation2 + $0x444] ss:$20 sps:$4 sm:$0xff]   ;;  %4424 = vst.msk [vmem:[#allocation2 + $0x47c] sm:$0xf] %vm51_vm3, %v4294_v49  ;;  %5647 = vst.msk [vmem:[#allocation2 + $0x3bc] sm:$0xf] %vm51_vm3, %v5543_v55 }
 0x2ec   :  { %v5546_v54 = vrot.slane %v8862_v22, 5  ;;  %v5549_v29 = vrot.slane %v8863_v24, 5  ;;  %4760 = vst.msk [vmem:[#allocation2 + $0x47c] sm:$0xf] %vm615_vm4, %v15462_v59  ;;  %v4284_v17 = vsel %vm9562_vm2, %v4279_v46, %v4283_v2  ;;  %7578 = vmatprep.mubr.bf16.mxu1 %v9466_v33  ;;  %v8685_v18 = vld [vmem:[%s16074_s0 + $0x184] sm:$0xf]  ;;  %v5317_v33 = vpop.permute.xlu0 %5316  ;;  %v7224_v45 = vpop.f32.mrf.mxu0 }
 0x2ed   :  { %v8686_v61 = vld [vmem:[%s16074_s0 + $0x188] sm:$0x1]  ;;  %v8684_v42 = vld [vmem:[%s16074_s0 + $0x180] sm:$0xf]  ;;  %16144 = vst [vmem:[#allocation42_spill] sm:$0xff] %v15581_v37  ;;  %v4305_v48 = vshll.u32 %v8685_v18, 16  ;;  %7579 = vmatmul.mubr.bf16.gmra.mxu1 %v9464_v57 }
 0x2ee   :  { %v9462_v4 = vld [vmem:[#allocation2 + $0x380] ss:$20 sps:$4 sm:$0xff]   ;;  %4423 = vst.msk [vmem:[#allocation2 + $0x468] sm:$0xf] %vm51_vm3, %v4284_v17  ;;  %v5547_v59 = vsel %vm10157_vm7, %v8893_v21, %v5546_v54  ;;  %v5548_v2 = vrot.slane %v5546_v54, 4  ;;  %v4309_v22 = vshrl.u32 %v8685_v18, 16 }
 0x2ef   :  { %4759 = vst.msk [vmem:[#allocation2 + $0x468] sm:$0xf] %vm615_vm4, %v15470_v38  ;;  %v4315_v24 = vshll.u32 %v8686_v61, 16  ;;  %v4296_v49 = vshrl.u32 %v8684_v42, 16  ;;  %v4299_v46 = vshll.u32 %v8684_v42, 16  ;;  %9217 = vmatprep.mubr.msk.bf16.mxu0 %vm6944_vm8, %v9462_v4  ;;  %v4307_v21 = vrot.slane %v4305_v48, 5  ;;  %v15602_v4 = vpop.f32.mrf.mxu1 }
 0x2f0   :  { %5648 = vst.msk [vmem:[#allocation2 + $0x3d0] sm:$0xf] %vm51_vm3, %v5547_v59  ;;  %v8864_v55 = vld [vmem:[%s16074_s0 + $0x15c] sm:$0xe]  ;;  %v5550_v57 = vsel %vm10157_vm7, %v5548_v2, %v5549_v29  ;;  %v8865_v38 = vld [vmem:[%s16074_s0 + $0x160] sm:$0xf] }
 0x2f1   :  { %v8866_v54 = vld [vmem:[%s16074_s0 + $0x164] sm:$0x1]  ;;  %v8894_v17 = vrot.slane %v8864_v55, 9  ;;  %5649 = vst.msk [vmem:[#allocation2 + $0x3e4] sm:$0xf] %vm51_vm3, %v5550_v57  ;;  %v4311_v18 = vrot.slane %v4309_v22, 4 }
 0x2f2   :  { %v4317_v61 = vrot.slane %v4315_v24, 5  ;;  %v4298_v42 = vrot.slane %v4296_v49, 4  ;;  %v4301_v59 = vrot.slane %v4299_v46, 5  ;;  %v5553_v45 = vrot.slane %v8865_v38, 5  ;;  %v8784_v2 = vld [vmem:[%s16074_s0 + $0x190] sm:$0xf]  ;;  %v7446_v24 = vpop.f32.mrf.mxu1 }
 0x2f3   :  { %v5556_v29 = vrot.slane %v8866_v54, 5  ;;  %v8783_v48 = vld [vmem:[%s16074_s0 + $0x18c] sm:$0xf]  ;;  %v9463_v37 = vld [vmem:[#allocation2 + $0x3a8] ss:$20 sps:$4 sm:$0xff]   ;;  %v4312_v55 = vor.u32 %v4311_v18, %v4307_v21  ;;  %v15625_v54 = vpop.permute.xlu1 %4697 }
 0x2f4   :  { %v4302_v34 = vor.u32 %v4301_v59, %v4298_v42  ;;  %4827 = vst.msk [vmem:[#allocation2 + $0x4a8] sm:$0xf] %vm51_vm3, %v8784_v2  ;;  %4826 = vst.msk [vmem:[#allocation2 + $0x494] sm:$0xf] %vm51_vm3, %v8783_v48  ;;  %v8867_v22 = vld [vmem:[%s16074_s0 + $0x168] sm:$0xe]  ;;  %v5554_v49 = vsel %vm10157_vm7, %v8894_v17, %v5553_v45  ;;  %9218 = vmatmul.mubr.msk.bf16.gmra.mxu0 %vm6944_vm8, %v9463_v37  ;;  %v15632_v59 = vpop.permute.xlu0 %4695 }
 0x2f5   :  { %v5555_v46 = vrot.slane %v5553_v45, 4  ;;  %5387 = vst.msk [vmem:[#allocation2 + $0x4a8] sm:$0xf] %vm615_vm4, %v5319_v58  ;;  %5386 = vst.msk [vmem:[#allocation2 + $0x494] sm:$0xf] %vm615_vm4, %v5317_v33  ;;  %v4313_v18 = vrot.slane %v4312_v55, 4  ;;  %v15634_v45 = vpop.f32.mrf.mxu1 }
 0x2f6   :  { %v8868_v57 = vld [vmem:[%s16074_s0 + $0x16c] sm:$0xf]  ;;  %v8869_v38 = vld [vmem:[%s16074_s0 + $0x170] sm:$0x1]  ;;  %v4303_v42 = vrot.slane %v4302_v34, 4  ;;  %v8895_v17 = vrot.slane %v8867_v22, 9 }
 0x2f7   :  { %5650 = vst.msk [vmem:[#allocation2 + $0x3f8] sm:$0xf] %vm51_vm3, %v5554_v49  ;;  %v5560_v58 = vrot.slane %v8868_v57, 5  ;;  %v8688_v33 = vld [vmem:[%s16074_s0 + $0x190] sm:$0xf]  ;;  %16145 = vst [vmem:[#allocation43_spill] sm:$0xff] %v15634_v45  ;;  %v5557_v2 = vsel %vm10157_vm7, %v5555_v46, %v5556_v29  ;;  %v4318_v34 = vsel %vm9562_vm2, %v4313_v18, %v4317_v61  ;;  %v7449_v29 = vpop.f32.mrf.mxu1 }
 0x2f8   :  { %v9469_v48 = vld [vmem:[#allocation2 + $0x468] ss:$20 sps:$4 sm:$0xff]   ;;  %v5563_v24 = vrot.slane %v8869_v38, 5  ;;  %v4308_v37 = vsel %vm9562_vm2, %v4303_v42, %v4307_v21  ;;  %5651 = vst.msk [vmem:[#allocation2 + $0x40c] sm:$0xf] %vm51_vm3, %v5557_v2  ;;  %v4329_v21 = vshll.u32 %v8688_v33, 16 }
 0x2f9   :  { %v9471_v55 = vld [vmem:[#allocation2 + $0x46c] ss:$20 sps:$4 sm:$0xff]   ;;  %v5561_v22 = vsel %vm10157_vm7, %v8895_v17, %v5560_v58  ;;  %v5562_v49 = vrot.slane %v5560_v58, 4  ;;  %v8689_v57 = vld [vmem:[%s16074_s0 + $0x194] sm:$0x1]  ;;  %v4333_v61 = vshrl.u32 %v8688_v33, 16  ;;  %v15663_v58 = vpop.f32.mrf.mxu0 }
 0x2fa   :  { %v9467_v46 = vld [vmem:[#allocation2 + $0x3d0] ss:$20 sps:$4 sm:$0xff]   ;;  %4426 = vst.msk [vmem:[#allocation2 + $0x4a4] sm:$0xf] %vm51_vm3, %v4318_v34  ;;  %4425 = vst.msk [vmem:[#allocation2 + $0x490] sm:$0xf] %vm51_vm3, %v4308_v37  ;;  %7586 = vmatprep.mubr.bf16.mxu1 %v9471_v55  ;;  %v5323_v34 = vpop.permute.xlu1 %5322 }
 0x2fb   :  { %5652 = vst.msk [vmem:[#allocation2 + $0x420] sm:$0xf] %vm51_vm3, %v5561_v22  ;;  %v5564_v38 = vsel %vm10157_vm7, %v5562_v49, %v5563_v24  ;;  %v4339_v18 = vshll.u32 %v8689_v57, 16  ;;  %v8687_v42 = vld [vmem:[%s16074_s0 + $0x18c] sm:$0xf]  ;;  %16146 = vst [vmem:[#allocation44_spill] sm:$0xff] %v15663_v58  ;;  %9221 = vmatprep.mubr.msk.bf16.mxu0 %vm6944_vm8, %v9467_v46  ;;  %7587 = vmatmul.mubr.bf16.gmra.mxu1 %v9469_v48  ;;  %v5321_v57 = vpop.permute.xlu0 %5320  ;;  %v7229_v29 = vpop.f32.mrf.mxu0 }
 0x2fc   :  { %4762 = vst.msk [vmem:[#allocation2 + $0x4a4] sm:$0xf] %vm615_vm4, %v15537_v7  ;;  %4761 = vst.msk [vmem:[#allocation2 + $0x490] sm:$0xf] %vm615_vm4, %v15545_v3  ;;  %v8870_v17 = vld [vmem:[%s16074_s0 + $0x174] sm:$0xe] }
 0x2fd   :  { %5653 = vst.msk [vmem:[#allocation2 + $0x434] sm:$0xf] %vm51_vm3, %v5564_v38  ;;  %v4331_v7 = vrot.slane %v4329_v21, 5  ;;  %v4335_v3 = vrot.slane %v4333_v61, 4  ;;  %v4320_v33 = vshrl.u32 %v8687_v42, 16  ;;  %v4323_v2 = vshll.u32 %v8687_v42, 16 }
 0x2fe   :  { %v8871_v24 = vld [vmem:[%s16074_s0 + $0x178] sm:$0xf]  ;;  %v4341_v37 = vrot.slane %v4339_v18, 5  ;;  %v8872_v55 = vld [vmem:[%s16074_s0 + $0x17c] sm:$0x1]  ;;  %v8896_v22 = vrot.slane %v8870_v17, 9  ;;  %v15681_v17 = vpop.f32.mrf.mxu0 }
 0x2ff   :  { %v5567_v49 = vrot.slane %v8871_v24, 5  ;;  %v4336_v46 = vor.u32 %v4335_v3, %v4331_v7  ;;  %v4322_v21 = vrot.slane %v4320_v33, 4  ;;  %v4325_v61 = vrot.slane %v4323_v2, 5  ;;  %v8786_v18 = vld [vmem:[%s16074_s0 + $0x19c] sm:$0xf]  ;;  %16147 = vst [vmem:[#allocation45_spill] sm:$0xff] %v15681_v17 }
 0x300   :  { %v5570_v38 = vrot.slane %v8872_v55, 5  ;;  %v8785_v58 = vld [vmem:[%s16074_s0 + $0x198] sm:$0xf]  ;;  %4829 = vst.msk [vmem:[#allocation2 + $0x4d0] sm:$0xf] %vm51_vm3, %v8786_v18 }
 0x301   :  { %v5568_v48 = vsel %vm10157_vm7, %v8896_v22, %v5567_v49  ;;  %v5569_v42 = vrot.slane %v5567_v49, 4  ;;  %v9468_v24 = vld [vmem:[#allocation2 + $0x3f8] ss:$20 sps:$4 sm:$0xff]   ;;  %v4337_v29 = vrot.slane %v4336_v46, 4  ;;  %v4326_v3 = vor.u32 %v4325_v61, %v4322_v21  ;;  %4828 = vst.msk [vmem:[#allocation2 + $0x4bc] sm:$0xf] %vm51_vm3, %v8785_v58  ;;  %v7232_v22 = vpop.f32.mrf.mxu0 }
 0x302   :  { %5654 = vst.msk [vmem:[#allocation2 + $0x448] sm:$0xf] %vm51_vm3, %v5568_v48  ;;  %v8873_v2 = vld [vmem:[%s16074_s0 + $0x180] sm:$0xe]  ;;  %v8874_v55 = vld [vmem:[%s16074_s0 + $0x184] sm:$0xf]  ;;  %9222 = vmatmul.mubr.msk.bf16.gmra.mxu0 %vm6944_vm8, %v9468_v24  ;;  %v15705_v48 = vpop.f32.mrf.mxu1 }
 0x303   :  { %v5571_v33 = vsel %vm10157_vm7, %v5569_v42, %v5570_v38  ;;  %5389 = vst.msk [vmem:[#allocation2 + $0x4d0] sm:$0xf] %vm615_vm4, %v5323_v34  ;;  %5388 = vst.msk [vmem:[#allocation2 + $0x4bc] sm:$0xf] %vm615_vm4, %v5321_v57  ;;  %v4342_v58 = vsel %vm9562_vm2, %v4337_v29, %v4341_v37  ;;  %v4327_v49 = vrot.slane %v4326_v3, 4  ;;  %v8897_v46 = vrot.slane %v8873_v2, 9  ;;  %v15700_v57 = vpop.permute.xlu1 %4701  ;;  %v15703_v38 = vpop.permute.xlu0 %4699 }
 0x304   :  { %5655 = vst.msk [vmem:[#allocation2 + $0x45c] sm:$0xf] %vm51_vm3, %v5571_v33  ;;  %v9474_v34 = vld [vmem:[#allocation2 + $0x490] ss:$20 sps:$4 sm:$0xff]   ;;  %v9472_v21 = vld [vmem:[#allocation2 + $0x420] ss:$20 sps:$4 sm:$0xff]   ;;  %v7454_v33 = vpop.f32.mrf.mxu1 }
 0x305   :  { %4428 = vst.msk [vmem:[#allocation2 + $0x4cc] sm:$0xf] %vm51_vm3, %v4342_v58  ;;  %v9476_v61 = vld [vmem:[#allocation2 + $0x494] ss:$20 sps:$4 sm:$0xff]   ;;  %16148 = vst [vmem:[#allocation46_spill] sm:$0xff] %v15705_v48  ;;  %v4332_v37 = vsel %vm9562_vm2, %v4327_v49, %v4331_v7  ;;  %v5574_v18 = vrot.slane %v8874_v55, 5  ;;  %9225 = vmatprep.mubr.msk.bf16.mxu0 %vm6944_vm8, %v9472_v21 }
 0x306   :  { %4764 = vst.msk [vmem:[#allocation2 + $0x4cc] sm:$0xf] %vm615_vm4, %v15625_v54  ;;  %v8875_v42 = vld [vmem:[%s16074_s0 + $0x188] sm:$0x1]  ;;  %v8691_v24 = vld [vmem:[%s16074_s0 + $0x19c] sm:$0xf]  ;;  %7594 = vmatprep.mubr.bf16.mxu1 %v9476_v61 }
 0x307   :  { %4427 = vst.msk [vmem:[#allocation2 + $0x4b8] sm:$0xf] %vm51_vm3, %v4332_v37  ;;  %v5577_v29 = vrot.slane %v8875_v42, 5  ;;  %v8692_v54 = vld [vmem:[%s16074_s0 + $0x1a0] sm:$0x1]  ;;  %v4353_v7 = vshll.u32 %v8691_v24, 16  ;;  %v5575_v2 = vsel %vm10157_vm7, %v8897_v46, %v5574_v18  ;;  %7595 = vmatmul.mubr.bf16.gmra.mxu1 %v9474_v34  ;;  %v15733_v42 = vpop.f32.mrf.mxu1  ;;  %v5327_v33 = vpop.permute.xlu1 %5326 }
 0x308   :  { %v4357_v3 = vshrl.u32 %v8691_v24, 16  ;;  %4763 = vst.msk [vmem:[#allocation2 + $0x4b8] sm:$0xf] %vm615_vm4, %v15632_v59  ;;  %v5576_v55 = vrot.slane %v5574_v18, 4  ;;  %v4363_v22 = vshll.u32 %v8692_v54, 16  ;;  %16149 = vst [vmem:[#allocation47_spill] sm:$0xff] %v15733_v42  ;;  %v5325_v17 = vpop.permute.xlu0 %5324 }
 0x309   :  { %v8690_v58 = vld [vmem:[%s16074_s0 + $0x198] sm:$0xf]  ;;  %v8876_v49 = vld [vmem:[%s16074_s0 + $0x18c] sm:$0xe]  ;;  %5656 = vst.msk [vmem:[#allocation2 + $0x470] sm:$0xf] %vm51_vm3, %v5575_v2  ;;  %v7457_v42 = vpop.f32.mrf.mxu1 }
 0x30a   :  { %v4355_v21 = vrot.slane %v4353_v7, 5  ;;  %v4359_v61 = vrot.slane %v4357_v3, 4  ;;  %v4344_v37 = vshrl.u32 %v8690_v58, 16  ;;  %v4347_v59 = vshll.u32 %v8690_v58, 16  ;;  %v8877_v34 = vld [vmem:[%s16074_s0 + $0x190] sm:$0xf] }
 0x30b   :  { %v5578_v46 = vsel %vm10157_vm7, %v5576_v55, %v5577_v29  ;;  %v4365_v18 = vrot.slane %v4363_v22, 5  ;;  %v8878_v24 = vld [vmem:[%s16074_s0 + $0x194] sm:$0x1]  ;;  %v8898_v54 = vrot.slane %v8876_v49, 9  ;;  %v9473_v7 = vld [vmem:[#allocation2 + $0x448] ss:$20 sps:$4 sm:$0xff]  }
 0x30c   :  { %5657 = vst.msk [vmem:[#allocation2 + $0x484] sm:$0xf] %vm51_vm3, %v5578_v46  ;;  %v4360_v3 = vor.u32 %v4359_v61, %v4355_v21  ;;  %v4346_v2 = vrot.slane %v4344_v37, 4  ;;  %v4349_v58 = vrot.slane %v4347_v59, 5  ;;  %v5581_v29 = vrot.slane %v8877_v34, 5  ;;  %9226 = vmatmul.mubr.msk.bf16.gmra.mxu0 %vm6944_vm8, %v9473_v7  ;;  %v15759_v59 = vpop.f32.mrf.mxu0 }
 0x30d   :  { %v5584_v55 = vrot.slane %v8878_v24, 5  ;;  %v8788_v22 = vld [vmem:[%s16074_s0 + $0x1a8] sm:$0xf]  ;;  %v8787_v48 = vld [vmem:[%s16074_s0 + $0x1a4] sm:$0xf] }
 0x30e   :  { %v4361_v49 = vrot.slane %v4360_v3, 4  ;;  %v4350_v45 = vor.u32 %v4349_v58, %v4346_v2  ;;  %4831 = vst.msk [vmem:[#allocation2 + $0x4f8] sm:$0xf] %vm51_vm3, %v8788_v22  ;;  %4830 = vst.msk [vmem:[#allocation2 + $0x4e4] sm:$0xf] %vm51_vm3, %v8787_v48  ;;  %v5582_v42 = vsel %vm10157_vm7, %v8898_v54, %v5581_v29  ;;  %v5583_v46 = vrot.slane %v5581_v29, 4  ;;  %v7237_v54 = vpop.f32.mrf.mxu0 }
 0x30f   :  { %v8879_v61 = vld [vmem:[%s16074_s0 + $0x198] sm:$0xe]  ;;  %v8880_v37 = vld [vmem:[%s16074_s0 + $0x19c] sm:$0xf]  ;;  %5391 = vst.msk [vmem:[#allocation2 + $0x4f8] sm:$0xf] %vm615_vm4, %v5327_v33 }
 0x310   :  { %5390 = vst.msk [vmem:[#allocation2 + $0x4e4] sm:$0xf] %vm615_vm4, %v5325_v17  ;;  %v8881_v48 = vld [vmem:[%s16074_s0 + $0x1a0] sm:$0x1]  ;;  %v8899_v34 = vrot.slane %v8879_v61, 9  ;;  %v5588_v24 = vrot.slane %v8880_v37, 5  ;;  %v4366_v7 = vsel %vm9562_vm2, %v4361_v49, %v4365_v18  ;;  %v5585_v17 = vsel %vm10157_vm7, %v5583_v46, %v5584_v55  ;;  %v15791_v37 = vpop.f32.mrf.mxu0 }
 0x311   :  { %v4351_v3 = vrot.slane %v4350_v45, 4  ;;  %5658 = vst.msk [vmem:[#allocation2 + $0x498] sm:$0xf] %vm51_vm3, %v5582_v42  ;;  %v9479_v2 = vld [vmem:[#allocation2 + $0x4b8] ss:$20 sps:$4 sm:$0xff]   ;;  %v5591_v22 = vrot.slane %v8881_v48, 5 }
 0x312   :  { %v9481_v58 = vld [vmem:[#allocation2 + $0x4bc] ss:$20 sps:$4 sm:$0xff]   ;;  %4430 = vst.msk [vmem:[#allocation2 + $0x4f4] sm:$0xf] %vm51_vm3, %v4366_v7  ;;  %v5589_v33 = vsel %vm10157_vm7, %v8899_v34, %v5588_v24  ;;  %v5590_v29 = vrot.slane %v5588_v24, 4  ;;  %v7240_v46 = vpop.f32.mrf.mxu0 }
 0x313   :  { %v8882_v18 = vld [vmem:[%s16074_s0 + $0x1a4] sm:$0xe]  ;;  %4766 = vst.msk [vmem:[#allocation2 + $0x4f4] sm:$0xf] %vm615_vm4, %v15700_v57  ;;  %v4356_v45 = vsel %vm9562_vm2, %v4351_v3, %v4355_v21  ;;  %7602 = vmatprep.mubr.bf16.mxu1 %v9481_v58  ;;  %v8883_v55 = vld [vmem:[%s16074_s0 + $0x1a8] sm:$0xf] }
 0x314   :  { %5659 = vst.msk [vmem:[#allocation2 + $0x4ac] sm:$0xf] %vm51_vm3, %v5585_v17  ;;  %5660 = vst.msk [vmem:[#allocation2 + $0x4c0] sm:$0xf] %vm51_vm3, %v5589_v33  ;;  %v8884_v49 = vld [vmem:[%s16074_s0 + $0x1ac] sm:$0x1]  ;;  %v5592_v23 = vsel %vm10157_vm7, %v5590_v29, %v5591_v22  ;;  %7603 = vmatmul.mubr.bf16.gmra.mxu1 %v9479_v2 }
 0x315   :  { %v8900_v61 = vrot.slane %v8882_v18, 9  ;;  %v9477_v57 = vld [vmem:[#allocation2 + $0x470] ss:$20 sps:$4 sm:$0xff]   ;;  %4429 = vst.msk [vmem:[#allocation2 + $0x4e0] sm:$0xf] %vm51_vm3, %v4356_v45  ;;  %v5595_v21 = vrot.slane %v8883_v55, 5 }
 0x316   :  { %v5598_v42 = vrot.slane %v8884_v49, 5  ;;  %4765 = vst.msk [vmem:[#allocation2 + $0x4e0] sm:$0xf] %vm615_vm4, %v15703_v38 }
 0x317   :  { %5661 = vst.msk [vmem:[#allocation2 + $0x4d4] sm:$0xf] %vm51_vm3, %v5592_v23 }
 0x318   :  { %9 = vsyncpa [#allocation4], 0  ;;  %9229 = vmatprep.mubr.msk.bf16.mxu0 %vm6944_vm8, %v9477_v57  ;;  %v5596_v48 = vsel %vm10157_vm7, %v8900_v61, %v5595_v21  ;;  %v5597_v34 = vrot.slane %v5595_v21, 4  ;;  %v15803_v24 = vpop.f32.mrf.mxu1  ;;  %v9486_v17 = vld [vmem:[#allocation2 + $0x4e4] ss:$20 sps:$4 sm:$0xff]   ;;  %v15812_v29 = vpop.f32.mrf.mxu0  ;;  %s9511_s0 = smov [#allocation3]  }
 0x319   :  { %5662 = vst.msk [vmem:[#allocation2 + $0x4e8] sm:$0xf] %vm51_vm3, %v5596_v48  ;;  %7610 = vmatprep.mubr.bf16.mxu1 %v9486_v17  ;;  %s8154_s10 = sshll.u32 %s9511_s0, 4  ;;  %s8155_s10 = int_to_ptr.vmem [resolvable:$true] %s8154_s10 }
 0x31a   :  { %v5599_v7 = vsel %vm10157_vm7, %v5597_v34, %v5598_v42  ;;  %v7462_v38 = vpop.f32.mrf.mxu1  ;;  %v7245_v28 = vpop.f32.mrf.mxu0  ;;  %s9487_s12 = scalar_lea.vmem %s8155_s10, 2048  ;;  %p9492_p1 = scmp.lt.s32.totalorder %s8155_s10, %s8155_s10 }
 0x31b   :  { %5663 = vst.msk [vmem:[#allocation2 + $0x4fc] sm:$0xf] %vm51_vm3, %v5599_v7  ;;  %v9478_v3 = vld [vmem:[#allocation2 + $0x498] ss:$20 sps:$4 sm:$0xff]   ;;  %v7365_v28 = vadd.f32 %v14633_v27, %v13195_v60  ;;  %p9488_p0 = scmp.ne.s32.totalorder %s8155_s10, %s9487_s12  ;;  %p9493_p2 = scmp.lt.s32.totalorder %s9487_s12, %s9487_s12 }
 0x31c   :  { %v15808_v2 = vpop.f32.mrf.mxu1  ;;  %9230 = vmatmul.mubr.msk.bf16.gmra.mxu0 %vm6944_vm8, %v9478_v3  ;;  %v15814_v18 = vpop.f32.mrf.mxu0 }
 0x31d   :  { %v9484_v54 = vld [vmem:[#allocation2 + $0x4e0] ss:$20 sps:$4 sm:$0xff]   ;;  %p9494_p3 = por %p9493_p2, %p9492_p1 }
 0x31e   :  { %v9482_v58 = vld [vmem:[#allocation2 + $0x4c0] ss:$20 sps:$4 sm:$0xff]   ;;  %v7465_v33 = vpop.f32.mrf.mxu1  ;;  %7611 = vmatmul.mubr.bf16.gmra.mxu1 %v9484_v54  ;;  %v7248_v45 = vpop.f32.mrf.mxu0 }
 0x31f   :  { %9233 = vmatprep.mubr.msk.bf16.mxu0 %vm6944_vm8, %v9482_v58  ;;  %p9495_p4 = pnand %p9494_p3, %p9488_p0 }
 0x320   :  { %v15817_v55 = vpop.f32.mrf.mxu1  ;;  %v15821_v23 = vpop.f32.mrf.mxu0 }
 0x322   :  { %v9483_v22 = vld [vmem:[#allocation2 + $0x4e8] ss:$20 sps:$4 sm:$0xff]   ;;  %v7470_v49 = vpop.f32.mrf.mxu1  ;;  %v7253_v21 = vpop.f32.mrf.mxu0 }
 0x324   :  { %9234 = vmatmul.mubr.msk.bf16.gmra.mxu0 %vm6944_vm8, %v9483_v22  ;;  %v15819_v61 = vpop.f32.mrf.mxu1  ;;  %v15823_v42 = vpop.f32.mrf.mxu0 }
 0x325   :  { %16150 = vst [vmem:[#allocation48_spill] sm:$0xff] %v15823_v42  ;;  %v7376_v42 = vadd.f32 %v14795_v47, %v13345_v53 }
 0x326   :  { %v7473_v57 = vpop.f32.mrf.mxu1  ;;  %v7256_v46 = vpop.f32.mrf.mxu0 }
 0x328   :  { %v15825_v48 = vpop.f32.mrf.mxu1  ;;  %v15829_v3 = vpop.f32.mrf.mxu0 }
 0x329   :  { %16151 = vst [vmem:[#allocation49_spill] sm:$0xff] %v15829_v3  ;;  %v7373_v3 = vadd.f32 %v14764_v40, %v13302_v51  ;;  %v7381_v51 = vadd.f32 %v14861_v14, %v13402_v16 }
 0x32a   :  { %v7478_v34 = vpop.f32.mrf.mxu1  ;;  %v7261_v58 = vpop.f32.mrf.mxu0 }
 0x32b   :  { %v7368_v34 = vadd.f32 %v14667_v63, %v13242_v15 }
 0x32c   :  { %v15827_v7 = vpop.f32.mrf.mxu1  ;;  %v15831_v54 = vpop.f32.mrf.mxu0 }
 0x32d   :  { %16152 = vst [vmem:[#allocation50_spill] sm:$0xff] %v15831_v54 }
 0x32e   :  { %v7481_v38 = vpop.f32.mrf.mxu1  ;;  %v7264_v17 = vpop.f32.mrf.mxu0 }
 0x330   :  { %v15833_v33 = vpop.f32.mrf.mxu1  ;;  %v9175_v22 = vpop.f32.mrf.mxu0 }
 0x332   :  { %v7486_v45 = vpop.f32.mrf.mxu1  ;;  %v7653_v49 = vpop.f32.mrf.mxu0 }
 0x333   :  { %v7654_v57 = vadd.f32 %v7653_v49, %v7365_v28  ;;  %v7662_v45 = vadd.f32 %v9175_v22, %v7373_v3 }
 0x334   :  { %v15837_v21 = vpop.f32.mrf.mxu1  ;;  %v9176_v46 = vpop.f32.mrf.mxu0 }
 0x335   :  { %7916 = vxpose.xlu0.b32.start [1/16] (narrow) %v7654_v57, 32  ;;  %v7665_v57 = vadd.f32 %v9176_v46, %v7376_v42 }
 0x336   :  { %v7489_v38 = vpop.f32.mrf.mxu1  ;;  %v7656_v58 = vpop.f32.mrf.mxu0 }
 0x337   :  { %v7657_v54 = vadd.f32 %v7656_v58, %v7368_v34  ;;  %v7384_v58 = vadd.f32 %v14887_v10, %v13476_v1 }
 0x338   :  { %v15841_v17 = vpop.f32.mrf.mxu1  ;;  %v9179_v60 = vpop.f32.mrf.mxu0 }
 0x339   :  { %7917 = vxpose.xlu0.b32.cont [2/16] (narrow) %v7657_v54, 32 }
 0x33a   :  { %v7494_v27 = vpop.f32.mrf.mxu1  ;;  %v7669_v28 = vpop.f32.mrf.mxu0 }
 0x33b   :  { %v7670_v54 = vadd.f32 %v7669_v28, %v7381_v51 }
 0x33c   :  { %v15845_v49 = vpop.f32.mrf.mxu1  ;;  %v9180_v15 = vpop.f32.mrf.mxu0 }
 0x33d   :  { %7918 = vxpose.xlu0.b32.cont [3/16] (narrow) %v7662_v45, 32  ;;  %v7389_v45 = vadd.f32 %v14944_v12, %v13531_v30 }
 0x33e   :  { %v7497_v63 = vpop.f32.mrf.mxu1  ;;  %v7672_v34 = vpop.f32.mrf.mxu0 }
 0x33f   :  { %v7673_v27 = vadd.f32 %v7672_v34, %v7384_v58  ;;  %v7678_v28 = vadd.f32 %v9179_v60, %v7389_v45 }
 0x340   :  { %v15849_v38 = vpop.f32.mrf.mxu1  ;;  %v9183_v3 = vpop.f32.mrf.mxu0 }
 0x341   :  { %7919 = vxpose.xlu0.b32.cont [4/16] (narrow) %v7665_v57, 32  ;;  %v7392_v57 = vadd.f32 %v14972_v44, %v13591_v56 }
 0x342   :  { %v7502_v40 = vpop.f32.mrf.mxu1  ;;  %v7685_v53 = vpop.f32.mrf.mxu0 }
 0x343   :  { %v7681_v51 = vadd.f32 %v9180_v15, %v7392_v57  ;;  %v7405_v15 = vadd.f32 %v15104_v50, %v13785_v8  ;;  %v7432_v8 = vadd.f32 %v15420_v20, %v14577_v11  ;;  %v7416_v11 = vadd.f32 %v15235_v25, %v14280_v52 }
 0x344   :  { %v15853_v22 = vpop.f32.mrf.mxu1  ;;  %v9184_v42 = vpop.f32.mrf.mxu0 }
 0x345   :  { %7920 = vxpose.xlu0.b32.cont [5/16] (narrow) %v7670_v54, 32  ;;  %v7397_v54 = vadd.f32 %v15018_v26, %v13651_v9  ;;  %v7429_v9 = vadd.f32 %v15392_v0, %v14528_v13  ;;  %v7694_v26 = vadd.f32 %v9183_v3, %v7405_v15  ;;  %v7413_v13 = vadd.f32 %v15201_v62, %v14211_v36  ;;  %v16154_v15 = vld [vmem:[#allocation23_spill] sm:$0xff] }
 0x346   :  { %v7505_v47 = vpop.f32.mrf.mxu1  ;;  %v7688_v16 = vpop.f32.mrf.mxu0  ;;  %v7440_v36 = vadd.f32 %v15525_v35, %v14712_v19  ;;  %v7445_v52 = vadd.f32 %v15602_v4, %v16154_v15  ;;  %v16155_v35 = vld [vmem:[#allocation20_spill] sm:$0xff] }
 0x347   :  { %v7686_v58 = vadd.f32 %v7685_v53, %v7397_v54  ;;  %v7400_v47 = vadd.f32 %v15051_v31, %v13702_v32  ;;  %v7408_v32 = vadd.f32 %v15146_v39, %v13831_v43  ;;  %v7437_v43 = vadd.f32 %v15494_v6, %v14665_v41  ;;  %v16153_v6 = vld [vmem:[#allocation35_spill] sm:$0xff] }
 0x348   :  { %v15857_v46 = vpop.f32.mrf.mxu1 }
 0x349   :  { %7921 = vxpose.xlu0.b32.cont [6/16] (narrow) %v7673_v27, 32  ;;  %v9187_v1 = vpop.f32.mrf.mxu0  ;;  %v7689_v27 = vadd.f32 %v7688_v16, %v7400_v47  ;;  %v7697_v50 = vadd.f32 %v9184_v42, %v7408_v32 }
 0x34a   :  { %v7510_v14 = vpop.f32.mrf.mxu1 }
 0x34b   :  { %v7701_v34 = vpop.f32.mrf.mxu0 }
 0x34c   :  { %v15861_v63 = vpop.f32.mrf.mxu1  ;;  %v7702_v39 = vadd.f32 %v7701_v34, %v7413_v13  ;;  %v7421_v34 = vadd.f32 %v16153_v6, %v14378_v5 }
 0x34d   :  { %7922 = vxpose.xlu0.b32.cont [7/16] (narrow) %v7678_v28, 32  ;;  %v9188_v30 = vpop.f32.mrf.mxu0 }
 0x34e   :  { %v7513_v10 = vpop.f32.mrf.mxu1 }
 0x34f   :  { %v7704_v56 = vpop.f32.mrf.mxu0 }
 0x350   :  { %v15865_v40 = vpop.f32.mrf.mxu1  ;;  %v7705_v42 = vadd.f32 %v7704_v56, %v7416_v11 }
 0x351   :  { %7923 = vxpose.xlu0.b32.cont [8/16] (narrow) %v7681_v51, 32 }
 0x352   :  { %v7518_v12 = vpop.f32.mrf.mxu1 }
 0x354   :  { %v15869_v60 = vpop.f32.mrf.mxu1 }
 0x355   :  { %7924 = vxpose.xlu0.b32.cont [9/16] (narrow) %v7686_v58, 32 }
 0x356   :  { %v7521_v44 = vpop.f32.mrf.mxu1 }
 0x358   :  { %v15875_v14 = vpop.f32.mrf.mxu1 }
 0x359   :  { %v9191_v45 = vpop.f32.mrf.mxu0  ;;  %7925 = vxpose.xlu0.b32.cont [10/16] (narrow) %v7689_v27, 32 }
 0x35a   :  { %v7526_v28 = vpop.f32.mrf.mxu1  ;;  %v7726_v12 = vadd.f32 %v9191_v45, %v7437_v43  ;;  %v7710_v45 = vadd.f32 %v9187_v1, %v7421_v34  ;;  %v16160_v1 = vld [vmem:[#allocation46_spill] sm:$0xff] }
 0x35b   :  { %v7717_v53 = vpop.f32.mrf.mxu0  ;;  %v16157_v28 = vld [vmem:[#allocation24_spill] sm:$0xff] }
 0x35c   :  { %v7718_v57 = vadd.f32 %v7717_v53, %v7429_v9  ;;  %v15881_v10 = vpop.f32.mrf.mxu1 }
 0x35d   :  { %v9192_v31 = vpop.f32.mrf.mxu0  ;;  %7926 = vxpose.xlu0.b32.cont [11/16] (narrow) %v7694_v26, 32  ;;  %v16156_v26 = vld [vmem:[#allocation36_spill] sm:$0xff] }
 0x35e   :  { %7948 = vxpose.xlu1.b32.start [1/16] (narrow) %v7718_v57, 32  ;;  %v7529_v51 = vpop.f32.mrf.mxu1  ;;  %v7729_v44 = vadd.f32 %v9192_v31, %v7440_v36  ;;  %v7424_v56 = vadd.f32 %v16156_v26, %v16155_v35  ;;  %v16158_v57 = vld [vmem:[#allocation43_spill] sm:$0xff]  ;;  %v16165_v26 = vld [vmem:[#allocation29_spill] sm:$0xff] }
 0x35f   :  { %v7720_v16 = vpop.f32.mrf.mxu0  ;;  %v7448_v5 = vadd.f32 %v16158_v57, %v16157_v28 }
 0x360   :  { %v7721_v54 = vadd.f32 %v7720_v16, %v7432_v8  ;;  %v7713_v31 = vadd.f32 %v9188_v30, %v7424_v56  ;;  %v16159_v16 = vld [vmem:[#allocation25_spill] sm:$0xff] }
 0x361   :  { %7927 = vxpose.xlu0.b32.cont [12/16] (narrow) %v7697_v50, 32  ;;  %v7453_v51 = vadd.f32 %v16160_v1, %v16159_v16 }
 0x362   :  { %v15887_v0 = vpop.f32.mrf.mxu1  ;;  %7949 = vxpose.xlu1.b32.cont [2/16] (narrow) %v7721_v54, 32 }
 0x364   :  { %v7534_v3 = vpop.f32.mrf.mxu1 }
 0x365   :  { %7928 = vxpose.xlu0.b32.cont [13/16] (narrow) %v7702_v39, 32  ;;  %v16161_v39 = vld [vmem:[#allocation26_spill] sm:$0xff]  ;;  %v16162_v3 = vld [vmem:[#allocation47_spill] sm:$0xff] }
 0x366   :  { %v15893_v20 = vpop.f32.mrf.mxu1  ;;  %7950 = vxpose.xlu1.b32.cont [3/16] (narrow) %v7726_v12, 32  ;;  %v7456_v12 = vadd.f32 %v16162_v3, %v16161_v39  ;;  %v16169_v39 = vld [vmem:[#allocation31_spill] sm:$0xff] }
 0x368   :  { %v9195_v58 = vpop.f32.mrf.mxu0  ;;  %v7537_v47 = vpop.f32.mrf.mxu1 }
 0x369   :  { %7929 = vxpose.xlu0.b32.cont [14/16] (narrow) %v7705_v42, 32  ;;  %v7742_v13 = vadd.f32 %v9195_v58, %v7453_v51  ;;  %v16163_v42 = vld [vmem:[#allocation27_spill] sm:$0xff] }
 0x36a   :  { %v7733_v62 = vpop.f32.mrf.mxu0  ;;  %7951 = vxpose.xlu1.b32.cont [4/16] (narrow) %v7729_v44, 32  ;;  %v7461_v47 = vadd.f32 %v15803_v24, %v16163_v42  ;;  %v7469_v24 = vadd.f32 %v15817_v55, %v16165_v26 }
 0x36b   :  { %v7734_v19 = vadd.f32 %v7733_v62, %v7445_v52  ;;  %v16164_v52 = vld [vmem:[#allocation28_spill] sm:$0xff] }
 0x36c   :  { %v9196_v41 = vpop.f32.mrf.mxu0  ;;  %v15899_v27 = vpop.f32.mrf.mxu1 }
 0x36d   :  { %7930 = vxpose.xlu0.b32.cont [15/16] (narrow) %v7710_v45, 32  ;;  %v7745_v62 = vadd.f32 %v9196_v41, %v7456_v12 }
 0x36e   :  { %v7736_v25 = vpop.f32.mrf.mxu0  ;;  %v7542_v9 = vpop.f32.mrf.mxu1  ;;  %7952 = vxpose.xlu1.b32.cont [5/16] (narrow) %v7734_v19, 32 }
 0x36f   :  { %v7737_v50 = vadd.f32 %v7736_v25, %v7448_v5  ;;  %v7464_v25 = vadd.f32 %v15808_v2, %v16164_v52  ;;  %v16166_v5 = vld [vmem:[#allocation37_spill] sm:$0xff] }
 0x370   :  { %v15905_v53 = vpop.f32.mrf.mxu1 }
 0x371   :  { %7931 = vxpose.xlu0.b32.end [16/16] (narrow) %v7713_v31, 32  ;;  %v7493_v31 = vadd.f32 %v15841_v17, %v16166_v5 }
 0x372   :  { %v7545_v8 = vpop.f32.mrf.mxu1  ;;  %7953 = vxpose.xlu1.b32.cont [6/16] (narrow) %v7737_v50, 32 }
 0x373   :  { %v9199_v32 = vpop.f32.mrf.mxu0  ;;  %v16167_v8 = vld [vmem:[#allocation30_spill] sm:$0xff] }
 0x374   :  { %v7758_v28 = vadd.f32 %v9199_v32, %v7469_v24  ;;  %v7472_v2 = vadd.f32 %v15819_v61, %v16167_v8  ;;  %v7477_v32 = vadd.f32 %v15825_v48, %v16169_v39  ;;  %v16172_v48 = vld [vmem:[#allocation40_spill] sm:$0xff] }
 0x375   :  { %v7749_v4 = vpop.f32.mrf.mxu0  ;;  %v7504_v52 = vadd.f32 %v15853_v22, %v16172_v48 }
 0x376   :  { %7954 = vxpose.xlu1.b32.cont [7/16] (narrow) %v7742_v13, 32  ;;  %v7750_v34 = vadd.f32 %v7749_v4, %v7461_v47  ;;  %v16168_v13 = vld [vmem:[#allocation38_spill] sm:$0xff] }
 0x377   :  { %v9200_v54 = vpop.f32.mrf.mxu0  ;;  %v7496_v55 = vadd.f32 %v15845_v49, %v16168_v13 }
 0x378   :  { %v7761_v16 = vadd.f32 %v9200_v54, %v7472_v2  ;;  %v16176_v2 = vld [vmem:[#allocation42_spill] sm:$0xff] }
 0x379   :  { %v7752_v11 = vpop.f32.mrf.mxu0 }
 0x37a   :  { %7955 = vxpose.xlu1.b32.cont [8/16] (narrow) %v7745_v62, 32  ;;  %v7753_v19 = vadd.f32 %v7752_v11, %v7464_v25  ;;  %v16171_v62 = vld [vmem:[#allocation32_spill] sm:$0xff] }
 0x37b   :  { %v15911_v43 = vpop.f32.mrf.mxu1  ;;  %v7480_v42 = vadd.f32 %v15827_v7, %v16171_v62 }
 0x37d   :  { %v7550_v36 = vpop.f32.mrf.mxu1 }
 0x37e   :  { %7956 = vxpose.xlu1.b32.cont [9/16] (narrow) %v7750_v34, 32  ;;  %v16170_v36 = vld [vmem:[#allocation39_spill] sm:$0xff] }
 0x37f   :  { %v15915_v30 = vpop.f32.mrf.mxu1  ;;  %v7501_v54 = vadd.f32 %v15849_v38, %v16170_v36 }
 0x381   :  { %v7553_v6 = vpop.f32.mrf.mxu1 }
 0x382   :  { %v9203_v44 = vpop.f32.mrf.mxu0  ;;  %7957 = vxpose.xlu1.b32.cont [10/16] (narrow) %v7753_v19, 32 }
 0x384   :  { %v7765_v15 = vpop.f32.mrf.mxu0 }
 0x385   :  { %v7766_v11 = vadd.f32 %v7765_v15, %v7477_v32  ;;  %v16173_v15 = vld [vmem:[#allocation33_spill] sm:$0xff] }
 0x386   :  { %v15919_v58 = vpop.f32.mrf.mxu1  ;;  %v9204_v45 = vpop.f32.mrf.mxu0  ;;  %7958 = vxpose.xlu1.b32.cont [11/16] (narrow) %v7758_v28, 32 }
 0x388   :  { %v7558_v9 = vpop.f32.mrf.mxu1  ;;  %v7768_v41 = vpop.f32.mrf.mxu0 }
 0x389   :  { %v7769_v34 = vadd.f32 %v7768_v41, %v7480_v42  ;;  %v7485_v9 = vadd.f32 %v15833_v33, %v16173_v15  ;;  %v16175_v41 = vld [vmem:[#allocation34_spill] sm:$0xff] }
 0x38a   :  { %v15923_v35 = vpop.f32.mrf.mxu1  ;;  %7959 = vxpose.xlu1.b32.cont [12/16] (narrow) %v7761_v16, 32  ;;  %v7488_v22 = vadd.f32 %v15837_v21, %v16175_v41 }
 0x38b   :  { %v7774_v24 = vadd.f32 %v9203_v44, %v7485_v9 }
 0x38c   :  { %v7561_v56 = vpop.f32.mrf.mxu1  ;;  %v7777_v33 = vadd.f32 %v9204_v45, %v7488_v22 }
 0x38d   :  { %v16174_v56 = vld [vmem:[#allocation41_spill] sm:$0xff] }
 0x38e   :  { %v9207_v57 = vpop.f32.mrf.mxu0  ;;  %7960 = vxpose.xlu1.b32.cont [13/16] (narrow) %v7766_v11, 32  ;;  %v7509_v28 = vadd.f32 %v15857_v46, %v16174_v56  ;;  %v15957_v46 = vpop.permute.xlu0 %7982 }
 0x38f   :  { %v7790_v47 = vadd.f32 %v9207_v57, %v7501_v54 }
 0x390   :  { %v7781_v50 = vpop.f32.mrf.mxu0 }
 0x391   :  { %v7782_v4 = vadd.f32 %v7781_v50, %v7493_v31  ;;  %v7512_v50 = vadd.f32 %v15861_v63, %v16176_v2 }
 0x392   :  { %v9208_v1 = vpop.f32.mrf.mxu0  ;;  %7961 = vxpose.xlu1.b32.cont [14/16] (narrow) %v7769_v34, 32 }
 0x393   :  { %v15931_v51 = vpop.f32.mrf.mxu1  ;;  %8052 = vxpose.xlu0.b32.start [1/16] (narrow) %v7782_v4, 32  ;;  %v7793_v38 = vadd.f32 %v9208_v1, %v7504_v52  ;;  %v16177_v1 = vld [vmem:[#allocation44_spill] sm:$0xff] }
 0x394   :  { %v7784_v3 = vpop.f32.mrf.mxu0  ;;  %v7517_v13 = vadd.f32 %v15865_v40, %v16177_v1  ;;  %v7525_v40 = vadd.f32 %v15875_v14, %v15759_v59  ;;  %v7533_v59 = vadd.f32 %v15887_v0, %v15812_v29 }
 0x395   :  { %v7566_v17 = vpop.f32.mrf.mxu1  ;;  %v7785_v12 = vadd.f32 %v7784_v3, %v7496_v55  ;;  %v16178_v3 = vld [vmem:[#allocation45_spill] sm:$0xff] }
 0x396   :  { %7962 = vxpose.xlu1.b32.cont [15/16] (narrow) %v7774_v24, 32  ;;  %v7520_v63 = vadd.f32 %v15869_v60, %v16178_v3  ;;  %v7528_v60 = vadd.f32 %v15881_v10, %v15791_v37  ;;  %v16179_v37 = vld [vmem:[#allocation6_spill] sm:$0xff]  ;;  %v7536_v24 = vadd.f32 %v15893_v20, %v15814_v18  ;;  %v7541_v18 = vadd.f32 %v15899_v27, %v15821_v23  ;;  %v16182_v23 = vld [vmem:[#allocation48_spill] sm:$0xff] }
 0x397   :  { %v15937_v61 = vpop.f32.mrf.mxu1  ;;  %8053 = vxpose.xlu0.b32.cont [2/16] (narrow) %v7785_v12, 32  ;;  %v15967_v12 = vpop.permute.xlu0 %7992  ;;  %v7557_v10 = vadd.f32 %v15919_v58, %v16179_v37  ;;  %v7544_v27 = vadd.f32 %v15905_v53, %v16182_v23 }
 0x399   :  { %v7569_v49 = vpop.f32.mrf.mxu1 }
 0x39a   :  { %7963 = vxpose.xlu1.b32.end [16/16] (narrow) %v7777_v33, 32 }
 0x39b   :  { %v9211_v6 = vpop.f32.mrf.mxu0  ;;  %8054 = vxpose.xlu0.b32.cont [3/16] (narrow) %v7790_v47, 32  ;;  %v15973_v49 = vpop.permute.xlu0 %8010 }
 0x39c   :  { %v7806_v39 = vadd.f32 %v9211_v6, %v7517_v13  ;;  %v16181_v13 = vld [vmem:[#allocation8_spill] sm:$0xff] }
 0x39d   :  { %v7797_v25 = vpop.f32.mrf.mxu0 }
 0x39e   :  { %v7798_v31 = vadd.f32 %v7797_v25, %v7509_v28  ;;  %v15981_v25 = vpop.permute.xlu1 %7987 }
 0x39f   :  { %v15947_v19 = vpop.f32.mrf.mxu1  ;;  %v9212_v26 = vpop.f32.mrf.mxu0  ;;  %8055 = vxpose.xlu0.b32.cont [4/16] (narrow) %v7793_v38, 32 }
 0x3a0   :  { %v7809_v11 = vadd.f32 %v9212_v26, %v7520_v63  ;;  %v15987_v15 = vpop.permute.xlu0 %8020 }
 0x3a1   :  { %v7574_v7 = vpop.f32.mrf.mxu1  ;;  %v7800_v57 = vpop.f32.mrf.mxu0 }
 0x3a2   :  { %v7801_v44 = vadd.f32 %v7800_v57, %v7512_v50  ;;  %v15993_v57 = vpop.permute.xlu1 %7997 }
 0x3a3   :  { %v15953_v5 = vpop.f32.mrf.mxu1  ;;  %8056 = vxpose.xlu0.b32.cont [5/16] (narrow) %v7798_v31, 32  ;;  %v16180_v31 = vld [vmem:[#allocation7_spill] sm:$0xff] }
 0x3a4   :  { %v7560_v33 = vadd.f32 %v15923_v35, %v16180_v31  ;;  %v7565_v35 = vadd.f32 %v15931_v51, %v16181_v13  ;;  %v16183_v51 = vld [vmem:[#allocation9_spill] sm:$0xff] }
 0x3a5   :  { %v7577_v8 = vpop.f32.mrf.mxu1 }
 0x3a7   :  { %v9215_v4 = vpop.f32.mrf.mxu0  ;;  %8057 = vxpose.xlu0.b32.cont [6/16] (narrow) %v7801_v44, 32 }
 0x3a8   :  { %v7822_v9 = vadd.f32 %v9215_v4, %v7533_v59 }
 0x3a9   :  { %v7813_v16 = vpop.f32.mrf.mxu0 }
 0x3aa   :  { %v7814_v42 = vadd.f32 %v7813_v16, %v7525_v40 }
 0x3ab   :  { %v9216_v21 = vpop.f32.mrf.mxu0  ;;  %8058 = vxpose.xlu0.b32.cont [7/16] (narrow) %v7806_v39, 32 }
 0x3ac   :  { %v7825_v0 = vadd.f32 %v9216_v21, %v7536_v24  ;;  %v16008_v21 = vpop.permute.xlu1 %8015  ;;  %v16185_v24 = vld [vmem:[#allocation10_spill] sm:$0xff] }
 0x3ad   :  { %v15961_v55 = vpop.f32.mrf.mxu1  ;;  %v7816_v32 = vpop.f32.mrf.mxu0 }
 0x3ae   :  { %v7817_v34 = vadd.f32 %v7816_v32, %v7528_v60  ;;  %v16184_v60 = vld [vmem:[#allocation49_spill] sm:$0xff] }
 0x3af   :  { %v7582_v45 = vpop.f32.mrf.mxu1  ;;  %8059 = vxpose.xlu0.b32.cont [8/16] (narrow) %v7809_v11, 32 }
 0x3b1   :  { %v15965_v17 = vpop.f32.mrf.mxu1  ;;  %v7932_v56 = vpop.trf.xlu0 }
 0x3b2   :  { %v8000_v29 = vmul.f32 %v15957_v46, %v7932_v56 }
 0x3b3   :  { %v7585_v36 = vpop.f32.mrf.mxu1  ;;  %8060 = vxpose.xlu0.b32.cont [9/16] (narrow) %v7814_v42, 32  ;;  %v7568_v42 = vadd.f32 %v15937_v61, %v16183_v51  ;;  %v7573_v61 = vadd.f32 %v15947_v19, %v16185_v24 }
 0x3b4   :  { %v15969_v54 = vpop.f32.mrf.mxu0  ;;  %v8028_v58 = vadd.f32 %v15973_v49, %v8000_v29 }
 0x3b5   :  { %v7933_v4 = vpop.trf.xlu0 }
 0x3b6   :  { %v7829_v62 = vpop.f32.mrf.mxu0  ;;  %v8036_v50 = vmax.f32 %v8028_v58, 0.0  ;;  %v8002_v1 = vmul.f32 %v15981_v25, %v7933_v4  ;;  %v16187_v58 = vld [vmem:[#allocation11_spill] sm:$0xff] }
 0x3b7   :  { %8061 = vxpose.xlu0.b32.cont [10/16] (narrow) %v7817_v34, 32  ;;  %v7830_v44 = vadd.f32 %v7829_v62, %v7541_v18  ;;  %v7549_v34 = vadd.f32 %v15911_v43, %v16184_v60  ;;  %v16186_v43 = vld [vmem:[#allocation50_spill] sm:$0xff]  ;;  %v7576_v19 = vadd.f32 %v15953_v5, %v16187_v58 }
 0x3b8   :  { %v15975_v47 = vpop.f32.mrf.mxu0  ;;  %8044 = vst [vmem:[#allocation3] sm:$0xff] %v8036_v50  ;;  %v8030_v32 = vadd.f32 %v16008_v21, %v8002_v1  ;;  %v7552_v56 = vadd.f32 %v15915_v30, %v16186_v43  ;;  %v16188_v30 = vld [vmem:[#allocation12_spill] sm:$0xff] }
 0x3b9   :  { %v7934_v63 = vpop.trf.xlu0 }
 0x3ba   :  { %v7832_v48 = vpop.f32.mrf.mxu0  ;;  %v8038_v40 = vmax.f32 %v8030_v32, 0.0  ;;  %v8004_v62 = vmul.f32 %v15967_v12, %v7934_v63 }
 0x3bb   :  { %v15979_v6 = vpop.f32.mrf.mxu1  ;;  %8062 = vxpose.xlu0.b32.cont [11/16] (narrow) %v7822_v9, 32  ;;  %v7833_v11 = vadd.f32 %v7832_v48, %v7544_v27  ;;  %v7838_v48 = vadd.f32 %v15969_v54, %v7549_v34  ;;  %v16190_v27 = vld [vmem:[#allocation14_spill] sm:$0xff] }
 0x3bc   :  { %8046 = vst [vmem:[#allocation3 + $0x10] sm:$0xff] %v8038_v40  ;;  %v8032_v53 = vadd.f32 %v15987_v15, %v8004_v62  ;;  %v16193_v62 = vld [vmem:[#allocation17_spill] sm:$0xff] }
 0x3bd   :  { %v7590_v52 = vpop.f32.mrf.mxu1  ;;  %v7935_v9 = vpop.trf.xlu0 }
 0x3be   :  { %v8040_v37 = vmax.f32 %v8032_v53, 0.0 }
 0x3bf   :  { %v15985_v14 = vpop.f32.mrf.mxu1  ;;  %8063 = vxpose.xlu0.b32.cont [12/16] (narrow) %v7825_v0, 32  ;;  %v7841_v0 = vadd.f32 %v15975_v47, %v7552_v56  ;;  %v16189_v47 = vld [vmem:[#allocation13_spill] sm:$0xff] }
 0x3c0   :  { %8048 = vst [vmem:[#allocation3 + $0x20] sm:$0xff] %v8040_v37  ;;  %v7584_v1 = vadd.f32 %v15965_v17, %v16189_v47  ;;  %v16195_v37 = vld [vmem:[#allocation19_spill] sm:$0xff] }
 0x3c1   :  { %v7593_v26 = vpop.f32.mrf.mxu1 }
 0x3c2   :  { %v9223_v38 = vpop.f32.mrf.mxu0 }
 0x3c3   :  { %8064 = vxpose.xlu0.b32.cont [13/16] (narrow) %v7830_v44, 32  ;;  %v7854_v3 = vadd.f32 %v9223_v38, %v7565_v35 }
 0x3c4   :  { %v7845_v7 = vpop.f32.mrf.mxu0 }
 0x3c5   :  { %v7846_v28 = vadd.f32 %v7845_v7, %v7557_v10  ;;  %v8006_v10 = vmul.f32 %v15993_v57, %v7935_v9  ;;  %v16023_v7 = vpop.permute.xlu1 %8025 }
 0x3c6   :  { %v9224_v41 = vpop.f32.mrf.mxu0 }
 0x3c7   :  { %v15996_v22 = vpop.f32.mrf.mxu1  ;;  %8084 = vxpose.xlu1.b32.start [1/16] (narrow) %v7846_v28, 32  ;;  %8065 = vxpose.xlu0.b32.cont [14/16] (narrow) %v7833_v11, 32  ;;  %v7857_v59 = vadd.f32 %v9224_v41, %v7568_v42  ;;  %v8034_v29 = vadd.f32 %v16023_v7, %v8006_v10 }
 0x3c8   :  { %v7848_v20 = vpop.f32.mrf.mxu0 }
 0x3c9   :  { %v7598_v8 = vpop.f32.mrf.mxu1  ;;  %v7849_v2 = vadd.f32 %v7848_v20, %v7560_v33  ;;  %v8042_v33 = vmax.f32 %v8034_v29, 0.0 }
 0x3ca   :  { %v7581_v8 = vadd.f32 %v15961_v55, %v16188_v30  ;;  %v16191_v55 = vld [vmem:[#allocation15_spill] sm:$0xff] }
 0x3cb   :  { %v16003_v16 = vpop.f32.mrf.mxu1  ;;  %8085 = vxpose.xlu1.b32.cont [2/16] (narrow) %v7849_v2, 32  ;;  %8066 = vxpose.xlu0.b32.cont [15/16] (narrow) %v7838_v48, 32  ;;  %8050 = vst [vmem:[#allocation3 + $0x30] sm:$0xff] %v8042_v33  ;;  %v7592_v63 = vadd.f32 %v15985_v14, %v16191_v55  ;;  %v16194_v14 = vld [vmem:[#allocation18_spill] sm:$0xff] }
 0x3cc   :  { %v9227_v39 = vpop.f32.mrf.mxu0  ;;  %v7600_v51 = vadd.f32 %v16003_v16, %v16193_v62 }
 0x3cd   :  { %v7601_v45 = vpop.f32.mrf.mxu1  ;;  %v7870_v50 = vadd.f32 %v9227_v39, %v7581_v8  ;;  %v16192_v39 = vld [vmem:[#allocation16_spill] sm:$0xff] }
 0x3ce   :  { %v7861_v36 = vpop.f32.mrf.mxu0  ;;  %v7589_v45 = vadd.f32 %v15979_v6, %v16190_v27  ;;  %v7597_v11 = vadd.f32 %v15996_v22, %v16192_v39 }
 0x3cf   :  { %8086 = vxpose.xlu1.b32.cont [3/16] (narrow) %v7854_v3, 32  ;;  %v7862_v54 = vadd.f32 %v7861_v36, %v7573_v61  ;;  %8067 = vxpose.xlu0.b32.end [16/16] (narrow) %v7841_v0, 32 }
 0x3d0   :  { %v9228_v38 = vpop.f32.mrf.mxu0 }
 0x3d1   :  { %v7873_v35 = vadd.f32 %v9228_v38, %v7584_v1 }
 0x3d2   :  { %v7864_v41 = vpop.f32.mrf.mxu0 }
 0x3d3   :  { %8087 = vxpose.xlu1.b32.cont [4/16] (narrow) %v7857_v59, 32  ;;  %v7865_v18 = vadd.f32 %v7864_v41, %v7576_v19  ;;  %v16197_v19 = vld [vmem:[#allocation22_spill] sm:$0xff] }
 0x3d4   :  { %v7604_v52 = vpop.f32.mrf.mxu1 }
 0x3d5   :  { %v7605_v59 = vadd.f32 %v7604_v52, %v16194_v14 }
 0x3d6   :  { %v7606_v26 = vpop.f32.mrf.mxu1 }
 0x3d7   :  { %8088 = vxpose.xlu1.b32.cont [5/16] (narrow) %v7862_v54, 32  ;;  %v16196_v54 = vld [vmem:[#allocation21_spill] sm:$0xff] }
 0x3d8   :  { %v7607_v28 = vpop.f32.mrf.mxu1 }
 0x3d9   :  { %v7608_v10 = vadd.f32 %v7607_v28, %v16195_v37 }
 0x3da   :  { %v7609_v31 = vpop.f32.mrf.mxu1  ;;  %v7964_v42 = vpop.trf.xlu1 }
 0x3db   :  { %8089 = vxpose.xlu1.b32.cont [6/16] (narrow) %v7865_v18, 32  ;;  %v8001_v6 = vmul.f32 %v15957_v46, %v7964_v42 }
 0x3dc   :  { %v9231_v20 = vpop.f32.mrf.mxu0 }
 0x3dd   :  { %v7886_v40 = vadd.f32 %v9231_v20, %v7597_v11  ;;  %v8029_v34 = vadd.f32 %v15973_v49, %v8001_v6 }
 0x3de   :  { %v7612_v2 = vpop.f32.mrf.mxu1  ;;  %v7877_v4 = vpop.f32.mrf.mxu0 }
 0x3df   :  { %8090 = vxpose.xlu1.b32.cont [7/16] (narrow) %v7870_v50, 32  ;;  %v7878_v32 = vadd.f32 %v7877_v4, %v7589_v45  ;;  %v7965_v9 = vpop.trf.xlu1  ;;  %v8037_v22 = vmax.f32 %v8029_v34, 0.0  ;;  %v7613_v0 = vadd.f32 %v7612_v2, %v16196_v54 }
 0x3e0   :  { %v7614_v44 = vpop.f32.mrf.mxu1  ;;  %v9232_v5 = vpop.f32.mrf.mxu0  ;;  %v8003_v38 = vmul.f32 %v15981_v25, %v7965_v9 }
 0x3e1   :  { %v7889_v53 = vadd.f32 %v9232_v5, %v7600_v51  ;;  %8045 = vst [vmem:[#allocation3 + $0x8] sm:$0xff] %v8037_v22 }
 0x3e2   :  { %v7615_v13 = vpop.f32.mrf.mxu1  ;;  %v7880_v3 = vpop.f32.mrf.mxu0  ;;  %v8031_v26 = vadd.f32 %v16008_v21, %v8003_v38 }
 0x3e3   :  { %8091 = vxpose.xlu1.b32.cont [8/16] (narrow) %v7873_v35, 32  ;;  %v7881_v36 = vadd.f32 %v7880_v3, %v7592_v63  ;;  %v7966_v24 = vpop.trf.xlu1  ;;  %v7616_v18 = vadd.f32 %v7615_v13, %v16197_v19 }
 0x3e4   :  { %v7617_v23 = vpop.f32.mrf.mxu1  ;;  %v9235_v17 = vpop.f32.mrf.mxu0  ;;  %v8039_v43 = vmax.f32 %v8031_v26, 0.0  ;;  %v8005_v56 = vmul.f32 %v15967_v12, %v7966_v24 }
 0x3e5   :  { %v7902_v58 = vadd.f32 %v9235_v17, %v7613_v0 }
 0x3e6   :  { %v7893_v60 = vpop.f32.mrf.mxu0  ;;  %8047 = vst [vmem:[#allocation3 + $0x18] sm:$0xff] %v8039_v43  ;;  %v8033_v52 = vadd.f32 %v15987_v15, %v8005_v56 }
 0x3e7   :  { %8092 = vxpose.xlu1.b32.cont [9/16] (narrow) %v7878_v32, 32  ;;  %v7894_v16 = vadd.f32 %v7893_v60, %v7605_v59  ;;  %v7967_v41 = vpop.trf.xlu1 }
 0x3e8   :  { %v9236_v48 = vpop.f32.mrf.mxu0  ;;  %v8041_v31 = vmax.f32 %v8033_v52, 0.0  ;;  %v8007_v33 = vmul.f32 %v15993_v57, %v7967_v41 }
 0x3e9   :  { %v7905_v30 = vadd.f32 %v9236_v48, %v7616_v18 }
 0x3ea   :  { %v7896_v61 = vpop.f32.mrf.mxu0  ;;  %8049 = vst [vmem:[#allocation3 + $0x28] sm:$0xff] %v8041_v31  ;;  %v8035_v28 = vadd.f32 %v16023_v7, %v8007_v33 }
 0x3eb   :  { %8093 = vxpose.xlu1.b32.cont [10/16] (narrow) %v7881_v36, 32  ;;  %v7897_v29 = vadd.f32 %v7896_v61, %v7608_v10 }
 0x3ec   :  { %v8043_v20 = vmax.f32 %v8035_v28, 0.0 }
 0x3ee   :  { %8051 = vst [vmem:[#allocation3 + $0x38] sm:$0xff] %v8043_v20 }
 0x3ef   :  { %8094 = vxpose.xlu1.b32.cont [11/16] (narrow) %v7886_v40, 32 }
 0x3f3   :  { %8095 = vxpose.xlu1.b32.cont [12/16] (narrow) %v7889_v53, 32 }
 0x3f7   :  { %8096 = vxpose.xlu1.b32.cont [13/16] (narrow) %v7894_v16, 32 }
 0x3fb   :  { %8097 = vxpose.xlu1.b32.cont [14/16] (narrow) %v7897_v29, 32 }
 0x3ff   :  { %8098 = vxpose.xlu1.b32.cont [15/16] (narrow) %v7902_v58, 32 }
 0x403   :  { %8099 = vxpose.xlu1.b32.end [16/16] (narrow) %v7905_v30, 32 }
 0x40f   :  { %v8068_v8 = vpop.trf.xlu0 }
 0x410   :  { %v8116_v50 = vmul.f32 %v8068_v8, %v15957_v46 }
 0x412   :  { %v8124_v2 = vadd.f32 %v8116_v50, %v15973_v49 }
 0x413   :  { %v8069_v4 = vpop.trf.xlu0 }
 0x414   :  { %v8132_v44 = vmax.f32 %v8124_v2, 0.0  ;;  %v8118_v47 = vmul.f32 %v8069_v4, %v15981_v25 }
 0x416   :  { %8141 = vst [vmem:[#allocation3 + $0x40] sm:$0xff] %v8132_v44  ;;  %v8126_v1 = vadd.f32 %v8118_v47, %v16008_v21 }
 0x417   :  { %v8070_v35 = vpop.trf.xlu0 }
 0x418   :  { %v8134_v5 = vmax.f32 %v8126_v1, 0.0  ;;  %v8120_v13 = vmul.f32 %v8070_v35, %v15967_v12 }
 0x41a   :  { %8143 = vst [vmem:[#allocation3 + $0x50] sm:$0xff] %v8134_v5  ;;  %v8128_v23 = vadd.f32 %v8120_v13, %v15987_v15 }
 0x41b   :  { %v8071_v27 = vpop.trf.xlu0 }
 0x41c   :  { %v8136_v45 = vmax.f32 %v8128_v23, 0.0  ;;  %v8122_v32 = vmul.f32 %v8071_v27, %v15993_v57 }
 0x41e   :  { %8145 = vst [vmem:[#allocation3 + $0x60] sm:$0xff] %v8136_v45  ;;  %v8130_v3 = vadd.f32 %v8122_v32, %v16023_v7 }
 0x420   :  { %v8138_v55 = vmax.f32 %v8130_v3, 0.0 }
 0x422   :  { %8147 = vst [vmem:[#allocation3 + $0x70] sm:$0xff] %v8138_v55 }
 0x443   :  { %v8100_v63 = vpop.trf.xlu1 }
 0x444   :  { %v8117_v39 = vmul.f32 %v8100_v63, %v15957_v46 }
 0x446   :  { %v8125_v11 = vadd.f32 %v8117_v39, %v15973_v49 }
 0x447   :  { %v8101_v36 = vpop.trf.xlu1 }
 0x448   :  { %v8133_v17 = vmax.f32 %v8125_v11, 0.0  ;;  %v8119_v40 = vmul.f32 %v8101_v36, %v15981_v25 }
 0x44a   :  { %8142 = vst [vmem:[#allocation3 + $0x48] sm:$0xff] %v8133_v17  ;;  %v8127_v62 = vadd.f32 %v8119_v40, %v16008_v21 }
 0x44b   :  { %v8102_v51 = vpop.trf.xlu1 }
 0x44c   :  { %v8135_v42 = vmax.f32 %v8127_v62, 0.0  ;;  %v8121_v60 = vmul.f32 %v8102_v51, %v15967_v12 }
 0x44e   :  { %8144 = vst [vmem:[#allocation3 + $0x58] sm:$0xff] %v8135_v42  ;;  %v8129_v6 = vadd.f32 %v8121_v60, %v15987_v15 }
 0x44f   :  { %v8103_v34 = vpop.trf.xlu1 }
 0x450   :  { %v8137_v53 = vmax.f32 %v8129_v6, 0.0  ;;  %v8123_v46 = vmul.f32 %v8103_v34, %v15993_v57 }
 0x452   :  { %8146 = vst [vmem:[#allocation3 + $0x68] sm:$0xff] %v8137_v53  ;;  %v8131_v49 = vadd.f32 %v8123_v46, %v16023_v7 }
 0x454   :  { %v8139_v25 = vmax.f32 %v8131_v49, 0.0 }
 0x456   :  { %8148 = vst [vmem:[#allocation3 + $0x78] sm:$0xff] %v8139_v25 }
 0x457   :  { %9498 = shalt.err (!%p9495_p4)
}
 0x458   :  { %s9512_s13 = smov 256   ;;  %s9513_s14 = smov 16  }
 0x459   :  { %8160 = dma.vmem_to_hbm [thread:$0]  %s8155_s10, 2048, %s16078_s4, [#allocation4], %s9512_s13, %s9512_s13, %s9513_s14  }
 0x45a   :  { %9507 = dma.done.wait [#allocation4], 2048  }
 0x45b   :  { %9508 = vsyncadd [#allocation4], 4294965248 }
 0x45c   :  { %8164 = vsyncpa [#allocation4], 1 }

</bundles_post_ra>
